<compile_context>
chip_gen: v7x
topology: tpu7x:2x2x1
jax: 0.10.0
libtpu: 0.0.40
codegen_flags: <defaults>
</compile_context>

<pallas_src>
import functools

import jax
import jax.numpy as jnp
from jax.experimental import pallas as pl
from jax.experimental.pallas import tpu as pltpu

LEAKY_SLOPE = 0.2
BN_EPS = 1e-5

# VMEM planning: keep live (double-buffered) kernel data under ~20 MiB and set
# the scoped limit to 32 MiB explicitly -- safe on v5e (128 MiB physical /
# 16 MiB scoped default), v6e (128/32) and v7x (64/32).
_VMEM_LIMIT = 32 * 1024 * 1024
_VMEM_BUDGET = 20 * 1024 * 1024
_TM_CANDIDATES = (16384, 8192, 4096, 2048, 1024, 512, 256, 128, 64, 32, 16, 8)


def _round_up(x, m):
    return (x + m - 1) // m * m


def _pad_rows(a, mp):
    m = a.shape[0]
    if mp != m:
        a = jnp.pad(a, ((0, mp - m), (0, 0)))
    return a


def _plan_matmul_tiles(mp, k, n, out_bytes):
    """Pick (tm, tk). Prefer full-K (single K step, VMEM-resident weights);
    fall back to tk=512 K-splitting only if full-K blows the VMEM budget."""
    def footprint(tm, tk):
        a = 2 * tm * tk * 2          # A, bf16, double-buffered
        b = 2 * tk * n * 2           # B, bf16, double-buffered (resident if tk==k)
        o = 2 * tm * n * out_bytes   # output tile, double-buffered
        acc = tm * n * 4             # f32 accumulator scratch
        return a + b + o + acc
    tk_options = [k]
    if k > 512 and k % 512 == 0:
        tk_options.append(512)
    for tk in tk_options:
        for tm in _TM_CANDIDATES:
            if mp % tm == 0 and footprint(tm, tk) <= _VMEM_BUDGET:
                return tm, tk
    return 8, tk_options[-1]


def _plan_rows_tile(mp, n, bytes_per_elem=2):
    """Row tile for the elementwise BN+LeakyReLU pass: ~2 MiB tiles (>=85% of
    HBM roofline per measurements) while amortizing the ~0.35 us/step cost."""
    for tm in _TM_CANDIDATES:
        if mp % tm == 0 and tm * n * bytes_per_elem <= (2 << 20):
            return tm
    return 8


def _apply_act(z, act):
    if act == "leaky":
        return jnp.where(z >= 0, z, LEAKY_SLOPE * z)
    if act == "sigmoid":
        return jax.nn.sigmoid(z)
    return z


# ----------------------------- Pallas kernels ------------------------------ #

def _mm_act_kernel(a_ref, b_ref, o_ref, acc_ref, *, act):
    """Tiled (M,K)@(K,N) with f32 accumulator; activation epilogue on last K."""
    k = pl.program_id(1)

    @pl.when(k == 0)
    def _():
        acc_ref[...] = jnp.zeros_like(acc_ref)

    acc_ref[...] += jnp.dot(a_ref[...], b_ref[...],
                            preferred_element_type=jnp.float32)

    @pl.when(k == pl.num_programs(1) - 1)
    def _():
        o_ref[...] = _apply_act(acc_ref[...], act).astype(o_ref.dtype)


def _mm_stats_kernel(a_ref, b_ref, o_ref, sum_ref, sq_ref, acc_ref):
    """Tiled matmul whose epilogue also emits PER-M-TILE partial channel sums
    and sums-of-squares (BatchNorm batch stats). Each M tile owns its own
    (1, 1, N) output row, so the M grid axis can be "parallel" (megacore-safe
    on v7x); the cheap cross-tile reduction is done on the host."""
    k = pl.program_id(1)

    @pl.when(k == 0)
    def _():
        acc_ref[...] = jnp.zeros_like(acc_ref)

    acc_ref[...] += jnp.dot(a_ref[...], b_ref[...],
                            preferred_element_type=jnp.float32)

    @pl.when(k == pl.num_programs(1) - 1)
    def _():
        y = acc_ref[...]
        o_ref[...] = y.astype(o_ref.dtype)
        sum_ref[0] = jnp.sum(y, axis=0, keepdims=True)
        sq_ref[0] = jnp.sum(y * y, axis=0, keepdims=True)


def _affine_act_kernel(y_ref, scale_ref, bias_ref, o_ref, *, act):
    """act(y * scale + bias); bf16 I/O, f32 math; scale/bias broadcast rows."""
    z = y_ref[...].astype(jnp.float32) * scale_ref[...] + bias_ref[...]
    o_ref[...] = _apply_act(z, act).astype(o_ref.dtype)


# ---------------------------- kernel wrappers ------------------------------ #

def matmul_act(a, b, act="none", out_dtype=jnp.bfloat16):
    """a:(M,K), b:(K,N) -> act(a @ b). bf16 MXU operands, f32 accumulation.
    Returns the ROW-PADDED (mp, N) result; caller slices to M if needed."""
    m, k = a.shape
    k2, n = b.shape
    assert k == k2
    a = a.astype(jnp.bfloat16)
    b = b.astype(jnp.bfloat16)
    mp = _round_up(m, 8)
    a = _pad_rows(a, mp)
    tm, tk = _plan_matmul_tiles(mp, k, n, jnp.dtype(out_dtype).itemsize)

    out = pl.pallas_call(
        functools.partial(_mm_act_kernel, act=act),
        out_shape=jax.ShapeDtypeStruct((mp, n), out_dtype),
        grid_spec=pltpu.PrefetchScalarGridSpec(
            num_scalar_prefetch=0,
            grid=(mp // tm, k // tk),
            in_specs=[
                pl.BlockSpec((tm, tk), lambda i, kk: (i, kk)),
                # full-K case: block index is constant -> B fetched once.
                pl.BlockSpec((tk, n), lambda i, kk: (kk, 0)),
            ],
            out_specs=pl.BlockSpec((tm, n), lambda i, kk: (i, 0)),
            scratch_shapes=[pltpu.VMEM((tm, n), jnp.float32)],
        ),
        compiler_params=pltpu.CompilerParams(
            dimension_semantics=("parallel", "arbitrary"),
            vmem_limit_bytes=_VMEM_LIMIT),
    )(a, b)
    return out


def matmul_with_stats(a, b, out_dtype=jnp.bfloat16):
    """Returns (row-padded a@b, per-column sum, per-column sum of squares).
    Stats are exact over the REAL rows only (zero padded rows of the bias-free
    conv contribute zero)."""
    m, k = a.shape
    k2, n = b.shape
    assert k == k2
    a = a.astype(jnp.bfloat16)
    b = b.astype(jnp.bfloat16)
    mp = _round_up(m, 8)
    a = _pad_rows(a, mp)
    tm, tk = _plan_matmul_tiles(mp, k, n, jnp.dtype(out_dtype).itemsize)
    nm, nk = mp // tm, k // tk

    y, psum, psq = pl.pallas_call(
        _mm_stats_kernel,
        out_shape=(
            jax.ShapeDtypeStruct((mp, n), out_dtype),
            jax.ShapeDtypeStruct((nm, 1, n), jnp.float32),
            jax.ShapeDtypeStruct((nm, 1, n), jnp.float32),
        ),
        grid_spec=pltpu.PrefetchScalarGridSpec(
            num_scalar_prefetch=0,
            grid=(nm, nk),
            in_specs=[
                pl.BlockSpec((tm, tk), lambda i, kk: (i, kk)),
                pl.BlockSpec((tk, n), lambda i, kk: (kk, 0)),
            ],
            out_specs=[
                pl.BlockSpec((tm, n), lambda i, kk: (i, 0)),
                pl.BlockSpec((1, 1, n), lambda i, kk: (i, 0, 0)),
                pl.BlockSpec((1, 1, n), lambda i, kk: (i, 0, 0)),
            ],
            scratch_shapes=[pltpu.VMEM((tm, n), jnp.float32)],
        ),
        # Per-M-tile partial stats -> the M axis is safely "parallel"
        # (both v7x TensorCores active on the compute-bound BN-conv layers).
        compiler_params=pltpu.CompilerParams(
            dimension_semantics=("parallel", "arbitrary"),
            vmem_limit_bytes=_VMEM_LIMIT),
    )(a, b)
    ssum = jnp.sum(psum[:, 0, :], axis=0)
    ssq = jnp.sum(psq[:, 0, :], axis=0)
    return y, ssum, ssq


def affine_act(y, scale, bias, act="leaky", out_dtype=jnp.bfloat16):
    """Row-tiled act(y*scale + bias); y is already row-padded; bf16 I/O."""
    mp, n = y.shape
    tm = _plan_rows_tile(mp, n, jnp.dtype(y.dtype).itemsize)
    s = scale.reshape(1, n).astype(jnp.float32)
    b = bias.reshape(1, n).astype(jnp.float32)

    out = pl.pallas_call(
        functools.partial(_affine_act_kernel, act=act),
        out_shape=jax.ShapeDtypeStruct((mp, n), out_dtype),
        grid_spec=pltpu.PrefetchScalarGridSpec(
            num_scalar_prefetch=0,
            grid=(mp // tm,),
            in_specs=[
                pl.BlockSpec((tm, n), lambda i: (i, 0)),
                pl.BlockSpec((1, n), lambda i: (0, 0)),
                pl.BlockSpec((1, n), lambda i: (0, 0)),
            ],
            out_specs=pl.BlockSpec((tm, n), lambda i: (i, 0)),
        ),
        compiler_params=pltpu.CompilerParams(
            dimension_semantics=("parallel",),
            vmem_limit_bytes=_VMEM_LIMIT),
    )(y, s, b)
    return out


# ------------------------------- conv glue --------------------------------- #

def im2col(x, k, stride, pad):
    """x:(N,H,W,C) -> (N*OH*OW, k*k*C) bf16 patches, feature order (kh,kw,c)."""
    n, h, w, c = x.shape
    x = x.astype(jnp.bfloat16)
    if pad:
        x = jnp.pad(x, ((0, 0), (pad, pad), (pad, pad), (0, 0)))
    oh = (h + 2 * pad - k) // stride + 1
    ow = (w + 2 * pad - k) // stride + 1
    cols = []
    for kh in range(k):
        for kw in range(k):
            cols.append(
                x[:, kh:kh + stride * oh:stride, kw:kw + stride * ow:stride, :])
    patches = jnp.concatenate(cols, axis=-1)  # (N, OH, OW, k*k*C)
    # TODO(synk): avoid materializing the 4x im2col matrix for the early
    # memory-bound layers by generating patches in-kernel from a VMEM-resident
    # activation slab (manual DMA / pl.ANY path).
    return patches.reshape(n * oh * ow, k * k * c), (n, oh, ow)


def _weight_matrix(w):
    """PyTorch (Cout, Cin, KH, KW) -> (KH*KW*Cin, Cout) matching patch order."""
    cout, cin, kh, kw = w.shape
    return jnp.transpose(w, (2, 3, 1, 0)).reshape(kh * kw * cin, cout)


def conv2d_act(x, w, stride, pad, act="none", out_dtype=jnp.bfloat16):
    """Bias-free conv (NHWC) + optional activation; matmul runs on the MXU."""
    cout = w.shape[0]
    a, (n, oh, ow) = im2col(x, w.shape[2], stride, pad)
    m = n * oh * ow
    y = matmul_act(a, _weight_matrix(w), act=act, out_dtype=out_dtype)
    if y.shape[0] != m:
        y = y[:m]
    return y.reshape(n, oh, ow, cout)


def conv2d_bn_leaky(x, w, gamma, beta, stride, pad):
    """Conv -> BatchNorm2d (training-mode batch stats) -> LeakyReLU(0.2)."""
    cout = w.shape[0]
    a, (n, oh, ow) = im2col(x, w.shape[2], stride, pad)
    m = n * oh * ow
    y, ssum, ssq = matmul_with_stats(a, _weight_matrix(w))  # y row-padded
    count = jnp.float32(m)
    mean = ssum / count
    var = jnp.maximum(ssq / count - mean * mean, 0.0)  # biased variance
    # Note: stats come from bf16xbf16 MXU products (f32 accumulate) and a
    # one-pass E[x^2]-E[x]^2 -> tiny drift vs PyTorch's two-pass f32 BN.
    inv = gamma.astype(jnp.float32) / jnp.sqrt(var + BN_EPS)
    scale = inv
    bias = beta.astype(jnp.float32) - mean * inv
    out = affine_act(y, scale, bias, act="leaky")  # stays row-padded
    if out.shape[0] != m:
        out = out[:m]
    return out.reshape(n, oh, ow, cout)


def _pad_cout_to_lanes(w, lanes=128):
    """Zero-pad output channels to a lane-dense width (used only for the tiny
    head matmul, where the padding cost is nil)."""
    cout = w.shape[0]
    if cout >= lanes:
        return w
    return jnp.pad(w, ((0, lanes - cout), (0, 0), (0, 0), (0, 0)))


# ------------------------------ Discriminator ------------------------------ #

class DiscriminatorPallas:
    def __init__(self, number_channel=3, image_size=64, num_classes=10,
                 key=jax.random.PRNGKey(42)):
        nc, ndf = number_channel, image_size
        ks = jax.random.split(key, 6)

        def w_init(k, shape):
            return 0.02 * jax.random.normal(k, shape, jnp.float32)

        self.w1 = w_init(ks[0], (ndf, nc, 4, 4))
        self.w2 = w_init(ks[1], (ndf * 2, ndf, 4, 4))
        self.w3 = w_init(ks[2], (ndf * 4, ndf * 2, 4, 4))
        self.w4 = w_init(ks[3], (ndf * 8, ndf * 4, 4, 4))
        self.w_rf = w_init(ks[4], (1, ndf * 8, 4, 4))
        self.w_lbl = w_init(ks[5], (num_classes, ndf * 8, 4, 4))
        # BatchNorm2d affine params (PyTorch init: gamma=1, beta=0)
        self.g2 = jnp.ones((ndf * 2,), jnp.float32)
        self.b2 = jnp.zeros((ndf * 2,), jnp.float32)
        self.g3 = jnp.ones((ndf * 4,), jnp.float32)
        self.b3 = jnp.zeros((ndf * 4,), jnp.float32)
        self.g4 = jnp.ones((ndf * 8,), jnp.float32)
        self.b4 = jnp.zeros((ndf * 8,), jnp.float32)
        # TODO(synk): the ngpu>1 nn.parallel.data_parallel branch has no TPU
        # equivalent here; single-device path is implemented.

    def __call__(self, inp_nchw, classify=False):
        x = jnp.transpose(inp_nchw, (0, 2, 3, 1))  # NCHW -> NHWC

        # self.main (bf16 inter-layer activations; f32 accumulation inside).
        # NB: layer-1 Cout (=ndf) may be <128 lanes; padding it is only worth
        # it if the store slot binds -- left unpadded per the bundle guidance.
        f = conv2d_act(x, self.w1, stride=2, pad=1, act="leaky")
        f = conv2d_bn_leaky(f, self.w2, self.g2, self.b2, stride=2, pad=1)
        f = conv2d_bn_leaky(f, self.w3, self.g3, self.b3, stride=2, pad=1)
        f = conv2d_bn_leaky(f, self.w4, self.g4, self.b4, stride=2, pad=1)

        # heads: 4x4 valid conv -> 1x1 spatial.  Both heads share one im2col,
        # are fused into one single-grid-step matmul, and their (tiny) output
        # width is padded to 128 lanes for dense stores.
        if classify:
            w_heads = jnp.concatenate([self.w_rf, self.w_lbl], axis=0)
            n_real = w_heads.shape[0]
            y = conv2d_act(f, _pad_cout_to_lanes(w_heads), stride=1, pad=0,
                           act="none", out_dtype=jnp.float32)[..., :n_real]
            rf = jnp.transpose(jax.nn.sigmoid(y[..., :1]), (0, 3, 1, 2))
            lbl = jnp.transpose(y[..., 1:], (0, 3, 1, 2))
            return rf, lbl
        y = conv2d_act(f, _pad_cout_to_lanes(self.w_rf), stride=1, pad=0,
                       act="none", out_dtype=jnp.float32)[..., :1]
        return jnp.transpose(jax.nn.sigmoid(y), (0, 3, 1, 2))


if __name__ == "__main__":
    # The architecture requires 64x64 spatial input (four stride-2 convs then
    # a 4x4 valid conv), so keep spatial fixed and shrink the channel widths
    # (image_size=8 -> channel widths 8/16/32/64) for a small deterministic run.
    batch, nc, num_classes = 2, 3, 10
    key = jax.random.PRNGKey(0)
    k_x, k_w = jax.random.split(key)
    x = jax.random.normal(k_x, (batch, nc, 64, 64), jnp.float32)

    model = DiscriminatorPallas(number_channel=nc, image_size=8,
                                num_classes=num_classes, key=k_w)

    fwd = jax.jit(lambda inp: model(inp, classify=True))
    real_fake, labels = fwd(x)
    real_fake, labels = jax.block_until_ready((real_fake, labels))

    assert real_fake.shape == (batch, 1, 1, 1), real_fake.shape
    assert labels.shape == (batch, num_classes, 1, 1), labels.shape
    assert bool(jnp.all(jnp.isfinite(real_fake))) and bool(jnp.all(jnp.isfinite(labels)))
    assert bool(jnp.all((real_fake >= 0.0) & (real_fake <= 1.0)))  # sigmoid range

    print("KERNEL_OK")
</pallas_src>

<mosaic_0001>
module attributes {stable_mosaic.version = 11 : i64} {
  func.func @_mm_act_kernel(%arg0: i32, %arg1: i32, %arg2: memref<2048x48xbf16, #tpu.memory_space<vmem>>, %arg3: memref<48x8xbf16, #tpu.memory_space<vmem>>, %arg4: memref<2048x8xbf16, #tpu.memory_space<vmem>>, %arg5: memref<2048x8xf32, #tpu.memory_space<vmem>>) attributes {dimension_semantics = [#tpu.dimension_semantics<parallel>, #tpu.dimension_semantics<arbitrary>], iteration_bounds = array<i64: 1, 1>, scalar_prefetch = 0 : i64, scratch_operands = 1 : i64, tpu.core_type = #tpu.core_type<tc>, window_params = [{transform_indices = @transform_0, window_bounds = array<i64: 2048, 48>}, {transform_indices = @transform_1, window_bounds = array<i64: 48, 8>}, {transform_indices = @transform_2, window_bounds = array<i64: 2048, 8>}]} {
    %c0_i32 = arith.constant 0 : i32
    %0 = arith.cmpi eq, %arg1, %c0_i32 : i32
    %1 = arith.extui %0 : i1 to i32
    %c0_i32_0 = arith.constant 0 : i32
    %2 = arith.cmpi ne, %1, %c0_i32_0 : i32
    scf.if %2 {
      %cst_10 = arith.constant 0.000000e+00 : f32
      %12 = vector.broadcast %cst_10 : f32 to vector<2048x8xf32>
      %c0_11 = arith.constant 0 : index
      %c0_12 = arith.constant 0 : index
      %13 = vector.load %arg5[%c0_11, %c0_12] : memref<2048x8xf32, #tpu.memory_space<vmem>>, vector<2048x8xf32>
      tpu.vector_store %arg5[%c0_11, %c0_12], %12 {strides = array<i32>} : memref<2048x8xf32, #tpu.memory_space<vmem>>, vector<2048x8xf32>,
    } else {
    }
    %c0 = arith.constant 0 : index
    %c0_1 = arith.constant 0 : index
    %3 = vector.load %arg5[%c0, %c0_1] : memref<2048x8xf32, #tpu.memory_space<vmem>>, vector<2048x8xf32>
    %c0_2 = arith.constant 0 : index
    %c0_3 = arith.constant 0 : index
    %4 = vector.load %arg2[%c0_2, %c0_3] : memref<2048x48xbf16, #tpu.memory_space<vmem>>, vector<2048x48xbf16>
    %c0_4 = arith.constant 0 : index
    %c0_5 = arith.constant 0 : index
    %5 = vector.load %arg3[%c0_4, %c0_5] : memref<48x8xbf16, #tpu.memory_space<vmem>>, vector<48x8xbf16>
    %cst = arith.constant dense<0.000000e+00> : vector<2048x8xf32>
    %6 = tpu.matmul %4, %5, %cst {dimension_numbers = #tpu.dot_dimension_numbers<[1], [0], [0], [1], [0, 0, 1, 1], [], []>} : vector<2048x48xbf16>, vector<48x8xbf16>, vector<2048x8xf32> -> vector<2048x8xf32>
    %7 = arith.addf %3, %6 : vector<2048x8xf32>
    %c0_6 = arith.constant 0 : index
    %c0_7 = arith.constant 0 : index
    %8 = vector.load %arg5[%c0_6, %c0_7] : memref<2048x8xf32, #tpu.memory_space<vmem>>, vector<2048x8xf32>
    tpu.vector_store %arg5[%c0_6, %c0_7], %7 {strides = array<i32>} : memref<2048x8xf32, #tpu.memory_space<vmem>>, vector<2048x8xf32>,
    %c0_i32_8 = arith.constant 0 : i32
    %9 = arith.cmpi eq, %arg1, %c0_i32_8 : i32
    %10 = arith.extui %9 : i1 to i32
    %c0_i32_9 = arith.constant 0 : i32
    %11 = arith.cmpi ne, %10, %c0_i32_9 : i32
    scf.if %11 {
      %c0_10 = arith.constant 0 : index
      %c0_11 = arith.constant 0 : index
      %12 = vector.load %arg5[%c0_10, %c0_11] : memref<2048x8xf32, #tpu.memory_space<vmem>>, vector<2048x8xf32>
      %cst_12 = arith.constant 0.000000e+00 : f32
      %13 = vector.broadcast %cst_12 : f32 to vector<2048x8xf32>
      %14 = arith.cmpf oge, %12, %13 : vector<2048x8xf32>
      %cst_13 = arith.constant 2.000000e-01 : f32
      %15 = vector.broadcast %cst_13 : f32 to vector<2048x8xf32>
      %16 = arith.mulf %15, %12 : vector<2048x8xf32>
      %17 = arith.select %14, %12, %16 : vector<2048x8xi1>, vector<2048x8xf32>
      %18 = arith.truncf %17 : vector<2048x8xf32> to vector<2048x8xbf16>
      %c0_14 = arith.constant 0 : index
      %c0_15 = arith.constant 0 : index
      %19 = vector.load %arg4[%c0_14, %c0_15] : memref<2048x8xbf16, #tpu.memory_space<vmem>>, vector<2048x8xbf16>
      tpu.vector_store %arg4[%c0_14, %c0_15], %18 {strides = array<i32>} : memref<2048x8xbf16, #tpu.memory_space<vmem>>, vector<2048x8xbf16>,
    } else {
    }
    return
  }
  func.func @transform_0(%arg0: i32, %arg1: i32) -> (i32, i32) {
    %c0_i32 = arith.constant 0 : i32
    return %arg0, %arg1 : i32, i32
  }
  func.func @transform_1(%arg0: i32, %arg1: i32) -> (i32, i32) {
    %c0_i32 = arith.constant 0 : i32
    %c0_i32_0 = arith.constant 0 : i32
    return %arg1, %c0_i32 : i32, i32
  }
  func.func @transform_2(%arg0: i32, %arg1: i32) -> (i32, i32) {
    %c0_i32 = arith.constant 0 : i32
    %c0_i32_0 = arith.constant 0 : i32
    return %arg0, %c0_i32 : i32, i32
  }
}

module attributes {stable_mosaic.version = 11 : i64} {
  func.func @_mm_stats_kernel(%arg0: i32, %arg1: i32, %arg2: memref<512x128xbf16, #tpu.memory_space<vmem>>, %arg3: memref<128x16xbf16, #tpu.memory_space<vmem>>, %arg4: memref<512x16xbf16, #tpu.memory_space<vmem>>, %arg5: memref<1x1x16xf32, #tpu.memory_space<vmem>>, %arg6: memref<1x1x16xf32, #tpu.memory_space<vmem>>, %arg7: memref<512x16xf32, #tpu.memory_space<vmem>>) attributes {dimension_semantics = [#tpu.dimension_semantics<parallel>, #tpu.dimension_semantics<arbitrary>], iteration_bounds = array<i64: 1, 1>, scalar_prefetch = 0 : i64, scratch_operands = 1 : i64, tpu.core_type = #tpu.core_type<tc>, window_params = [{transform_indices = @transform_0, window_bounds = array<i64: 512, 128>}, {transform_indices = @transform_1, window_bounds = array<i64: 128, 16>}, {transform_indices = @transform_2, window_bounds = array<i64: 512, 16>}, {transform_indices = @transform_3, window_bounds = array<i64: 1, 1, 16>}, {transform_indices = @transform_4, window_bounds = array<i64: 1, 1, 16>}]} {
    %c0_i32 = arith.constant 0 : i32
    %0 = arith.cmpi eq, %arg1, %c0_i32 : i32
    %1 = arith.extui %0 : i1 to i32
    %c0_i32_0 = arith.constant 0 : i32
    %2 = arith.cmpi ne, %1, %c0_i32_0 : i32
    scf.if %2 {
      %cst_10 = arith.constant 0.000000e+00 : f32
      %12 = vector.broadcast %cst_10 : f32 to vector<512x16xf32>
      %c0_11 = arith.constant 0 : index
      %c0_12 = arith.constant 0 : index
      %13 = vector.load %arg7[%c0_11, %c0_12] : memref<512x16xf32, #tpu.memory_space<vmem>>, vector<512x16xf32>
      tpu.vector_store %arg7[%c0_11, %c0_12], %12 {strides = array<i32>} : memref<512x16xf32, #tpu.memory_space<vmem>>, vector<512x16xf32>,
    } else {
    }
    %c0 = arith.constant 0 : index
    %c0_1 = arith.constant 0 : index
    %3 = vector.load %arg7[%c0, %c0_1] : memref<512x16xf32, #tpu.memory_space<vmem>>, vector<512x16xf32>
    %c0_2 = arith.constant 0 : index
    %c0_3 = arith.constant 0 : index
    %4 = vector.load %arg2[%c0_2, %c0_3] : memref<512x128xbf16, #tpu.memory_space<vmem>>, vector<512x128xbf16>
    %c0_4 = arith.constant 0 : index
    %c0_5 = arith.constant 0 : index
    %5 = vector.load %arg3[%c0_4, %c0_5] : memref<128x16xbf16, #tpu.memory_space<vmem>>, vector<128x16xbf16>
    %cst = arith.constant dense<0.000000e+00> : vector<512x16xf32>
    %6 = tpu.matmul %4, %5, %cst {dimension_numbers = #tpu.dot_dimension_numbers<[1], [0], [0], [1], [0, 0, 1, 1], [], []>} : vector<512x128xbf16>, vector<128x16xbf16>, vector<512x16xf32> -> vector<512x16xf32>
    %7 = arith.addf %3, %6 : vector<512x16xf32>
    %c0_6 = arith.constant 0 : index
    %c0_7 = arith.constant 0 : index
    %8 = vector.load %arg7[%c0_6, %c0_7] : memref<512x16xf32, #tpu.memory_space<vmem>>, vector<512x16xf32>
    tpu.vector_store %arg7[%c0_6, %c0_7], %7 {strides = array<i32>} : memref<512x16xf32, #tpu.memory_space<vmem>>, vector<512x16xf32>,
    %c0_i32_8 = arith.constant 0 : i32
    %9 = arith.cmpi eq, %arg1, %c0_i32_8 : i32
    %10 = arith.extui %9 : i1 to i32
    %c0_i32_9 = arith.constant 0 : i32
    %11 = arith.cmpi ne, %10, %c0_i32_9 : i32
    scf.if %11 {
      %c0_10 = arith.constant 0 : index
      %c0_11 = arith.constant 0 : index
      %12 = vector.load %arg7[%c0_10, %c0_11] : memref<512x16xf32, #tpu.memory_space<vmem>>, vector<512x16xf32>
      %13 = arith.truncf %12 : vector<512x16xf32> to vector<512x16xbf16>
      %c0_12 = arith.constant 0 : index
      %c0_13 = arith.constant 0 : index
      %14 = vector.load %arg4[%c0_12, %c0_13] : memref<512x16xbf16, #tpu.memory_space<vmem>>, vector<512x16xbf16>
      tpu.vector_store %arg4[%c0_12, %c0_13], %13 {strides = array<i32>} : memref<512x16xbf16, #tpu.memory_space<vmem>>, vector<512x16xbf16>,
      %cst_14 = arith.constant dense<0.000000e+00> : vector<16xf32>
      %15 = vector.multi_reduction <add>, %12, %cst_14 [0] : vector<512x16xf32> to vector<16xf32>
      %16 = vector.shape_cast %15 : vector<16xf32> to vector<1x16xf32>
      %c0_15 = arith.constant 0 : index
      %c0_16 = arith.constant 0 : index
      %c0_17 = arith.constant 0 : index
      %17 = vector.load %arg5[%c0_15, %c0_16, %c0_17] : memref<1x1x16xf32, #tpu.memory_space<vmem>>, vector<1x1x16xf32>
      %18 = vector.shape_cast %17 : vector<1x1x16xf32> to vector<1x16xf32>
      %19 = vector.shape_cast %16 : vector<1x16xf32> to vector<1x1x16xf32>
      tpu.vector_store %arg5[%c0_15, %c0_16, %c0_17], %19 {strides = array<i32>} : memref<1x1x16xf32, #tpu.memory_space<vmem>>, vector<1x1x16xf32>,
      %20 = arith.mulf %12, %12 : vector<512x16xf32>
      %cst_18 = arith.constant dense<0.000000e+00> : vector<16xf32>
      %21 = vector.multi_reduction <add>, %20, %cst_18 [0] : vector<512x16xf32> to vector<16xf32>
      %22 = vector.shape_cast %21 : vector<16xf32> to vector<1x16xf32>
      %c0_19 = arith.constant 0 : index
      %c0_20 = arith.constant 0 : index
      %c0_21 = arith.constant 0 : index
      %23 = vector.load %arg6[%c0_19, %c0_20, %c0_21] : memref<1x1x16xf32, #tpu.memory_space<vmem>>, vector<1x1x16xf32>
      %24 = vector.shape_cast %23 : vector<1x1x16xf32> to vector<1x16xf32>
      %25 = vector.shape_cast %22 : vector<1x16xf32> to vector<1x1x16xf32>
      tpu.vector_store %arg6[%c0_19, %c0_20, %c0_21], %25 {strides = array<i32>} : memref<1x1x16xf32, #tpu.memory_space<vmem>>, vector<1x1x16xf32>,
    } else {
    }
    return
  }
  func.func @transform_0(%arg0: i32, %arg1: i32) -> (i32, i32) {
    %c0_i32 = arith.constant 0 : i32
    return %arg0, %arg1 : i32, i32
  }
  func.func @transform_1(%arg0: i32, %arg1: i32) -> (i32, i32) {
    %c0_i32 = arith.constant 0 : i32
    %c0_i32_0 = arith.constant 0 : i32
    return %arg1, %c0_i32 : i32, i32
  }
  func.func @transform_2(%arg0: i32, %arg1: i32) -> (i32, i32) {
    %c0_i32 = arith.constant 0 : i32
    %c0_i32_0 = arith.constant 0 : i32
    return %arg0, %c0_i32 : i32, i32
  }
  func.func @transform_3(%arg0: i32, %arg1: i32) -> (i32, i32, i32) {
    %c0_i32 = arith.constant 0 : i32
    %c0_i32_0 = arith.constant 0 : i32
    %c0_i32_1 = arith.constant 0 : i32
    return %arg0, %c0_i32, %c0_i32_0 : i32, i32, i32
  }
  func.func @transform_4(%arg0: i32, %arg1: i32) -> (i32, i32, i32) {
    %c0_i32 = arith.constant 0 : i32
    %c0_i32_0 = arith.constant 0 : i32
    %c0_i32_1 = arith.constant 0 : i32
    return %arg0, %c0_i32, %c0_i32_0 : i32, i32, i32
  }
}

module attributes {stable_mosaic.version = 11 : i64} {
  func.func @_affine_act_kernel(%arg0: i32, %arg1: memref<512x16xbf16, #tpu.memory_space<vmem>>, %arg2: memref<1x16xf32, #tpu.memory_space<vmem>>, %arg3: memref<1x16xf32, #tpu.memory_space<vmem>>, %arg4: memref<512x16xbf16, #tpu.memory_space<vmem>>) attributes {dimension_semantics = [#tpu.dimension_semantics<parallel>], iteration_bounds = array<i64: 1>, scalar_prefetch = 0 : i64, scratch_operands = 0 : i64, tpu.core_type = #tpu.core_type<tc>, window_params = [{transform_indices = @transform_0, window_bounds = array<i64: 512, 16>}, {pipeline_mode = #tpu.pipeline_mode<synchronous>, transform_indices = @transform_1, window_bounds = array<i64: 1, 16>}, {pipeline_mode = #tpu.pipeline_mode<synchronous>, transform_indices = @transform_2, window_bounds = array<i64: 1, 16>}, {transform_indices = @transform_3, window_bounds = array<i64: 512, 16>}]} {
    %c0 = arith.constant 0 : index
    %c0_0 = arith.constant 0 : index
    %0 = vector.load %arg1[%c0, %c0_0] : memref<512x16xbf16, #tpu.memory_space<vmem>>, vector<512x16xbf16>
    %1 = arith.extf %0 : vector<512x16xbf16> to vector<512x16xf32>
    %c0_1 = arith.constant 0 : index
    %c0_2 = arith.constant 0 : index
    %2 = vector.load %arg2[%c0_1, %c0_2] : memref<1x16xf32, #tpu.memory_space<vmem>>, vector<1x16xf32>
    %3 = vector.broadcast %2 : vector<1x16xf32> to vector<512x16xf32>
    %4 = arith.mulf %1, %3 : vector<512x16xf32>
    %c0_3 = arith.constant 0 : index
    %c0_4 = arith.constant 0 : index
    %5 = vector.load %arg3[%c0_3, %c0_4] : memref<1x16xf32, #tpu.memory_space<vmem>>, vector<1x16xf32>
    %6 = vector.broadcast %5 : vector<1x16xf32> to vector<512x16xf32>
    %7 = arith.addf %4, %6 : vector<512x16xf32>
    %cst = arith.constant 0.000000e+00 : f32
    %8 = vector.broadcast %cst : f32 to vector<512x16xf32>
    %9 = arith.cmpf oge, %7, %8 : vector<512x16xf32>
    %cst_5 = arith.constant 2.000000e-01 : f32
    %10 = vector.broadcast %cst_5 : f32 to vector<512x16xf32>
    %11 = arith.mulf %10, %7 : vector<512x16xf32>
    %12 = arith.select %9, %7, %11 : vector<512x16xi1>, vector<512x16xf32>
    %13 = arith.truncf %12 : vector<512x16xf32> to vector<512x16xbf16>
    %c0_6 = arith.constant 0 : index
    %c0_7 = arith.constant 0 : index
    %14 = vector.load %arg4[%c0_6, %c0_7] : memref<512x16xbf16, #tpu.memory_space<vmem>>, vector<512x16xbf16>
    tpu.vector_store %arg4[%c0_6, %c0_7], %13 {strides = array<i32>} : memref<512x16xbf16, #tpu.memory_space<vmem>>, vector<512x16xbf16>,
    return
  }
  func.func @transform_0(%arg0: i32) -> (i32, i32) {
    %c0_i32 = arith.constant 0 : i32
    %c0_i32_0 = arith.constant 0 : i32
    return %arg0, %c0_i32 : i32, i32
  }
  func.func @transform_1(%arg0: i32) -> (i32, i32) {
    %c0_i32 = arith.constant 0 : i32
    %c0_i32_0 = arith.constant 0 : i32
    %c0_i32_1 = arith.constant 0 : i32
    return %c0_i32, %c0_i32_0 : i32, i32
  }
  func.func @transform_2(%arg0: i32) -> (i32, i32) {
    %c0_i32 = arith.constant 0 : i32
    %c0_i32_0 = arith.constant 0 : i32
    %c0_i32_1 = arith.constant 0 : i32
    return %c0_i32, %c0_i32_0 : i32, i32
  }
  func.func @transform_3(%arg0: i32) -> (i32, i32) {
    %c0_i32 = arith.constant 0 : i32
    %c0_i32_0 = arith.constant 0 : i32
    return %arg0, %c0_i32 : i32, i32
  }
}

module attributes {stable_mosaic.version = 11 : i64} {
  func.func @_mm_stats_kernel(%arg0: i32, %arg1: i32, %arg2: memref<128x256xbf16, #tpu.memory_space<vmem>>, %arg3: memref<256x32xbf16, #tpu.memory_space<vmem>>, %arg4: memref<128x32xbf16, #tpu.memory_space<vmem>>, %arg5: memref<1x1x32xf32, #tpu.memory_space<vmem>>, %arg6: memref<1x1x32xf32, #tpu.memory_space<vmem>>, %arg7: memref<128x32xf32, #tpu.memory_space<vmem>>) attributes {dimension_semantics = [#tpu.dimension_semantics<parallel>, #tpu.dimension_semantics<arbitrary>], iteration_bounds = array<i64: 1, 1>, scalar_prefetch = 0 : i64, scratch_operands = 1 : i64, tpu.core_type = #tpu.core_type<tc>, window_params = [{transform_indices = @transform_0, window_bounds = array<i64: 128, 256>}, {transform_indices = @transform_1, window_bounds = array<i64: 256, 32>}, {transform_indices = @transform_2, window_bounds = array<i64: 128, 32>}, {transform_indices = @transform_3, window_bounds = array<i64: 1, 1, 32>}, {transform_indices = @transform_4, window_bounds = array<i64: 1, 1, 32>}]} {
    %c0_i32 = arith.constant 0 : i32
    %0 = arith.cmpi eq, %arg1, %c0_i32 : i32
    %1 = arith.extui %0 : i1 to i32
    %c0_i32_0 = arith.constant 0 : i32
    %2 = arith.cmpi ne, %1, %c0_i32_0 : i32
    scf.if %2 {
      %cst_10 = arith.constant 0.000000e+00 : f32
      %12 = vector.broadcast %cst_10 : f32 to vector<128x32xf32>
      %c0_11 = arith.constant 0 : index
      %c0_12 = arith.constant 0 : index
      %13 = vector.load %arg7[%c0_11, %c0_12] : memref<128x32xf32, #tpu.memory_space<vmem>>, vector<128x32xf32>
      tpu.vector_store %arg7[%c0_11, %c0_12], %12 {strides = array<i32>} : memref<128x32xf32, #tpu.memory_space<vmem>>, vector<128x32xf32>,
    } else {
    }
    %c0 = arith.constant 0 : index
    %c0_1 = arith.constant 0 : index
    %3 = vector.load %arg7[%c0, %c0_1] : memref<128x32xf32, #tpu.memory_space<vmem>>, vector<128x32xf32>
    %c0_2 = arith.constant 0 : index
    %c0_3 = arith.constant 0 : index
    %4 = vector.load %arg2[%c0_2, %c0_3] : memref<128x256xbf16, #tpu.memory_space<vmem>>, vector<128x256xbf16>
    %c0_4 = arith.constant 0 : index
    %c0_5 = arith.constant 0 : index
    %5 = vector.load %arg3[%c0_4, %c0_5] : memref<256x32xbf16, #tpu.memory_space<vmem>>, vector<256x32xbf16>
    %cst = arith.constant dense<0.000000e+00> : vector<128x32xf32>
    %6 = tpu.matmul %4, %5, %cst {dimension_numbers = #tpu.dot_dimension_numbers<[1], [0], [0], [1], [0, 0, 1, 1], [], []>} : vector<128x256xbf16>, vector<256x32xbf16>, vector<128x32xf32> -> vector<128x32xf32>
    %7 = arith.addf %3, %6 : vector<128x32xf32>
    %c0_6 = arith.constant 0 : index
    %c0_7 = arith.constant 0 : index
    %8 = vector.load %arg7[%c0_6, %c0_7] : memref<128x32xf32, #tpu.memory_space<vmem>>, vector<128x32xf32>
    tpu.vector_store %arg7[%c0_6, %c0_7], %7 {strides = array<i32>} : memref<128x32xf32, #tpu.memory_space<vmem>>, vector<128x32xf32>,
    %c0_i32_8 = arith.constant 0 : i32
    %9 = arith.cmpi eq, %arg1, %c0_i32_8 : i32
    %10 = arith.extui %9 : i1 to i32
    %c0_i32_9 = arith.constant 0 : i32
    %11 = arith.cmpi ne, %10, %c0_i32_9 : i32
    scf.if %11 {
      %c0_10 = arith.constant 0 : index
      %c0_11 = arith.constant 0 : index
      %12 = vector.load %arg7[%c0_10, %c0_11] : memref<128x32xf32, #tpu.memory_space<vmem>>, vector<128x32xf32>
      %13 = arith.truncf %12 : vector<128x32xf32> to vector<128x32xbf16>
      %c0_12 = arith.constant 0 : index
      %c0_13 = arith.constant 0 : index
      %14 = vector.load %arg4[%c0_12, %c0_13] : memref<128x32xbf16, #tpu.memory_space<vmem>>, vector<128x32xbf16>
      tpu.vector_store %arg4[%c0_12, %c0_13], %13 {strides = array<i32>} : memref<128x32xbf16, #tpu.memory_space<vmem>>, vector<128x32xbf16>,
      %cst_14 = arith.constant dense<0.000000e+00> : vector<32xf32>
      %15 = vector.multi_reduction <add>, %12, %cst_14 [0] : vector<128x32xf32> to vector<32xf32>
      %16 = vector.shape_cast %15 : vector<32xf32> to vector<1x32xf32>
      %c0_15 = arith.constant 0 : index
      %c0_16 = arith.constant 0 : index
      %c0_17 = arith.constant 0 : index
      %17 = vector.load %arg5[%c0_15, %c0_16, %c0_17] : memref<1x1x32xf32, #tpu.memory_space<vmem>>, vector<1x1x32xf32>
      %18 = vector.shape_cast %17 : vector<1x1x32xf32> to vector<1x32xf32>
      %19 = vector.shape_cast %16 : vector<1x32xf32> to vector<1x1x32xf32>
      tpu.vector_store %arg5[%c0_15, %c0_16, %c0_17], %19 {strides = array<i32>} : memref<1x1x32xf32, #tpu.memory_space<vmem>>, vector<1x1x32xf32>,
      %20 = arith.mulf %12, %12 : vector<128x32xf32>
      %cst_18 = arith.constant dense<0.000000e+00> : vector<32xf32>
      %21 = vector.multi_reduction <add>, %20, %cst_18 [0] : vector<128x32xf32> to vector<32xf32>
      %22 = vector.shape_cast %21 : vector<32xf32> to vector<1x32xf32>
      %c0_19 = arith.constant 0 : index
      %c0_20 = arith.constant 0 : index
      %c0_21 = arith.constant 0 : index
      %23 = vector.load %arg6[%c0_19, %c0_20, %c0_21] : memref<1x1x32xf32, #tpu.memory_space<vmem>>, vector<1x1x32xf32>
      %24 = vector.shape_cast %23 : vector<1x1x32xf32> to vector<1x32xf32>
      %25 = vector.shape_cast %22 : vector<1x32xf32> to vector<1x1x32xf32>
      tpu.vector_store %arg6[%c0_19, %c0_20, %c0_21], %25 {strides = array<i32>} : memref<1x1x32xf32, #tpu.memory_space<vmem>>, vector<1x1x32xf32>,
    } else {
    }
    return
  }
  func.func @transform_0(%arg0: i32, %arg1: i32) -> (i32, i32) {
    %c0_i32 = arith.constant 0 : i32
    return %arg0, %arg1 : i32, i32
  }
  func.func @transform_1(%arg0: i32, %arg1: i32) -> (i32, i32) {
    %c0_i32 = arith.constant 0 : i32
    %c0_i32_0 = arith.constant 0 : i32
    return %arg1, %c0_i32 : i32, i32
  }
  func.func @transform_2(%arg0: i32, %arg1: i32) -> (i32, i32) {
    %c0_i32 = arith.constant 0 : i32
    %c0_i32_0 = arith.constant 0 : i32
    return %arg0, %c0_i32 : i32, i32
  }
  func.func @transform_3(%arg0: i32, %arg1: i32) -> (i32, i32, i32) {
    %c0_i32 = arith.constant 0 : i32
    %c0_i32_0 = arith.constant 0 : i32
    %c0_i32_1 = arith.constant 0 : i32
    return %arg0, %c0_i32, %c0_i32_0 : i32, i32, i32
  }
  func.func @transform_4(%arg0: i32, %arg1: i32) -> (i32, i32, i32) {
    %c0_i32 = arith.constant 0 : i32
    %c0_i32_0 = arith.constant 0 : i32
    %c0_i32_1 = arith.constant 0 : i32
    return %arg0, %c0_i32, %c0_i32_0 : i32, i32, i32
  }
}

module attributes {stable_mosaic.version = 11 : i64} {
  func.func @_affine_act_kernel(%arg0: i32, %arg1: memref<128x32xbf16, #tpu.memory_space<vmem>>, %arg2: memref<1x32xf32, #tpu.memory_space<vmem>>, %arg3: memref<1x32xf32, #tpu.memory_space<vmem>>, %arg4: memref<128x32xbf16, #tpu.memory_space<vmem>>) attributes {dimension_semantics = [#tpu.dimension_semantics<parallel>], iteration_bounds = array<i64: 1>, scalar_prefetch = 0 : i64, scratch_operands = 0 : i64, tpu.core_type = #tpu.core_type<tc>, window_params = [{transform_indices = @transform_0, window_bounds = array<i64: 128, 32>}, {pipeline_mode = #tpu.pipeline_mode<synchronous>, transform_indices = @transform_1, window_bounds = array<i64: 1, 32>}, {pipeline_mode = #tpu.pipeline_mode<synchronous>, transform_indices = @transform_2, window_bounds = array<i64: 1, 32>}, {transform_indices = @transform_3, window_bounds = array<i64: 128, 32>}]} {
    %c0 = arith.constant 0 : index
    %c0_0 = arith.constant 0 : index
    %0 = vector.load %arg1[%c0, %c0_0] : memref<128x32xbf16, #tpu.memory_space<vmem>>, vector<128x32xbf16>
    %1 = arith.extf %0 : vector<128x32xbf16> to vector<128x32xf32>
    %c0_1 = arith.constant 0 : index
    %c0_2 = arith.constant 0 : index
    %2 = vector.load %arg2[%c0_1, %c0_2] : memref<1x32xf32, #tpu.memory_space<vmem>>, vector<1x32xf32>
    %3 = vector.broadcast %2 : vector<1x32xf32> to vector<128x32xf32>
    %4 = arith.mulf %1, %3 : vector<128x32xf32>
    %c0_3 = arith.constant 0 : index
    %c0_4 = arith.constant 0 : index
    %5 = vector.load %arg3[%c0_3, %c0_4] : memref<1x32xf32, #tpu.memory_space<vmem>>, vector<1x32xf32>
    %6 = vector.broadcast %5 : vector<1x32xf32> to vector<128x32xf32>
    %7 = arith.addf %4, %6 : vector<128x32xf32>
    %cst = arith.constant 0.000000e+00 : f32
    %8 = vector.broadcast %cst : f32 to vector<128x32xf32>
    %9 = arith.cmpf oge, %7, %8 : vector<128x32xf32>
    %cst_5 = arith.constant 2.000000e-01 : f32
    %10 = vector.broadcast %cst_5 : f32 to vector<128x32xf32>
    %11 = arith.mulf %10, %7 : vector<128x32xf32>
    %12 = arith.select %9, %7, %11 : vector<128x32xi1>, vector<128x32xf32>
    %13 = arith.truncf %12 : vector<128x32xf32> to vector<128x32xbf16>
    %c0_6 = arith.constant 0 : index
    %c0_7 = arith.constant 0 : index
    %14 = vector.load %arg4[%c0_6, %c0_7] : memref<128x32xbf16, #tpu.memory_space<vmem>>, vector<128x32xbf16>
    tpu.vector_store %arg4[%c0_6, %c0_7], %13 {strides = array<i32>} : memref<128x32xbf16, #tpu.memory_space<vmem>>, vector<128x32xbf16>,
    return
  }
  func.func @transform_0(%arg0: i32) -> (i32, i32) {
    %c0_i32 = arith.constant 0 : i32
    %c0_i32_0 = arith.constant 0 : i32
    return %arg0, %c0_i32 : i32, i32
  }
  func.func @transform_1(%arg0: i32) -> (i32, i32) {
    %c0_i32 = arith.constant 0 : i32
    %c0_i32_0 = arith.constant 0 : i32
    %c0_i32_1 = arith.constant 0 : i32
    return %c0_i32, %c0_i32_0 : i32, i32
  }
  func.func @transform_2(%arg0: i32) -> (i32, i32) {
    %c0_i32 = arith.constant 0 : i32
    %c0_i32_0 = arith.constant 0 : i32
    %c0_i32_1 = arith.constant 0 : i32
    return %c0_i32, %c0_i32_0 : i32, i32
  }
  func.func @transform_3(%arg0: i32) -> (i32, i32) {
    %c0_i32 = arith.constant 0 : i32
    %c0_i32_0 = arith.constant 0 : i32
    return %arg0, %c0_i32 : i32, i32
  }
}

module attributes {stable_mosaic.version = 11 : i64} {
  func.func @_mm_stats_kernel(%arg0: i32, %arg1: i32, %arg2: memref<32x512xbf16, #tpu.memory_space<vmem>>, %arg3: memref<512x64xbf16, #tpu.memory_space<vmem>>, %arg4: memref<32x64xbf16, #tpu.memory_space<vmem>>, %arg5: memref<1x1x64xf32, #tpu.memory_space<vmem>>, %arg6: memref<1x1x64xf32, #tpu.memory_space<vmem>>, %arg7: memref<32x64xf32, #tpu.memory_space<vmem>>) attributes {dimension_semantics = [#tpu.dimension_semantics<parallel>, #tpu.dimension_semantics<arbitrary>], iteration_bounds = array<i64: 1, 1>, scalar_prefetch = 0 : i64, scratch_operands = 1 : i64, tpu.core_type = #tpu.core_type<tc>, window_params = [{transform_indices = @transform_0, window_bounds = array<i64: 32, 512>}, {transform_indices = @transform_1, window_bounds = array<i64: 512, 64>}, {transform_indices = @transform_2, window_bounds = array<i64: 32, 64>}, {transform_indices = @transform_3, window_bounds = array<i64: 1, 1, 64>}, {transform_indices = @transform_4, window_bounds = array<i64: 1, 1, 64>}]} {
    %c0_i32 = arith.constant 0 : i32
    %0 = arith.cmpi eq, %arg1, %c0_i32 : i32
    %1 = arith.extui %0 : i1 to i32
    %c0_i32_0 = arith.constant 0 : i32
    %2 = arith.cmpi ne, %1, %c0_i32_0 : i32
    scf.if %2 {
      %cst_10 = arith.constant 0.000000e+00 : f32
      %12 = vector.broadcast %cst_10 : f32 to vector<32x64xf32>
      %c0_11 = arith.constant 0 : index
      %c0_12 = arith.constant 0 : index
      %13 = vector.load %arg7[%c0_11, %c0_12] : memref<32x64xf32, #tpu.memory_space<vmem>>, vector<32x64xf32>
      tpu.vector_store %arg7[%c0_11, %c0_12], %12 {strides = array<i32>} : memref<32x64xf32, #tpu.memory_space<vmem>>, vector<32x64xf32>,
    } else {
    }
    %c0 = arith.constant 0 : index
    %c0_1 = arith.constant 0 : index
    %3 = vector.load %arg7[%c0, %c0_1] : memref<32x64xf32, #tpu.memory_space<vmem>>, vector<32x64xf32>
    %c0_2 = arith.constant 0 : index
    %c0_3 = arith.constant 0 : index
    %4 = vector.load %arg2[%c0_2, %c0_3] : memref<32x512xbf16, #tpu.memory_space<vmem>>, vector<32x512xbf16>
    %c0_4 = arith.constant 0 : index
    %c0_5 = arith.constant 0 : index
    %5 = vector.load %arg3[%c0_4, %c0_5] : memref<512x64xbf16, #tpu.memory_space<vmem>>, vector<512x64xbf16>
    %cst = arith.constant dense<0.000000e+00> : vector<32x64xf32>
    %6 = tpu.matmul %4, %5, %cst {dimension_numbers = #tpu.dot_dimension_numbers<[1], [0], [0], [1], [0, 0, 1, 1], [], []>} : vector<32x512xbf16>, vector<512x64xbf16>, vector<32x64xf32> -> vector<32x64xf32>
    %7 = arith.addf %3, %6 : vector<32x64xf32>
    %c0_6 = arith.constant 0 : index
    %c0_7 = arith.constant 0 : index
    %8 = vector.load %arg7[%c0_6, %c0_7] : memref<32x64xf32, #tpu.memory_space<vmem>>, vector<32x64xf32>
    tpu.vector_store %arg7[%c0_6, %c0_7], %7 {strides = array<i32>} : memref<32x64xf32, #tpu.memory_space<vmem>>, vector<32x64xf32>,
    %c0_i32_8 = arith.constant 0 : i32
    %9 = arith.cmpi eq, %arg1, %c0_i32_8 : i32
    %10 = arith.extui %9 : i1 to i32
    %c0_i32_9 = arith.constant 0 : i32
    %11 = arith.cmpi ne, %10, %c0_i32_9 : i32
    scf.if %11 {
      %c0_10 = arith.constant 0 : index
      %c0_11 = arith.constant 0 : index
      %12 = vector.load %arg7[%c0_10, %c0_11] : memref<32x64xf32, #tpu.memory_space<vmem>>, vector<32x64xf32>
      %13 = arith.truncf %12 : vector<32x64xf32> to vector<32x64xbf16>
      %c0_12 = arith.constant 0 : index
      %c0_13 = arith.constant 0 : index
      %14 = vector.load %arg4[%c0_12, %c0_13] : memref<32x64xbf16, #tpu.memory_space<vmem>>, vector<32x64xbf16>
      tpu.vector_store %arg4[%c0_12, %c0_13], %13 {strides = array<i32>} : memref<32x64xbf16, #tpu.memory_space<vmem>>, vector<32x64xbf16>,
      %cst_14 = arith.constant dense<0.000000e+00> : vector<64xf32>
      %15 = vector.multi_reduction <add>, %12, %cst_14 [0] : vector<32x64xf32> to vector<64xf32>
      %16 = vector.shape_cast %15 : vector<64xf32> to vector<1x64xf32>
      %c0_15 = arith.constant 0 : index
      %c0_16 = arith.constant 0 : index
      %c0_17 = arith.constant 0 : index
      %17 = vector.load %arg5[%c0_15, %c0_16, %c0_17] : memref<1x1x64xf32, #tpu.memory_space<vmem>>, vector<1x1x64xf32>
      %18 = vector.shape_cast %17 : vector<1x1x64xf32> to vector<1x64xf32>
      %19 = vector.shape_cast %16 : vector<1x64xf32> to vector<1x1x64xf32>
      tpu.vector_store %arg5[%c0_15, %c0_16, %c0_17], %19 {strides = array<i32>} : memref<1x1x64xf32, #tpu.memory_space<vmem>>, vector<1x1x64xf32>,
      %20 = arith.mulf %12, %12 : vector<32x64xf32>
      %cst_18 = arith.constant dense<0.000000e+00> : vector<64xf32>
      %21 = vector.multi_reduction <add>, %20, %cst_18 [0] : vector<32x64xf32> to vector<64xf32>
      %22 = vector.shape_cast %21 : vector<64xf32> to vector<1x64xf32>
      %c0_19 = arith.constant 0 : index
      %c0_20 = arith.constant 0 : index
      %c0_21 = arith.constant 0 : index
      %23 = vector.load %arg6[%c0_19, %c0_20, %c0_21] : memref<1x1x64xf32, #tpu.memory_space<vmem>>, vector<1x1x64xf32>
      %24 = vector.shape_cast %23 : vector<1x1x64xf32> to vector<1x64xf32>
      %25 = vector.shape_cast %22 : vector<1x64xf32> to vector<1x1x64xf32>
      tpu.vector_store %arg6[%c0_19, %c0_20, %c0_21], %25 {strides = array<i32>} : memref<1x1x64xf32, #tpu.memory_space<vmem>>, vector<1x1x64xf32>,
    } else {
    }
    return
  }
  func.func @transform_0(%arg0: i32, %arg1: i32) -> (i32, i32) {
    %c0_i32 = arith.constant 0 : i32
    return %arg0, %arg1 : i32, i32
  }
  func.func @transform_1(%arg0: i32, %arg1: i32) -> (i32, i32) {
    %c0_i32 = arith.constant 0 : i32
    %c0_i32_0 = arith.constant 0 : i32
    return %arg1, %c0_i32 : i32, i32
  }
  func.func @transform_2(%arg0: i32, %arg1: i32) -> (i32, i32) {
    %c0_i32 = arith.constant 0 : i32
    %c0_i32_0 = arith.constant 0 : i32
    return %arg0, %c0_i32 : i32, i32
  }
  func.func @transform_3(%arg0: i32, %arg1: i32) -> (i32, i32, i32) {
    %c0_i32 = arith.constant 0 : i32
    %c0_i32_0 = arith.constant 0 : i32
    %c0_i32_1 = arith.constant 0 : i32
    return %arg0, %c0_i32, %c0_i32_0 : i32, i32, i32
  }
  func.func @transform_4(%arg0: i32, %arg1: i32) -> (i32, i32, i32) {
    %c0_i32 = arith.constant 0 : i32
    %c0_i32_0 = arith.constant 0 : i32
    %c0_i32_1 = arith.constant 0 : i32
    return %arg0, %c0_i32, %c0_i32_0 : i32, i32, i32
  }
}

module attributes {stable_mosaic.version = 11 : i64} {
  func.func @_affine_act_kernel(%arg0: i32, %arg1: memref<32x64xbf16, #tpu.memory_space<vmem>>, %arg2: memref<1x64xf32, #tpu.memory_space<vmem>>, %arg3: memref<1x64xf32, #tpu.memory_space<vmem>>, %arg4: memref<32x64xbf16, #tpu.memory_space<vmem>>) attributes {dimension_semantics = [#tpu.dimension_semantics<parallel>], iteration_bounds = array<i64: 1>, scalar_prefetch = 0 : i64, scratch_operands = 0 : i64, tpu.core_type = #tpu.core_type<tc>, window_params = [{transform_indices = @transform_0, window_bounds = array<i64: 32, 64>}, {pipeline_mode = #tpu.pipeline_mode<synchronous>, transform_indices = @transform_1, window_bounds = array<i64: 1, 64>}, {pipeline_mode = #tpu.pipeline_mode<synchronous>, transform_indices = @transform_2, window_bounds = array<i64: 1, 64>}, {transform_indices = @transform_3, window_bounds = array<i64: 32, 64>}]} {
    %c0 = arith.constant 0 : index
    %c0_0 = arith.constant 0 : index
    %0 = vector.load %arg1[%c0, %c0_0] : memref<32x64xbf16, #tpu.memory_space<vmem>>, vector<32x64xbf16>
    %1 = arith.extf %0 : vector<32x64xbf16> to vector<32x64xf32>
    %c0_1 = arith.constant 0 : index
    %c0_2 = arith.constant 0 : index
    %2 = vector.load %arg2[%c0_1, %c0_2] : memref<1x64xf32, #tpu.memory_space<vmem>>, vector<1x64xf32>
    %3 = vector.broadcast %2 : vector<1x64xf32> to vector<32x64xf32>
    %4 = arith.mulf %1, %3 : vector<32x64xf32>
    %c0_3 = arith.constant 0 : index
    %c0_4 = arith.constant 0 : index
    %5 = vector.load %arg3[%c0_3, %c0_4] : memref<1x64xf32, #tpu.memory_space<vmem>>, vector<1x64xf32>
    %6 = vector.broadcast %5 : vector<1x64xf32> to vector<32x64xf32>
    %7 = arith.addf %4, %6 : vector<32x64xf32>
    %cst = arith.constant 0.000000e+00 : f32
    %8 = vector.broadcast %cst : f32 to vector<32x64xf32>
    %9 = arith.cmpf oge, %7, %8 : vector<32x64xf32>
    %cst_5 = arith.constant 2.000000e-01 : f32
    %10 = vector.broadcast %cst_5 : f32 to vector<32x64xf32>
    %11 = arith.mulf %10, %7 : vector<32x64xf32>
    %12 = arith.select %9, %7, %11 : vector<32x64xi1>, vector<32x64xf32>
    %13 = arith.truncf %12 : vector<32x64xf32> to vector<32x64xbf16>
    %c0_6 = arith.constant 0 : index
    %c0_7 = arith.constant 0 : index
    %14 = vector.load %arg4[%c0_6, %c0_7] : memref<32x64xbf16, #tpu.memory_space<vmem>>, vector<32x64xbf16>
    tpu.vector_store %arg4[%c0_6, %c0_7], %13 {strides = array<i32>} : memref<32x64xbf16, #tpu.memory_space<vmem>>, vector<32x64xbf16>,
    return
  }
  func.func @transform_0(%arg0: i32) -> (i32, i32) {
    %c0_i32 = arith.constant 0 : i32
    %c0_i32_0 = arith.constant 0 : i32
    return %arg0, %c0_i32 : i32, i32
  }
  func.func @transform_1(%arg0: i32) -> (i32, i32) {
    %c0_i32 = arith.constant 0 : i32
    %c0_i32_0 = arith.constant 0 : i32
    %c0_i32_1 = arith.constant 0 : i32
    return %c0_i32, %c0_i32_0 : i32, i32
  }
  func.func @transform_2(%arg0: i32) -> (i32, i32) {
    %c0_i32 = arith.constant 0 : i32
    %c0_i32_0 = arith.constant 0 : i32
    %c0_i32_1 = arith.constant 0 : i32
    return %c0_i32, %c0_i32_0 : i32, i32
  }
  func.func @transform_3(%arg0: i32) -> (i32, i32) {
    %c0_i32 = arith.constant 0 : i32
    %c0_i32_0 = arith.constant 0 : i32
    return %arg0, %c0_i32 : i32, i32
  }
}

module attributes {stable_mosaic.version = 11 : i64} {
  func.func @_mm_act_kernel(%arg0: i32, %arg1: i32, %arg2: memref<8x1024xbf16, #tpu.memory_space<vmem>>, %arg3: memref<1024x128xbf16, #tpu.memory_space<vmem>>, %arg4: memref<8x128xf32, #tpu.memory_space<vmem>>, %arg5: memref<8x128xf32, #tpu.memory_space<vmem>>) attributes {dimension_semantics = [#tpu.dimension_semantics<parallel>, #tpu.dimension_semantics<arbitrary>], iteration_bounds = array<i64: 1, 1>, scalar_prefetch = 0 : i64, scratch_operands = 1 : i64, tpu.core_type = #tpu.core_type<tc>, window_params = [{transform_indices = @transform_0, window_bounds = array<i64: 8, 1024>}, {transform_indices = @transform_1, window_bounds = array<i64: 1024, 128>}, {transform_indices = @transform_2, window_bounds = array<i64: 8, 128>}]} {
    %c0_i32 = arith.constant 0 : i32
    %0 = arith.cmpi eq, %arg1, %c0_i32 : i32
    %1 = arith.extui %0 : i1 to i32
    %c0_i32_0 = arith.constant 0 : i32
    %2 = arith.cmpi ne, %1, %c0_i32_0 : i32
    scf.if %2 {
      %cst_10 = arith.constant 0.000000e+00 : f32
      %12 = vector.broadcast %cst_10 : f32 to vector<8x128xf32>
      %c0_11 = arith.constant 0 : index
      %c0_12 = arith.constant 0 : index
      %13 = vector.load %arg5[%c0_11, %c0_12] : memref<8x128xf32, #tpu.memory_space<vmem>>, vector<8x128xf32>
      tpu.vector_store %arg5[%c0_11, %c0_12], %12 {strides = array<i32>} : memref<8x128xf32, #tpu.memory_space<vmem>>, vector<8x128xf32>,
    } else {
    }
    %c0 = arith.constant 0 : index
    %c0_1 = arith.constant 0 : index
    %3 = vector.load %arg5[%c0, %c0_1] : memref<8x128xf32, #tpu.memory_space<vmem>>, vector<8x128xf32>
    %c0_2 = arith.constant 0 : index
    %c0_3 = arith.constant 0 : index
    %4 = vector.load %arg2[%c0_2, %c0_3] : memref<8x1024xbf16, #tpu.memory_space<vmem>>, vector<8x1024xbf16>
    %c0_4 = arith.constant 0 : index
    %c0_5 = arith.constant 0 : index
    %5 = vector.load %arg3[%c0_4, %c0_5] : memref<1024x128xbf16, #tpu.memory_space<vmem>>, vector<1024x128xbf16>
    %cst = arith.constant dense<0.000000e+00> : vector<8x128xf32>
    %6 = tpu.matmul %4, %5, %cst {dimension_numbers = #tpu.dot_dimension_numbers<[1], [0], [0], [1], [0, 0, 1, 1], [], []>} : vector<8x1024xbf16>, vector<1024x128xbf16>, vector<8x128xf32> -> vector<8x128xf32>
    %7 = arith.addf %3, %6 : vector<8x128xf32>
    %c0_6 = arith.constant 0 : index
    %c0_7 = arith.constant 0 : index
    %8 = vector.load %arg5[%c0_6, %c0_7] : memref<8x128xf32, #tpu.memory_space<vmem>>, vector<8x128xf32>
    tpu.vector_store %arg5[%c0_6, %c0_7], %7 {strides = array<i32>} : memref<8x128xf32, #tpu.memory_space<vmem>>, vector<8x128xf32>,
    %c0_i32_8 = arith.constant 0 : i32
    %9 = arith.cmpi eq, %arg1, %c0_i32_8 : i32
    %10 = arith.extui %9 : i1 to i32
    %c0_i32_9 = arith.constant 0 : i32
    %11 = arith.cmpi ne, %10, %c0_i32_9 : i32
    scf.if %11 {
      %c0_10 = arith.constant 0 : index
      %c0_11 = arith.constant 0 : index
      %12 = vector.load %arg5[%c0_10, %c0_11] : memref<8x128xf32, #tpu.memory_space<vmem>>, vector<8x128xf32>
      %c0_12 = arith.constant 0 : index
      %c0_13 = arith.constant 0 : index
      %13 = vector.load %arg4[%c0_12, %c0_13] : memref<8x128xf32, #tpu.memory_space<vmem>>, vector<8x128xf32>
      tpu.vector_store %arg4[%c0_12, %c0_13], %12 {strides = array<i32>} : memref<8x128xf32, #tpu.memory_space<vmem>>, vector<8x128xf32>,
    } else {
    }
    return
  }
  func.func @transform_0(%arg0: i32, %arg1: i32) -> (i32, i32) {
    %c0_i32 = arith.constant 0 : i32
    return %arg0, %arg1 : i32, i32
  }
  func.func @transform_1(%arg0: i32, %arg1: i32) -> (i32, i32) {
    %c0_i32 = arith.constant 0 : i32
    %c0_i32_0 = arith.constant 0 : i32
    return %arg1, %c0_i32 : i32, i32
  }
  func.func @transform_2(%arg0: i32, %arg1: i32) -> (i32, i32) {
    %c0_i32 = arith.constant 0 : i32
    %c0_i32_0 = arith.constant 0 : i32
    return %arg0, %c0_i32 : i32, i32
  }
}

</mosaic_0001>

<bundles_post_ra>
// kernel: _lambda_.9
= control target key start
LH: loop header
LB: loop body
LE: loop exit
PB: predicated region body
PF: predicated region fallthrough
CT: control target
= control target key end

     0   :  { %vm19_vm0 = vcmask 130048   ;;  %v1964_v1 = vmov 0.0   ;;  %vm1209_vm1 = vcmask 125952   ;;  %vm1407_vm2 = vcmask 122880   ;;  %s3033_s1 = inlined_call_operand.vmem [shape: bf16[128,16], index: 1, kind: input, shape index: {}]   ;;  %s3034_s0 = inlined_call_operand.vmem [shape: bf16[512,128], index: 0, kind: input, shape index: {}]   ;;  %s3035_s2 = inlined_call_operand.vmem [shape: bf16[512,16], index: 2, kind: output, shape index: {0}]   ;;  %s3036_s3 = inlined_call_operand.vmem [shape: f32[1,1,16], index: 3, kind: output, shape index: {1}]   ;;  %s3037_s4 = inlined_call_operand.vmem [shape: f32[1,1,16], index: 4, kind: output, shape index: {2}]  }
   0x1   :  { %v1993_v0 = vld [vmem:[%s3033_s1] sm:$0xff]   ;;  %22 = vst.msk [vmem:[#allocation2 + $0x10] sm:$0xff] %vm19_vm0, %v1964_v1  ;;  %20 = vst.msk [vmem:[#allocation2] sm:$0xff] %vm19_vm0, %v1964_v1  ;;  %v1925_v2 = vld [vmem:[%s3033_s1 + $0x8] sm:$0xff]  }
   0x2   :  { %21 = vst.msk [vmem:[#allocation2 + $0x8] sm:$0xff] %vm19_vm0, %v1964_v1  ;;  %23 = vst.msk [vmem:[#allocation2 + $0x18] sm:$0xff] %vm19_vm0, %v1964_v1  ;;  %1827 = vmatprep.subr.bf16.mxu0 %v1993_v0  ;;  %1907 = vmatprep.subr.bf16.mxu1 %v1993_v0  ;;  %v1926_v3 = vld [vmem:[%s3033_s1 + $0x10] sm:$0xff]   ;;  %v1927_v4 = vld [vmem:[%s3033_s1 + $0x18] sm:$0xff]  }
   0x3   :  { %24 = vst.msk [vmem:[#allocation2 + $0x20] sm:$0xff] %vm19_vm0, %v1964_v1  ;;  %25 = vst.msk [vmem:[#allocation2 + $0x28] sm:$0xff] %vm19_vm0, %v1964_v1  ;;  %1828 = vmatpush3.bf16.msra.mxu0 %v1993_v0  ;;  %1915 = vmatpush3.bf16.msra.mxu1 %v1993_v0  ;;  %v1932_v5 = vld [vmem:[%s3034_s0] sm:$0xff]   ;;  %v1929_v7 = vld [vmem:[%s3033_s1 + $0x28] sm:$0xff]  }
   0x4   :  { %26 = vst.msk [vmem:[#allocation2 + $0x30] sm:$0xff] %vm19_vm0, %v1964_v1  ;;  %27 = vst.msk [vmem:[#allocation2 + $0x38] sm:$0xff] %vm19_vm0, %v1964_v1  ;;  %1829 = vmatprep.subr.bf16.mxu0 %v1925_v2  ;;  %1908 = vmatprep.subr.bf16.mxu1 %v1925_v2  ;;  %v1928_v6 = vld [vmem:[%s3033_s1 + $0x20] sm:$0xff]   ;;  %v1930_v8 = vld [vmem:[%s3033_s1 + $0x30] sm:$0xff]  }
   0x5   :  { %28 = vst.msk [vmem:[#allocation2 + $0x40] sm:$0xff] %vm19_vm0, %v1964_v1  ;;  %29 = vst.msk [vmem:[#allocation2 + $0x48] sm:$0xff] %vm19_vm0, %v1964_v1  ;;  %1843 = vmatprep.mubr.bf16.mxu0 %v1932_v5  ;;  %v1931_v9 = vld [vmem:[%s3033_s1 + $0x38] sm:$0xff]   ;;  %v1948_v10 = vld [vmem:[%s3034_s0 + $0x80] sm:$0xff]  }
   0x6   :  { %30 = vst.msk [vmem:[#allocation2 + $0x50] sm:$0xff] %vm19_vm0, %v1964_v1  ;;  %31 = vst.msk [vmem:[#allocation2 + $0x58] sm:$0xff] %vm19_vm0, %v1964_v1  ;;  %1875 = vmatprep.mubr.bf16.mxu1 %v1948_v10  ;;  %v1933_v11 = vld [vmem:[%s3034_s0 + $0x8] sm:$0xff]   ;;  %v1934_v12 = vld [vmem:[%s3034_s0 + $0x10] sm:$0xff]  }
   0x7   :  { %32 = vst.msk [vmem:[#allocation2 + $0x60] sm:$0xff] %vm19_vm0, %v1964_v1  ;;  %33 = vst.msk [vmem:[#allocation2 + $0x68] sm:$0xff] %vm19_vm0, %v1964_v1  ;;  %1830 = vmatpush3.bf16.msra.mxu0 %v1925_v2  ;;  %1916 = vmatpush3.bf16.msra.mxu1 %v1925_v2  ;;  %v1949_v13 = vld [vmem:[%s3034_s0 + $0x88] sm:$0xff]   ;;  %v1950_v14 = vld [vmem:[%s3034_s0 + $0x90] sm:$0xff]  }
   0x8   :  { %34 = vst.msk [vmem:[#allocation2 + $0x70] sm:$0xff] %vm19_vm0, %v1964_v1  ;;  %35 = vst.msk [vmem:[#allocation2 + $0x78] sm:$0xff] %vm19_vm0, %v1964_v1  ;;  %1831 = vmatprep.subr.bf16.mxu0 %v1926_v3  ;;  %1909 = vmatprep.subr.bf16.mxu1 %v1926_v3  ;;  %v1935_v15 = vld [vmem:[%s3034_s0 + $0x18] sm:$0xff]   ;;  %v1936_v16 = vld [vmem:[%s3034_s0 + $0x20] sm:$0xff]  }
   0x9   :  { %36 = vst.msk [vmem:[#allocation2 + $0x80] sm:$0xff] %vm19_vm0, %v1964_v1  ;;  %37 = vst.msk [vmem:[#allocation2 + $0x88] sm:$0xff] %vm19_vm0, %v1964_v1  ;;  %v1951_v17 = vld [vmem:[%s3034_s0 + $0x98] sm:$0xff]   ;;  %v1952_v18 = vld [vmem:[%s3034_s0 + $0xa0] sm:$0xff]  }
   0xa   :  { %38 = vst.msk [vmem:[#allocation2 + $0x90] sm:$0xff] %vm19_vm0, %v1964_v1  ;;  %39 = vst.msk [vmem:[#allocation2 + $0x98] sm:$0xff] %vm19_vm0, %v1964_v1  ;;  %v1937_v19 = vld [vmem:[%s3034_s0 + $0x28] sm:$0xff]   ;;  %v1938_v21 = vld [vmem:[%s3034_s0 + $0x30] sm:$0xff]  }
   0xb   :  { %40 = vst.msk [vmem:[#allocation2 + $0xa0] sm:$0xff] %vm19_vm0, %v1964_v1  ;;  %41 = vst.msk [vmem:[#allocation2 + $0xa8] sm:$0xff] %vm19_vm0, %v1964_v1  ;;  %1832 = vmatpush3.bf16.msra.mxu0 %v1926_v3  ;;  %1917 = vmatpush3.bf16.msra.mxu1 %v1926_v3  ;;  %v1953_v20 = vld [vmem:[%s3034_s0 + $0xa8] sm:$0xff]   ;;  %v1954_v22 = vld [vmem:[%s3034_s0 + $0xb0] sm:$0xff]  }
   0xc   :  { %42 = vst.msk [vmem:[#allocation2 + $0xb0] sm:$0xff] %vm19_vm0, %v1964_v1  ;;  %43 = vst.msk [vmem:[#allocation2 + $0xb8] sm:$0xff] %vm19_vm0, %v1964_v1  ;;  %1833 = vmatprep.subr.bf16.mxu0 %v1927_v4  ;;  %1910 = vmatprep.subr.bf16.mxu1 %v1927_v4  ;;  %v1939_v23 = vld [vmem:[%s3034_s0 + $0x38] sm:$0xff]   ;;  %v1940_v25 = vld [vmem:[%s3034_s0 + $0x40] sm:$0xff]  }
   0xd   :  { %44 = vst.msk [vmem:[#allocation2 + $0xc0] sm:$0xff] %vm19_vm0, %v1964_v1  ;;  %45 = vst.msk [vmem:[#allocation2 + $0xc8] sm:$0xff] %vm19_vm0, %v1964_v1  ;;  %v1955_v24 = vld [vmem:[%s3034_s0 + $0xb8] sm:$0xff]   ;;  %v1956_v26 = vld [vmem:[%s3034_s0 + $0xc0] sm:$0xff]  }
   0xe   :  { %46 = vst.msk [vmem:[#allocation2 + $0xd0] sm:$0xff] %vm19_vm0, %v1964_v1  ;;  %47 = vst.msk [vmem:[#allocation2 + $0xd8] sm:$0xff] %vm19_vm0, %v1964_v1  ;;  %v1941_v27 = vld [vmem:[%s3034_s0 + $0x48] sm:$0xff]   ;;  %v1942_v29 = vld [vmem:[%s3034_s0 + $0x50] sm:$0xff]  }
   0xf   :  { %48 = vst.msk [vmem:[#allocation2 + $0xe0] sm:$0xff] %vm19_vm0, %v1964_v1  ;;  %49 = vst.msk [vmem:[#allocation2 + $0xe8] sm:$0xff] %vm19_vm0, %v1964_v1  ;;  %1834 = vmatpush3.bf16.msra.mxu0 %v1927_v4  ;;  %1918 = vmatpush3.bf16.msra.mxu1 %v1927_v4  ;;  %v1957_v28 = vld [vmem:[%s3034_s0 + $0xc8] sm:$0xff]   ;;  %v1958_v30 = vld [vmem:[%s3034_s0 + $0xd0] sm:$0xff]  }
  0x10   :  { %50 = vst.msk [vmem:[#allocation2 + $0xf0] sm:$0xff] %vm19_vm0, %v1964_v1  ;;  %51 = vst.msk [vmem:[#allocation2 + $0xf8] sm:$0xff] %vm19_vm0, %v1964_v1  ;;  %1835 = vmatprep.subr.bf16.mxu0 %v1928_v6  ;;  %1911 = vmatprep.subr.bf16.mxu1 %v1928_v6  ;;  %v1943_v31 = vld [vmem:[%s3034_s0 + $0x58] sm:$0xff]   ;;  %v1944_v33 = vld [vmem:[%s3034_s0 + $0x60] sm:$0xff]  }
  0x11   :  { %52 = vst.msk [vmem:[#allocation2 + $0x100] sm:$0xff] %vm19_vm0, %v1964_v1  ;;  %53 = vst.msk [vmem:[#allocation2 + $0x108] sm:$0xff] %vm19_vm0, %v1964_v1  ;;  %v1959_v32 = vld [vmem:[%s3034_s0 + $0xd8] sm:$0xff]   ;;  %v1960_v34 = vld [vmem:[%s3034_s0 + $0xe0] sm:$0xff]  }
  0x12   :  { %54 = vst.msk [vmem:[#allocation2 + $0x110] sm:$0xff] %vm19_vm0, %v1964_v1  ;;  %55 = vst.msk [vmem:[#allocation2 + $0x118] sm:$0xff] %vm19_vm0, %v1964_v1  ;;  %v1945_v35 = vld [vmem:[%s3034_s0 + $0x68] sm:$0xff]   ;;  %v1946_v37 = vld [vmem:[%s3034_s0 + $0x70] sm:$0xff]  }
  0x13   :  { %56 = vst.msk [vmem:[#allocation2 + $0x120] sm:$0xff] %vm19_vm0, %v1964_v1  ;;  %57 = vst.msk [vmem:[#allocation2 + $0x128] sm:$0xff] %vm19_vm0, %v1964_v1  ;;  %1836 = vmatpush3.bf16.msra.mxu0 %v1928_v6  ;;  %1919 = vmatpush3.bf16.msra.mxu1 %v1928_v6  ;;  %v1961_v36 = vld [vmem:[%s3034_s0 + $0xe8] sm:$0xff]   ;;  %v1962_v38 = vld [vmem:[%s3034_s0 + $0xf0] sm:$0xff]  }
  0x14   :  { %58 = vst.msk [vmem:[#allocation2 + $0x130] sm:$0xff] %vm19_vm0, %v1964_v1  ;;  %59 = vst.msk [vmem:[#allocation2 + $0x138] sm:$0xff] %vm19_vm0, %v1964_v1  ;;  %1837 = vmatprep.subr.bf16.mxu0 %v1929_v7  ;;  %1912 = vmatprep.subr.bf16.mxu1 %v1929_v7  ;;  %v1947_v39 = vld [vmem:[%s3034_s0 + $0x78] sm:$0xff]   ;;  %v86_v41 = vld [vmem:[#allocation2 + $0x10] sm:$0xff] }
  0x15   :  { %60 = vst.msk [vmem:[#allocation2 + $0x140] sm:$0xff] %vm19_vm0, %v1964_v1  ;;  %61 = vst.msk [vmem:[#allocation2 + $0x148] sm:$0xff] %vm19_vm0, %v1964_v1  ;;  %v1963_v40 = vld [vmem:[%s3034_s0 + $0xf8] sm:$0xff]   ;;  %v84_v43 = vld [vmem:[#allocation2] sm:$0xff] }
  0x16   :  { %62 = vst.msk [vmem:[#allocation2 + $0x150] sm:$0xff] %vm19_vm0, %v1964_v1  ;;  %63 = vst.msk [vmem:[#allocation2 + $0x158] sm:$0xff] %vm19_vm0, %v1964_v1  ;;  %v87_v46 = vld [vmem:[#allocation2 + $0x18] sm:$0xff]  ;;  %v85_v51 = vld [vmem:[#allocation2 + $0x8] sm:$0xff] }
  0x17   :  { %64 = vst.msk [vmem:[#allocation2 + $0x160] sm:$0xff] %vm19_vm0, %v1964_v1  ;;  %65 = vst.msk [vmem:[#allocation2 + $0x168] sm:$0xff] %vm19_vm0, %v1964_v1  ;;  %1838 = vmatpush3.bf16.msra.mxu0 %v1929_v7  ;;  %1920 = vmatpush3.bf16.msra.mxu1 %v1929_v7  ;;  %v88_v3 = vld [vmem:[#allocation2 + $0x20] sm:$0xff]  ;;  %v91_v6 = vld [vmem:[#allocation2 + $0x38] sm:$0xff] }
  0x18   :  { %66 = vst.msk [vmem:[#allocation2 + $0x170] sm:$0xff] %vm19_vm0, %v1964_v1  ;;  %67 = vst.msk [vmem:[#allocation2 + $0x178] sm:$0xff] %vm19_vm0, %v1964_v1  ;;  %1839 = vmatprep.subr.bf16.mxu0 %v1930_v8  ;;  %1913 = vmatprep.subr.bf16.mxu1 %v1930_v8  ;;  %v116_v44 = vld [vmem:[#allocation2 + $0x100] sm:$0xff]  ;;  %v117_v54 = vld [vmem:[#allocation2 + $0x108] sm:$0xff] }
  0x19   :  { %68 = vst.msk [vmem:[#allocation2 + $0x180] sm:$0xff] %vm19_vm0, %v1964_v1  ;;  %69 = vst.msk [vmem:[#allocation2 + $0x188] sm:$0xff] %vm19_vm0, %v1964_v1  ;;  %v118_v42 = vld [vmem:[#allocation2 + $0x110] sm:$0xff]  ;;  %v119_v48 = vld [vmem:[#allocation2 + $0x118] sm:$0xff] }
  0x1a   :  { %70 = vst.msk [vmem:[#allocation2 + $0x190] sm:$0xff] %vm19_vm0, %v1964_v1  ;;  %71 = vst.msk [vmem:[#allocation2 + $0x198] sm:$0xff] %vm19_vm0, %v1964_v1  ;;  %v120_v4 = vld [vmem:[#allocation2 + $0x120] sm:$0xff]  ;;  %v89_v10 = vld [vmem:[#allocation2 + $0x28] sm:$0xff] }
  0x1b   :  { %72 = vst.msk [vmem:[#allocation2 + $0x1a0] sm:$0xff] %vm19_vm0, %v1964_v1  ;;  %73 = vst.msk [vmem:[#allocation2 + $0x1a8] sm:$0xff] %vm19_vm0, %v1964_v1  ;;  %1840 = vmatpush3.bf16.msra.mxu0 %v1930_v8  ;;  %1921 = vmatpush3.bf16.msra.mxu1 %v1930_v8  ;;  %v122_v2 = vld [vmem:[#allocation2 + $0x130] sm:$0xff] }
  0x1c   :  { %74 = vst.msk [vmem:[#allocation2 + $0x1b0] sm:$0xff] %vm19_vm0, %v1964_v1  ;;  %75 = vst.msk [vmem:[#allocation2 + $0x1b8] sm:$0xff] %vm19_vm0, %v1964_v1  ;;  %1841 = vmatprep.subr.bf16.mxu0 %v1931_v9  ;;  %1914 = vmatprep.subr.bf16.mxu1 %v1931_v9 }
  0x1d   :  { %76 = vst.msk [vmem:[#allocation2 + $0x1c0] sm:$0xff] %vm19_vm0, %v1964_v1  ;;  %77 = vst.msk [vmem:[#allocation2 + $0x1c8] sm:$0xff] %vm19_vm0, %v1964_v1 }
  0x1e   :  { %78 = vst.msk [vmem:[#allocation2 + $0x1d0] sm:$0xff] %vm19_vm0, %v1964_v1  ;;  %79 = vst.msk [vmem:[#allocation2 + $0x1d8] sm:$0xff] %vm19_vm0, %v1964_v1 }
  0x1f   :  { %80 = vst.msk [vmem:[#allocation2 + $0x1e0] sm:$0xff] %vm19_vm0, %v1964_v1  ;;  %81 = vst.msk [vmem:[#allocation2 + $0x1e8] sm:$0xff] %vm19_vm0, %v1964_v1  ;;  %1842 = vmatpush3.bf16.msra.mxu0 %v1931_v9  ;;  %1922 = vmatpush3.bf16.msra.mxu1 %v1931_v9 }
  0x20   :  { %82 = vst.msk [vmem:[#allocation2 + $0x1f0] sm:$0xff] %vm19_vm0, %v1964_v1  ;;  %83 = vst.msk [vmem:[#allocation2 + $0x1f8] sm:$0xff] %vm19_vm0, %v1964_v1  ;;  %v90_v1 = vld [vmem:[#allocation2 + $0x30] sm:$0xff] }
  0x22   :  { %1844 = vmatmul.mubr.bf16.vlgmr.msra.gmra.mrb[0].mxu0 %v1933_v11  ;;  %1876 = vmatmul.mubr.bf16.vlgmr.msra.gmra.mrb[0].mxu1 %v1949_v13 }
  0x23   :  { %1847 = vmatprep.mubr.bf16.mxu0 %v1934_v12  ;;  %1879 = vmatprep.mubr.bf16.mxu1 %v1950_v14 }
  0x2a   :  { %1848 = vmatmul.mubr.bf16.gmra.mrb[4].mxu0 %v1935_v15  ;;  %1880 = vmatmul.mubr.bf16.gmra.mrb[4].mxu1 %v1951_v17 }
  0x2b   :  { %1851 = vmatprep.mubr.bf16.mxu0 %v1936_v16  ;;  %1883 = vmatprep.mubr.bf16.mxu1 %v1952_v18 }
  0x32   :  { %1852 = vmatmul.mubr.bf16.gmra.mrb[8].mxu0 %v1937_v19  ;;  %1884 = vmatmul.mubr.bf16.gmra.mrb[8].mxu1 %v1953_v20 }
  0x33   :  { %1855 = vmatprep.mubr.bf16.mxu0 %v1938_v21  ;;  %1887 = vmatprep.mubr.bf16.mxu1 %v1954_v22 }
  0x3a   :  { %1856 = vmatmul.mubr.bf16.gmra.mrb[12].mxu0 %v1939_v23  ;;  %1888 = vmatmul.mubr.bf16.gmra.mrb[12].mxu1 %v1955_v24 }
  0x3b   :  { %1859 = vmatprep.mubr.bf16.mxu0 %v1940_v25  ;;  %1891 = vmatprep.mubr.bf16.mxu1 %v1956_v26 }
  0x42   :  { %1860 = vmatmul.mubr.bf16.gmra.mrb[16].mxu0 %v1941_v27  ;;  %1892 = vmatmul.mubr.bf16.gmra.mrb[16].mxu1 %v1957_v28 }
  0x43   :  { %1863 = vmatprep.mubr.bf16.mxu0 %v1942_v29  ;;  %1895 = vmatprep.mubr.bf16.mxu1 %v1958_v30 }
  0x4a   :  { %1864 = vmatmul.mubr.bf16.gmra.mrb[20].mxu0 %v1943_v31  ;;  %1896 = vmatmul.mubr.bf16.gmra.mrb[20].mxu1 %v1959_v32 }
  0x4b   :  { %1867 = vmatprep.mubr.bf16.mxu0 %v1944_v33  ;;  %1899 = vmatprep.mubr.bf16.mxu1 %v1960_v34 }
  0x52   :  { %1868 = vmatmul.mubr.bf16.gmra.mrb[24].mxu0 %v1945_v35  ;;  %1900 = vmatmul.mubr.bf16.gmra.mrb[24].mxu1 %v1961_v36  ;;  %v94_v36 = vld [vmem:[#allocation2 + $0x50] sm:$0xff] }
  0x53   :  { %1871 = vmatprep.mubr.bf16.mxu0 %v1946_v37  ;;  %1903 = vmatprep.mubr.bf16.mxu1 %v1962_v38 }
  0x5a   :  { %1872 = vmatmul.mubr.bf16.gmra.mrb[28].mxu0 %v1947_v39  ;;  %1904 = vmatmul.mubr.bf16.gmra.mrb[28].mxu1 %v1963_v40  ;;  %v92_v39 = vld [vmem:[#allocation2 + $0x40] sm:$0xff] }
  0xf5   :  { %v1845_v45 = vpop.f32.mrb[0].mxu0  ;;  %v1877_v47 = vpop.f32.mrb[0].mxu1 }
  0xf6   :  { %v759_v49 = vadd.f32 %v1845_v45, %v86_v41  ;;  %v502_v50 = vpop.f32.mrb[1].mxu0  ;;  %v791_v52 = vadd.f32 %v1877_v47, %v118_v42  ;;  %v630_v53 = vpop.f32.mrb[1].mxu1 }
  0xf7   :  { %v757_v55 = vadd.f32 %v502_v50, %v84_v43  ;;  %v1846_v56 = vpop.f32.mrb[2].mxu0  ;;  %v789_v57 = vadd.f32 %v630_v53, %v116_v44  ;;  %v1878_v58 = vpop.f32.mrb[2].mxu1 }
  0xf8   :  { %824 = vst.msk [vmem:[#allocation2 + $0x10] sm:$0xff] %vm19_vm0, %v759_v49  ;;  %v760_v59 = vadd.f32 %v1846_v56, %v87_v46  ;;  %v505_v60 = vpop.f32.mrb[3].mxu0  ;;  %856 = vst.msk [vmem:[#allocation2 + $0x110] sm:$0xff] %vm19_vm0, %v791_v52  ;;  %v792_v61 = vadd.f32 %v1878_v58, %v119_v48  ;;  %v633_v62 = vpop.f32.mrb[3].mxu1 }
  0xf9   :  { %822 = vst.msk [vmem:[#allocation2] sm:$0xff] %vm19_vm0, %v757_v55  ;;  %v758_v63 = vadd.f32 %v505_v60, %v85_v51  ;;  %854 = vst.msk [vmem:[#allocation2 + $0x100] sm:$0xff] %vm19_vm0, %v789_v57  ;;  %v790_v0 = vadd.f32 %v633_v62, %v117_v54 }
  0xfa   :  { %825 = vst.msk [vmem:[#allocation2 + $0x18] sm:$0xff] %vm19_vm0, %v760_v59  ;;  %857 = vst.msk [vmem:[#allocation2 + $0x118] sm:$0xff] %vm19_vm0, %v792_v61 }
  0xfb   :  { %823 = vst.msk [vmem:[#allocation2 + $0x8] sm:$0xff] %vm19_vm0, %v758_v63  ;;  %855 = vst.msk [vmem:[#allocation2 + $0x108] sm:$0xff] %vm19_vm0, %v790_v0 }
  0xfd   :  { %v1849_v5 = vpop.f32.mrb[4].mxu0  ;;  %v1881_v7 = vpop.f32.mrb[4].mxu1 }
  0xfe   :  { %v763_v8 = vadd.f32 %v1849_v5, %v90_v1  ;;  %v518_v9 = vpop.f32.mrb[5].mxu0  ;;  %v795_v11 = vadd.f32 %v1881_v7, %v122_v2  ;;  %v646_v12 = vpop.f32.mrb[5].mxu1  ;;  %v95_v7 = vld [vmem:[#allocation2 + $0x58] sm:$0xff] }
  0xff   :  { %v891_v13 = vld [vmem:[#allocation2 + $0x10] sm:$0xff]  ;;  %v761_v14 = vadd.f32 %v518_v9, %v88_v3  ;;  %v1850_v15 = vpop.f32.mrb[6].mxu0  ;;  %v793_v16 = vadd.f32 %v646_v12, %v120_v4  ;;  %v2252_v17 = vpop.f32.mrb[6].mxu1  ;;  %v93_v12 = vld [vmem:[#allocation2 + $0x48] sm:$0xff] }
 0x100   :  { %v1725_v18 = vpack.c.bf16 %v891_v13, %v891_v13  ;;  %v889_v19 = vld [vmem:[#allocation2] sm:$0xff]  ;;  %828 = vst.msk [vmem:[#allocation2 + $0x30] sm:$0xff] %vm19_vm0, %v763_v8  ;;  %v764_v20 = vadd.f32 %v1850_v15, %v91_v6  ;;  %v521_v21 = vpop.f32.mrb[7].mxu0  ;;  %860 = vst.msk [vmem:[#allocation2 + $0x130] sm:$0xff] %vm19_vm0, %v795_v11  ;;  %v2256_v22 = vpop.f32.mrb[7].mxu1  ;;  %v2259_v27 = vld [vmem:[#allocation2 + $0x110] sm:$0xff]  ;;  %v1411_v28 = vmul.f32 %v891_v13, %v891_v13 }
 0x101   :  { %v1723_v23 = vpack.c.bf16 %v889_v19, %v889_v19  ;;  %v1409_v24 = vmul.f32 %v889_v19, %v889_v19  ;;  %v892_v25 = vld [vmem:[#allocation2 + $0x18] sm:$0xff]  ;;  %826 = vst.msk [vmem:[#allocation2 + $0x20] sm:$0xff] %vm19_vm0, %v761_v14  ;;  %v762_v26 = vadd.f32 %v521_v21, %v89_v10  ;;  %858 = vst.msk [vmem:[#allocation2 + $0x120] sm:$0xff] %vm19_vm0, %v793_v16  ;;  %v2267_v31 = vld [vmem:[#allocation2 + $0x100] sm:$0xff]  ;;  %v1274_v32 = vsel %vm19_vm0, %v889_v19, 0.0 }
 0x102   :  { %1212 = vst.msk [vmem:[%s3035_s2 + $0x8] sm:$0xf] %vm1209_vm1, %v1725_v18  ;;  %v1726_v29 = vpack.c.bf16 %v892_v25, %v892_v25  ;;  %v890_v30 = vld [vmem:[#allocation2 + $0x8] sm:$0xff]  ;;  %v1277_v37 = vsel %vm19_vm0, %v891_v13, 0.0  ;;  %v1757_v40 = vpack.c.bf16 %v2259_v27, %v2259_v27  ;;  %v2283_v41 = vld [vmem:[#allocation2 + $0x118] sm:$0xff]  ;;  %v1412_v43 = vmul.f32 %v892_v25, %v892_v25  ;;  %v98_v16 = vld [vmem:[#allocation2 + $0x70] sm:$0xff] }
 0x103   :  { %829 = vst.msk [vmem:[#allocation2 + $0x38] sm:$0xff] %vm19_vm0, %v764_v20  ;;  %v1724_v33 = vpack.c.bf16 %v890_v30, %v890_v30  ;;  %v1275_v34 = vsel %vm19_vm0, %v890_v30, 0.0  ;;  %v1410_v35 = vmul.f32 %v890_v30, %v890_v30  ;;  %827 = vst.msk [vmem:[#allocation2 + $0x28] sm:$0xff] %vm19_vm0, %v762_v26  ;;  %v1473_v42 = vsel %vm19_vm0, %v1409_v24, 0.0  ;;  %v2330_v18 = vld [vmem:[#allocation2 + $0x108] sm:$0xff]  ;;  %v96_v24 = vld [vmem:[#allocation2 + $0x60] sm:$0xff] }
 0x104   :  { %1210 = vst.msk [vmem:[%s3035_s2] sm:$0xf] %vm1209_vm1, %v1723_v23  ;;  %1213 = vst.msk [vmem:[%s3035_s2 + $0xc] sm:$0xf] %vm1209_vm1, %v1726_v29  ;;  %v1276_v38 = vadd.f32 %v1275_v34, %v1274_v32  ;;  %v1755_v46 = vpack.c.bf16 %v2267_v31, %v2267_v31  ;;  %v1476_v53 = vsel %vm19_vm0, %v1411_v28, 0.0  ;;  %v1279_v54 = vsel %vm19_vm0, %v892_v25, 0.0 }
 0x105   :  { %1211 = vst.msk [vmem:[%s3035_s2 + $0x4] sm:$0xf] %vm1209_vm1, %v1724_v33  ;;  %v1474_v44 = vsel %vm19_vm0, %v1410_v35, 0.0  ;;  %v1853_v45 = vpop.f32.mrb[8].mxu0  ;;  %v2293_v47 = vpop.f32.mrb[8].mxu1  ;;  %v1758_v58 = vpack.c.bf16 %v2283_v41, %v2283_v41  ;;  %v1478_v2 = vsel %vm19_vm0, %v1412_v43, 0.0 }
 0x106   :  { %v1278_v48 = vadd.f32 %v1277_v37, %v1276_v38  ;;  %v1475_v49 = vadd.f32 %v1474_v44, %v1473_v42  ;;  %v767_v50 = vadd.f32 %v1853_v45, %v94_v36  ;;  %v534_v51 = vpop.f32.mrb[9].mxu0  ;;  %1244 = vst.msk [vmem:[%s3035_s2 + $0x88] sm:$0xf] %vm1209_vm1, %v1757_v40  ;;  %v2299_v52 = vpop.f32.mrb[9].mxu1  ;;  %1242 = vst.msk [vmem:[%s3035_s2 + $0x80] sm:$0xf] %vm1209_vm1, %v1755_v46 }
 0x107   :  { %v895_v55 = vld [vmem:[#allocation2 + $0x30] sm:$0xff]  ;;  %v765_v56 = vadd.f32 %v534_v51, %v92_v39  ;;  %v1854_v57 = vpop.f32.mrb[10].mxu0  ;;  %v2309_v59 = vpop.f32.mrb[10].mxu1  ;;  %1245 = vst.msk [vmem:[%s3035_s2 + $0x8c] sm:$0xf] %vm1209_vm1, %v1758_v58  ;;  %v99_v30 = vld [vmem:[#allocation2 + $0x78] sm:$0xff]  ;;  %v1756_v37 = vpack.c.bf16 %v2330_v18, %v2330_v18 }
 0x108   :  { %v1280_v60 = vadd.f32 %v1279_v54, %v1278_v48  ;;  %v1477_v61 = vadd.f32 %v1476_v53, %v1475_v49  ;;  %v1729_v62 = vpack.c.bf16 %v895_v55, %v895_v55  ;;  %v893_v63 = vld [vmem:[#allocation2 + $0x20] sm:$0xff]  ;;  %832 = vst.msk [vmem:[#allocation2 + $0x50] sm:$0xff] %vm19_vm0, %v767_v50  ;;  %v537_v0 = vpop.f32.mrb[11].mxu0  ;;  %v2312_v1 = vpop.f32.mrb[11].mxu1  ;;  %v1415_v13 = vmul.f32 %v895_v55, %v895_v55  ;;  %v97_v45 = vld [vmem:[#allocation2 + $0x68] sm:$0xff] }
 0x109   :  { %v1727_v3 = vpack.c.bf16 %v893_v63, %v893_v63  ;;  %v1281_v4 = vsel %vm19_vm0, %v893_v63, 0.0  ;;  %v1413_v5 = vmul.f32 %v893_v63, %v893_v63  ;;  %830 = vst.msk [vmem:[#allocation2 + $0x40] sm:$0xff] %vm19_vm0, %v765_v56  ;;  %v768_v23 = vadd.f32 %v1854_v57, %v95_v7 }
 0x10a   :  { %v896_v6 = vld [vmem:[#allocation2 + $0x38] sm:$0xff]  ;;  %v1479_v8 = vadd.f32 %v1478_v2, %v1477_v61  ;;  %1216 = vst.msk [vmem:[%s3035_s2 + $0x18] sm:$0xf] %vm1209_vm1, %v1729_v62  ;;  %v1282_v9 = vadd.f32 %v1281_v4, %v1280_v60  ;;  %v894_v11 = vld [vmem:[#allocation2 + $0x28] sm:$0xff]  ;;  %v1285_v25 = vsel %vm19_vm0, %v895_v55, 0.0  ;;  %v766_v28 = vadd.f32 %v537_v0, %v93_v12  ;;  %v2364_v55 = vld [vmem:[#allocation2 + $0x130] sm:$0xff] }
 0x10b   :  { %v1730_v10 = vpack.c.bf16 %v896_v6, %v896_v6  ;;  %1214 = vst.msk [vmem:[%s3035_s2 + $0x10] sm:$0xf] %vm1209_vm1, %v1727_v3  ;;  %v1480_v14 = vsel %vm19_vm0, %v1413_v5, 0.0  ;;  %v1728_v15 = vpack.c.bf16 %v894_v11, %v894_v11  ;;  %v1283_v20 = vsel %vm19_vm0, %v894_v11, 0.0  ;;  %1243 = vst.msk [vmem:[%s3035_s2 + $0x84] sm:$0xf] %vm1209_vm1, %v1756_v37 }
 0x10c   :  { %v1481_v19 = vadd.f32 %v1480_v14, %v1479_v8  ;;  %v1414_v21 = vmul.f32 %v894_v11, %v894_v11  ;;  %v1284_v26 = vadd.f32 %v1283_v20, %v1282_v9  ;;  %v1416_v33 = vmul.f32 %v896_v6, %v896_v6  ;;  %833 = vst.msk [vmem:[#allocation2 + $0x58] sm:$0xff] %vm19_vm0, %v768_v23  ;;  %v2370_v62 = vld [vmem:[#allocation2 + $0x120] sm:$0xff]  ;;  %v102_v4 = vld [vmem:[#allocation2 + $0x90] sm:$0xff]  ;;  %v103_v37 = vld [vmem:[#allocation2 + $0x98] sm:$0xff] }
 0x10d   :  { %1217 = vst.msk [vmem:[%s3035_s2 + $0x1c] sm:$0xf] %vm1209_vm1, %v1730_v10  ;;  %1215 = vst.msk [vmem:[%s3035_s2 + $0x14] sm:$0xf] %vm1209_vm1, %v1728_v15  ;;  %v1857_v29 = vpop.f32.mrb[12].mxu0  ;;  %v2342_v32 = vpop.f32.mrb[12].mxu1  ;;  %v1761_v5 = vpack.c.bf16 %v2364_v55, %v2364_v55  ;;  %v1759_v9 = vpack.c.bf16 %v2370_v62, %v2370_v62 }
 0x10e   :  { %v1482_v34 = vsel %vm19_vm0, %v1414_v21, 0.0  ;;  %v771_v35 = vadd.f32 %v1857_v29, %v98_v16  ;;  %v550_v36 = vpop.f32.mrb[13].mxu0  ;;  %v2348_v38 = vpop.f32.mrb[13].mxu1  ;;  %v1286_v39 = vadd.f32 %v1285_v25, %v1284_v26  ;;  %831 = vst.msk [vmem:[#allocation2 + $0x48] sm:$0xff] %vm19_vm0, %v766_v28  ;;  %v1484_v48 = vsel %vm19_vm0, %v1415_v13, 0.0  ;;  %v100_v8 = vld [vmem:[#allocation2 + $0x80] sm:$0xff] }
 0x10f   :  { %v1483_v40 = vadd.f32 %v1482_v34, %v1481_v19  ;;  %v2350_v42 = vld [vmem:[#allocation2 + $0x50] sm:$0xff]  ;;  %v769_v43 = vadd.f32 %v550_v36, %v96_v24  ;;  %v1858_v44 = vpop.f32.mrb[14].mxu0  ;;  %v2353_v46 = vpop.f32.mrb[14].mxu1  ;;  %v1287_v49 = vsel %vm19_vm0, %v896_v6, 0.0  ;;  %v1486_v63 = vsel %vm19_vm0, %v1416_v33, 0.0 }
 0x110   :  { %v1733_v50 = vpack.c.bf16 %v2350_v42, %v2350_v42  ;;  %v897_v51 = vld [vmem:[#allocation2 + $0x40] sm:$0xff]  ;;  %836 = vst.msk [vmem:[#allocation2 + $0x70] sm:$0xff] %vm19_vm0, %v771_v35  ;;  %v772_v53 = vadd.f32 %v1858_v44, %v99_v30  ;;  %v553_v54 = vpop.f32.mrb[15].mxu0  ;;  %v2366_v56 = vpop.f32.mrb[15].mxu1  ;;  %v1288_v60 = vadd.f32 %v1287_v49, %v1286_v39  ;;  %v1419_v10 = vmul.f32 %v2350_v42, %v2350_v42 }
 0x111   :  { %v1485_v57 = vadd.f32 %v1484_v48, %v1483_v40  ;;  %v1731_v58 = vpack.c.bf16 %v897_v51, %v897_v51  ;;  %v1289_v61 = vsel %vm19_vm0, %v897_v51, 0.0  ;;  %834 = vst.msk [vmem:[#allocation2 + $0x60] sm:$0xff] %vm19_vm0, %v769_v43  ;;  %v1417_v0 = vmul.f32 %v897_v51, %v897_v51 }
 0x112   :  { %1220 = vst.msk [vmem:[%s3035_s2 + $0x28] sm:$0xf] %vm1209_vm1, %v1733_v50  ;;  %v770_v2 = vadd.f32 %v553_v54, %v97_v45  ;;  %v1290_v6 = vadd.f32 %v1289_v61, %v1288_v60  ;;  %1248 = vst.msk [vmem:[%s3035_s2 + $0x98] sm:$0xf] %vm1209_vm1, %v1761_v5  ;;  %v1293_v43 = vsel %vm19_vm0, %v2350_v42, 0.0  ;;  %v1492_v44 = vsel %vm19_vm0, %v1419_v10, 0.0 }
 0x113   :  { %837 = vst.msk [vmem:[#allocation2 + $0x78] sm:$0xff] %vm19_vm0, %v772_v53  ;;  %v1487_v3 = vadd.f32 %v1486_v63, %v1485_v57  ;;  %v1488_v7 = vsel %vm19_vm0, %v1417_v0, 0.0  ;;  %v900_v11 = vld [vmem:[#allocation2 + $0x58] sm:$0xff]  ;;  %v101_v54 = vld [vmem:[#allocation2 + $0x88] sm:$0xff]  ;;  %v106_v0 = vld [vmem:[#allocation2 + $0xb0] sm:$0xff] }
 0x114   :  { %1218 = vst.msk [vmem:[%s3035_s2 + $0x20] sm:$0xf] %vm1209_vm1, %v1731_v58  ;;  %v1734_v15 = vpack.c.bf16 %v900_v11, %v900_v11  ;;  %v1420_v16 = vmul.f32 %v900_v11, %v900_v11  ;;  %1246 = vst.msk [vmem:[%s3035_s2 + $0x90] sm:$0xf] %vm1209_vm1, %v1759_v9  ;;  %v1295_v57 = vsel %vm19_vm0, %v900_v11, 0.0 }
 0x115   :  { %835 = vst.msk [vmem:[#allocation2 + $0x68] sm:$0xff] %vm19_vm0, %v770_v2  ;;  %v1861_v12 = vpop.f32.mrb[16].mxu0  ;;  %v2394_v13 = vpop.f32.mrb[16].mxu1  ;;  %v1489_v14 = vadd.f32 %v1488_v7, %v1487_v3  ;;  %v898_v19 = vld [vmem:[#allocation2 + $0x48] sm:$0xff]  ;;  %v123_v7 = vld [vmem:[#allocation2 + $0x138] sm:$0xff] }
 0x116   :  { %v775_v20 = vadd.f32 %v1861_v12, %v102_v4  ;;  %v566_v21 = vpop.f32.mrb[17].mxu0  ;;  %v2400_v23 = vpop.f32.mrb[17].mxu1  ;;  %v1732_v24 = vpack.c.bf16 %v898_v19, %v898_v19  ;;  %v1291_v25 = vsel %vm19_vm0, %v898_v19, 0.0  ;;  %v1418_v26 = vmul.f32 %v898_v19, %v898_v19  ;;  %1221 = vst.msk [vmem:[%s3035_s2 + $0x2c] sm:$0xf] %vm1209_vm1, %v1734_v15 }
 0x117   :  { %v903_v28 = vld [vmem:[#allocation2 + $0x70] sm:$0xff]  ;;  %v773_v29 = vadd.f32 %v566_v21, %v100_v8  ;;  %v1862_v30 = vpop.f32.mrb[18].mxu0  ;;  %v2403_v33 = vpop.f32.mrb[18].mxu1  ;;  %v1292_v34 = vadd.f32 %v1291_v25, %v1290_v6  ;;  %v1494_v58 = vsel %vm19_vm0, %v1420_v16, 0.0  ;;  %v104_v6 = vld [vmem:[#allocation2 + $0xa0] sm:$0xff]  ;;  %v107_v21 = vld [vmem:[#allocation2 + $0xb8] sm:$0xff] }
 0x118   :  { %v1737_v35 = vpack.c.bf16 %v903_v28, %v903_v28  ;;  %v901_v36 = vld [vmem:[#allocation2 + $0x60] sm:$0xff]  ;;  %840 = vst.msk [vmem:[#allocation2 + $0x90] sm:$0xff] %vm19_vm0, %v775_v20  ;;  %v569_v39 = vpop.f32.mrb[19].mxu0  ;;  %v2410_v40 = vpop.f32.mrb[19].mxu1  ;;  %v1490_v45 = vsel %vm19_vm0, %v1418_v26, 0.0  ;;  %v776_v63 = vadd.f32 %v1862_v30, %v103_v37  ;;  %v1423_v3 = vmul.f32 %v903_v28, %v903_v28 }
 0x119   :  { %1219 = vst.msk [vmem:[%s3035_s2 + $0x24] sm:$0xf] %vm1209_vm1, %v1732_v24  ;;  %v1735_v48 = vpack.c.bf16 %v901_v36, %v901_v36  ;;  %v1294_v50 = vadd.f32 %v1293_v43, %v1292_v34  ;;  %v1491_v51 = vadd.f32 %v1490_v45, %v1489_v14  ;;  %v1421_v42 = vmul.f32 %v901_v36, %v901_v36 }
 0x11a   :  { %v904_v49 = vld [vmem:[#allocation2 + $0x78] sm:$0xff]  ;;  %838 = vst.msk [vmem:[#allocation2 + $0x80] sm:$0xff] %vm19_vm0, %v773_v29  ;;  %v1297_v60 = vsel %vm19_vm0, %v901_v36, 0.0  ;;  %841 = vst.msk [vmem:[#allocation2 + $0x98] sm:$0xff] %vm19_vm0, %v776_v63  ;;  %v774_v11 = vadd.f32 %v569_v39, %v101_v54  ;;  %v1301_v25 = vsel %vm19_vm0, %v903_v28, 0.0  ;;  %v796_v36 = vadd.f32 %v2252_v17, %v123_v7 }
 0x11b   :  { %1224 = vst.msk [vmem:[%s3035_s2 + $0x38] sm:$0xf] %vm1209_vm1, %v1737_v35  ;;  %v1738_v53 = vpack.c.bf16 %v904_v49, %v904_v49  ;;  %1222 = vst.msk [vmem:[%s3035_s2 + $0x30] sm:$0xf] %vm1209_vm1, %v1735_v48  ;;  %v1493_v2 = vadd.f32 %v1492_v44, %v1491_v51  ;;  %v1296_v4 = vadd.f32 %v1295_v57, %v1294_v50  ;;  %v1496_v8 = vsel %vm19_vm0, %v1421_v42, 0.0  ;;  %v105_v35 = vld [vmem:[#allocation2 + $0xa8] sm:$0xff] }
 0x11c   :  { %v902_v61 = vld [vmem:[#allocation2 + $0x68] sm:$0xff]  ;;  %839 = vst.msk [vmem:[#allocation2 + $0x88] sm:$0xff] %vm19_vm0, %v774_v11  ;;  %v1500_v39 = vsel %vm19_vm0, %v1423_v3, 0.0  ;;  %v126_v51 = vld [vmem:[#allocation2 + $0x150] sm:$0xff]  ;;  %v1424_v17 = vmul.f32 %v904_v49, %v904_v49  ;;  %861 = vst.msk [vmem:[#allocation2 + $0x138] sm:$0xff] %vm19_vm0, %v796_v36 }
 0x11d   :  { %1225 = vst.msk [vmem:[%s3035_s2 + $0x3c] sm:$0xf] %vm1209_vm1, %v1738_v53  ;;  %v1736_v5 = vpack.c.bf16 %v902_v61, %v902_v61  ;;  %v1299_v9 = vsel %vm19_vm0, %v902_v61, 0.0  ;;  %v1422_v10 = vmul.f32 %v902_v61, %v902_v61  ;;  %v1865_v12 = vpop.f32.mrb[20].mxu0  ;;  %v2439_v14 = vpop.f32.mrb[20].mxu1  ;;  %v1298_v15 = vadd.f32 %v1297_v60, %v1296_v4  ;;  %v121_v50 = vld [vmem:[#allocation2 + $0x128] sm:$0xff] }
 0x11e   :  { %v1495_v16 = vadd.f32 %v1494_v58, %v1493_v2  ;;  %v779_v19 = vadd.f32 %v1865_v12, %v106_v0  ;;  %v582_v20 = vpop.f32.mrb[21].mxu0  ;;  %v2445_v24 = vpop.f32.mrb[21].mxu1  ;;  %v1303_v53 = vsel %vm19_vm0, %v904_v49, 0.0  ;;  %v124_v58 = vld [vmem:[#allocation2 + $0x140] sm:$0xff]  ;;  %v127_v60 = vld [vmem:[#allocation2 + $0x158] sm:$0xff]  ;;  %v125_v3 = vld [vmem:[#allocation2 + $0x148] sm:$0xff]  ;;  %v799_v7 = vadd.f32 %v2293_v47, %v126_v51 }
 0x11f   :  { %1223 = vst.msk [vmem:[%s3035_s2 + $0x34] sm:$0xf] %vm1209_vm1, %v1736_v5  ;;  %v1498_v26 = vsel %vm19_vm0, %v1422_v10, 0.0  ;;  %v2449_v29 = vld [vmem:[#allocation2 + $0x90] sm:$0xff]  ;;  %v777_v30 = vadd.f32 %v582_v20, %v104_v6  ;;  %v1866_v34 = vpop.f32.mrb[22].mxu0  ;;  %v2453_v37 = vpop.f32.mrb[22].mxu1  ;;  %v1300_v44 = vadd.f32 %v1299_v9, %v1298_v15  ;;  %v794_v6 = vadd.f32 %v2256_v22, %v121_v50 }
 0x120   :  { %v1497_v43 = vadd.f32 %v1496_v8, %v1495_v16  ;;  %v1741_v28 = vpack.c.bf16 %v2449_v29, %v2449_v29  ;;  %844 = vst.msk [vmem:[#allocation2 + $0xb0] sm:$0xff] %vm19_vm0, %v779_v19  ;;  %v585_v48 = vpop.f32.mrb[23].mxu0  ;;  %v2459_v42 = vpop.f32.mrb[23].mxu1  ;;  %v780_v0 = vadd.f32 %v1866_v34, %v107_v21  ;;  %v1427_v49 = vmul.f32 %v2449_v29, %v2449_v29  ;;  %v110_v5 = vld [vmem:[#allocation2 + $0xd0] sm:$0xff]  ;;  %v108_v34 = vld [vmem:[#allocation2 + $0xc0] sm:$0xff] }
 0x121   :  { %v905_v45 = vld [vmem:[#allocation2 + $0x80] sm:$0xff]  ;;  %842 = vst.msk [vmem:[#allocation2 + $0xa0] sm:$0xff] %vm19_vm0, %v777_v30  ;;  %v1302_v61 = vadd.f32 %v1301_v25, %v1300_v44  ;;  %v778_v2 = vadd.f32 %v585_v48, %v105_v35  ;;  %v130_v8 = vld [vmem:[#allocation2 + $0x170] sm:$0xff]  ;;  %v908_v11 = vld [vmem:[#allocation2 + $0x98] sm:$0xff]  ;;  %v797_v12 = vadd.f32 %v2299_v52, %v124_v58  ;;  %v800_v15 = vadd.f32 %v2309_v59, %v127_v60 }
 0x122   :  { %v1739_v54 = vpack.c.bf16 %v905_v45, %v905_v45  ;;  %v1425_v57 = vmul.f32 %v905_v45, %v905_v45  ;;  %v1499_v63 = vadd.f32 %v1498_v26, %v1497_v43  ;;  %1228 = vst.msk [vmem:[%s3035_s2 + $0x48] sm:$0xf] %vm1209_vm1, %v1741_v28  ;;  %v1305_v4 = vsel %vm19_vm0, %v905_v45, 0.0  ;;  %v111_v45 = vld [vmem:[#allocation2 + $0xd8] sm:$0xff] }
 0x123   :  { %v1304_v10 = vadd.f32 %v1303_v53, %v1302_v61  ;;  %845 = vst.msk [vmem:[#allocation2 + $0xb8] sm:$0xff] %vm19_vm0, %v780_v0  ;;  %843 = vst.msk [vmem:[#allocation2 + $0xa8] sm:$0xff] %vm19_vm0, %v778_v2  ;;  %v1502_v16 = vsel %vm19_vm0, %v1424_v17, 0.0  ;;  %v1742_v20 = vpack.c.bf16 %v908_v11, %v908_v11  ;;  %v798_v47 = vadd.f32 %v2312_v1, %v125_v3  ;;  %v906_v30 = vld [vmem:[#allocation2 + $0x88] sm:$0xff]  ;;  %v2509_v58 = vld [vmem:[#allocation2 + $0x138] sm:$0xff] }
 0x124   :  { %1226 = vst.msk [vmem:[%s3035_s2 + $0x40] sm:$0xf] %vm1209_vm1, %v1739_v54  ;;  %v1501_v9 = vadd.f32 %v1500_v39, %v1499_v63  ;;  %v1504_v19 = vsel %vm19_vm0, %v1425_v57, 0.0  ;;  %v803_v35 = vadd.f32 %v2342_v32, %v130_v8  ;;  %v1309_v39 = vsel %vm19_vm0, %v2449_v29, 0.0  ;;  %v109_v54 = vld [vmem:[#allocation2 + $0xc8] sm:$0xff] }
 0x125   :  { %v1869_v22 = vpop.f32.mrb[24].mxu0  ;;  %859 = vst.msk [vmem:[#allocation2 + $0x128] sm:$0xff] %vm19_vm0, %v794_v6  ;;  %864 = vst.msk [vmem:[#allocation2 + $0x150] sm:$0xff] %vm19_vm0, %v799_v7  ;;  %v2486_v21 = vpop.f32.mrb[24].mxu1  ;;  %v1306_v25 = vadd.f32 %v1305_v4, %v1304_v10  ;;  %v1740_v1 = vpack.c.bf16 %v906_v30, %v906_v30  ;;  %v1307_v43 = vsel %vm19_vm0, %v906_v30, 0.0  ;;  %v1426_v44 = vmul.f32 %v906_v30, %v906_v30 }
 0x126   :  { %v1503_v26 = vadd.f32 %v1502_v16, %v1501_v9  ;;  %v783_v52 = vadd.f32 %v1869_v22, %v110_v5  ;;  %v598_v59 = vpop.f32.mrb[25].mxu0  ;;  %862 = vst.msk [vmem:[#allocation2 + $0x140] sm:$0xff] %vm19_vm0, %v797_v12  ;;  %865 = vst.msk [vmem:[#allocation2 + $0x158] sm:$0xff] %vm19_vm0, %v800_v15  ;;  %v2491_v36 = vpop.f32.mrb[25].mxu1  ;;  %v1508_v50 = vsel %vm19_vm0, %v1427_v49, 0.0  ;;  %v1311_v61 = vsel %vm19_vm0, %v908_v11, 0.0 }
 0x127   :  { %1229 = vst.msk [vmem:[%s3035_s2 + $0x4c] sm:$0xf] %vm1209_vm1, %v1742_v20  ;;  %v2500_v28 = vld [vmem:[#allocation2 + $0xb0] sm:$0xff]  ;;  %v1870_v48 = vpop.f32.mrb[26].mxu0  ;;  %v2503_v32 = vpop.f32.mrb[26].mxu1  ;;  %v1308_v51 = vadd.f32 %v1307_v43, %v1306_v25  ;;  %v1428_v63 = vmul.f32 %v908_v11, %v908_v11  ;;  %v1506_v0 = vsel %vm19_vm0, %v1426_v44, 0.0  ;;  %v781_v5 = vadd.f32 %v598_v59, %v108_v34 }
 0x128   :  { %863 = vst.msk [vmem:[#allocation2 + $0x148] sm:$0xff] %vm19_vm0, %v798_v47  ;;  %v1505_v29 = vadd.f32 %v1504_v19, %v1503_v26  ;;  %v1745_v53 = vpack.c.bf16 %v2500_v28, %v2500_v28  ;;  %v909_v17 = vld [vmem:[#allocation2 + $0xa0] sm:$0xff]  ;;  %848 = vst.msk [vmem:[#allocation2 + $0xd0] sm:$0xff] %vm19_vm0, %v783_v52  ;;  %v601_v57 = vpop.f32.mrb[27].mxu0  ;;  %v2512_v60 = vpop.f32.mrb[27].mxu1  ;;  %v784_v9 = vadd.f32 %v1870_v48, %v111_v45  ;;  %v114_v11 = vld [vmem:[#allocation2 + $0xf0] sm:$0xff] }
 0x129   :  { %868 = vst.msk [vmem:[#allocation2 + $0x170] sm:$0xff] %vm19_vm0, %v803_v35  ;;  %v1743_v2 = vpack.c.bf16 %v909_v17, %v909_v17  ;;  %v1310_v3 = vadd.f32 %v1309_v39, %v1308_v51  ;;  %v1429_v4 = vmul.f32 %v909_v17, %v909_v17  ;;  %v1313_v6 = vsel %vm19_vm0, %v909_v17, 0.0  ;;  %846 = vst.msk [vmem:[#allocation2 + $0xc0] sm:$0xff] %vm19_vm0, %v781_v5  ;;  %v112_v20 = vld [vmem:[#allocation2 + $0xe0] sm:$0xff]  ;;  %v115_v43 = vld [vmem:[#allocation2 + $0xf8] sm:$0xff] }
 0x12a   :  { %1227 = vst.msk [vmem:[%s3035_s2 + $0x44] sm:$0xf] %vm1209_vm1, %v1740_v1  ;;  %v1507_v49 = vadd.f32 %v1506_v0, %v1505_v29  ;;  %1232 = vst.msk [vmem:[%s3035_s2 + $0x58] sm:$0xf] %vm1209_vm1, %v1745_v53  ;;  %v912_v7 = vld [vmem:[#allocation2 + $0xb8] sm:$0xff]  ;;  %v910_v8 = vld [vmem:[#allocation2 + $0xa8] sm:$0xff]  ;;  %v782_v10 = vadd.f32 %v601_v57, %v109_v54  ;;  %v1762_v12 = vpack.c.bf16 %v2509_v58, %v2509_v58 }
 0x12b   :  { %1230 = vst.msk [vmem:[%s3035_s2 + $0x50] sm:$0xf] %vm1209_vm1, %v1743_v2  ;;  %v1312_v16 = vadd.f32 %v1311_v61, %v1310_v3  ;;  %v1746_v19 = vpack.c.bf16 %v912_v7, %v912_v7  ;;  %v1510_v22 = vsel %vm19_vm0, %v1428_v63, 0.0  ;;  %v1512_v47 = vsel %vm19_vm0, %v1429_v4, 0.0  ;;  %v113_v44 = vld [vmem:[#allocation2 + $0xe8] sm:$0xff] }
 0x12c   :  { %v1509_v15 = vadd.f32 %v1508_v50, %v1507_v49  ;;  %v1744_v25 = vpack.c.bf16 %v910_v8, %v910_v8  ;;  %v1315_v26 = vsel %vm19_vm0, %v910_v8, 0.0  ;;  %849 = vst.msk [vmem:[#allocation2 + $0xd8] sm:$0xff] %vm19_vm0, %v784_v9  ;;  %847 = vst.msk [vmem:[#allocation2 + $0xc8] sm:$0xff] %vm19_vm0, %v782_v10  ;;  %v1430_v35 = vmul.f32 %v910_v8, %v910_v8  ;;  %v2555_v53 = vld [vmem:[#allocation2 + $0x128] sm:$0xff]  ;;  %v2561_v2 = vld [vmem:[#allocation2 + $0x150] sm:$0xff] }
 0x12d   :  { %v1873_v30 = vpop.f32.mrb[28].mxu0  ;;  %1249 = vst.msk [vmem:[%s3035_s2 + $0x9c] sm:$0xf] %vm1209_vm1, %v1762_v12  ;;  %v2541_v52 = vpop.f32.mrb[28].mxu1  ;;  %v1314_v34 = vadd.f32 %v1313_v6, %v1312_v16  ;;  %1233 = vst.msk [vmem:[%s3035_s2 + $0x5c] sm:$0xf] %vm1209_vm1, %v1746_v19  ;;  %v1431_v48 = vmul.f32 %v2500_v28, %v2500_v28  ;;  %v1432_v4 = vmul.f32 %v912_v7, %v912_v7 }
 0x12e   :  { %v1511_v59 = vadd.f32 %v1510_v22, %v1509_v15  ;;  %v787_v39 = vadd.f32 %v1873_v30, %v114_v11  ;;  %v614_v1 = vpop.f32.mrb[29].mxu0  ;;  %v2547_v45 = vpop.f32.mrb[29].mxu1  ;;  %1231 = vst.msk [vmem:[%s3035_s2 + $0x54] sm:$0xf] %vm1209_vm1, %v1744_v25  ;;  %v1514_v61 = vsel %vm19_vm0, %v1430_v35, 0.0  ;;  %v1317_v49 = vsel %vm19_vm0, %v2500_v28, 0.0 }
 0x12f   :  { %v915_v50 = vld [vmem:[#allocation2 + $0xd0] sm:$0xff]  ;;  %v785_v29 = vadd.f32 %v614_v1, %v112_v20  ;;  %v1874_v51 = vpop.f32.mrb[30].mxu0  ;;  %v2557_v17 = vpop.f32.mrb[30].mxu1  ;;  %v1316_v57 = vadd.f32 %v1315_v26, %v1314_v34  ;;  %v1760_v10 = vpack.c.bf16 %v2555_v53, %v2555_v53  ;;  %v1516_v11 = vsel %vm19_vm0, %v1431_v48, 0.0 }
 0x130   :  { %v1513_v54 = vadd.f32 %v1512_v47, %v1511_v59  ;;  %v1749_v63 = vpack.c.bf16 %v915_v50, %v915_v50  ;;  %852 = vst.msk [vmem:[#allocation2 + $0xf0] sm:$0xff] %vm19_vm0, %v787_v39  ;;  %v617_v0 = vpop.f32.mrb[31].mxu0  ;;  %v2563_v3 = vpop.f32.mrb[31].mxu1  ;;  %v788_v5 = vadd.f32 %v1874_v51, %v115_v43  ;;  %v1319_v12 = vsel %vm19_vm0, %v912_v7, 0.0  ;;  %v913_v28 = vld [vmem:[#allocation2 + $0xc0] sm:$0xff] }
 0x131   :  { %850 = vst.msk [vmem:[#allocation2 + $0xe0] sm:$0xff] %vm19_vm0, %v785_v29  ;;  %v786_v6 = vadd.f32 %v617_v0, %v113_v44  ;;  %v1318_v8 = vadd.f32 %v1317_v49, %v1316_v57  ;;  %v1765_v15 = vpack.c.bf16 %v2561_v2, %v2561_v2  ;;  %v1747_v19 = vpack.c.bf16 %v913_v28, %v913_v28 }
 0x132   :  { %v1515_v9 = vadd.f32 %v1514_v61, %v1513_v54  ;;  %1236 = vst.msk [vmem:[%s3035_s2 + $0x68] sm:$0xf] %vm1209_vm1, %v1749_v63  ;;  %v1321_v22 = vsel %vm19_vm0, %v913_v28, 0.0  ;;  %1247 = vst.msk [vmem:[%s3035_s2 + $0x94] sm:$0xf] %vm1209_vm1, %v1760_v10  ;;  %v1518_v7 = vsel %vm19_vm0, %v1432_v4, 0.0  ;;  %v1433_v26 = vmul.f32 %v913_v28, %v913_v28 }
 0x133   :  { %853 = vst.msk [vmem:[#allocation2 + $0xf8] sm:$0xff] %vm19_vm0, %v788_v5  ;;  %851 = vst.msk [vmem:[#allocation2 + $0xe8] sm:$0xff] %vm19_vm0, %v786_v6  ;;  %v1320_v20 = vadd.f32 %v1319_v12, %v1318_v8  ;;  %v916_v47 = vld [vmem:[#allocation2 + $0xd8] sm:$0xff]  ;;  %v914_v25 = vld [vmem:[#allocation2 + $0xc8] sm:$0xff]  ;;  %v1435_v1 = vmul.f32 %v915_v50, %v915_v50  ;;  %v2606_v61 = vsel %vm19_vm0, %v2259_v27, 0.0  ;;  %v1325_v63 = vsel %vm19_vm0, %v915_v50, 0.0 }
 0x134   :  { %v1517_v16 = vadd.f32 %v1516_v11, %v1515_v9  ;;  %v1750_v30 = vpack.c.bf16 %v916_v47, %v916_v47  ;;  %1252 = vst.msk [vmem:[%s3035_s2 + $0xa8] sm:$0xf] %vm1209_vm1, %v1765_v15  ;;  %1234 = vst.msk [vmem:[%s3035_s2 + $0x60] sm:$0xf] %vm1209_vm1, %v1747_v19  ;;  %v1748_v35 = vpack.c.bf16 %v914_v25, %v914_v25  ;;  %v1323_v39 = vsel %vm19_vm0, %v914_v25, 0.0 }
 0x135   :  { %v1322_v34 = vadd.f32 %v1321_v22, %v1320_v20  ;;  %v1520_v43 = vsel %vm19_vm0, %v1433_v26, 0.0  ;;  %v1434_v44 = vmul.f32 %v914_v25, %v914_v25  ;;  %v1436_v0 = vmul.f32 %v916_v47, %v916_v47  ;;  %v2629_v25 = vld [vmem:[#allocation2 + $0x158] sm:$0xff] }
 0x136   :  { %v1519_v59 = vadd.f32 %v1518_v7, %v1517_v16  ;;  %1237 = vst.msk [vmem:[%s3035_s2 + $0x6c] sm:$0xf] %vm1209_vm1, %v1750_v30  ;;  %1235 = vst.msk [vmem:[%s3035_s2 + $0x64] sm:$0xf] %vm1209_vm1, %v1748_v35  ;;  %v2616_v11 = vmul.f32 %v2259_v27, %v2259_v27  ;;  %v1524_v50 = vsel %vm19_vm0, %v1435_v1, 0.0  ;;  %v1327_v12 = vsel %vm19_vm0, %v916_v47, 0.0 }
 0x137   :  { %v919_v48 = vld [vmem:[#allocation2 + $0xf0] sm:$0xff]  ;;  %v1324_v51 = vadd.f32 %v1323_v39, %v1322_v34  ;;  %v1522_v49 = vsel %vm19_vm0, %v1434_v44, 0.0  ;;  %v2625_v16 = vld [vmem:[#allocation2 + $0x140] sm:$0xff]  ;;  %v1441_v27 = vmul.f32 %v2267_v31, %v2267_v31  ;;  %v1526_v47 = vsel %vm19_vm0, %v1436_v0, 0.0  ;;  %v2646_v1 = vld [vmem:[#allocation2 + $0x148] sm:$0xff] }
 0x138   :  { %v1521_v29 = vadd.f32 %v1520_v43, %v1519_v59  ;;  %v1753_v54 = vpack.c.bf16 %v919_v48, %v919_v48  ;;  %v917_v57 = vld [vmem:[#allocation2 + $0xe0] sm:$0xff]  ;;  %v1442_v35 = vmul.f32 %v2330_v18, %v2330_v18  ;;  %v1763_v39 = vpack.c.bf16 %v2625_v16, %v2625_v16 }
 0x139   :  { %v1751_v4 = vpack.c.bf16 %v917_v57, %v917_v57  ;;  %v1326_v5 = vadd.f32 %v1325_v63, %v1324_v51  ;;  %v1437_v8 = vmul.f32 %v917_v57, %v917_v57  ;;  %v1329_v28 = vsel %vm19_vm0, %v917_v57, 0.0 }
 0x13a   :  { %v1523_v6 = vadd.f32 %v1522_v49, %v1521_v29  ;;  %1240 = vst.msk [vmem:[%s3035_s2 + $0x78] sm:$0xf] %vm1209_vm1, %v1753_v54  ;;  %v920_v9 = vld [vmem:[#allocation2 + $0xf8] sm:$0xff]  ;;  %v918_v10 = vld [vmem:[#allocation2 + $0xe8] sm:$0xff]  ;;  %v1439_v43 = vmul.f32 %v919_v48, %v919_v48  ;;  %v1337_v29 = vsel %vm19_vm0, %v2267_v31, 0.0  ;;  %v1766_v51 = vpack.c.bf16 %v2629_v25, %v2629_v25  ;;  %v2653_v54 = vld [vmem:[#allocation2 + $0x170] sm:$0xff] }
 0x13b   :  { %1238 = vst.msk [vmem:[%s3035_s2 + $0x70] sm:$0xf] %vm1209_vm1, %v1751_v4  ;;  %v1754_v15 = vpack.c.bf16 %v920_v9, %v920_v9  ;;  %v1328_v20 = vadd.f32 %v1327_v12, %v1326_v5  ;;  %v1752_v22 = vpack.c.bf16 %v918_v10, %v918_v10  ;;  %v1528_v7 = vsel %vm19_vm0, %v1437_v8, 0.0  ;;  %1250 = vst.msk [vmem:[%s3035_s2 + $0xa0] sm:$0xf] %vm1209_vm1, %v1763_v39  ;;  %v128_v4 = vld [vmem:[#allocation2 + $0x160] sm:$0xff] }
 0x13c   :  { %v1525_v19 = vadd.f32 %v1524_v50, %v1523_v6  ;;  %v1331_v26 = vsel %vm19_vm0, %v918_v10, 0.0  ;;  %v1438_v30 = vmul.f32 %v918_v10, %v918_v10  ;;  %v1536_v0 = vsel %vm19_vm0, %v1441_v27, 0.0  ;;  %1253 = vst.msk [vmem:[%s3035_s2 + $0xac] sm:$0xf] %vm1209_vm1, %v1766_v51  ;;  %v131_v10 = vld [vmem:[#allocation2 + $0x178] sm:$0xff]  ;;  %v129_v50 = vld [vmem:[#allocation2 + $0x168] sm:$0xff] }
 0x13d   :  { %1241 = vst.msk [vmem:[%s3035_s2 + $0x7c] sm:$0xf] %vm1209_vm1, %v1754_v15  ;;  %v1330_v34 = vadd.f32 %v1329_v28, %v1328_v20  ;;  %1239 = vst.msk [vmem:[%s3035_s2 + $0x74] sm:$0xf] %vm1209_vm1, %v1752_v22  ;;  %v2658_v49 = vmul.f32 %v2283_v41, %v2283_v41  ;;  %v1333_v31 = vsel %vm19_vm0, %v919_v48, 0.0  ;;  %v1440_v5 = vmul.f32 %v920_v9, %v920_v9  ;;  %v132_v20 = vld [vmem:[#allocation2 + $0x180] sm:$0xff] }
 0x13e   :  { %v1527_v59 = vadd.f32 %v1526_v47, %v1525_v19  ;;  %v1530_v44 = vsel %vm19_vm0, %v1438_v30, 0.0  ;;  %v1339_v6 = vsel %vm19_vm0, %v2330_v18, 0.0  ;;  %v1764_v8 = vpack.c.bf16 %v2646_v1, %v2646_v1  ;;  %v134_v19 = vld [vmem:[#allocation2 + $0x190] sm:$0xff]  ;;  %v135_v18 = vld [vmem:[#allocation2 + $0x198] sm:$0xff] }
 0x13f   :  { %v1332_v63 = vadd.f32 %v1331_v26, %v1330_v34  ;;  %v1538_v15 = vsel %vm19_vm0, %v1442_v35, 0.0  ;;  %v1769_v48 = vpack.c.bf16 %v2653_v54, %v2653_v54  ;;  %v1532_v22 = vsel %vm19_vm0, %v1439_v43, 0.0  ;;  %v133_v26 = vld [vmem:[#allocation2 + $0x188] sm:$0xff]  ;;  %v138_v30 = vld [vmem:[#allocation2 + $0x1b0] sm:$0xff]  ;;  %v136_v34 = vld [vmem:[#allocation2 + $0x1a0] sm:$0xff] }
 0x140   :  { %v1529_v57 = vadd.f32 %v1528_v7, %v1527_v59  ;;  %v1335_v27 = vsel %vm19_vm0, %v920_v9, 0.0  ;;  %v2680_v47 = vmul.f32 %v2370_v62, %v2370_v62  ;;  %1251 = vst.msk [vmem:[%s3035_s2 + $0xa4] sm:$0xf] %vm1209_vm1, %v1764_v8  ;;  %v801_v7 = vadd.f32 %v2348_v38, %v128_v4  ;;  %v139_v43 = vld [vmem:[#allocation2 + $0x1b8] sm:$0xff]  ;;  %v142_v51 = vld [vmem:[#allocation2 + $0x1d0] sm:$0xff] }
 0x141   :  { %v1334_v12 = vadd.f32 %v1333_v31, %v1332_v63  ;;  %1256 = vst.msk [vmem:[%s3035_s2 + $0xb8] sm:$0xf] %vm1209_vm1, %v1769_v48  ;;  %v804_v9 = vadd.f32 %v2353_v46, %v131_v10  ;;  %v802_v39 = vadd.f32 %v2366_v56, %v129_v50  ;;  %v807_v38 = vadd.f32 %v2394_v13, %v134_v19  ;;  %v140_v31 = vld [vmem:[#allocation2 + $0x1c0] sm:$0xff]  ;;  %v143_v8 = vld [vmem:[#allocation2 + $0x1d8] sm:$0xff]  ;;  %v146_v10 = vld [vmem:[#allocation2 + $0x1f0] sm:$0xff] }
 0x142   :  { %v1531_v28 = vadd.f32 %v1530_v44, %v1529_v57  ;;  %v137_v44 = vld [vmem:[#allocation2 + $0x1a8] sm:$0xff]  ;;  %v1534_v57 = vsel %vm19_vm0, %v1440_v5, 0.0  ;;  %866 = vst.msk [vmem:[#allocation2 + $0x160] sm:$0xff] %vm19_vm0, %v801_v7  ;;  %v805_v63 = vadd.f32 %v2400_v23, %v132_v20  ;;  %v808_v4 = vadd.f32 %v2403_v33, %v135_v18  ;;  %v144_v50 = vld [vmem:[#allocation2 + $0x1e0] sm:$0xff]  ;;  %v147_v13 = vld [vmem:[#allocation2 + $0x1f8] sm:$0xff] }
 0x143   :  { %v1336_v35 = vadd.f32 %v1335_v27, %v1334_v12  ;;  %v141_v12 = vld [vmem:[#allocation2 + $0x1c8] sm:$0xff]  ;;  %869 = vst.msk [vmem:[#allocation2 + $0x178] sm:$0xff] %vm19_vm0, %v804_v9  ;;  %867 = vst.msk [vmem:[#allocation2 + $0x168] sm:$0xff] %vm19_vm0, %v802_v39  ;;  %v806_v56 = vadd.f32 %v2410_v40, %v133_v26  ;;  %v811_v5 = vadd.f32 %v2439_v14, %v138_v30 }
 0x144   :  { %v1533_v59 = vadd.f32 %v1532_v22, %v1531_v28  ;;  %872 = vst.msk [vmem:[#allocation2 + $0x190] sm:$0xff] %vm19_vm0, %v807_v38  ;;  %870 = vst.msk [vmem:[#allocation2 + $0x180] sm:$0xff] %vm19_vm0, %v805_v63  ;;  %v809_v23 = vadd.f32 %v2445_v24, %v136_v34  ;;  %v812_v33 = vadd.f32 %v2453_v37, %v139_v43  ;;  %v145_v40 = vld [vmem:[#allocation2 + $0x1e8] sm:$0xff]  ;;  %v1347_v34 = vsel %vm19_vm0, %v2555_v53, 0.0 }
 0x145   :  { %v1338_v28 = vadd.f32 %v1337_v29, %v1336_v35  ;;  %873 = vst.msk [vmem:[#allocation2 + $0x198] sm:$0xff] %vm19_vm0, %v808_v4  ;;  %v810_v29 = vadd.f32 %v2459_v42, %v137_v44  ;;  %v815_v48 = vadd.f32 %v2486_v21, %v142_v51  ;;  %871 = vst.msk [vmem:[#allocation2 + $0x188] sm:$0xff] %vm19_vm0, %v806_v56  ;;  %v1349_v35 = vsel %vm19_vm0, %v2364_v55, 0.0 }
 0x146   :  { %v1535_v46 = vadd.f32 %v1534_v57, %v1533_v59  ;;  %876 = vst.msk [vmem:[#allocation2 + $0x1b0] sm:$0xff] %vm19_vm0, %v811_v5  ;;  %v813_v20 = vadd.f32 %v2491_v36, %v140_v31  ;;  %v816_v18 = vadd.f32 %v2503_v32, %v143_v8  ;;  %874 = vst.msk [vmem:[#allocation2 + $0x1a0] sm:$0xff] %vm19_vm0, %v809_v23 }
 0x147   :  { %v1340_v14 = vadd.f32 %v1339_v6, %v1338_v28  ;;  %877 = vst.msk [vmem:[#allocation2 + $0x1b8] sm:$0xff] %vm19_vm0, %v812_v33  ;;  %875 = vst.msk [vmem:[#allocation2 + $0x1a8] sm:$0xff] %vm19_vm0, %v810_v29  ;;  %v814_v24 = vadd.f32 %v2512_v60, %v141_v12  ;;  %v819_v37 = vadd.f32 %v2541_v52, %v146_v10  ;;  %v1540_v6 = vsel %vm19_vm0, %v2616_v11, 0.0 }
 0x148   :  { %v1537_v19 = vadd.f32 %v1536_v0, %v1535_v46  ;;  %880 = vst.msk [vmem:[#allocation2 + $0x1d0] sm:$0xff] %vm19_vm0, %v815_v48  ;;  %v817_v42 = vadd.f32 %v2547_v45, %v144_v50  ;;  %v820_v21 = vadd.f32 %v2557_v17, %v147_v13  ;;  %878 = vst.msk [vmem:[#allocation2 + $0x1c0] sm:$0xff] %vm19_vm0, %v813_v20  ;;  %v1343_v60 = vsel %vm19_vm0, %v2283_v41, 0.0 }
 0x149   :  { %v1342_v36 = vadd.f32 %v2606_v61, %v1340_v14  ;;  %881 = vst.msk [vmem:[#allocation2 + $0x1d8] sm:$0xff] %vm19_vm0, %v816_v18  ;;  %v818_v32 = vadd.f32 %v2563_v3, %v145_v40  ;;  %v1345_v52 = vsel %vm19_vm0, %v2370_v62, 0.0  ;;  %879 = vst.msk [vmem:[#allocation2 + $0x1c8] sm:$0xff] %vm19_vm0, %v814_v24  ;;  %v2735_v3 = vld [vmem:[#allocation2 + $0x160] sm:$0xff]  ;;  %v1542_v41 = vsel %vm19_vm0, %v2658_v49, 0.0 }
 0x14a   :  { %v1539_v0 = vadd.f32 %v1538_v15, %v1537_v19  ;;  %884 = vst.msk [vmem:[#allocation2 + $0x1f0] sm:$0xff] %vm19_vm0, %v819_v37  ;;  %882 = vst.msk [vmem:[#allocation2 + $0x1e0] sm:$0xff] %vm19_vm0, %v817_v42  ;;  %v1544_v62 = vsel %vm19_vm0, %v2680_v47, 0.0  ;;  %v1446_v61 = vmul.f32 %v2555_v53, %v2555_v53  ;;  %v1767_v11 = vpack.c.bf16 %v2735_v3, %v2735_v3  ;;  %v2746_v15 = vld [vmem:[#allocation2 + $0x178] sm:$0xff]  ;;  %v2748_v22 = vld [vmem:[#allocation2 + $0x168] sm:$0xff] }
 0x14b   :  { %885 = vst.msk [vmem:[#allocation2 + $0x1f8] sm:$0xff] %vm19_vm0, %v820_v21  ;;  %v1344_v17 = vadd.f32 %v1343_v60, %v1342_v36  ;;  %883 = vst.msk [vmem:[#allocation2 + $0x1e8] sm:$0xff] %vm19_vm0, %v818_v32  ;;  %v1770_v26 = vpack.c.bf16 %v2746_v15, %v2746_v15  ;;  %v2752_v30 = vld [vmem:[#allocation2 + $0x190] sm:$0xff]  ;;  %v2754_v49 = vld [vmem:[#allocation2 + $0x180] sm:$0xff]  ;;  %v1447_v47 = vmul.f32 %v2364_v55, %v2364_v55  ;;  %v1351_v12 = vsel %vm19_vm0, %v2509_v58, 0.0 }
 0x14c   :  { %v1541_v45 = vadd.f32 %v1540_v6, %v1539_v0  ;;  %1254 = vst.msk [vmem:[%s3035_s2 + $0xb0] sm:$0xf] %vm1209_vm1, %v1767_v11  ;;  %v1768_v59 = vpack.c.bf16 %v2748_v22, %v2748_v22  ;;  %v1773_v53 = vpack.c.bf16 %v2752_v30, %v2752_v30  ;;  %v2774_v43 = vld [vmem:[#allocation2 + $0x198] sm:$0xff]  ;;  %v1448_v44 = vmul.f32 %v2509_v58, %v2509_v58  ;;  %v2787_v38 = vld [vmem:[#allocation2 + $0x188] sm:$0xff] }
 0x14d   :  { %v1346_v27 = vadd.f32 %v1345_v52, %v1344_v17  ;;  %1257 = vst.msk [vmem:[%s3035_s2 + $0xbc] sm:$0xf] %vm1209_vm1, %v1770_v26  ;;  %v1546_v51 = vsel %vm19_vm0, %v1446_v61, 0.0  ;;  %v1449_v55 = vmul.f32 %v2625_v16, %v2625_v16  ;;  %v1771_v57 = vpack.c.bf16 %v2754_v49, %v2754_v49  ;;  %v2793_v31 = vld [vmem:[#allocation2 + $0x1b0] sm:$0xff]  ;;  %v2808_v50 = vld [vmem:[#allocation2 + $0x1a0] sm:$0xff] }
 0x14e   :  { %v1543_v7 = vadd.f32 %v1542_v41, %v1541_v45  ;;  %1255 = vst.msk [vmem:[%s3035_s2 + $0xb4] sm:$0xf] %vm1209_vm1, %v1768_v59  ;;  %1260 = vst.msk [vmem:[%s3035_s2 + $0xc8] sm:$0xf] %vm1209_vm1, %v1773_v53  ;;  %v1548_v8 = vsel %vm19_vm0, %v1447_v47, 0.0  ;;  %v1353_v28 = vsel %vm19_vm0, %v2625_v16, 0.0  ;;  %v1774_v46 = vpack.c.bf16 %v2774_v43, %v2774_v43 }
 0x14f   :  { %v1348_v39 = vadd.f32 %v1347_v34, %v1346_v27  ;;  %1258 = vst.msk [vmem:[%s3035_s2 + $0xc0] sm:$0xf] %vm1209_vm1, %v1771_v57  ;;  %v1772_v10 = vpack.c.bf16 %v2787_v38, %v2787_v38  ;;  %v1550_v58 = vsel %vm19_vm0, %v1448_v44, 0.0  ;;  %v1552_v13 = vsel %vm19_vm0, %v1449_v55, 0.0  ;;  %v2820_v33 = vld [vmem:[#allocation2 + $0x1b8] sm:$0xff]  ;;  %v2826_v40 = vld [vmem:[#allocation2 + $0x1a8] sm:$0xff] }
 0x150   :  { %v1545_v9 = vadd.f32 %v1544_v62, %v1543_v7  ;;  %v1450_v16 = vmul.f32 %v2646_v1, %v2646_v1  ;;  %1261 = vst.msk [vmem:[%s3035_s2 + $0xcc] sm:$0xf] %vm1209_vm1, %v1774_v46  ;;  %v1777_v23 = vpack.c.bf16 %v2793_v31, %v2793_v31  ;;  %v1451_v19 = vmul.f32 %v2561_v2, %v2561_v2  ;;  %v2842_v21 = vld [vmem:[#allocation2 + $0x1d0] sm:$0xff]  ;;  %v2855_v32 = vld [vmem:[#allocation2 + $0x1c0] sm:$0xff]  ;;  %v2861_v52 = vld [vmem:[#allocation2 + $0x1d8] sm:$0xff] }
 0x151   :  { %v1350_v63 = vadd.f32 %v1349_v35, %v1348_v39  ;;  %1259 = vst.msk [vmem:[%s3035_s2 + $0xc4] sm:$0xf] %vm1209_vm1, %v1772_v10  ;;  %v1355_v14 = vsel %vm19_vm0, %v2646_v1, 0.0  ;;  %v1775_v20 = vpack.c.bf16 %v2808_v50, %v2808_v50  ;;  %v1357_v18 = vsel %vm19_vm0, %v2561_v2, 0.0  ;;  %v2876_v7 = vld [vmem:[#allocation2 + $0x1c8] sm:$0xff]  ;;  %v2888_v34 = vld [vmem:[#allocation2 + $0x1f0] sm:$0xff] }
 0x152   :  { %v1547_v4 = vadd.f32 %v1546_v51, %v1545_v9  ;;  %1264 = vst.msk [vmem:[%s3035_s2 + $0xd8] sm:$0xf] %vm1209_vm1, %v1777_v23  ;;  %v1778_v42 = vpack.c.bf16 %v2820_v33, %v2820_v33  ;;  %v1452_v1 = vmul.f32 %v2629_v25, %v2629_v25  ;;  %v1554_v36 = vsel %vm19_vm0, %v1450_v16, 0.0  ;;  %v2894_v9 = vld [vmem:[#allocation2 + $0x1e0] sm:$0xff] }
 0x153   :  { %v1352_v5 = vadd.f32 %v1351_v12, %v1350_v63  ;;  %v1453_v0 = vmul.f32 %v2735_v3, %v2735_v3  ;;  %1262 = vst.msk [vmem:[%s3035_s2 + $0xd0] sm:$0xf] %vm1209_vm1, %v1775_v20  ;;  %v1776_v2 = vpack.c.bf16 %v2826_v40, %v2826_v40  ;;  %v1556_v45 = vsel %vm19_vm0, %v1451_v19, 0.0 }
 0x154   :  { %v1549_v56 = vadd.f32 %v1548_v8, %v1547_v4  ;;  %1265 = vst.msk [vmem:[%s3035_s2 + $0xdc] sm:$0xf] %vm1209_vm1, %v1778_v42  ;;  %v1359_v17 = vsel %vm19_vm0, %v2629_v25, 0.0  ;;  %v1361_v41 = vsel %vm19_vm0, %v2735_v3, 0.0  ;;  %v1781_v62 = vpack.c.bf16 %v2842_v21, %v2842_v21  ;;  %v2910_v4 = vld [vmem:[#allocation2 + $0x1f8] sm:$0xff] }
 0x155   :  { %v1354_v29 = vadd.f32 %v1353_v28, %v1352_v5  ;;  %1263 = vst.msk [vmem:[%s3035_s2 + $0xd4] sm:$0xf] %vm1209_vm1, %v1776_v2  ;;  %v1779_v27 = vpack.c.bf16 %v2855_v32, %v2855_v32  ;;  %v1558_v25 = vsel %vm19_vm0, %v1452_v1, 0.0  ;;  %v1560_v26 = vsel %vm19_vm0, %v1453_v0, 0.0  ;;  %v2923_v28 = vld [vmem:[#allocation2 + $0x1e8] sm:$0xff] }
 0x156   :  { %v1551_v48 = vadd.f32 %v1550_v58, %v1549_v56  ;;  %v1454_v3 = vmul.f32 %v2748_v22, %v2748_v22  ;;  %1268 = vst.msk [vmem:[%s3035_s2 + $0xe8] sm:$0xf] %vm1209_vm1, %v1781_v62  ;;  %v1782_v47 = vpack.c.bf16 %v2861_v52, %v2861_v52  ;;  %v1455_v39 = vmul.f32 %v2653_v54, %v2653_v54 }
 0x157   :  { %v1356_v37 = vadd.f32 %v1355_v14, %v1354_v29  ;;  %1266 = vst.msk [vmem:[%s3035_s2 + $0xe0] sm:$0xf] %vm1209_vm1, %v1779_v27  ;;  %v1363_v53 = vsel %vm19_vm0, %v2748_v22, 0.0  ;;  %v1780_v44 = vpack.c.bf16 %v2876_v7, %v2876_v7  ;;  %v1365_v51 = vsel %vm19_vm0, %v2653_v54, 0.0 }
 0x158   :  { %v1553_v24 = vadd.f32 %v1552_v13, %v1551_v48  ;;  %1269 = vst.msk [vmem:[%s3035_s2 + $0xec] sm:$0xf] %vm1209_vm1, %v1782_v47  ;;  %v1785_v63 = vpack.c.bf16 %v2888_v34, %v2888_v34  ;;  %v1456_v22 = vmul.f32 %v2746_v15, %v2746_v15  ;;  %v1562_v8 = vsel %vm19_vm0, %v1454_v3, 0.0 }
 0x159   :  { %v1358_v6 = vadd.f32 %v1357_v18, %v1356_v37  ;;  %v1457_v12 = vmul.f32 %v2754_v49, %v2754_v49  ;;  %1267 = vst.msk [vmem:[%s3035_s2 + $0xe4] sm:$0xf] %vm1209_vm1, %v1780_v44  ;;  %v1783_v54 = vpack.c.bf16 %v2894_v9, %v2894_v9  ;;  %v1564_v5 = vsel %vm19_vm0, %v1455_v39, 0.0 }
 0x15a   :  { %v1555_v60 = vadd.f32 %v1554_v36, %v1553_v24  ;;  %1272 = vst.msk [vmem:[%s3035_s2 + $0xf8] sm:$0xf] %vm1209_vm1, %v1785_v63  ;;  %v1367_v10 = vsel %vm19_vm0, %v2746_v15, 0.0  ;;  %v1369_v58 = vsel %vm19_vm0, %v2754_v49, 0.0  ;;  %v1786_v13 = vpack.c.bf16 %v2910_v4, %v2910_v4 }
 0x15b   :  { %v1360_v11 = vadd.f32 %v1359_v17, %v1358_v6  ;;  %1270 = vst.msk [vmem:[%s3035_s2 + $0xf0] sm:$0xf] %vm1209_vm1, %v1783_v54  ;;  %v1784_v29 = vpack.c.bf16 %v2923_v28, %v2923_v28  ;;  %v1566_v48 = vsel %vm19_vm0, %v1456_v22, 0.0  ;;  %v1568_v15 = vsel %vm19_vm0, %v1457_v12, 0.0 }
 0x15c   :  { %v1557_v61 = vadd.f32 %v1556_v45, %v1555_v60  ;;  %v1458_v49 = vmul.f32 %v2787_v38, %v2787_v38  ;;  %1273 = vst.msk [vmem:[%s3035_s2 + $0xfc] sm:$0xf] %vm1209_vm1, %v1786_v13  ;;  %v1459_v20 = vmul.f32 %v2752_v30, %v2752_v30  ;;  %v1371_v18 = vsel %vm19_vm0, %v2787_v38, 0.0 }
 0x15d   :  { %v1362_v59 = vadd.f32 %v1361_v41, %v1360_v11  ;;  %1271 = vst.msk [vmem:[%s3035_s2 + $0xf4] sm:$0xf] %vm1209_vm1, %v1784_v29  ;;  %v1373_v42 = vsel %vm19_vm0, %v2752_v30, 0.0  ;;  %v1460_v1 = vmul.f32 %v2774_v43, %v2774_v43  ;;  %v1461_v0 = vmul.f32 %v2808_v50, %v2808_v50 }
 0x15e   :  { %v1559_v35 = vadd.f32 %v1558_v25, %v1557_v61  ;;  %v1570_v36 = vsel %vm19_vm0, %v1458_v49, 0.0  ;;  %v1572_v60 = vsel %vm19_vm0, %v1459_v20, 0.0  ;;  %v1375_v38 = vsel %vm19_vm0, %v2774_v43, 0.0 }
 0x15f   :  { %v1364_v57 = vadd.f32 %v1363_v53, %v1362_v59  ;;  %v1377_v45 = vsel %vm19_vm0, %v2808_v50, 0.0  ;;  %v1574_v41 = vsel %vm19_vm0, %v1460_v1, 0.0  ;;  %v1576_v62 = vsel %vm19_vm0, %v1461_v0, 0.0 }
 0x160   :  { %v1561_v55 = vadd.f32 %v1560_v26, %v1559_v35  ;;  %v1462_v61 = vmul.f32 %v2826_v40, %v2826_v40  ;;  %v1463_v25 = vmul.f32 %v2793_v31, %v2793_v31  ;;  %v1379_v43 = vsel %vm19_vm0, %v2826_v40, 0.0 }
 0x161   :  { %v1366_v46 = vadd.f32 %v1365_v51, %v1364_v57  ;;  %v1381_v50 = vsel %vm19_vm0, %v2793_v31, 0.0  ;;  %v1464_v47 = vmul.f32 %v2820_v33, %v2820_v33  ;;  %v1465_v35 = vmul.f32 %v2855_v32, %v2855_v32 }
 0x162   :  { %v1563_v56 = vadd.f32 %v1562_v8, %v1561_v55  ;;  %v1578_v59 = vsel %vm19_vm0, %v1462_v61, 0.0  ;;  %v1580_v44 = vsel %vm19_vm0, %v1463_v25, 0.0  ;;  %v1383_v40 = vsel %vm19_vm0, %v2820_v33, 0.0 }
 0x163   :  { %v1368_v23 = vadd.f32 %v1367_v10, %v1366_v46  ;;  %v1385_v51 = vsel %vm19_vm0, %v2855_v32, 0.0  ;;  %v1582_v57 = vsel %vm19_vm0, %v1464_v47, 0.0  ;;  %v1584_v63 = vsel %vm19_vm0, %v1465_v35, 0.0 }
 0x164   :  { %v1565_v16 = vadd.f32 %v1564_v5, %v1563_v56  ;;  %v1466_v22 = vmul.f32 %v2876_v7, %v2876_v7  ;;  %v1467_v54 = vmul.f32 %v2842_v21, %v2842_v21  ;;  %v1387_v33 = vsel %vm19_vm0, %v2876_v7, 0.0 }
 0x165   :  { %v1370_v19 = vadd.f32 %v1369_v58, %v1368_v23  ;;  %v1389_v32 = vsel %vm19_vm0, %v2842_v21, 0.0  ;;  %v1468_v5 = vmul.f32 %v2861_v52, %v2861_v52  ;;  %v1469_v58 = vmul.f32 %v2894_v9, %v2894_v9 }
 0x166   :  { %v1567_v14 = vadd.f32 %v1566_v48, %v1565_v16  ;;  %v1586_v10 = vsel %vm19_vm0, %v1466_v22, 0.0  ;;  %v1588_v23 = vsel %vm19_vm0, %v1467_v54, 0.0  ;;  %v1391_v7 = vsel %vm19_vm0, %v2861_v52, 0.0 }
 0x167   :  { %v1372_v37 = vadd.f32 %v1371_v18, %v1370_v19  ;;  %v1393_v29 = vsel %vm19_vm0, %v2894_v9, 0.0  ;;  %v1592_v49 = vsel %vm19_vm0, %v1469_v58, 0.0  ;;  %v1470_v19 = vmul.f32 %v2923_v28, %v2923_v28 }
 0x168   :  { %v1569_v24 = vadd.f32 %v1568_v15, %v1567_v14  ;;  %v1590_v15 = vsel %vm19_vm0, %v1468_v5, 0.0  ;;  %v1471_v18 = vmul.f32 %v2888_v34, %v2888_v34  ;;  %v1395_v52 = vsel %vm19_vm0, %v2923_v28, 0.0 }
 0x169   :  { %v1374_v2 = vadd.f32 %v1373_v42, %v1372_v37  ;;  %v1397_v9 = vsel %vm19_vm0, %v2888_v34, 0.0  ;;  %v1472_v42 = vmul.f32 %v2910_v4, %v2910_v4  ;;  %v1594_v1 = vsel %vm19_vm0, %v1470_v19, 0.0 }
 0x16a   :  { %v1571_v6 = vadd.f32 %v1570_v36, %v1569_v24 }
 0x16b   :  { %v1376_v30 = vadd.f32 %v1375_v38, %v1374_v2  ;;  %v1596_v2 = vsel %vm19_vm0, %v1471_v18, 0.0  ;;  %v1598_v28 = vsel %vm19_vm0, %v1472_v42, 0.0 }
 0x16c   :  { %v1573_v17 = vadd.f32 %v1572_v60, %v1571_v6  ;;  %v1399_v6 = vsel %vm19_vm0, %v2910_v4, 0.0 }
 0x16d   :  { %v1378_v11 = vadd.f32 %v1377_v45, %v1376_v30 }
 0x16e   :  { %v1575_v27 = vadd.f32 %v1574_v41, %v1573_v17 }
 0x16f   :  { %v1380_v3 = vadd.f32 %v1379_v43, %v1378_v11 }
 0x170   :  { %v1577_v26 = vadd.f32 %v1576_v62, %v1575_v27 }
 0x171   :  { %v1382_v39 = vadd.f32 %v1381_v50, %v1380_v3 }
 0x172   :  { %v1579_v53 = vadd.f32 %v1578_v59, %v1577_v26 }
 0x173   :  { %v1384_v31 = vadd.f32 %v1383_v40, %v1382_v39 }
 0x174   :  { %v1581_v55 = vadd.f32 %v1580_v44, %v1579_v53 }
 0x175   :  { %v1386_v8 = vadd.f32 %v1385_v51, %v1384_v31 }
 0x176   :  { %v1583_v12 = vadd.f32 %v1582_v57, %v1581_v55 }
 0x177   :  { %v1388_v56 = vadd.f32 %v1387_v33, %v1386_v8 }
 0x178   :  { %v1585_v46 = vadd.f32 %v1584_v63, %v1583_v12 }
 0x179   :  { %v1390_v13 = vadd.f32 %v1389_v32, %v1388_v56 }
 0x17a   :  { %v1587_v16 = vadd.f32 %v1586_v10, %v1585_v46 }
 0x17b   :  { %v1392_v21 = vadd.f32 %v1391_v7, %v1390_v13 }
 0x17c   :  { %v1589_v48 = vadd.f32 %v1588_v23, %v1587_v16 }
 0x17d   :  { %v1394_v14 = vadd.f32 %v1393_v29, %v1392_v21 }
 0x17e   :  { %v1591_v20 = vadd.f32 %v1590_v15, %v1589_v48 }
 0x17f   :  { %v1396_v37 = vadd.f32 %v1395_v52, %v1394_v14 }
 0x180   :  { %v1593_v24 = vadd.f32 %v1592_v49, %v1591_v20 }
 0x181   :  { %v1398_v36 = vadd.f32 %v1397_v9, %v1396_v37 }
 0x182   :  { %v1595_v0 = vadd.f32 %v1594_v1, %v1593_v24 }
 0x183   :  { %v1400_v60 = vadd.f32 %v1399_v6, %v1398_v36 }
 0x184   :  { %v1597_v38 = vadd.f32 %v1596_v2, %v1595_v0 }
 0x185   :  { %v1401_v45 = vrot.slane %v1400_v60, 4 }
 0x186   :  { %v1599_v17 = vadd.f32 %v1598_v28, %v1597_v38 }
 0x187   :  { %v1402_v30 = vadd.f32 %v1401_v45, %v1400_v60 }
 0x188   :  { %v1600_v34 = vrot.slane %v1599_v17, 4 }
 0x189   :  { %v1403_v41 = vrot.slane %v1402_v30, 2 }
 0x18a   :  { %v1601_v62 = vadd.f32 %v1600_v34, %v1599_v17 }
 0x18b   :  { %v1404_v61 = vadd.f32 %v1403_v41, %v1402_v30 }
 0x18c   :  { %v1602_v11 = vrot.slane %v1601_v62, 2 }
 0x18d   :  { %v1405_v27 = vrot.slane %v1404_v61, 1 }
 0x18e   :  { %v1603_v25 = vadd.f32 %v1602_v11, %v1601_v62 }
 0x18f   :  { %v1406_v43 = vadd.f32 %v1405_v27, %v1404_v61 }
 0x190   :  { %v1604_v26 = vrot.slane %v1603_v25, 1 }
 0x191   :  { %1408 = vst.msk [vmem:[%s3036_s3] sm:$0x1] %vm1407_vm2, %v1406_v43 }
 0x192   :  { %v1605_v4 = vadd.f32 %v1604_v26, %v1603_v25 }
 0x194   :  { %1606 = vst.msk [vmem:[%s3037_s4] sm:$0x1] %vm1407_vm2, %v1605_v4 }

// kernel: _lambda_.8
= control target key start
LH: loop header
LB: loop body
LE: loop exit
PB: predicated region body
PF: predicated region fallthrough
CT: control target
= control target key end

     0   :  { %vm1449_vm0 = vcmask 392192   ;;  %vm16_vm1 = vcmask 64512   ;;  %v7018_v49 = vmov 0.0   ;;  %vm5455_vm4 = vcmask 60416   ;;  %s10187_s1 = inlined_call_operand.vmem [shape: bf16[48,8], index: 1, kind: input, shape index: {}]   ;;  %s10188_s0 = inlined_call_operand.vmem [shape: bf16[2048,48], index: 0, kind: input, shape index: {}]   ;;  %s10189_s2 = inlined_call_operand.vmem [shape: bf16[2048,8], index: 2, kind: output, shape index: {}]  }
   0x1   :  { %v6887_v0 = vld [vmem:[%s10187_s1] sm:$0xff]   ;;  %v6888_v1 = vld [vmem:[%s10187_s1 + $0x8] sm:$0xff]   ;;  %v6889_v2 = vld [vmem:[%s10187_s1 + $0x10] sm:$0xff]   ;;  %19 = vst.msk [vmem:[#allocation2 + $0x10] sm:$0xff] %vm16_vm1, %v7018_v49 }
   0x2   :  { %6618 = vmatprep.subr.bf16.mxu0 %v6887_v0  ;;  %6880 = vmatprep.subr.bf16.mxu1 %v6887_v0  ;;  %v6890_v3 = vld [vmem:[%s10188_s0] sm:$0xff]   ;;  %v6892_v5 = vld [vmem:[%s10188_s0 + $0x8] sm:$0xff]   ;;  %v6894_v7 = vld [vmem:[%s10188_s0 + $0x10] sm:$0xff]   ;;  %17 = vst.msk [vmem:[#allocation2] sm:$0xff] %vm16_vm1, %v7018_v49 }
   0x3   :  { %6619 = vmatpush3.bf16.msra.mxu0 %v6887_v0  ;;  %6883 = vmatpush3.bf16.msra.mxu1 %v6887_v0  ;;  %v6891_v4 = vld [vmem:[%s10188_s0 + $0x200] sm:$0xff]   ;;  %v6893_v6 = vld [vmem:[%s10188_s0 + $0x208] sm:$0xff]   ;;  %v6895_v8 = vld [vmem:[%s10188_s0 + $0x210] sm:$0xff]   ;;  %18 = vst.msk [vmem:[#allocation2 + $0x8] sm:$0xff] %vm16_vm1, %v7018_v49 }
   0x4   :  { %6620 = vmatprep.subr.bf16.mxu0 %v6888_v1  ;;  %6881 = vmatprep.subr.bf16.mxu1 %v6888_v1  ;;  %v6896_v9 = vld [vmem:[%s10188_s0 + $0x18] sm:$0xff]   ;;  %v6898_v11 = vld [vmem:[%s10188_s0 + $0x20] sm:$0xff]   ;;  %v6900_v13 = vld [vmem:[%s10188_s0 + $0x28] sm:$0xff]   ;;  %20 = vst.msk [vmem:[#allocation2 + $0x18] sm:$0xff] %vm16_vm1, %v7018_v49 }
   0x5   :  { %6624 = vmatprep.mubr.msk.bf16.mxu0 %vm1449_vm0, %v6890_v3  ;;  %6752 = vmatprep.mubr.msk.bf16.mxu1 %vm1449_vm0, %v6891_v4  ;;  %v6897_v10 = vld [vmem:[%s10188_s0 + $0x218] sm:$0xff]   ;;  %v6899_v12 = vld [vmem:[%s10188_s0 + $0x220] sm:$0xff]   ;;  %v6901_v14 = vld [vmem:[%s10188_s0 + $0x228] sm:$0xff]   ;;  %21 = vst.msk [vmem:[#allocation2 + $0x20] sm:$0xff] %vm16_vm1, %v7018_v49 }
   0x6   :  { %v6902_v15 = vld [vmem:[%s10188_s0 + $0x30] sm:$0xff]   ;;  %v6904_v17 = vld [vmem:[%s10188_s0 + $0x38] sm:$0xff]   ;;  %v6906_v19 = vld [vmem:[%s10188_s0 + $0x40] sm:$0xff]   ;;  %22 = vst.msk [vmem:[#allocation2 + $0x28] sm:$0xff] %vm16_vm1, %v7018_v49 }
   0x7   :  { %6621 = vmatpush3.bf16.msra.mxu0 %v6888_v1  ;;  %6884 = vmatpush3.bf16.msra.mxu1 %v6888_v1  ;;  %v6903_v16 = vld [vmem:[%s10188_s0 + $0x230] sm:$0xff]   ;;  %v6905_v18 = vld [vmem:[%s10188_s0 + $0x238] sm:$0xff]   ;;  %v6907_v20 = vld [vmem:[%s10188_s0 + $0x240] sm:$0xff]   ;;  %23 = vst.msk [vmem:[#allocation2 + $0x30] sm:$0xff] %vm16_vm1, %v7018_v49 }
   0x8   :  { %6622 = vmatprep.subr.bf16.mxu0 %v6889_v2  ;;  %6882 = vmatprep.subr.bf16.mxu1 %v6889_v2  ;;  %v6908_v21 = vld [vmem:[%s10188_s0 + $0x48] sm:$0xff]   ;;  %v6910_v23 = vld [vmem:[%s10188_s0 + $0x50] sm:$0xff]   ;;  %v6912_v25 = vld [vmem:[%s10188_s0 + $0x58] sm:$0xff]   ;;  %24 = vst.msk [vmem:[#allocation2 + $0x38] sm:$0xff] %vm16_vm1, %v7018_v49 }
   0x9   :  { %v6909_v22 = vld [vmem:[%s10188_s0 + $0x248] sm:$0xff]   ;;  %v6911_v24 = vld [vmem:[%s10188_s0 + $0x250] sm:$0xff]   ;;  %v6913_v26 = vld [vmem:[%s10188_s0 + $0x258] sm:$0xff]   ;;  %25 = vst.msk [vmem:[#allocation2 + $0x40] sm:$0xff] %vm16_vm1, %v7018_v49 }
   0xa   :  { %v6914_v27 = vld [vmem:[%s10188_s0 + $0x60] sm:$0xff]   ;;  %v6916_v29 = vld [vmem:[%s10188_s0 + $0x68] sm:$0xff]   ;;  %v6918_v31 = vld [vmem:[%s10188_s0 + $0x70] sm:$0xff]   ;;  %26 = vst.msk [vmem:[#allocation2 + $0x48] sm:$0xff] %vm16_vm1, %v7018_v49 }
   0xb   :  { %6623 = vmatpush3.bf16.msra.mxu0 %v6889_v2  ;;  %6885 = vmatpush3.bf16.msra.mxu1 %v6889_v2  ;;  %v6915_v28 = vld [vmem:[%s10188_s0 + $0x260] sm:$0xff]   ;;  %v6917_v30 = vld [vmem:[%s10188_s0 + $0x268] sm:$0xff]   ;;  %v6919_v32 = vld [vmem:[%s10188_s0 + $0x270] sm:$0xff]   ;;  %27 = vst.msk [vmem:[#allocation2 + $0x50] sm:$0xff] %vm16_vm1, %v7018_v49 }
   0xc   :  { %v6920_v33 = vld [vmem:[%s10188_s0 + $0x78] sm:$0xff]   ;;  %v6922_v35 = vld [vmem:[%s10188_s0 + $0x80] sm:$0xff]   ;;  %v6924_v37 = vld [vmem:[%s10188_s0 + $0x88] sm:$0xff]   ;;  %28 = vst.msk [vmem:[#allocation2 + $0x58] sm:$0xff] %vm16_vm1, %v7018_v49 }
   0xd   :  { %v6921_v34 = vld [vmem:[%s10188_s0 + $0x278] sm:$0xff]   ;;  %v6923_v36 = vld [vmem:[%s10188_s0 + $0x280] sm:$0xff]   ;;  %v6925_v38 = vld [vmem:[%s10188_s0 + $0x288] sm:$0xff]   ;;  %29 = vst.msk [vmem:[#allocation2 + $0x60] sm:$0xff] %vm16_vm1, %v7018_v49 }
   0xe   :  { %6625 = vmatmul.mubr.msk.bf16.vlgmr.msra.gmra.mrb[0].mxu0 %vm1449_vm0, %v6892_v5  ;;  %6753 = vmatmul.mubr.msk.bf16.vlgmr.msra.gmra.mrb[0].mxu1 %vm1449_vm0, %v6893_v6  ;;  %v6926_v39 = vld [vmem:[%s10188_s0 + $0x90] sm:$0xff]   ;;  %v6928_v41 = vld [vmem:[%s10188_s0 + $0x98] sm:$0xff]   ;;  %v6930_v43 = vld [vmem:[%s10188_s0 + $0xa0] sm:$0xff]   ;;  %30 = vst.msk [vmem:[#allocation2 + $0x68] sm:$0xff] %vm16_vm1, %v7018_v49 }
   0xf   :  { %6628 = vmatprep.mubr.msk.bf16.mxu0 %vm1449_vm0, %v6894_v7  ;;  %6756 = vmatprep.mubr.msk.bf16.mxu1 %vm1449_vm0, %v6895_v8  ;;  %v6927_v40 = vld [vmem:[%s10188_s0 + $0x290] sm:$0xff]   ;;  %v6929_v42 = vld [vmem:[%s10188_s0 + $0x298] sm:$0xff]   ;;  %v6931_v44 = vld [vmem:[%s10188_s0 + $0x2a0] sm:$0xff]   ;;  %31 = vst.msk [vmem:[#allocation2 + $0x70] sm:$0xff] %vm16_vm1, %v7018_v49 }
  0x10   :  { %v7214_v45 = vld [vmem:[%s10188_s0 + $0xa8] sm:$0xff]   ;;  %v7224_v47 = vld [vmem:[%s10188_s0 + $0xb0] sm:$0xff]   ;;  %32 = vst.msk [vmem:[#allocation2 + $0x78] sm:$0xff] %vm16_vm1, %v7018_v49  ;;  %33 = vst.msk [vmem:[#allocation2 + $0x80] sm:$0xff] %vm16_vm1, %v7018_v49 }
  0x11   :  { %v7219_v46 = vld [vmem:[%s10188_s0 + $0x2a8] sm:$0xff]   ;;  %v7229_v48 = vld [vmem:[%s10188_s0 + $0x2b0] sm:$0xff]   ;;  %34 = vst.msk [vmem:[#allocation2 + $0x88] sm:$0xff] %vm16_vm1, %v7018_v49  ;;  %35 = vst.msk [vmem:[#allocation2 + $0x90] sm:$0xff] %vm16_vm1, %v7018_v49 }
  0x12   :  { %36 = vst.msk [vmem:[#allocation2 + $0x98] sm:$0xff] %vm16_vm1, %v7018_v49  ;;  %37 = vst.msk [vmem:[#allocation2 + $0xa0] sm:$0xff] %vm16_vm1, %v7018_v49  ;;  %v6936_v50 = vld [vmem:[%s10188_s0 + $0xb8] sm:$0xff]   ;;  %v6938_v52 = vld [vmem:[%s10188_s0 + $0xc0] sm:$0xff]  }
  0x13   :  { %38 = vst.msk [vmem:[#allocation2 + $0xa8] sm:$0xff] %vm16_vm1, %v7018_v49  ;;  %39 = vst.msk [vmem:[#allocation2 + $0xb0] sm:$0xff] %vm16_vm1, %v7018_v49  ;;  %v6937_v51 = vld [vmem:[%s10188_s0 + $0x2b8] sm:$0xff]   ;;  %v6939_v53 = vld [vmem:[%s10188_s0 + $0x2c0] sm:$0xff]  }
  0x14   :  { %40 = vst.msk [vmem:[#allocation2 + $0xb8] sm:$0xff] %vm16_vm1, %v7018_v49  ;;  %41 = vst.msk [vmem:[#allocation2 + $0xc0] sm:$0xff] %vm16_vm1, %v7018_v49  ;;  %v6940_v54 = vld [vmem:[%s10188_s0 + $0xc8] sm:$0xff]   ;;  %v6942_v56 = vld [vmem:[%s10188_s0 + $0xd0] sm:$0xff]  }
  0x15   :  { %42 = vst.msk [vmem:[#allocation2 + $0xc8] sm:$0xff] %vm16_vm1, %v7018_v49  ;;  %43 = vst.msk [vmem:[#allocation2 + $0xd0] sm:$0xff] %vm16_vm1, %v7018_v49  ;;  %v6941_v55 = vld [vmem:[%s10188_s0 + $0x2c8] sm:$0xff]   ;;  %v6943_v57 = vld [vmem:[%s10188_s0 + $0x2d0] sm:$0xff]  }
  0x16   :  { %6629 = vmatmul.mubr.msk.bf16.gmra.mrb[4].mxu0 %vm1449_vm0, %v6896_v9  ;;  %6757 = vmatmul.mubr.msk.bf16.gmra.mrb[4].mxu1 %vm1449_vm0, %v6897_v10  ;;  %44 = vst.msk [vmem:[#allocation2 + $0xd8] sm:$0xff] %vm16_vm1, %v7018_v49  ;;  %45 = vst.msk [vmem:[#allocation2 + $0xe0] sm:$0xff] %vm16_vm1, %v7018_v49  ;;  %v6944_v58 = vld [vmem:[%s10188_s0 + $0xd8] sm:$0xff]   ;;  %v6946_v60 = vld [vmem:[%s10188_s0 + $0xe0] sm:$0xff]  }
  0x17   :  { %6632 = vmatprep.mubr.msk.bf16.mxu0 %vm1449_vm0, %v6898_v11  ;;  %6760 = vmatprep.mubr.msk.bf16.mxu1 %vm1449_vm0, %v6899_v12  ;;  %46 = vst.msk [vmem:[#allocation2 + $0xe8] sm:$0xff] %vm16_vm1, %v7018_v49  ;;  %47 = vst.msk [vmem:[#allocation2 + $0xf0] sm:$0xff] %vm16_vm1, %v7018_v49  ;;  %v6945_v59 = vld [vmem:[%s10188_s0 + $0x2d8] sm:$0xff]   ;;  %v6947_v61 = vld [vmem:[%s10188_s0 + $0x2e0] sm:$0xff]  }
  0x18   :  { %48 = vst.msk [vmem:[#allocation2 + $0xf8] sm:$0xff] %vm16_vm1, %v7018_v49  ;;  %49 = vst.msk [vmem:[#allocation2 + $0x100] sm:$0xff] %vm16_vm1, %v7018_v49  ;;  %v6948_v62 = vld [vmem:[%s10188_s0 + $0xe8] sm:$0xff]   ;;  %v6950_v0 = vld [vmem:[%s10188_s0 + $0xf0] sm:$0xff]  }
  0x19   :  { %50 = vst.msk [vmem:[#allocation2 + $0x108] sm:$0xff] %vm16_vm1, %v7018_v49  ;;  %51 = vst.msk [vmem:[#allocation2 + $0x110] sm:$0xff] %vm16_vm1, %v7018_v49  ;;  %v6949_v63 = vld [vmem:[%s10188_s0 + $0x2e8] sm:$0xff]   ;;  %v6951_v1 = vld [vmem:[%s10188_s0 + $0x2f0] sm:$0xff]  }
  0x1a   :  { %52 = vst.msk [vmem:[#allocation2 + $0x118] sm:$0xff] %vm16_vm1, %v7018_v49  ;;  %53 = vst.msk [vmem:[#allocation2 + $0x120] sm:$0xff] %vm16_vm1, %v7018_v49  ;;  %v6952_v2 = vld [vmem:[%s10188_s0 + $0xf8] sm:$0xff]   ;;  %v6954_v4 = vld [vmem:[%s10188_s0 + $0x100] sm:$0xff]  }
  0x1b   :  { %54 = vst.msk [vmem:[#allocation2 + $0x128] sm:$0xff] %vm16_vm1, %v7018_v49  ;;  %55 = vst.msk [vmem:[#allocation2 + $0x130] sm:$0xff] %vm16_vm1, %v7018_v49  ;;  %v6953_v3 = vld [vmem:[%s10188_s0 + $0x2f8] sm:$0xff]   ;;  %v6955_v5 = vld [vmem:[%s10188_s0 + $0x300] sm:$0xff]  }
  0x1c   :  { %56 = vst.msk [vmem:[#allocation2 + $0x138] sm:$0xff] %vm16_vm1, %v7018_v49  ;;  %57 = vst.msk [vmem:[#allocation2 + $0x140] sm:$0xff] %vm16_vm1, %v7018_v49  ;;  %v6956_v6 = vld [vmem:[%s10188_s0 + $0x108] sm:$0xff]   ;;  %v6958_v8 = vld [vmem:[%s10188_s0 + $0x110] sm:$0xff]  }
  0x1d   :  { %58 = vst.msk [vmem:[#allocation2 + $0x148] sm:$0xff] %vm16_vm1, %v7018_v49  ;;  %59 = vst.msk [vmem:[#allocation2 + $0x150] sm:$0xff] %vm16_vm1, %v7018_v49  ;;  %v6957_v7 = vld [vmem:[%s10188_s0 + $0x308] sm:$0xff]   ;;  %v6959_v9 = vld [vmem:[%s10188_s0 + $0x310] sm:$0xff]  }
  0x1e   :  { %6633 = vmatmul.mubr.msk.bf16.gmra.mrb[8].mxu0 %vm1449_vm0, %v6900_v13  ;;  %6761 = vmatmul.mubr.msk.bf16.gmra.mrb[8].mxu1 %vm1449_vm0, %v6901_v14  ;;  %60 = vst.msk [vmem:[#allocation2 + $0x158] sm:$0xff] %vm16_vm1, %v7018_v49  ;;  %61 = vst.msk [vmem:[#allocation2 + $0x160] sm:$0xff] %vm16_vm1, %v7018_v49  ;;  %v6960_v10 = vld [vmem:[%s10188_s0 + $0x118] sm:$0xff]   ;;  %v6962_v12 = vld [vmem:[%s10188_s0 + $0x120] sm:$0xff]  }
  0x1f   :  { %6636 = vmatprep.mubr.msk.bf16.mxu0 %vm1449_vm0, %v6902_v15  ;;  %6764 = vmatprep.mubr.msk.bf16.mxu1 %vm1449_vm0, %v6903_v16  ;;  %62 = vst.msk [vmem:[#allocation2 + $0x168] sm:$0xff] %vm16_vm1, %v7018_v49  ;;  %63 = vst.msk [vmem:[#allocation2 + $0x170] sm:$0xff] %vm16_vm1, %v7018_v49  ;;  %v6961_v11 = vld [vmem:[%s10188_s0 + $0x318] sm:$0xff]   ;;  %v6963_v13 = vld [vmem:[%s10188_s0 + $0x320] sm:$0xff]  }
  0x20   :  { %64 = vst.msk [vmem:[#allocation2 + $0x178] sm:$0xff] %vm16_vm1, %v7018_v49  ;;  %65 = vst.msk [vmem:[#allocation2 + $0x180] sm:$0xff] %vm16_vm1, %v7018_v49  ;;  %v6964_v14 = vld [vmem:[%s10188_s0 + $0x128] sm:$0xff]   ;;  %v6966_v16 = vld [vmem:[%s10188_s0 + $0x130] sm:$0xff]  }
  0x21   :  { %66 = vst.msk [vmem:[#allocation2 + $0x188] sm:$0xff] %vm16_vm1, %v7018_v49  ;;  %67 = vst.msk [vmem:[#allocation2 + $0x190] sm:$0xff] %vm16_vm1, %v7018_v49  ;;  %v6965_v15 = vld [vmem:[%s10188_s0 + $0x328] sm:$0xff]  }
  0x22   :  { %68 = vst.msk [vmem:[#allocation2 + $0x198] sm:$0xff] %vm16_vm1, %v7018_v49  ;;  %69 = vst.msk [vmem:[#allocation2 + $0x1a0] sm:$0xff] %vm16_vm1, %v7018_v49 }
  0x23   :  { %70 = vst.msk [vmem:[#allocation2 + $0x1a8] sm:$0xff] %vm16_vm1, %v7018_v49  ;;  %71 = vst.msk [vmem:[#allocation2 + $0x1b0] sm:$0xff] %vm16_vm1, %v7018_v49 }
  0x24   :  { %72 = vst.msk [vmem:[#allocation2 + $0x1b8] sm:$0xff] %vm16_vm1, %v7018_v49  ;;  %73 = vst.msk [vmem:[#allocation2 + $0x1c0] sm:$0xff] %vm16_vm1, %v7018_v49 }
  0x25   :  { %74 = vst.msk [vmem:[#allocation2 + $0x1c8] sm:$0xff] %vm16_vm1, %v7018_v49  ;;  %75 = vst.msk [vmem:[#allocation2 + $0x1d0] sm:$0xff] %vm16_vm1, %v7018_v49 }
  0x26   :  { %6637 = vmatmul.mubr.msk.bf16.gmra.mrb[12].mxu0 %vm1449_vm0, %v6904_v17  ;;  %6765 = vmatmul.mubr.msk.bf16.gmra.mrb[12].mxu1 %vm1449_vm0, %v6905_v18  ;;  %76 = vst.msk [vmem:[#allocation2 + $0x1d8] sm:$0xff] %vm16_vm1, %v7018_v49  ;;  %77 = vst.msk [vmem:[#allocation2 + $0x1e0] sm:$0xff] %vm16_vm1, %v7018_v49  ;;  %v6967_v17 = vld [vmem:[%s10188_s0 + $0x330] sm:$0xff]   ;;  %v6968_v18 = vld [vmem:[%s10188_s0 + $0x138] sm:$0xff]  }
  0x27   :  { %6640 = vmatprep.mubr.msk.bf16.mxu0 %vm1449_vm0, %v6906_v19  ;;  %6768 = vmatprep.mubr.msk.bf16.mxu1 %vm1449_vm0, %v6907_v20  ;;  %78 = vst.msk [vmem:[#allocation2 + $0x1e8] sm:$0xff] %vm16_vm1, %v7018_v49  ;;  %79 = vst.msk [vmem:[#allocation2 + $0x1f0] sm:$0xff] %vm16_vm1, %v7018_v49  ;;  %v6969_v19 = vld [vmem:[%s10188_s0 + $0x338] sm:$0xff]   ;;  %v6970_v20 = vld [vmem:[%s10188_s0 + $0x140] sm:$0xff]  }
  0x28   :  { %80 = vst.msk [vmem:[#allocation2 + $0x1f8] sm:$0xff] %vm16_vm1, %v7018_v49  ;;  %81 = vst.msk [vmem:[#allocation2 + $0x200] sm:$0xff] %vm16_vm1, %v7018_v49 }
  0x29   :  { %82 = vst.msk [vmem:[#allocation2 + $0x208] sm:$0xff] %vm16_vm1, %v7018_v49  ;;  %83 = vst.msk [vmem:[#allocation2 + $0x210] sm:$0xff] %vm16_vm1, %v7018_v49 }
  0x2a   :  { %84 = vst.msk [vmem:[#allocation2 + $0x218] sm:$0xff] %vm16_vm1, %v7018_v49  ;;  %85 = vst.msk [vmem:[#allocation2 + $0x220] sm:$0xff] %vm16_vm1, %v7018_v49 }
  0x2b   :  { %86 = vst.msk [vmem:[#allocation2 + $0x228] sm:$0xff] %vm16_vm1, %v7018_v49  ;;  %87 = vst.msk [vmem:[#allocation2 + $0x230] sm:$0xff] %vm16_vm1, %v7018_v49 }
  0x2c   :  { %88 = vst.msk [vmem:[#allocation2 + $0x238] sm:$0xff] %vm16_vm1, %v7018_v49  ;;  %89 = vst.msk [vmem:[#allocation2 + $0x240] sm:$0xff] %vm16_vm1, %v7018_v49 }
  0x2d   :  { %90 = vst.msk [vmem:[#allocation2 + $0x248] sm:$0xff] %vm16_vm1, %v7018_v49  ;;  %91 = vst.msk [vmem:[#allocation2 + $0x250] sm:$0xff] %vm16_vm1, %v7018_v49 }
  0x2e   :  { %6641 = vmatmul.mubr.msk.bf16.gmra.mrb[16].mxu0 %vm1449_vm0, %v6908_v21  ;;  %6769 = vmatmul.mubr.msk.bf16.gmra.mrb[16].mxu1 %vm1449_vm0, %v6909_v22  ;;  %92 = vst.msk [vmem:[#allocation2 + $0x258] sm:$0xff] %vm16_vm1, %v7018_v49  ;;  %93 = vst.msk [vmem:[#allocation2 + $0x260] sm:$0xff] %vm16_vm1, %v7018_v49  ;;  %v6971_v21 = vld [vmem:[%s10188_s0 + $0x340] sm:$0xff]   ;;  %v6972_v22 = vld [vmem:[%s10188_s0 + $0x148] sm:$0xff]  }
  0x2f   :  { %6644 = vmatprep.mubr.msk.bf16.mxu0 %vm1449_vm0, %v6910_v23  ;;  %6772 = vmatprep.mubr.msk.bf16.mxu1 %vm1449_vm0, %v6911_v24  ;;  %94 = vst.msk [vmem:[#allocation2 + $0x268] sm:$0xff] %vm16_vm1, %v7018_v49  ;;  %95 = vst.msk [vmem:[#allocation2 + $0x270] sm:$0xff] %vm16_vm1, %v7018_v49  ;;  %v6973_v23 = vld [vmem:[%s10188_s0 + $0x348] sm:$0xff]   ;;  %v6974_v24 = vld [vmem:[%s10188_s0 + $0x150] sm:$0xff]  }
  0x30   :  { %96 = vst.msk [vmem:[#allocation2 + $0x278] sm:$0xff] %vm16_vm1, %v7018_v49  ;;  %97 = vst.msk [vmem:[#allocation2 + $0x280] sm:$0xff] %vm16_vm1, %v7018_v49 }
  0x31   :  { %98 = vst.msk [vmem:[#allocation2 + $0x288] sm:$0xff] %vm16_vm1, %v7018_v49  ;;  %99 = vst.msk [vmem:[#allocation2 + $0x290] sm:$0xff] %vm16_vm1, %v7018_v49 }
  0x32   :  { %100 = vst.msk [vmem:[#allocation2 + $0x298] sm:$0xff] %vm16_vm1, %v7018_v49  ;;  %101 = vst.msk [vmem:[#allocation2 + $0x2a0] sm:$0xff] %vm16_vm1, %v7018_v49 }
  0x33   :  { %102 = vst.msk [vmem:[#allocation2 + $0x2a8] sm:$0xff] %vm16_vm1, %v7018_v49  ;;  %103 = vst.msk [vmem:[#allocation2 + $0x2b0] sm:$0xff] %vm16_vm1, %v7018_v49 }
  0x34   :  { %104 = vst.msk [vmem:[#allocation2 + $0x2b8] sm:$0xff] %vm16_vm1, %v7018_v49  ;;  %105 = vst.msk [vmem:[#allocation2 + $0x2c0] sm:$0xff] %vm16_vm1, %v7018_v49 }
  0x35   :  { %106 = vst.msk [vmem:[#allocation2 + $0x2c8] sm:$0xff] %vm16_vm1, %v7018_v49  ;;  %107 = vst.msk [vmem:[#allocation2 + $0x2d0] sm:$0xff] %vm16_vm1, %v7018_v49 }
  0x36   :  { %6645 = vmatmul.mubr.msk.bf16.gmra.mrb[20].mxu0 %vm1449_vm0, %v6912_v25  ;;  %6773 = vmatmul.mubr.msk.bf16.gmra.mrb[20].mxu1 %vm1449_vm0, %v6913_v26  ;;  %108 = vst.msk [vmem:[#allocation2 + $0x2d8] sm:$0xff] %vm16_vm1, %v7018_v49  ;;  %109 = vst.msk [vmem:[#allocation2 + $0x2e0] sm:$0xff] %vm16_vm1, %v7018_v49  ;;  %v6975_v25 = vld [vmem:[%s10188_s0 + $0x350] sm:$0xff]   ;;  %v6976_v26 = vld [vmem:[%s10188_s0 + $0x158] sm:$0xff]  }
  0x37   :  { %6648 = vmatprep.mubr.msk.bf16.mxu0 %vm1449_vm0, %v6914_v27  ;;  %6776 = vmatprep.mubr.msk.bf16.mxu1 %vm1449_vm0, %v6915_v28  ;;  %110 = vst.msk [vmem:[#allocation2 + $0x2e8] sm:$0xff] %vm16_vm1, %v7018_v49  ;;  %111 = vst.msk [vmem:[#allocation2 + $0x2f0] sm:$0xff] %vm16_vm1, %v7018_v49  ;;  %v6977_v27 = vld [vmem:[%s10188_s0 + $0x358] sm:$0xff]   ;;  %v6978_v28 = vld [vmem:[%s10188_s0 + $0x160] sm:$0xff]  }
  0x38   :  { %112 = vst.msk [vmem:[#allocation2 + $0x2f8] sm:$0xff] %vm16_vm1, %v7018_v49  ;;  %113 = vst.msk [vmem:[#allocation2 + $0x300] sm:$0xff] %vm16_vm1, %v7018_v49 }
  0x39   :  { %114 = vst.msk [vmem:[#allocation2 + $0x308] sm:$0xff] %vm16_vm1, %v7018_v49  ;;  %115 = vst.msk [vmem:[#allocation2 + $0x310] sm:$0xff] %vm16_vm1, %v7018_v49 }
  0x3a   :  { %116 = vst.msk [vmem:[#allocation2 + $0x318] sm:$0xff] %vm16_vm1, %v7018_v49  ;;  %117 = vst.msk [vmem:[#allocation2 + $0x320] sm:$0xff] %vm16_vm1, %v7018_v49 }
  0x3b   :  { %118 = vst.msk [vmem:[#allocation2 + $0x328] sm:$0xff] %vm16_vm1, %v7018_v49  ;;  %119 = vst.msk [vmem:[#allocation2 + $0x330] sm:$0xff] %vm16_vm1, %v7018_v49 }
  0x3c   :  { %120 = vst.msk [vmem:[#allocation2 + $0x338] sm:$0xff] %vm16_vm1, %v7018_v49  ;;  %121 = vst.msk [vmem:[#allocation2 + $0x340] sm:$0xff] %vm16_vm1, %v7018_v49 }
  0x3d   :  { %122 = vst.msk [vmem:[#allocation2 + $0x348] sm:$0xff] %vm16_vm1, %v7018_v49  ;;  %123 = vst.msk [vmem:[#allocation2 + $0x350] sm:$0xff] %vm16_vm1, %v7018_v49 }
  0x3e   :  { %6649 = vmatmul.mubr.msk.bf16.gmra.mrb[24].mxu0 %vm1449_vm0, %v6916_v29  ;;  %6777 = vmatmul.mubr.msk.bf16.gmra.mrb[24].mxu1 %vm1449_vm0, %v6917_v30  ;;  %124 = vst.msk [vmem:[#allocation2 + $0x358] sm:$0xff] %vm16_vm1, %v7018_v49  ;;  %125 = vst.msk [vmem:[#allocation2 + $0x360] sm:$0xff] %vm16_vm1, %v7018_v49  ;;  %v6979_v29 = vld [vmem:[%s10188_s0 + $0x360] sm:$0xff]   ;;  %v6980_v30 = vld [vmem:[%s10188_s0 + $0x168] sm:$0xff]  }
  0x3f   :  { %6652 = vmatprep.mubr.msk.bf16.mxu0 %vm1449_vm0, %v6918_v31  ;;  %6780 = vmatprep.mubr.msk.bf16.mxu1 %vm1449_vm0, %v6919_v32  ;;  %126 = vst.msk [vmem:[#allocation2 + $0x368] sm:$0xff] %vm16_vm1, %v7018_v49  ;;  %127 = vst.msk [vmem:[#allocation2 + $0x370] sm:$0xff] %vm16_vm1, %v7018_v49  ;;  %v6981_v31 = vld [vmem:[%s10188_s0 + $0x368] sm:$0xff]   ;;  %v6982_v32 = vld [vmem:[%s10188_s0 + $0x170] sm:$0xff]  }
  0x40   :  { %128 = vst.msk [vmem:[#allocation2 + $0x378] sm:$0xff] %vm16_vm1, %v7018_v49  ;;  %129 = vst.msk [vmem:[#allocation2 + $0x380] sm:$0xff] %vm16_vm1, %v7018_v49 }
  0x41   :  { %130 = vst.msk [vmem:[#allocation2 + $0x388] sm:$0xff] %vm16_vm1, %v7018_v49  ;;  %131 = vst.msk [vmem:[#allocation2 + $0x390] sm:$0xff] %vm16_vm1, %v7018_v49 }
  0x42   :  { %132 = vst.msk [vmem:[#allocation2 + $0x398] sm:$0xff] %vm16_vm1, %v7018_v49  ;;  %133 = vst.msk [vmem:[#allocation2 + $0x3a0] sm:$0xff] %vm16_vm1, %v7018_v49 }
  0x43   :  { %134 = vst.msk [vmem:[#allocation2 + $0x3a8] sm:$0xff] %vm16_vm1, %v7018_v49  ;;  %135 = vst.msk [vmem:[#allocation2 + $0x3b0] sm:$0xff] %vm16_vm1, %v7018_v49 }
  0x44   :  { %136 = vst.msk [vmem:[#allocation2 + $0x3b8] sm:$0xff] %vm16_vm1, %v7018_v49  ;;  %137 = vst.msk [vmem:[#allocation2 + $0x3c0] sm:$0xff] %vm16_vm1, %v7018_v49 }
  0x45   :  { %138 = vst.msk [vmem:[#allocation2 + $0x3c8] sm:$0xff] %vm16_vm1, %v7018_v49  ;;  %139 = vst.msk [vmem:[#allocation2 + $0x3d0] sm:$0xff] %vm16_vm1, %v7018_v49 }
  0x46   :  { %6653 = vmatmul.mubr.msk.bf16.gmra.mrb[28].mxu0 %vm1449_vm0, %v6920_v33  ;;  %6781 = vmatmul.mubr.msk.bf16.gmra.mrb[28].mxu1 %vm1449_vm0, %v6921_v34  ;;  %140 = vst.msk [vmem:[#allocation2 + $0x3d8] sm:$0xff] %vm16_vm1, %v7018_v49  ;;  %141 = vst.msk [vmem:[#allocation2 + $0x3e0] sm:$0xff] %vm16_vm1, %v7018_v49  ;;  %v6983_v33 = vld [vmem:[%s10188_s0 + $0x370] sm:$0xff]   ;;  %v6984_v34 = vld [vmem:[%s10188_s0 + $0x178] sm:$0xff]  }
  0x47   :  { %6656 = vmatprep.mubr.msk.bf16.mxu0 %vm1449_vm0, %v6922_v35  ;;  %6784 = vmatprep.mubr.msk.bf16.mxu1 %vm1449_vm0, %v6923_v36  ;;  %142 = vst.msk [vmem:[#allocation2 + $0x3e8] sm:$0xff] %vm16_vm1, %v7018_v49  ;;  %143 = vst.msk [vmem:[#allocation2 + $0x3f0] sm:$0xff] %vm16_vm1, %v7018_v49  ;;  %v6985_v35 = vld [vmem:[%s10188_s0 + $0x378] sm:$0xff]   ;;  %v6986_v36 = vld [vmem:[%s10188_s0 + $0x180] sm:$0xff]  }
  0x48   :  { %144 = vst.msk [vmem:[#allocation2 + $0x3f8] sm:$0xff] %vm16_vm1, %v7018_v49  ;;  %145 = vst.msk [vmem:[#allocation2 + $0x400] sm:$0xff] %vm16_vm1, %v7018_v49 }
  0x49   :  { %146 = vst.msk [vmem:[#allocation2 + $0x408] sm:$0xff] %vm16_vm1, %v7018_v49  ;;  %147 = vst.msk [vmem:[#allocation2 + $0x410] sm:$0xff] %vm16_vm1, %v7018_v49 }
  0x4a   :  { %148 = vst.msk [vmem:[#allocation2 + $0x418] sm:$0xff] %vm16_vm1, %v7018_v49  ;;  %149 = vst.msk [vmem:[#allocation2 + $0x420] sm:$0xff] %vm16_vm1, %v7018_v49 }
  0x4b   :  { %150 = vst.msk [vmem:[#allocation2 + $0x428] sm:$0xff] %vm16_vm1, %v7018_v49  ;;  %151 = vst.msk [vmem:[#allocation2 + $0x430] sm:$0xff] %vm16_vm1, %v7018_v49 }
  0x4c   :  { %152 = vst.msk [vmem:[#allocation2 + $0x438] sm:$0xff] %vm16_vm1, %v7018_v49  ;;  %153 = vst.msk [vmem:[#allocation2 + $0x440] sm:$0xff] %vm16_vm1, %v7018_v49 }
  0x4d   :  { %154 = vst.msk [vmem:[#allocation2 + $0x448] sm:$0xff] %vm16_vm1, %v7018_v49  ;;  %155 = vst.msk [vmem:[#allocation2 + $0x450] sm:$0xff] %vm16_vm1, %v7018_v49 }
  0x4e   :  { %6657 = vmatmul.mubr.msk.bf16.gmra.mrb[32].mxu0 %vm1449_vm0, %v6924_v37  ;;  %6785 = vmatmul.mubr.msk.bf16.gmra.mrb[32].mxu1 %vm1449_vm0, %v6925_v38  ;;  %156 = vst.msk [vmem:[#allocation2 + $0x458] sm:$0xff] %vm16_vm1, %v7018_v49  ;;  %157 = vst.msk [vmem:[#allocation2 + $0x460] sm:$0xff] %vm16_vm1, %v7018_v49  ;;  %v6987_v37 = vld [vmem:[%s10188_s0 + $0x380] sm:$0xff]   ;;  %v6988_v38 = vld [vmem:[%s10188_s0 + $0x188] sm:$0xff]  }
  0x4f   :  { %6660 = vmatprep.mubr.msk.bf16.mxu0 %vm1449_vm0, %v6926_v39  ;;  %6788 = vmatprep.mubr.msk.bf16.mxu1 %vm1449_vm0, %v6927_v40  ;;  %158 = vst.msk [vmem:[#allocation2 + $0x468] sm:$0xff] %vm16_vm1, %v7018_v49  ;;  %159 = vst.msk [vmem:[#allocation2 + $0x470] sm:$0xff] %vm16_vm1, %v7018_v49  ;;  %v6989_v39 = vld [vmem:[%s10188_s0 + $0x388] sm:$0xff]   ;;  %v6990_v40 = vld [vmem:[%s10188_s0 + $0x190] sm:$0xff]  }
  0x50   :  { %160 = vst.msk [vmem:[#allocation2 + $0x478] sm:$0xff] %vm16_vm1, %v7018_v49  ;;  %161 = vst.msk [vmem:[#allocation2 + $0x480] sm:$0xff] %vm16_vm1, %v7018_v49 }
  0x51   :  { %162 = vst.msk [vmem:[#allocation2 + $0x488] sm:$0xff] %vm16_vm1, %v7018_v49  ;;  %163 = vst.msk [vmem:[#allocation2 + $0x490] sm:$0xff] %vm16_vm1, %v7018_v49 }
  0x52   :  { %164 = vst.msk [vmem:[#allocation2 + $0x498] sm:$0xff] %vm16_vm1, %v7018_v49  ;;  %165 = vst.msk [vmem:[#allocation2 + $0x4a0] sm:$0xff] %vm16_vm1, %v7018_v49 }
  0x53   :  { %166 = vst.msk [vmem:[#allocation2 + $0x4a8] sm:$0xff] %vm16_vm1, %v7018_v49  ;;  %167 = vst.msk [vmem:[#allocation2 + $0x4b0] sm:$0xff] %vm16_vm1, %v7018_v49 }
  0x54   :  { %168 = vst.msk [vmem:[#allocation2 + $0x4b8] sm:$0xff] %vm16_vm1, %v7018_v49  ;;  %169 = vst.msk [vmem:[#allocation2 + $0x4c0] sm:$0xff] %vm16_vm1, %v7018_v49 }
  0x55   :  { %170 = vst.msk [vmem:[#allocation2 + $0x4c8] sm:$0xff] %vm16_vm1, %v7018_v49  ;;  %171 = vst.msk [vmem:[#allocation2 + $0x4d0] sm:$0xff] %vm16_vm1, %v7018_v49 }
  0x56   :  { %6661 = vmatmul.mubr.msk.bf16.gmra.mrb[36].mxu0 %vm1449_vm0, %v6928_v41  ;;  %6789 = vmatmul.mubr.msk.bf16.gmra.mrb[36].mxu1 %vm1449_vm0, %v6929_v42  ;;  %172 = vst.msk [vmem:[#allocation2 + $0x4d8] sm:$0xff] %vm16_vm1, %v7018_v49  ;;  %173 = vst.msk [vmem:[#allocation2 + $0x4e0] sm:$0xff] %vm16_vm1, %v7018_v49  ;;  %v6991_v41 = vld [vmem:[%s10188_s0 + $0x390] sm:$0xff]   ;;  %v6992_v42 = vld [vmem:[%s10188_s0 + $0x198] sm:$0xff]  }
  0x57   :  { %6664 = vmatprep.mubr.msk.bf16.mxu0 %vm1449_vm0, %v6930_v43  ;;  %6792 = vmatprep.mubr.msk.bf16.mxu1 %vm1449_vm0, %v6931_v44  ;;  %174 = vst.msk [vmem:[#allocation2 + $0x4e8] sm:$0xff] %vm16_vm1, %v7018_v49  ;;  %175 = vst.msk [vmem:[#allocation2 + $0x4f0] sm:$0xff] %vm16_vm1, %v7018_v49  ;;  %v6993_v43 = vld [vmem:[%s10188_s0 + $0x398] sm:$0xff]   ;;  %v6994_v44 = vld [vmem:[%s10188_s0 + $0x1a0] sm:$0xff]  }
  0x58   :  { %176 = vst.msk [vmem:[#allocation2 + $0x4f8] sm:$0xff] %vm16_vm1, %v7018_v49  ;;  %177 = vst.msk [vmem:[#allocation2 + $0x500] sm:$0xff] %vm16_vm1, %v7018_v49 }
  0x59   :  { %178 = vst.msk [vmem:[#allocation2 + $0x508] sm:$0xff] %vm16_vm1, %v7018_v49  ;;  %179 = vst.msk [vmem:[#allocation2 + $0x510] sm:$0xff] %vm16_vm1, %v7018_v49 }
  0x5a   :  { %180 = vst.msk [vmem:[#allocation2 + $0x518] sm:$0xff] %vm16_vm1, %v7018_v49  ;;  %181 = vst.msk [vmem:[#allocation2 + $0x520] sm:$0xff] %vm16_vm1, %v7018_v49 }
  0x5b   :  { %182 = vst.msk [vmem:[#allocation2 + $0x528] sm:$0xff] %vm16_vm1, %v7018_v49  ;;  %183 = vst.msk [vmem:[#allocation2 + $0x530] sm:$0xff] %vm16_vm1, %v7018_v49 }
  0x5c   :  { %184 = vst.msk [vmem:[#allocation2 + $0x538] sm:$0xff] %vm16_vm1, %v7018_v49  ;;  %185 = vst.msk [vmem:[#allocation2 + $0x540] sm:$0xff] %vm16_vm1, %v7018_v49 }
  0x5d   :  { %186 = vst.msk [vmem:[#allocation2 + $0x548] sm:$0xff] %vm16_vm1, %v7018_v49  ;;  %187 = vst.msk [vmem:[#allocation2 + $0x550] sm:$0xff] %vm16_vm1, %v7018_v49 }
  0x5e   :  { %188 = vst.msk [vmem:[#allocation2 + $0x558] sm:$0xff] %vm16_vm1, %v7018_v49  ;;  %189 = vst.msk [vmem:[#allocation2 + $0x560] sm:$0xff] %vm16_vm1, %v7018_v49  ;;  %6665 = vmatmul.mubr.msk.bf16.gmra.mrb[40].mxu0 %vm1449_vm0, %v7214_v45  ;;  %6793 = vmatmul.mubr.msk.bf16.gmra.mrb[40].mxu1 %vm1449_vm0, %v7219_v46  ;;  %v6995_v45 = vld [vmem:[%s10188_s0 + $0x3a0] sm:$0xff]   ;;  %v6996_v46 = vld [vmem:[%s10188_s0 + $0x1a8] sm:$0xff]  }
  0x5f   :  { %190 = vst.msk [vmem:[#allocation2 + $0x568] sm:$0xff] %vm16_vm1, %v7018_v49  ;;  %191 = vst.msk [vmem:[#allocation2 + $0x570] sm:$0xff] %vm16_vm1, %v7018_v49  ;;  %6668 = vmatprep.mubr.msk.bf16.mxu0 %vm1449_vm0, %v7224_v47  ;;  %6796 = vmatprep.mubr.msk.bf16.mxu1 %vm1449_vm0, %v7229_v48  ;;  %v6997_v47 = vld [vmem:[%s10188_s0 + $0x3a8] sm:$0xff]   ;;  %v6998_v48 = vld [vmem:[%s10188_s0 + $0x1b0] sm:$0xff]  }
  0x60   :  { %192 = vst.msk [vmem:[#allocation2 + $0x578] sm:$0xff] %vm16_vm1, %v7018_v49  ;;  %193 = vst.msk [vmem:[#allocation2 + $0x580] sm:$0xff] %vm16_vm1, %v7018_v49 }
  0x61   :  { %194 = vst.msk [vmem:[#allocation2 + $0x588] sm:$0xff] %vm16_vm1, %v7018_v49  ;;  %195 = vst.msk [vmem:[#allocation2 + $0x590] sm:$0xff] %vm16_vm1, %v7018_v49 }
  0x62   :  { %196 = vst.msk [vmem:[#allocation2 + $0x598] sm:$0xff] %vm16_vm1, %v7018_v49  ;;  %197 = vst.msk [vmem:[#allocation2 + $0x5a0] sm:$0xff] %vm16_vm1, %v7018_v49 }
  0x63   :  { %198 = vst.msk [vmem:[#allocation2 + $0x5a8] sm:$0xff] %vm16_vm1, %v7018_v49  ;;  %199 = vst.msk [vmem:[#allocation2 + $0x5b0] sm:$0xff] %vm16_vm1, %v7018_v49 }
  0x64   :  { %200 = vst.msk [vmem:[#allocation2 + $0x5b8] sm:$0xff] %vm16_vm1, %v7018_v49  ;;  %201 = vst.msk [vmem:[#allocation2 + $0x5c0] sm:$0xff] %vm16_vm1, %v7018_v49 }
  0x65   :  { %202 = vst.msk [vmem:[#allocation2 + $0x5c8] sm:$0xff] %vm16_vm1, %v7018_v49  ;;  %203 = vst.msk [vmem:[#allocation2 + $0x5d0] sm:$0xff] %vm16_vm1, %v7018_v49 }
  0x66   :  { %204 = vst.msk [vmem:[#allocation2 + $0x5d8] sm:$0xff] %vm16_vm1, %v7018_v49  ;;  %205 = vst.msk [vmem:[#allocation2 + $0x5e0] sm:$0xff] %vm16_vm1, %v7018_v49  ;;  %6669 = vmatmul.mubr.msk.bf16.gmra.mrb[44].mxu0 %vm1449_vm0, %v6936_v50  ;;  %6797 = vmatmul.mubr.msk.bf16.gmra.mrb[44].mxu1 %vm1449_vm0, %v6937_v51  ;;  %v275_v50 = vld [vmem:[#allocation2 + $0x10] sm:$0xff] }
  0x67   :  { %206 = vst.msk [vmem:[#allocation2 + $0x5e8] sm:$0xff] %vm16_vm1, %v7018_v49  ;;  %207 = vst.msk [vmem:[#allocation2 + $0x5f0] sm:$0xff] %vm16_vm1, %v7018_v49  ;;  %6672 = vmatprep.mubr.msk.bf16.mxu0 %vm1449_vm0, %v6938_v52  ;;  %6800 = vmatprep.mubr.msk.bf16.mxu1 %vm1449_vm0, %v6939_v53  ;;  %v403_v51 = vld [vmem:[#allocation2 + $0x410] sm:$0xff]  ;;  %v273_v52 = vld [vmem:[#allocation2] sm:$0xff] }
  0x68   :  { %208 = vst.msk [vmem:[#allocation2 + $0x5f8] sm:$0xff] %vm16_vm1, %v7018_v49  ;;  %209 = vst.msk [vmem:[#allocation2 + $0x600] sm:$0xff] %vm16_vm1, %v7018_v49  ;;  %v401_v53 = vld [vmem:[#allocation2 + $0x400] sm:$0xff] }
  0x69   :  { %210 = vst.msk [vmem:[#allocation2 + $0x608] sm:$0xff] %vm16_vm1, %v7018_v49  ;;  %211 = vst.msk [vmem:[#allocation2 + $0x610] sm:$0xff] %vm16_vm1, %v7018_v49 }
  0x6a   :  { %212 = vst.msk [vmem:[#allocation2 + $0x618] sm:$0xff] %vm16_vm1, %v7018_v49  ;;  %213 = vst.msk [vmem:[#allocation2 + $0x620] sm:$0xff] %vm16_vm1, %v7018_v49 }
  0x6b   :  { %214 = vst.msk [vmem:[#allocation2 + $0x628] sm:$0xff] %vm16_vm1, %v7018_v49  ;;  %215 = vst.msk [vmem:[#allocation2 + $0x630] sm:$0xff] %vm16_vm1, %v7018_v49 }
  0x6c   :  { %216 = vst.msk [vmem:[#allocation2 + $0x638] sm:$0xff] %vm16_vm1, %v7018_v49  ;;  %217 = vst.msk [vmem:[#allocation2 + $0x640] sm:$0xff] %vm16_vm1, %v7018_v49 }
  0x6d   :  { %218 = vst.msk [vmem:[#allocation2 + $0x648] sm:$0xff] %vm16_vm1, %v7018_v49  ;;  %219 = vst.msk [vmem:[#allocation2 + $0x650] sm:$0xff] %vm16_vm1, %v7018_v49 }
  0x6e   :  { %220 = vst.msk [vmem:[#allocation2 + $0x658] sm:$0xff] %vm16_vm1, %v7018_v49  ;;  %221 = vst.msk [vmem:[#allocation2 + $0x660] sm:$0xff] %vm16_vm1, %v7018_v49  ;;  %6673 = vmatmul.mubr.msk.bf16.gmra.mrb[48].mxu0 %vm1449_vm0, %v6940_v54  ;;  %6801 = vmatmul.mubr.msk.bf16.gmra.mrb[48].mxu1 %vm1449_vm0, %v6941_v55 }
  0x6f   :  { %222 = vst.msk [vmem:[#allocation2 + $0x668] sm:$0xff] %vm16_vm1, %v7018_v49  ;;  %223 = vst.msk [vmem:[#allocation2 + $0x670] sm:$0xff] %vm16_vm1, %v7018_v49  ;;  %6676 = vmatprep.mubr.msk.bf16.mxu0 %vm1449_vm0, %v6942_v56  ;;  %6804 = vmatprep.mubr.msk.bf16.mxu1 %vm1449_vm0, %v6943_v57  ;;  %v276_v56 = vld [vmem:[#allocation2 + $0x18] sm:$0xff] }
  0x70   :  { %224 = vst.msk [vmem:[#allocation2 + $0x678] sm:$0xff] %vm16_vm1, %v7018_v49  ;;  %225 = vst.msk [vmem:[#allocation2 + $0x680] sm:$0xff] %vm16_vm1, %v7018_v49  ;;  %v404_v57 = vld [vmem:[#allocation2 + $0x418] sm:$0xff] }
  0x71   :  { %226 = vst.msk [vmem:[#allocation2 + $0x688] sm:$0xff] %vm16_vm1, %v7018_v49  ;;  %227 = vst.msk [vmem:[#allocation2 + $0x690] sm:$0xff] %vm16_vm1, %v7018_v49 }
  0x72   :  { %228 = vst.msk [vmem:[#allocation2 + $0x698] sm:$0xff] %vm16_vm1, %v7018_v49  ;;  %229 = vst.msk [vmem:[#allocation2 + $0x6a0] sm:$0xff] %vm16_vm1, %v7018_v49 }
  0x73   :  { %230 = vst.msk [vmem:[#allocation2 + $0x6a8] sm:$0xff] %vm16_vm1, %v7018_v49  ;;  %231 = vst.msk [vmem:[#allocation2 + $0x6b0] sm:$0xff] %vm16_vm1, %v7018_v49 }
  0x74   :  { %232 = vst.msk [vmem:[#allocation2 + $0x6b8] sm:$0xff] %vm16_vm1, %v7018_v49  ;;  %233 = vst.msk [vmem:[#allocation2 + $0x6c0] sm:$0xff] %vm16_vm1, %v7018_v49 }
  0x75   :  { %234 = vst.msk [vmem:[#allocation2 + $0x6c8] sm:$0xff] %vm16_vm1, %v7018_v49  ;;  %235 = vst.msk [vmem:[#allocation2 + $0x6d0] sm:$0xff] %vm16_vm1, %v7018_v49 }
  0x76   :  { %236 = vst.msk [vmem:[#allocation2 + $0x6d8] sm:$0xff] %vm16_vm1, %v7018_v49  ;;  %237 = vst.msk [vmem:[#allocation2 + $0x6e0] sm:$0xff] %vm16_vm1, %v7018_v49  ;;  %6677 = vmatmul.mubr.msk.bf16.gmra.mrb[52].mxu0 %vm1449_vm0, %v6944_v58  ;;  %6805 = vmatmul.mubr.msk.bf16.gmra.mrb[52].mxu1 %vm1449_vm0, %v6945_v59  ;;  %v274_v58 = vld [vmem:[#allocation2 + $0x8] sm:$0xff] }
  0x77   :  { %238 = vst.msk [vmem:[#allocation2 + $0x6e8] sm:$0xff] %vm16_vm1, %v7018_v49  ;;  %239 = vst.msk [vmem:[#allocation2 + $0x6f0] sm:$0xff] %vm16_vm1, %v7018_v49  ;;  %6680 = vmatprep.mubr.msk.bf16.mxu0 %vm1449_vm0, %v6946_v60  ;;  %6808 = vmatprep.mubr.msk.bf16.mxu1 %vm1449_vm0, %v6947_v61 }
  0x78   :  { %240 = vst.msk [vmem:[#allocation2 + $0x6f8] sm:$0xff] %vm16_vm1, %v7018_v49  ;;  %241 = vst.msk [vmem:[#allocation2 + $0x700] sm:$0xff] %vm16_vm1, %v7018_v49 }
  0x79   :  { %242 = vst.msk [vmem:[#allocation2 + $0x708] sm:$0xff] %vm16_vm1, %v7018_v49  ;;  %243 = vst.msk [vmem:[#allocation2 + $0x710] sm:$0xff] %vm16_vm1, %v7018_v49 }
  0x7a   :  { %244 = vst.msk [vmem:[#allocation2 + $0x718] sm:$0xff] %vm16_vm1, %v7018_v49  ;;  %245 = vst.msk [vmem:[#allocation2 + $0x720] sm:$0xff] %vm16_vm1, %v7018_v49 }
  0x7b   :  { %246 = vst.msk [vmem:[#allocation2 + $0x728] sm:$0xff] %vm16_vm1, %v7018_v49  ;;  %247 = vst.msk [vmem:[#allocation2 + $0x730] sm:$0xff] %vm16_vm1, %v7018_v49 }
  0x7c   :  { %248 = vst.msk [vmem:[#allocation2 + $0x738] sm:$0xff] %vm16_vm1, %v7018_v49  ;;  %249 = vst.msk [vmem:[#allocation2 + $0x740] sm:$0xff] %vm16_vm1, %v7018_v49 }
  0x7d   :  { %250 = vst.msk [vmem:[#allocation2 + $0x748] sm:$0xff] %vm16_vm1, %v7018_v49  ;;  %251 = vst.msk [vmem:[#allocation2 + $0x750] sm:$0xff] %vm16_vm1, %v7018_v49 }
  0x7e   :  { %252 = vst.msk [vmem:[#allocation2 + $0x758] sm:$0xff] %vm16_vm1, %v7018_v49  ;;  %253 = vst.msk [vmem:[#allocation2 + $0x760] sm:$0xff] %vm16_vm1, %v7018_v49  ;;  %6681 = vmatmul.mubr.msk.bf16.gmra.mrb[56].mxu0 %vm1449_vm0, %v6948_v62  ;;  %6809 = vmatmul.mubr.msk.bf16.gmra.mrb[56].mxu1 %vm1449_vm0, %v6949_v63  ;;  %v402_v63 = vld [vmem:[#allocation2 + $0x408] sm:$0xff] }
  0x7f   :  { %254 = vst.msk [vmem:[#allocation2 + $0x768] sm:$0xff] %vm16_vm1, %v7018_v49  ;;  %255 = vst.msk [vmem:[#allocation2 + $0x770] sm:$0xff] %vm16_vm1, %v7018_v49  ;;  %6684 = vmatprep.mubr.msk.bf16.mxu0 %vm1449_vm0, %v6950_v0  ;;  %6812 = vmatprep.mubr.msk.bf16.mxu1 %vm1449_vm0, %v6951_v1  ;;  %v7000_v0 = vld [vmem:[%s10188_s0 + $0x1b8] sm:$0xff]  }
  0x80   :  { %256 = vst.msk [vmem:[#allocation2 + $0x778] sm:$0xff] %vm16_vm1, %v7018_v49  ;;  %257 = vst.msk [vmem:[#allocation2 + $0x780] sm:$0xff] %vm16_vm1, %v7018_v49  ;;  %v7001_v1 = vld [vmem:[%s10188_s0 + $0x3b8] sm:$0xff]  }
  0x81   :  { %258 = vst.msk [vmem:[#allocation2 + $0x788] sm:$0xff] %vm16_vm1, %v7018_v49  ;;  %259 = vst.msk [vmem:[#allocation2 + $0x790] sm:$0xff] %vm16_vm1, %v7018_v49 }
  0x82   :  { %260 = vst.msk [vmem:[#allocation2 + $0x798] sm:$0xff] %vm16_vm1, %v7018_v49  ;;  %261 = vst.msk [vmem:[#allocation2 + $0x7a0] sm:$0xff] %vm16_vm1, %v7018_v49 }
  0x83   :  { %262 = vst.msk [vmem:[#allocation2 + $0x7a8] sm:$0xff] %vm16_vm1, %v7018_v49  ;;  %263 = vst.msk [vmem:[#allocation2 + $0x7b0] sm:$0xff] %vm16_vm1, %v7018_v49 }
  0x84   :  { %264 = vst.msk [vmem:[#allocation2 + $0x7b8] sm:$0xff] %vm16_vm1, %v7018_v49  ;;  %265 = vst.msk [vmem:[#allocation2 + $0x7c0] sm:$0xff] %vm16_vm1, %v7018_v49 }
  0x85   :  { %266 = vst.msk [vmem:[#allocation2 + $0x7c8] sm:$0xff] %vm16_vm1, %v7018_v49  ;;  %267 = vst.msk [vmem:[#allocation2 + $0x7d0] sm:$0xff] %vm16_vm1, %v7018_v49 }
  0x86   :  { %268 = vst.msk [vmem:[#allocation2 + $0x7d8] sm:$0xff] %vm16_vm1, %v7018_v49  ;;  %269 = vst.msk [vmem:[#allocation2 + $0x7e0] sm:$0xff] %vm16_vm1, %v7018_v49  ;;  %6685 = vmatmul.mubr.msk.bf16.gmra.mrb[60].mxu0 %vm1449_vm0, %v6952_v2  ;;  %6813 = vmatmul.mubr.msk.bf16.gmra.mrb[60].mxu1 %vm1449_vm0, %v6953_v3 }
  0x87   :  { %270 = vst.msk [vmem:[#allocation2 + $0x7e8] sm:$0xff] %vm16_vm1, %v7018_v49  ;;  %271 = vst.msk [vmem:[#allocation2 + $0x7f0] sm:$0xff] %vm16_vm1, %v7018_v49  ;;  %6688 = vmatprep.mubr.msk.bf16.mxu0 %vm1449_vm0, %v6954_v4  ;;  %6816 = vmatprep.mubr.msk.bf16.mxu1 %vm1449_vm0, %v6955_v5 }
  0x88   :  { %272 = vst.msk [vmem:[#allocation2 + $0x7f8] sm:$0xff] %vm16_vm1, %v7018_v49  ;;  %v6999_v49 = vld [vmem:[%s10188_s0 + $0x3b0] sm:$0xff]  }
  0x8e   :  { %6689 = vmatmul.mubr.msk.bf16.gmra.mrb[64].mxu0 %vm1449_vm0, %v6956_v6  ;;  %6817 = vmatmul.mubr.msk.bf16.gmra.mrb[64].mxu1 %vm1449_vm0, %v6957_v7  ;;  %v7002_v6 = vld [vmem:[%s10188_s0 + $0x1c0] sm:$0xff]  }
  0x8f   :  { %6692 = vmatprep.mubr.msk.bf16.mxu0 %vm1449_vm0, %v6958_v8  ;;  %6820 = vmatprep.mubr.msk.bf16.mxu1 %vm1449_vm0, %v6959_v9  ;;  %v7003_v7 = vld [vmem:[%s10188_s0 + $0x3c0] sm:$0xff]  }
  0x96   :  { %6693 = vmatmul.mubr.msk.bf16.gmra.mrb[68].mxu0 %vm1449_vm0, %v6960_v10  ;;  %6821 = vmatmul.mubr.msk.bf16.gmra.mrb[68].mxu1 %vm1449_vm0, %v6961_v11 }
  0x97   :  { %6696 = vmatprep.mubr.msk.bf16.mxu0 %vm1449_vm0, %v6962_v12  ;;  %6824 = vmatprep.mubr.msk.bf16.mxu1 %vm1449_vm0, %v6963_v13 }
  0x9e   :  { %6697 = vmatmul.mubr.msk.bf16.gmra.mrb[72].mxu0 %vm1449_vm0, %v6964_v14  ;;  %6825 = vmatmul.mubr.msk.bf16.gmra.mrb[72].mxu1 %vm1449_vm0, %v6965_v15  ;;  %v279_v14 = vld [vmem:[#allocation2 + $0x30] sm:$0xff] }
  0x9f   :  { %6700 = vmatprep.mubr.msk.bf16.mxu0 %vm1449_vm0, %v6966_v16  ;;  %6828 = vmatprep.mubr.msk.bf16.mxu1 %vm1449_vm0, %v6967_v17  ;;  %v407_v15 = vld [vmem:[#allocation2 + $0x430] sm:$0xff]  ;;  %v277_v16 = vld [vmem:[#allocation2 + $0x20] sm:$0xff] }
  0xa0   :  { %v405_v17 = vld [vmem:[#allocation2 + $0x420] sm:$0xff] }
  0xa6   :  { %6701 = vmatmul.mubr.msk.bf16.gmra.mrb[76].mxu0 %vm1449_vm0, %v6968_v18  ;;  %6829 = vmatmul.mubr.msk.bf16.gmra.mrb[76].mxu1 %vm1449_vm0, %v6969_v19 }
  0xa7   :  { %6704 = vmatprep.mubr.msk.bf16.mxu0 %vm1449_vm0, %v6970_v20  ;;  %6832 = vmatprep.mubr.msk.bf16.mxu1 %vm1449_vm0, %v6971_v21  ;;  %v280_v20 = vld [vmem:[#allocation2 + $0x38] sm:$0xff] }
  0xa8   :  { %v408_v21 = vld [vmem:[#allocation2 + $0x438] sm:$0xff] }
  0xae   :  { %6705 = vmatmul.mubr.msk.bf16.gmra.mrb[80].mxu0 %vm1449_vm0, %v6972_v22  ;;  %6833 = vmatmul.mubr.msk.bf16.gmra.mrb[80].mxu1 %vm1449_vm0, %v6973_v23 }
  0xaf   :  { %6708 = vmatprep.mubr.msk.bf16.mxu0 %vm1449_vm0, %v6974_v24  ;;  %6836 = vmatprep.mubr.msk.bf16.mxu1 %vm1449_vm0, %v6975_v25 }
  0xb6   :  { %6709 = vmatmul.mubr.msk.bf16.gmra.mrb[84].mxu0 %vm1449_vm0, %v6976_v26  ;;  %6837 = vmatmul.mubr.msk.bf16.gmra.mrb[84].mxu1 %vm1449_vm0, %v6977_v27  ;;  %v7004_v26 = vld [vmem:[%s10188_s0 + $0x1c8] sm:$0xff]  }
  0xb7   :  { %6712 = vmatprep.mubr.msk.bf16.mxu0 %vm1449_vm0, %v6978_v28  ;;  %6840 = vmatprep.mubr.msk.bf16.mxu1 %vm1449_vm0, %v6979_v29  ;;  %v7005_v27 = vld [vmem:[%s10188_s0 + $0x3c8] sm:$0xff]   ;;  %v7006_v28 = vld [vmem:[%s10188_s0 + $0x1d0] sm:$0xff]  }
  0xbe   :  { %6713 = vmatmul.mubr.msk.bf16.gmra.mrb[88].mxu0 %vm1449_vm0, %v6980_v30  ;;  %6841 = vmatmul.mubr.msk.bf16.gmra.mrb[88].mxu1 %vm1449_vm0, %v6981_v31 }
  0xbf   :  { %6716 = vmatprep.mubr.msk.bf16.mxu0 %vm1449_vm0, %v6982_v32  ;;  %6844 = vmatprep.mubr.msk.bf16.mxu1 %vm1449_vm0, %v6983_v33 }
  0xc6   :  { %6717 = vmatmul.mubr.msk.bf16.gmra.mrb[92].mxu0 %vm1449_vm0, %v6984_v34  ;;  %6845 = vmatmul.mubr.msk.bf16.gmra.mrb[92].mxu1 %vm1449_vm0, %v6985_v35  ;;  %v7007_v35 = vld [vmem:[%s10188_s0 + $0x3d0] sm:$0xff]  }
  0xc7   :  { %6720 = vmatprep.mubr.msk.bf16.mxu0 %vm1449_vm0, %v6986_v36  ;;  %6848 = vmatprep.mubr.msk.bf16.mxu1 %vm1449_vm0, %v6987_v37 }
  0xce   :  { %6721 = vmatmul.mubr.msk.bf16.gmra.mrb[96].mxu0 %vm1449_vm0, %v6988_v38  ;;  %6849 = vmatmul.mubr.msk.bf16.gmra.mrb[96].mxu1 %vm1449_vm0, %v6989_v39 }
  0xcf   :  { %6724 = vmatprep.mubr.msk.bf16.mxu0 %vm1449_vm0, %v6990_v40  ;;  %6852 = vmatprep.mubr.msk.bf16.mxu1 %vm1449_vm0, %v6991_v41 }
  0xd6   :  { %6725 = vmatmul.mubr.msk.bf16.gmra.mrb[100].mxu0 %vm1449_vm0, %v6992_v42  ;;  %6853 = vmatmul.mubr.msk.bf16.gmra.mrb[100].mxu1 %vm1449_vm0, %v6993_v43 }
  0xd7   :  { %6728 = vmatprep.mubr.msk.bf16.mxu0 %vm1449_vm0, %v6994_v44  ;;  %6856 = vmatprep.mubr.msk.bf16.mxu1 %vm1449_vm0, %v6995_v45 }
  0xde   :  { %6729 = vmatmul.mubr.msk.bf16.gmra.mrb[104].mxu0 %vm1449_vm0, %v6996_v46  ;;  %6857 = vmatmul.mubr.msk.bf16.gmra.mrb[104].mxu1 %vm1449_vm0, %v6997_v47 }
  0xdf   :  { %6732 = vmatprep.mubr.msk.bf16.mxu0 %vm1449_vm0, %v6998_v48  ;;  %6860 = vmatprep.mubr.msk.bf16.mxu1 %vm1449_vm0, %v6999_v49 }
  0xe1   :  { %v6626_v54 = vpop.f32.mrb[0].mxu0  ;;  %v6754_v55 = vpop.f32.mrb[0].mxu1 }
  0xe2   :  { %v2893_v59 = vadd.f32 %v6626_v54, %v275_v50  ;;  %v3021_v60 = vadd.f32 %v6754_v55, %v403_v51  ;;  %v1868_v61 = vpop.f32.mrb[1].mxu0  ;;  %v2380_v62 = vpop.f32.mrb[1].mxu1  ;;  %v278_v54 = vld [vmem:[#allocation2 + $0x28] sm:$0xff] }
  0xe3   :  { %v2891_v2 = vadd.f32 %v1868_v61, %v273_v52  ;;  %v3019_v3 = vadd.f32 %v2380_v62, %v401_v53  ;;  %v6627_v4 = vpop.f32.mrb[2].mxu0  ;;  %v6755_v5 = vpop.f32.mrb[2].mxu1 }
  0xe4   :  { %3150 = vst.msk [vmem:[#allocation2 + $0x10] sm:$0xff] %vm16_vm1, %v2893_v59  ;;  %3278 = vst.msk [vmem:[#allocation2 + $0x410] sm:$0xff] %vm16_vm1, %v3021_v60  ;;  %v2894_v8 = vadd.f32 %v6627_v4, %v276_v56  ;;  %v3022_v9 = vadd.f32 %v6755_v5, %v404_v57  ;;  %v1871_v10 = vpop.f32.mrb[3].mxu0  ;;  %v2383_v11 = vpop.f32.mrb[3].mxu1  ;;  %v7008_v57 = vld [vmem:[%s10188_s0 + $0x1d8] sm:$0xff]  }
  0xe5   :  { %3148 = vst.msk [vmem:[#allocation2] sm:$0xff] %vm16_vm1, %v2891_v2  ;;  %3276 = vst.msk [vmem:[#allocation2 + $0x400] sm:$0xff] %vm16_vm1, %v3019_v3  ;;  %v2892_v12 = vadd.f32 %v1871_v10, %v274_v58  ;;  %v3020_v13 = vadd.f32 %v2383_v11, %v402_v63  ;;  %v7009_v58 = vld [vmem:[%s10188_s0 + $0x3d8] sm:$0xff]  }
  0xe6   :  { %3151 = vst.msk [vmem:[#allocation2 + $0x18] sm:$0xff] %vm16_vm1, %v2894_v8  ;;  %3279 = vst.msk [vmem:[#allocation2 + $0x418] sm:$0xff] %vm16_vm1, %v3022_v9  ;;  %6733 = vmatmul.mubr.msk.bf16.gmra.mrb[108].mxu0 %vm1449_vm0, %v7000_v0  ;;  %6861 = vmatmul.mubr.msk.bf16.gmra.mrb[108].mxu1 %vm1449_vm0, %v7001_v1  ;;  %v7010_v0 = vld [vmem:[%s10188_s0 + $0x1e0] sm:$0xff]  }
  0xe7   :  { %3149 = vst.msk [vmem:[#allocation2 + $0x8] sm:$0xff] %vm16_vm1, %v2892_v12  ;;  %3277 = vst.msk [vmem:[#allocation2 + $0x408] sm:$0xff] %vm16_vm1, %v3020_v13  ;;  %6736 = vmatprep.mubr.msk.bf16.mxu0 %vm1449_vm0, %v7002_v6  ;;  %6864 = vmatprep.mubr.msk.bf16.mxu1 %vm1449_vm0, %v7003_v7  ;;  %v7011_v6 = vld [vmem:[%s10188_s0 + $0x3e0] sm:$0xff]  }
  0xe9   :  { %v6630_v18 = vpop.f32.mrb[4].mxu0  ;;  %v6758_v19 = vpop.f32.mrb[4].mxu1 }
  0xea   :  { %v2897_v22 = vadd.f32 %v6630_v18, %v279_v14  ;;  %v3025_v23 = vadd.f32 %v6758_v19, %v407_v15  ;;  %v1884_v24 = vpop.f32.mrb[5].mxu0  ;;  %v2396_v25 = vpop.f32.mrb[5].mxu1 }
  0xeb   :  { %v3409_v29 = vld [vmem:[#allocation2 + $0x10] sm:$0xff]  ;;  %v2895_v31 = vadd.f32 %v1884_v24, %v277_v16  ;;  %v3023_v32 = vadd.f32 %v2396_v25, %v405_v17  ;;  %v6631_v33 = vpop.f32.mrb[6].mxu0  ;;  %v6759_v34 = vpop.f32.mrb[6].mxu1  ;;  %v406_v24 = vld [vmem:[#allocation2 + $0x428] sm:$0xff] }
  0xec   :  { %v3537_v30 = vld [vmem:[#allocation2 + $0x410] sm:$0xff]  ;;  %vm3665_vm2 = vcmp.ge.f32.partialorder %v3409_v29, 0.0  ;;  %v3921_v36 = vmul.f32 0.2, %v3409_v29  ;;  %3154 = vst.msk [vmem:[#allocation2 + $0x30] sm:$0xff] %vm16_vm1, %v2897_v22  ;;  %3282 = vst.msk [vmem:[#allocation2 + $0x430] sm:$0xff] %vm16_vm1, %v3025_v23  ;;  %v2898_v41 = vadd.f32 %v6631_v33, %v280_v20  ;;  %v3026_v42 = vadd.f32 %v6759_v34, %v408_v21 }
  0xed   :  { %vm3793_vm3 = vcmp.ge.f32.partialorder %v3537_v30, 0.0  ;;  %v4049_v37 = vmul.f32 0.2, %v3537_v30  ;;  %v3407_v38 = vld [vmem:[#allocation2] sm:$0xff]  ;;  %v3410_v40 = vld [vmem:[#allocation2 + $0x18] sm:$0xff]  ;;  %3152 = vst.msk [vmem:[#allocation2 + $0x20] sm:$0xff] %vm16_vm1, %v2895_v31 }
  0xee   :  { %v3535_v39 = vld [vmem:[#allocation2 + $0x400] sm:$0xff]  ;;  %3280 = vst.msk [vmem:[#allocation2 + $0x420] sm:$0xff] %vm16_vm1, %v3023_v32  ;;  %v1887_v43 = vpop.f32.mrb[7].mxu0  ;;  %v8047_v44 = vpop.f32.mrb[7].mxu1  ;;  %v4177_v45 = vsel %vm3665_vm2, %v3409_v29, %v3921_v36  ;;  %vm3663_vm5 = vcmp.ge.f32.partialorder %v3407_v38, 0.0  ;;  %v3538_v48 = vld [vmem:[#allocation2 + $0x418] sm:$0xff]  ;;  %6737 = vmatmul.mubr.msk.bf16.gmra.mrb[112].mxu0 %vm1449_vm0, %v7004_v26  ;;  %6865 = vmatmul.mubr.msk.bf16.gmra.mrb[112].mxu1 %vm1449_vm0, %v7005_v27 }
  0xef   :  { %v4305_v46 = vsel %vm3793_vm3, %v3537_v30, %v4049_v37  ;;  %v3919_v47 = vmul.f32 0.2, %v3407_v38  ;;  %v3408_v49 = vld [vmem:[#allocation2 + $0x8] sm:$0xff]  ;;  %v6233_v50 = vpack.c.bf16 %v4177_v45, %v4177_v45  ;;  %vm3791_vm6 = vcmp.ge.f32.partialorder %v3535_v39, 0.0  ;;  %3155 = vst.msk [vmem:[#allocation2 + $0x38] sm:$0xff] %vm16_vm1, %v2898_v41  ;;  %3283 = vst.msk [vmem:[#allocation2 + $0x438] sm:$0xff] %vm16_vm1, %v3026_v42  ;;  %6740 = vmatprep.mubr.msk.bf16.mxu0 %vm1449_vm0, %v7006_v28 }
  0xf0   :  { %v6361_v51 = vpack.c.bf16 %v4305_v46, %v4305_v46  ;;  %v4047_v52 = vmul.f32 0.2, %v3535_v39  ;;  %v3536_v53 = vld [vmem:[#allocation2 + $0x408] sm:$0xff]  ;;  %6868 = vmatprep.mubr.msk.bf16.mxu1 %vm1449_vm0, %v7007_v35  ;;  %vm3666_vm7 = vcmp.ge.f32.partialorder %v3410_v40, 0.0  ;;  %v3922_v56 = vmul.f32 0.2, %v3410_v40 }
  0xf1   :  { %v4175_v55 = vsel %vm3663_vm5, %v3407_v38, %v3919_v47  ;;  %vm3794_vm8 = vcmp.ge.f32.partialorder %v3538_v48, 0.0  ;;  %5458 = vst.msk [vmem:[%s10189_s2 + $0x8] sm:$0xf] %vm5455_vm4, %v6233_v50  ;;  %v4050_v61 = vmul.f32 0.2, %v3538_v48  ;;  %vm3664_vm9 = vcmp.ge.f32.partialorder %v3408_v49, 0.0 }
  0xf2   :  { %5586 = vst.msk [vmem:[%s10189_s2 + $0x208] sm:$0xf] %vm5455_vm4, %v6361_v51  ;;  %v6231_v59 = vpack.c.bf16 %v4175_v55, %v4175_v55  ;;  %v4303_v60 = vsel %vm3791_vm6, %v3535_v39, %v4047_v52  ;;  %v8073_v62 = vpop.f32.mrb[8].mxu0  ;;  %v8075_v63 = vpop.f32.mrb[8].mxu1  ;;  %v4178_v2 = vsel %vm3666_vm7, %v3410_v40, %v3922_v56  ;;  %v3920_v3 = vmul.f32 0.2, %v3408_v49 }
  0xf3   :  { %v6359_v1 = vpack.c.bf16 %v4303_v60, %v4303_v60  ;;  %vm3792_vm10 = vcmp.ge.f32.partialorder %v3536_v53, 0.0  ;;  %v8080_v4 = vpop.f32.mrb[9].mxu0  ;;  %v8082_v5 = vpop.f32.mrb[9].mxu1  ;;  %v6234_v7 = vpack.c.bf16 %v4178_v2, %v4178_v2  ;;  %v4306_v8 = vsel %vm3794_vm8, %v3538_v48, %v4050_v61  ;;  %v3413_v10 = vld [vmem:[#allocation2 + $0x30] sm:$0xff]  ;;  %v281_v36 = vld [vmem:[#allocation2 + $0x40] sm:$0xff]  ;;  %v284_v38 = vld [vmem:[#allocation2 + $0x58] sm:$0xff] }
  0xf4   :  { %5456 = vst.msk [vmem:[%s10189_s2] sm:$0xf] %vm5455_vm4, %v6231_v59  ;;  %v4048_v9 = vmul.f32 0.2, %v3536_v53  ;;  %v3541_v11 = vld [vmem:[#allocation2 + $0x430] sm:$0xff]  ;;  %v2896_v12 = vadd.f32 %v1887_v43, %v278_v54  ;;  %v8092_v13 = vpop.f32.mrb[10].mxu0  ;;  %v6362_v15 = vpack.c.bf16 %v4306_v8, %v4306_v8  ;;  %v4176_v16 = vsel %vm3664_vm9, %v3408_v49, %v3920_v3 }
  0xf5   :  { %v8094_v14 = vpop.f32.mrb[10].mxu1  ;;  %5584 = vst.msk [vmem:[%s10189_s2 + $0x200] sm:$0xf] %vm5455_vm4, %v6359_v1  ;;  %vm3669_vm11 = vcmp.ge.f32.partialorder %v3413_v10, 0.0  ;;  %v3925_v17 = vmul.f32 0.2, %v3413_v10  ;;  %v6232_v21 = vpack.c.bf16 %v4176_v16, %v4176_v16  ;;  %v3024_v56 = vadd.f32 %v8047_v44, %v406_v24 }
  0xf6   :  { %v3411_v18 = vld [vmem:[#allocation2 + $0x20] sm:$0xff]  ;;  %v8101_v20 = vpop.f32.mrb[11].mxu0  ;;  %5459 = vst.msk [vmem:[%s10189_s2 + $0xc] sm:$0xf] %vm5455_vm4, %v6234_v7  ;;  %v4304_v22 = vsel %vm3792_vm10, %v3536_v53, %v4048_v9  ;;  %vm3797_vm12 = vcmp.ge.f32.partialorder %v3541_v11, 0.0  ;;  %v283_v25 = vld [vmem:[#allocation2 + $0x50] sm:$0xff]  ;;  %6741 = vmatmul.mubr.msk.bf16.gmra.mrb[116].mxu0 %vm1449_vm0, %v7008_v57  ;;  %6869 = vmatmul.mubr.msk.bf16.gmra.mrb[116].mxu1 %vm1449_vm0, %v7009_v58 }
  0xf7   :  { %v3539_v19 = vld [vmem:[#allocation2 + $0x420] sm:$0xff]  ;;  %v4053_v23 = vmul.f32 0.2, %v3541_v11  ;;  %3153 = vst.msk [vmem:[#allocation2 + $0x28] sm:$0xff] %vm16_vm1, %v2896_v12  ;;  %v8109_v26 = vpop.f32.mrb[11].mxu1  ;;  %v6360_v27 = vpack.c.bf16 %v4304_v22, %v4304_v22  ;;  %v4181_v28 = vsel %vm3669_vm11, %v3413_v10, %v3925_v17  ;;  %vm3667_vm13 = vcmp.ge.f32.partialorder %v3411_v18, 0.0  ;;  %6744 = vmatprep.mubr.msk.bf16.mxu0 %vm1449_vm0, %v7010_v0  ;;  %6872 = vmatprep.mubr.msk.bf16.mxu1 %vm1449_vm0, %v7011_v6 }
  0xf8   :  { %5587 = vst.msk [vmem:[%s10189_s2 + $0x20c] sm:$0xf] %vm5455_vm4, %v6362_v15  ;;  %v3923_v29 = vmul.f32 0.2, %v3411_v18  ;;  %v3414_v30 = vld [vmem:[#allocation2 + $0x38] sm:$0xff]  ;;  %v411_v32 = vld [vmem:[#allocation2 + $0x450] sm:$0xff]  ;;  %v6237_v33 = vpack.c.bf16 %v4181_v28, %v4181_v28  ;;  %v2901_v57 = vadd.f32 %v8073_v62, %v283_v25  ;;  %v2899_v62 = vadd.f32 %v8080_v4, %v281_v36 }
  0xf9   :  { %v3542_v31 = vld [vmem:[#allocation2 + $0x438] sm:$0xff]  ;;  %5457 = vst.msk [vmem:[%s10189_s2 + $0x4] sm:$0xf] %vm5455_vm4, %v6232_v21  ;;  %v4309_v34 = vsel %vm3797_vm12, %v3541_v11, %v4053_v23  ;;  %vm3795_vm14 = vcmp.ge.f32.partialorder %v3539_v19, 0.0  ;;  %v4051_v35 = vmul.f32 0.2, %v3539_v19  ;;  %v3029_v44 = vadd.f32 %v8075_v63, %v411_v32 }
  0xfa   :  { %v409_v37 = vld [vmem:[#allocation2 + $0x440] sm:$0xff]  ;;  %5585 = vst.msk [vmem:[%s10189_s2 + $0x204] sm:$0xf] %vm5455_vm4, %v6360_v27  ;;  %v6365_v39 = vpack.c.bf16 %v4309_v34, %v4309_v34  ;;  %v4179_v40 = vsel %vm3667_vm13, %v3411_v18, %v3923_v29  ;;  %vm3670_vm15 = vcmp.ge.f32.partialorder %v3414_v30, 0.0  ;;  %v3926_v41 = vmul.f32 0.2, %v3414_v30 }
  0xfb   :  { %v412_v42 = vld [vmem:[#allocation2 + $0x458] sm:$0xff]  ;;  %v282_v43 = vld [vmem:[#allocation2 + $0x48] sm:$0xff]  ;;  %5462 = vst.msk [vmem:[%s10189_s2 + $0x18] sm:$0xf] %vm5455_vm4, %v6237_v33  ;;  %v6235_v46 = vpack.c.bf16 %v4179_v40, %v4179_v40  ;;  %v4307_v47 = vsel %vm3795_vm14, %v3539_v19, %v4051_v35  ;;  %vm3798_vm2 = vcmp.ge.f32.partialorder %v3542_v31, 0.0  ;;  %v287_v49 = vld [vmem:[#allocation2 + $0x70] sm:$0xff]  ;;  %v3027_v63 = vadd.f32 %v8082_v5, %v409_v37 }
  0xfc   :  { %v410_v45 = vld [vmem:[#allocation2 + $0x448] sm:$0xff]  ;;  %v4054_v48 = vmul.f32 0.2, %v3542_v31  ;;  %v6638_v50 = vpop.f32.mrb[12].mxu0  ;;  %v415_v51 = vld [vmem:[#allocation2 + $0x470] sm:$0xff]  ;;  %v6766_v52 = vpop.f32.mrb[12].mxu1  ;;  %v6363_v54 = vpack.c.bf16 %v4307_v47, %v4307_v47  ;;  %v4182_v55 = vsel %vm3670_vm15, %v3414_v30, %v3926_v41  ;;  %v2902_v4 = vadd.f32 %v8092_v13, %v284_v38 }
  0xfd   :  { %v285_v53 = vld [vmem:[#allocation2 + $0x60] sm:$0xff]  ;;  %5590 = vst.msk [vmem:[%s10189_s2 + $0x218] sm:$0xf] %vm5455_vm4, %v6365_v39  ;;  %v1916_v58 = vpop.f32.mrb[13].mxu0  ;;  %v2428_v60 = vpop.f32.mrb[13].mxu1  ;;  %v288_v61 = vld [vmem:[#allocation2 + $0x78] sm:$0xff]  ;;  %v6238_v1 = vpack.c.bf16 %v4182_v55, %v4182_v55  ;;  %v3030_v12 = vadd.f32 %v8094_v14, %v412_v42  ;;  %v2900_v13 = vadd.f32 %v8101_v20, %v282_v43  ;;  %v3028_v14 = vadd.f32 %v8109_v26, %v410_v45 }
  0xfe   :  { %v413_v59 = vld [vmem:[#allocation2 + $0x460] sm:$0xff]  ;;  %v7012_v0 = vld [vmem:[%s10188_s0 + $0x1e8] sm:$0xff]   ;;  %5460 = vst.msk [vmem:[%s10189_s2 + $0x10] sm:$0xf] %vm5455_vm4, %v6235_v46  ;;  %v4310_v2 = vsel %vm3798_vm2, %v3542_v31, %v4054_v48  ;;  %v6639_v3 = vpop.f32.mrb[14].mxu0  ;;  %v416_v6 = vld [vmem:[#allocation2 + $0x478] sm:$0xff]  ;;  %v2905_v21 = vadd.f32 %v6638_v50, %v287_v49  ;;  %v3033_v22 = vadd.f32 %v6766_v52, %v415_v51  ;;  %v2903_v23 = vadd.f32 %v1916_v58, %v285_v53 }
  0xff   :  { %v6767_v7 = vpop.f32.mrb[14].mxu1  ;;  %v286_v8 = vld [vmem:[#allocation2 + $0x68] sm:$0xff]  ;;  %5588 = vst.msk [vmem:[%s10189_s2 + $0x210] sm:$0xf] %vm5455_vm4, %v6363_v54  ;;  %v6366_v10 = vpack.c.bf16 %v4310_v2, %v4310_v2  ;;  %v1919_v15 = vpop.f32.mrb[15].mxu0  ;;  %v7014_v17 = vld [vmem:[%s10188_s0 + $0x1f0] sm:$0xff]   ;;  %v3031_v24 = vadd.f32 %v2428_v60, %v413_v59  ;;  %6745 = vmatmul.mubr.msk.bf16.gmra.mrb[120].mxu0 %vm1449_vm0, %v7012_v0  ;;  %v2906_v25 = vadd.f32 %v6639_v3, %v288_v61 }
 0x100   :  { %v7013_v9 = vld [vmem:[%s10188_s0 + $0x3e8] sm:$0xff]   ;;  %3281 = vst.msk [vmem:[#allocation2 + $0x428] sm:$0xff] %vm16_vm1, %v3024_v56  ;;  %3158 = vst.msk [vmem:[#allocation2 + $0x50] sm:$0xff] %vm16_vm1, %v2901_v57  ;;  %v2431_v16 = vpop.f32.mrb[15].mxu1  ;;  %v7015_v18 = vld [vmem:[%s10188_s0 + $0x3f0] sm:$0xff]   ;;  %v3034_v26 = vadd.f32 %v6767_v7, %v416_v6  ;;  %v2904_v27 = vadd.f32 %v1919_v15, %v286_v8  ;;  %6748 = vmatprep.mubr.msk.bf16.mxu0 %vm1449_vm0, %v7014_v17 }
 0x101   :  { %v3412_v11 = vld [vmem:[#allocation2 + $0x28] sm:$0xff]  ;;  %5463 = vst.msk [vmem:[%s10189_s2 + $0x1c] sm:$0xf] %vm5455_vm4, %v6238_v1  ;;  %5591 = vst.msk [vmem:[%s10189_s2 + $0x21c] sm:$0xf] %vm5455_vm4, %v6366_v10  ;;  %6873 = vmatmul.mubr.msk.bf16.gmra.mrb[120].mxu1 %vm1449_vm0, %v7013_v9  ;;  %v291_v28 = vld [vmem:[#allocation2 + $0x90] sm:$0xff] }
 0x102   :  { %vm3668_vm3 = vcmp.ge.f32.partialorder %v3412_v11, 0.0  ;;  %v3924_v5 = vmul.f32 0.2, %v3412_v11  ;;  %3286 = vst.msk [vmem:[#allocation2 + $0x450] sm:$0xff] %vm16_vm1, %v3029_v44  ;;  %3156 = vst.msk [vmem:[#allocation2 + $0x40] sm:$0xff] %vm16_vm1, %v2899_v62  ;;  %v414_v19 = vld [vmem:[#allocation2 + $0x468] sm:$0xff]  ;;  %6876 = vmatprep.mubr.msk.bf16.mxu1 %vm1449_vm0, %v7015_v18 }
 0x103   :  { %3284 = vst.msk [vmem:[#allocation2 + $0x440] sm:$0xff] %vm16_vm1, %v3027_v63  ;;  %3159 = vst.msk [vmem:[#allocation2 + $0x58] sm:$0xff] %vm16_vm1, %v2902_v4  ;;  %v419_v29 = vld [vmem:[#allocation2 + $0x490] sm:$0xff]  ;;  %v3032_v31 = vadd.f32 %v2431_v16, %v414_v19  ;;  %v289_v32 = vld [vmem:[#allocation2 + $0x80] sm:$0xff]  ;;  %v6642_v34 = vpop.f32.mrb[16].mxu0  ;;  %v6770_v35 = vpop.f32.mrb[16].mxu1 }
 0x104   :  { %3287 = vst.msk [vmem:[#allocation2 + $0x458] sm:$0xff] %vm16_vm1, %v3030_v12  ;;  %v4180_v20 = vsel %vm3668_vm3, %v3412_v11, %v3924_v5  ;;  %3157 = vst.msk [vmem:[#allocation2 + $0x48] sm:$0xff] %vm16_vm1, %v2900_v13  ;;  %v417_v33 = vld [vmem:[#allocation2 + $0x480] sm:$0xff]  ;;  %v2909_v36 = vadd.f32 %v6642_v34, %v291_v28  ;;  %v3037_v37 = vadd.f32 %v6770_v35, %v419_v29  ;;  %v1932_v38 = vpop.f32.mrb[17].mxu0  ;;  %v2444_v39 = vpop.f32.mrb[17].mxu1  ;;  %v292_v40 = vld [vmem:[#allocation2 + $0x98] sm:$0xff] }
 0x105   :  { %3285 = vst.msk [vmem:[#allocation2 + $0x448] sm:$0xff] %vm16_vm1, %v3028_v14  ;;  %v6236_v30 = vpack.c.bf16 %v4180_v20, %v4180_v20  ;;  %3162 = vst.msk [vmem:[#allocation2 + $0x70] sm:$0xff] %vm16_vm1, %v2905_v21  ;;  %v420_v41 = vld [vmem:[#allocation2 + $0x498] sm:$0xff]  ;;  %v2907_v46 = vadd.f32 %v1932_v38, %v289_v32  ;;  %v3035_v47 = vadd.f32 %v2444_v39, %v417_v33  ;;  %v6643_v48 = vpop.f32.mrb[18].mxu0  ;;  %v6771_v49 = vpop.f32.mrb[18].mxu1 }
 0x106   :  { %3290 = vst.msk [vmem:[#allocation2 + $0x470] sm:$0xff] %vm16_vm1, %v3033_v22  ;;  %3160 = vst.msk [vmem:[#allocation2 + $0x60] sm:$0xff] %vm16_vm1, %v2903_v23  ;;  %v7016_v42 = vld [vmem:[%s10188_s0 + $0x1f8] sm:$0xff]   ;;  %v2910_v56 = vadd.f32 %v6643_v48, %v292_v40  ;;  %v3038_v57 = vadd.f32 %v6771_v49, %v420_v41  ;;  %v8214_v58 = vpop.f32.mrb[19].mxu0  ;;  %v8216_v59 = vpop.f32.mrb[19].mxu1 }
 0x107   :  { %3288 = vst.msk [vmem:[#allocation2 + $0x460] sm:$0xff] %vm16_vm1, %v3031_v24  ;;  %3163 = vst.msk [vmem:[#allocation2 + $0x78] sm:$0xff] %vm16_vm1, %v2906_v25  ;;  %v3540_v43 = vld [vmem:[#allocation2 + $0x428] sm:$0xff]  ;;  %v3417_v45 = vld [vmem:[#allocation2 + $0x50] sm:$0xff]  ;;  %6749 = vmatmul.mubr.msk.bf16.gmra.mrb[124].mxu0 %vm1449_vm0, %v7016_v42 }
 0x108   :  { %3291 = vst.msk [vmem:[#allocation2 + $0x478] sm:$0xff] %vm16_vm1, %v3034_v26  ;;  %3161 = vst.msk [vmem:[#allocation2 + $0x68] sm:$0xff] %vm16_vm1, %v2904_v27  ;;  %v7017_v50 = vld [vmem:[%s10188_s0 + $0x3f8] sm:$0xff]   ;;  %vm3796_vm5 = vcmp.ge.f32.partialorder %v3540_v43, 0.0  ;;  %v4052_v51 = vmul.f32 0.2, %v3540_v43 }
 0x109   :  { %5461 = vst.msk [vmem:[%s10189_s2 + $0x14] sm:$0xf] %vm5455_vm4, %v6236_v30  ;;  %vm3673_vm6 = vcmp.ge.f32.partialorder %v3417_v45, 0.0  ;;  %v3929_v52 = vmul.f32 0.2, %v3417_v45  ;;  %v3545_v53 = vld [vmem:[#allocation2 + $0x450] sm:$0xff]  ;;  %6877 = vmatmul.mubr.msk.bf16.gmra.mrb[124].mxu1 %vm1449_vm0, %v7017_v50 }
 0x10a   :  { %3289 = vst.msk [vmem:[#allocation2 + $0x468] sm:$0xff] %vm16_vm1, %v3032_v31  ;;  %3166 = vst.msk [vmem:[#allocation2 + $0x90] sm:$0xff] %vm16_vm1, %v2909_v36  ;;  %v3415_v54 = vld [vmem:[#allocation2 + $0x40] sm:$0xff]  ;;  %v4308_v60 = vsel %vm3796_vm5, %v3540_v43, %v4052_v51  ;;  %vm3801_vm7 = vcmp.ge.f32.partialorder %v3545_v53, 0.0  ;;  %v4057_v0 = vmul.f32 0.2, %v3545_v53 }
 0x10b   :  { %3294 = vst.msk [vmem:[#allocation2 + $0x490] sm:$0xff] %vm16_vm1, %v3037_v37  ;;  %v3543_v55 = vld [vmem:[#allocation2 + $0x440] sm:$0xff]  ;;  %3164 = vst.msk [vmem:[#allocation2 + $0x80] sm:$0xff] %vm16_vm1, %v2907_v46  ;;  %v4185_v61 = vsel %vm3673_vm6, %v3417_v45, %v3929_v52  ;;  %v3418_v1 = vld [vmem:[#allocation2 + $0x58] sm:$0xff]  ;;  %v6364_v44 = vpack.c.bf16 %v4308_v60, %v4308_v60  ;;  %vm3671_vm8 = vcmp.ge.f32.partialorder %v3415_v54, 0.0  ;;  %v8230_v18 = vpop.f32.mrb[20].mxu0 }
 0x10c   :  { %3292 = vst.msk [vmem:[#allocation2 + $0x480] sm:$0xff] %vm16_vm1, %v3035_v47  ;;  %v3546_v2 = vld [vmem:[#allocation2 + $0x458] sm:$0xff]  ;;  %v6241_v62 = vpack.c.bf16 %v4185_v61, %v4185_v61  ;;  %v3927_v3 = vmul.f32 0.2, %v3415_v54  ;;  %v3416_v6 = vld [vmem:[#allocation2 + $0x48] sm:$0xff]  ;;  %3167 = vst.msk [vmem:[#allocation2 + $0x98] sm:$0xff] %vm16_vm1, %v2910_v56  ;;  %v4313_v7 = vsel %vm3801_vm7, %v3545_v53, %v4057_v0 }
 0x10d   :  { %3295 = vst.msk [vmem:[#allocation2 + $0x498] sm:$0xff] %vm16_vm1, %v3038_v57  ;;  %vm3799_vm9 = vcmp.ge.f32.partialorder %v3543_v55, 0.0  ;;  %v4055_v8 = vmul.f32 0.2, %v3543_v55  ;;  %vm3674_vm10 = vcmp.ge.f32.partialorder %v3418_v1, 0.0  ;;  %v3544_v9 = vld [vmem:[#allocation2 + $0x448] sm:$0xff]  ;;  %v6369_v10 = vpack.c.bf16 %v4313_v7, %v4313_v7 }
 0x10e   :  { %5589 = vst.msk [vmem:[%s10189_s2 + $0x214] sm:$0xf] %vm5455_vm4, %v6364_v44  ;;  %5466 = vst.msk [vmem:[%s10189_s2 + $0x28] sm:$0xf] %vm5455_vm4, %v6241_v62  ;;  %v4183_v11 = vsel %vm3671_vm8, %v3415_v54, %v3927_v3  ;;  %v3930_v63 = vmul.f32 0.2, %v3418_v1 }
 0x10f   :  { %vm3802_vm11 = vcmp.ge.f32.partialorder %v3546_v2, 0.0  ;;  %v3421_v4 = vld [vmem:[#allocation2 + $0x70] sm:$0xff]  ;;  %v6239_v12 = vpack.c.bf16 %v4183_v11, %v4183_v11  ;;  %v4311_v15 = vsel %vm3799_vm9, %v3543_v55, %v4055_v8  ;;  %v4058_v16 = vmul.f32 0.2, %v3546_v2  ;;  %v8232_v5 = vpop.f32.mrb[20].mxu1  ;;  %v3419_v21 = vld [vmem:[#allocation2 + $0x60] sm:$0xff] }
 0x110   :  { %vm3672_vm0 = vcmp.ge.f32.partialorder %v3416_v6, 0.0  ;;  %v3549_v17 = vld [vmem:[#allocation2 + $0x470] sm:$0xff]  ;;  %5594 = vst.msk [vmem:[%s10189_s2 + $0x228] sm:$0xf] %vm5455_vm4, %v6369_v10  ;;  %v6367_v13 = vpack.c.bf16 %v4311_v15, %v4311_v15  ;;  %v4186_v14 = vsel %vm3674_vm10, %v3418_v1, %v3930_v63  ;;  %v3928_v19 = vmul.f32 0.2, %v3416_v6 }
 0x111   :  { %vm3800_vm12 = vcmp.ge.f32.partialorder %v3544_v9, 0.0  ;;  %v8239_v22 = vpop.f32.mrb[21].mxu0  ;;  %5464 = vst.msk [vmem:[%s10189_s2 + $0x20] sm:$0xf] %vm5455_vm4, %v6239_v12  ;;  %v6242_v23 = vpack.c.bf16 %v4186_v14, %v4186_v14  ;;  %v4314_v24 = vsel %vm3802_vm11, %v3546_v2, %v4058_v16  ;;  %v4056_v20 = vmul.f32 0.2, %v3544_v9 }
 0x112   :  { %vm3677_vm13 = vcmp.ge.f32.partialorder %v3421_v4, 0.0  ;;  %v3547_v25 = vld [vmem:[#allocation2 + $0x460] sm:$0xff]  ;;  %v8246_v26 = vpop.f32.mrb[21].mxu1  ;;  %5592 = vst.msk [vmem:[%s10189_s2 + $0x220] sm:$0xf] %vm5455_vm4, %v6367_v13  ;;  %v6370_v27 = vpack.c.bf16 %v4314_v24, %v4314_v24  ;;  %v4184_v28 = vsel %vm3672_vm0, %v3416_v6, %v3928_v19  ;;  %vm3805_vm14 = vcmp.ge.f32.partialorder %v3549_v17, 0.0 }
 0x113   :  { %v3933_v29 = vmul.f32 0.2, %v3421_v4  ;;  %v3422_v30 = vld [vmem:[#allocation2 + $0x78] sm:$0xff]  ;;  %v8253_v31 = vpop.f32.mrb[22].mxu0  ;;  %v8255_v32 = vpop.f32.mrb[22].mxu1  ;;  %v6240_v33 = vpack.c.bf16 %v4184_v28, %v4184_v28  ;;  %v4312_v34 = vsel %vm3800_vm12, %v3544_v9, %v4056_v20  ;;  %vm3675_vm15 = vcmp.ge.f32.partialorder %v3419_v21, 0.0 }
 0x114   :  { %5467 = vst.msk [vmem:[%s10189_s2 + $0x2c] sm:$0xf] %vm5455_vm4, %v6242_v23  ;;  %v4061_v35 = vmul.f32 0.2, %v3549_v17  ;;  %v3550_v36 = vld [vmem:[#allocation2 + $0x478] sm:$0xff]  ;;  %v8262_v37 = vpop.f32.mrb[23].mxu0  ;;  %v6368_v38 = vpack.c.bf16 %v4312_v34, %v4312_v34 }
 0x115   :  { %5595 = vst.msk [vmem:[%s10189_s2 + $0x22c] sm:$0xf] %vm5455_vm4, %v6370_v27  ;;  %v4189_v39 = vsel %vm3677_vm13, %v3421_v4, %v3933_v29  ;;  %v3931_v40 = vmul.f32 0.2, %v3419_v21  ;;  %vm3803_vm2 = vcmp.ge.f32.partialorder %v3547_v25, 0.0  ;;  %v3420_v41 = vld [vmem:[#allocation2 + $0x68] sm:$0xff] }
 0x116   :  { %v8269_v42 = vpop.f32.mrb[23].mxu1  ;;  %5465 = vst.msk [vmem:[%s10189_s2 + $0x24] sm:$0xf] %vm5455_vm4, %v6240_v33  ;;  %v6245_v43 = vpack.c.bf16 %v4189_v39, %v4189_v39  ;;  %v4317_v45 = vsel %vm3805_vm14, %v3549_v17, %v4061_v35  ;;  %v4059_v46 = vmul.f32 0.2, %v3547_v25  ;;  %vm3678_vm3 = vcmp.ge.f32.partialorder %v3422_v30, 0.0 }
 0x117   :  { %v3548_v47 = vld [vmem:[#allocation2 + $0x468] sm:$0xff]  ;;  %5593 = vst.msk [vmem:[%s10189_s2 + $0x224] sm:$0xf] %vm5455_vm4, %v6368_v38  ;;  %v6373_v48 = vpack.c.bf16 %v4317_v45, %v4317_v45  ;;  %v4187_v49 = vsel %vm3675_vm15, %v3419_v21, %v3931_v40  ;;  %v3934_v50 = vmul.f32 0.2, %v3422_v30  ;;  %vm3806_vm5 = vcmp.ge.f32.partialorder %v3550_v36, 0.0 }
 0x118   :  { %v3425_v51 = vld [vmem:[#allocation2 + $0x90] sm:$0xff]  ;;  %v8281_v52 = vpop.f32.mrb[24].mxu0  ;;  %v8283_v53 = vpop.f32.mrb[24].mxu1  ;;  %5470 = vst.msk [vmem:[%s10189_s2 + $0x38] sm:$0xf] %vm5455_vm4, %v6245_v43  ;;  %v6243_v54 = vpack.c.bf16 %v4187_v49, %v4187_v49  ;;  %v4315_v55 = vsel %vm3803_vm2, %v3547_v25, %v4059_v46  ;;  %vm3676_vm6 = vcmp.ge.f32.partialorder %v3420_v41, 0.0 }
 0x119   :  { %v4062_v56 = vmul.f32 0.2, %v3550_v36  ;;  %v3553_v57 = vld [vmem:[#allocation2 + $0x490] sm:$0xff]  ;;  %v8290_v60 = vpop.f32.mrb[25].mxu0  ;;  %v8292_v61 = vpop.f32.mrb[25].mxu1  ;;  %v6371_v0 = vpack.c.bf16 %v4315_v55, %v4315_v55  ;;  %v4190_v1 = vsel %vm3678_vm3, %v3422_v30, %v3934_v50  ;;  %vm3804_vm7 = vcmp.ge.f32.partialorder %v3548_v47, 0.0 }
 0x11a   :  { %5598 = vst.msk [vmem:[%s10189_s2 + $0x238] sm:$0xf] %vm5455_vm4, %v6373_v48  ;;  %v3932_v2 = vmul.f32 0.2, %v3420_v41  ;;  %v3423_v44 = vld [vmem:[#allocation2 + $0x80] sm:$0xff]  ;;  %v8299_v62 = vpop.f32.mrb[26].mxu0  ;;  %v6246_v6 = vpack.c.bf16 %v4190_v1, %v4190_v1 }
 0x11b   :  { %v8301_v3 = vpop.f32.mrb[26].mxu1  ;;  %5468 = vst.msk [vmem:[%s10189_s2 + $0x30] sm:$0xf] %vm5455_vm4, %v6243_v54  ;;  %v4318_v7 = vsel %vm3806_vm5, %v3550_v36, %v4062_v56  ;;  %v4060_v8 = vmul.f32 0.2, %v3548_v47  ;;  %vm3681_vm8 = vcmp.ge.f32.partialorder %v3425_v51, 0.0 }
 0x11c   :  { %v3551_v9 = vld [vmem:[#allocation2 + $0x480] sm:$0xff]  ;;  %v8308_v10 = vpop.f32.mrb[27].mxu0  ;;  %v8310_v11 = vpop.f32.mrb[27].mxu1  ;;  %5596 = vst.msk [vmem:[%s10189_s2 + $0x230] sm:$0xf] %vm5455_vm4, %v6371_v0  ;;  %v6374_v63 = vpack.c.bf16 %v4318_v7, %v4318_v7  ;;  %v4188_v4 = vsel %vm3676_vm6, %v3420_v41, %v3932_v2  ;;  %vm3809_vm9 = vcmp.ge.f32.partialorder %v3553_v57, 0.0 }
 0x11d   :  { %v3937_v12 = vmul.f32 0.2, %v3425_v51  ;;  %v3426_v15 = vld [vmem:[#allocation2 + $0x98] sm:$0xff]  ;;  %5471 = vst.msk [vmem:[%s10189_s2 + $0x3c] sm:$0xf] %vm5455_vm4, %v6246_v6  ;;  %v6244_v16 = vpack.c.bf16 %v4188_v4, %v4188_v4  ;;  %v4316_v17 = vsel %vm3804_vm7, %v3548_v47, %v4060_v8  ;;  %vm3679_vm10 = vcmp.ge.f32.partialorder %v3423_v44, 0.0 }
 0x11e   :  { %v4065_v13 = vmul.f32 0.2, %v3553_v57  ;;  %v3554_v14 = vld [vmem:[#allocation2 + $0x498] sm:$0xff]  ;;  %v290_v19 = vld [vmem:[#allocation2 + $0x88] sm:$0xff]  ;;  %5599 = vst.msk [vmem:[%s10189_s2 + $0x23c] sm:$0xf] %vm5455_vm4, %v6374_v63  ;;  %v6372_v23 = vpack.c.bf16 %v4316_v17, %v4316_v17 }
 0x11f   :  { %v418_v21 = vld [vmem:[#allocation2 + $0x488] sm:$0xff]  ;;  %v4193_v24 = vsel %vm3681_vm8, %v3425_v51, %v3937_v12  ;;  %v3935_v20 = vmul.f32 0.2, %v3423_v44  ;;  %vm3807_vm11 = vcmp.ge.f32.partialorder %v3551_v9, 0.0  ;;  %v295_v25 = vld [vmem:[#allocation2 + $0xb0] sm:$0xff]  ;;  %v293_v28 = vld [vmem:[#allocation2 + $0xa0] sm:$0xff]  ;;  %v2908_v51 = vadd.f32 %v8214_v58, %v290_v19 }
 0x120   :  { %v423_v27 = vld [vmem:[#allocation2 + $0x4b0] sm:$0xff]  ;;  %5469 = vst.msk [vmem:[%s10189_s2 + $0x34] sm:$0xf] %vm5455_vm4, %v6244_v16  ;;  %v6249_v29 = vpack.c.bf16 %v4193_v24, %v4193_v24  ;;  %v4321_v30 = vsel %vm3809_vm9, %v3553_v57, %v4065_v13  ;;  %v4063_v33 = vmul.f32 0.2, %v3551_v9  ;;  %vm3682_vm0 = vcmp.ge.f32.partialorder %v3426_v15, 0.0 }
 0x121   :  { %v421_v34 = vld [vmem:[#allocation2 + $0x4a0] sm:$0xff]  ;;  %v296_v35 = vld [vmem:[#allocation2 + $0xb8] sm:$0xff]  ;;  %5597 = vst.msk [vmem:[%s10189_s2 + $0x234] sm:$0xf] %vm5455_vm4, %v6372_v23  ;;  %v6377_v38 = vpack.c.bf16 %v4321_v30, %v4321_v30  ;;  %v4191_v39 = vsel %vm3679_vm10, %v3423_v44, %v3935_v20  ;;  %v3938_v40 = vmul.f32 0.2, %v3426_v15  ;;  %v3036_v2 = vadd.f32 %v8216_v59, %v418_v21 }
 0x122   :  { %v424_v36 = vld [vmem:[#allocation2 + $0x4b8] sm:$0xff]  ;;  %vm3810_vm12 = vcmp.ge.f32.partialorder %v3554_v14, 0.0  ;;  %v294_v41 = vld [vmem:[#allocation2 + $0xa8] sm:$0xff]  ;;  %v299_v45 = vld [vmem:[#allocation2 + $0xd0] sm:$0xff]  ;;  %v8337_v46 = vpop.f32.mrb[28].mxu0  ;;  %v8339_v47 = vpop.f32.mrb[28].mxu1  ;;  %v6247_v48 = vpack.c.bf16 %v4191_v39, %v4191_v39  ;;  %v4319_v49 = vsel %vm3807_vm11, %v3551_v9, %v4063_v33  ;;  %v2913_v44 = vadd.f32 %v8230_v18, %v295_v25 }
 0x123   :  { %v422_v43 = vld [vmem:[#allocation2 + $0x4a8] sm:$0xff]  ;;  %5474 = vst.msk [vmem:[%s10189_s2 + $0x48] sm:$0xf] %vm5455_vm4, %v6249_v29  ;;  %v4066_v50 = vmul.f32 0.2, %v3554_v14  ;;  %v427_v54 = vld [vmem:[#allocation2 + $0x4d0] sm:$0xff]  ;;  %v6375_v0 = vpack.c.bf16 %v4319_v49, %v4319_v49  ;;  %v4194_v1 = vsel %vm3682_vm0, %v3426_v15, %v3938_v40  ;;  %v3041_v12 = vadd.f32 %v8232_v5, %v423_v27 }
 0x124   :  { %v297_v55 = vld [vmem:[#allocation2 + $0xc0] sm:$0xff]  ;;  %v8347_v56 = vpop.f32.mrb[29].mxu0  ;;  %v8349_v57 = vpop.f32.mrb[29].mxu1  ;;  %5602 = vst.msk [vmem:[%s10189_s2 + $0x248] sm:$0xf] %vm5455_vm4, %v6377_v38  ;;  %v300_v58 = vld [vmem:[#allocation2 + $0xd8] sm:$0xff]  ;;  %v6250_v63 = vpack.c.bf16 %v4194_v1, %v4194_v1  ;;  %v2911_v59 = vadd.f32 %v8239_v22, %v293_v28  ;;  %v2914_v5 = vadd.f32 %v8253_v31, %v296_v35  ;;  %v3042_v22 = vadd.f32 %v8255_v32, %v424_v36 }
 0x125   :  { %v425_v6 = vld [vmem:[#allocation2 + $0x4c0] sm:$0xff]  ;;  %v428_v7 = vld [vmem:[#allocation2 + $0x4d8] sm:$0xff]  ;;  %v6655_v8 = vpop.f32.mrb[30].mxu0  ;;  %v6783_v9 = vpop.f32.mrb[30].mxu1  ;;  %5472 = vst.msk [vmem:[%s10189_s2 + $0x40] sm:$0xf] %vm5455_vm4, %v6247_v48  ;;  %v4322_v4 = vsel %vm3810_vm12, %v3554_v14, %v4066_v50  ;;  %v3039_v14 = vadd.f32 %v8246_v26, %v421_v34  ;;  %v2912_v20 = vadd.f32 %v8262_v37, %v294_v41  ;;  %v3040_v26 = vadd.f32 %v8269_v42, %v422_v43 }
 0x126   :  { %3165 = vst.msk [vmem:[#allocation2 + $0x88] sm:$0xff] %vm16_vm1, %v2908_v51  ;;  %v298_v18 = vld [vmem:[#allocation2 + $0xc8] sm:$0xff]  ;;  %v303_v16 = vld [vmem:[#allocation2 + $0xf0] sm:$0xff]  ;;  %v1983_v17 = vpop.f32.mrb[31].mxu0  ;;  %v2495_v13 = vpop.f32.mrb[31].mxu1  ;;  %v6378_v19 = vpack.c.bf16 %v4322_v4, %v4322_v4  ;;  %3293 = vst.msk [vmem:[#allocation2 + $0x488] sm:$0xff] %vm16_vm1, %v3036_v2  ;;  %v2917_v31 = vadd.f32 %v8281_v52, %v299_v45  ;;  %v3045_v32 = vadd.f32 %v8283_v53, %v427_v54 }
 0x127   :  { %v426_v15 = vld [vmem:[#allocation2 + $0x4c8] sm:$0xff]  ;;  %5600 = vst.msk [vmem:[%s10189_s2 + $0x240] sm:$0xf] %vm5455_vm4, %v6375_v0  ;;  %v431_v21 = vld [vmem:[#allocation2 + $0x4f0] sm:$0xff]  ;;  %v301_v23 = vld [vmem:[#allocation2 + $0xe0] sm:$0xff]  ;;  %v2915_v37 = vadd.f32 %v8290_v60, %v297_v55  ;;  %v3043_v42 = vadd.f32 %v8292_v61, %v425_v6  ;;  %v2918_v52 = vadd.f32 %v8299_v62, %v300_v58  ;;  %v3046_v53 = vadd.f32 %v8301_v3, %v428_v7  ;;  %v6658_v39 = vpop.f32.mrb[32].mxu0 }
 0x128   :  { %3170 = vst.msk [vmem:[#allocation2 + $0xb0] sm:$0xff] %vm16_vm1, %v2913_v44  ;;  %v429_v24 = vld [vmem:[#allocation2 + $0x4e0] sm:$0xff]  ;;  %3298 = vst.msk [vmem:[#allocation2 + $0x4b0] sm:$0xff] %vm16_vm1, %v3041_v12  ;;  %v304_v25 = vld [vmem:[#allocation2 + $0xf8] sm:$0xff]  ;;  %v2916_v34 = vadd.f32 %v8308_v10, %v298_v18  ;;  %v3044_v60 = vadd.f32 %v8310_v11, %v426_v15  ;;  %v2921_v61 = vadd.f32 %v8337_v46, %v303_v16  ;;  %v6786_v40 = vpop.f32.mrb[32].mxu1  ;;  %v1996_v49 = vpop.f32.mrb[33].mxu0 }
 0x129   :  { %5475 = vst.msk [vmem:[%s10189_s2 + $0x4c] sm:$0xf] %vm5455_vm4, %v6250_v63  ;;  %v432_v27 = vld [vmem:[#allocation2 + $0x4f8] sm:$0xff]  ;;  %v302_v28 = vld [vmem:[#allocation2 + $0xe8] sm:$0xff]  ;;  %5603 = vst.msk [vmem:[%s10189_s2 + $0x24c] sm:$0xf] %vm5455_vm4, %v6378_v19  ;;  %v3049_v62 = vadd.f32 %v8339_v47, %v431_v21  ;;  %v2919_v36 = vadd.f32 %v8347_v56, %v301_v23  ;;  %v3047_v10 = vadd.f32 %v8349_v57, %v429_v24 }
 0x12a   :  { %3168 = vst.msk [vmem:[#allocation2 + $0xa0] sm:$0xff] %vm16_vm1, %v2911_v59  ;;  %3296 = vst.msk [vmem:[#allocation2 + $0x4a0] sm:$0xff] %vm16_vm1, %v3039_v14  ;;  %v430_v29 = vld [vmem:[#allocation2 + $0x4e8] sm:$0xff]  ;;  %v307_v30 = vld [vmem:[#allocation2 + $0x110] sm:$0xff]  ;;  %v2922_v38 = vadd.f32 %v6655_v8, %v304_v25  ;;  %v3050_v11 = vadd.f32 %v6783_v9, %v432_v27  ;;  %v2920_v45 = vadd.f32 %v1983_v17, %v302_v28  ;;  %v2508_v50 = vpop.f32.mrb[33].mxu1  ;;  %v6659_v56 = vpop.f32.mrb[34].mxu0 }
 0x12b   :  { %3171 = vst.msk [vmem:[#allocation2 + $0xb8] sm:$0xff] %vm16_vm1, %v2914_v5  ;;  %3299 = vst.msk [vmem:[#allocation2 + $0x4b8] sm:$0xff] %vm16_vm1, %v3042_v22  ;;  %v435_v33 = vld [vmem:[#allocation2 + $0x510] sm:$0xff]  ;;  %v305_v3 = vld [vmem:[#allocation2 + $0x100] sm:$0xff]  ;;  %v3048_v46 = vadd.f32 %v2495_v13, %v430_v29  ;;  %v2925_v47 = vadd.f32 %v6658_v39, %v307_v30  ;;  %v6787_v57 = vpop.f32.mrb[34].mxu1  ;;  %v1999_v7 = vpop.f32.mrb[35].mxu0 }
 0x12c   :  { %3169 = vst.msk [vmem:[#allocation2 + $0xa8] sm:$0xff] %vm16_vm1, %v2912_v20  ;;  %3297 = vst.msk [vmem:[#allocation2 + $0x4a8] sm:$0xff] %vm16_vm1, %v3040_v26  ;;  %v433_v35 = vld [vmem:[#allocation2 + $0x500] sm:$0xff]  ;;  %v308_v41 = vld [vmem:[#allocation2 + $0x118] sm:$0xff]  ;;  %v3053_v48 = vadd.f32 %v6786_v40, %v435_v33  ;;  %v2923_v54 = vadd.f32 %v1996_v49, %v305_v3  ;;  %v8427_v15 = vpop.f32.mrb[35].mxu1 }
 0x12d   :  { %3174 = vst.msk [vmem:[#allocation2 + $0xd0] sm:$0xff] %vm16_vm1, %v2917_v31  ;;  %3302 = vst.msk [vmem:[#allocation2 + $0x4d0] sm:$0xff] %vm16_vm1, %v3045_v32  ;;  %v436_v43 = vld [vmem:[#allocation2 + $0x518] sm:$0xff]  ;;  %v3424_v51 = vld [vmem:[#allocation2 + $0x88] sm:$0xff]  ;;  %v3051_v55 = vadd.f32 %v2508_v50, %v433_v35  ;;  %v2926_v6 = vadd.f32 %v6659_v56, %v308_v41  ;;  %v8446_v29 = vpop.f32.mrb[36].mxu1 }
 0x12e   :  { %3172 = vst.msk [vmem:[#allocation2 + $0xc0] sm:$0xff] %vm16_vm1, %v2915_v37  ;;  %3300 = vst.msk [vmem:[#allocation2 + $0x4c0] sm:$0xff] %vm16_vm1, %v3043_v42  ;;  %v306_v0 = vld [vmem:[#allocation2 + $0x108] sm:$0xff]  ;;  %vm3680_vm13 = vcmp.ge.f32.partialorder %v3424_v51, 0.0  ;;  %v3936_v1 = vmul.f32 0.2, %v3424_v51  ;;  %v3054_v58 = vadd.f32 %v6787_v57, %v436_v43 }
 0x12f   :  { %3175 = vst.msk [vmem:[#allocation2 + $0xd8] sm:$0xff] %vm16_vm1, %v2918_v52  ;;  %3303 = vst.msk [vmem:[#allocation2 + $0x4d8] sm:$0xff] %vm16_vm1, %v3046_v53  ;;  %v3552_v2 = vld [vmem:[#allocation2 + $0x488] sm:$0xff]  ;;  %v3429_v44 = vld [vmem:[#allocation2 + $0xb0] sm:$0xff]  ;;  %v2924_v18 = vadd.f32 %v1999_v7, %v306_v0  ;;  %v8444_v53 = vpop.f32.mrb[36].mxu0  ;;  %v8451_v3 = vpop.f32.mrb[37].mxu1 }
 0x130   :  { %3173 = vst.msk [vmem:[#allocation2 + $0xc8] sm:$0xff] %vm16_vm1, %v2916_v34  ;;  %3301 = vst.msk [vmem:[#allocation2 + $0x4c8] sm:$0xff] %vm16_vm1, %v3044_v60  ;;  %vm3808_vm14 = vcmp.ge.f32.partialorder %v3552_v2, 0.0  ;;  %v4064_v8 = vmul.f32 0.2, %v3552_v2  ;;  %vm3685_vm15 = vcmp.ge.f32.partialorder %v3429_v44, 0.0  ;;  %v4192_v63 = vsel %vm3680_vm13, %v3424_v51, %v3936_v1 }
 0x131   :  { %3178 = vst.msk [vmem:[#allocation2 + $0xf0] sm:$0xff] %vm16_vm1, %v2921_v61  ;;  %3306 = vst.msk [vmem:[#allocation2 + $0x4f0] sm:$0xff] %vm16_vm1, %v3049_v62  ;;  %v3941_v9 = vmul.f32 0.2, %v3429_v44  ;;  %v3557_v4 = vld [vmem:[#allocation2 + $0x4b0] sm:$0xff]  ;;  %v3427_v12 = vld [vmem:[#allocation2 + $0xa0] sm:$0xff]  ;;  %v6248_v16 = vpack.c.bf16 %v4192_v63, %v4192_v63 }
 0x132   :  { %3176 = vst.msk [vmem:[#allocation2 + $0xe0] sm:$0xff] %vm16_vm1, %v2919_v36  ;;  %3304 = vst.msk [vmem:[#allocation2 + $0x4e0] sm:$0xff] %vm16_vm1, %v3047_v10  ;;  %v3555_v59 = vld [vmem:[#allocation2 + $0x4a0] sm:$0xff]  ;;  %v4320_v17 = vsel %vm3808_vm14, %v3552_v2, %v4064_v8  ;;  %vm3813_vm2 = vcmp.ge.f32.partialorder %v3557_v4, 0.0  ;;  %v3430_v19 = vld [vmem:[#allocation2 + $0xb8] sm:$0xff]  ;;  %vm3683_vm3 = vcmp.ge.f32.partialorder %v3427_v12, 0.0 }
 0x133   :  { %3179 = vst.msk [vmem:[#allocation2 + $0xf8] sm:$0xff] %vm16_vm1, %v2922_v38  ;;  %3307 = vst.msk [vmem:[#allocation2 + $0x4f8] sm:$0xff] %vm16_vm1, %v3050_v11  ;;  %v4197_v13 = vsel %vm3685_vm15, %v3429_v44, %v3941_v9  ;;  %v3558_v14 = vld [vmem:[#allocation2 + $0x4b8] sm:$0xff]  ;;  %v6376_v5 = vpack.c.bf16 %v4320_v17, %v4320_v17  ;;  %v4069_v21 = vmul.f32 0.2, %v3557_v4  ;;  %v3428_v23 = vld [vmem:[#allocation2 + $0xa8] sm:$0xff] }
 0x134   :  { %3177 = vst.msk [vmem:[#allocation2 + $0xe8] sm:$0xff] %vm16_vm1, %v2920_v45  ;;  %3305 = vst.msk [vmem:[#allocation2 + $0x4e8] sm:$0xff] %vm16_vm1, %v3048_v46  ;;  %v6253_v22 = vpack.c.bf16 %v4197_v13, %v4197_v13  ;;  %v3939_v24 = vmul.f32 0.2, %v3427_v12  ;;  %vm3811_vm5 = vcmp.ge.f32.partialorder %v3555_v59, 0.0  ;;  %vm3686_vm6 = vcmp.ge.f32.partialorder %v3430_v19, 0.0 }
 0x135   :  { %3182 = vst.msk [vmem:[#allocation2 + $0x110] sm:$0xff] %vm16_vm1, %v2925_v47  ;;  %3310 = vst.msk [vmem:[#allocation2 + $0x510] sm:$0xff] %vm16_vm1, %v3053_v48  ;;  %v4067_v20 = vmul.f32 0.2, %v3555_v59  ;;  %v4325_v26 = vsel %vm3813_vm2, %v3557_v4, %v4069_v21  ;;  %v3942_v31 = vmul.f32 0.2, %v3430_v19 }
 0x136   :  { %3180 = vst.msk [vmem:[#allocation2 + $0x100] sm:$0xff] %vm16_vm1, %v2923_v54  ;;  %3308 = vst.msk [vmem:[#allocation2 + $0x500] sm:$0xff] %vm16_vm1, %v3051_v55  ;;  %vm3814_vm7 = vcmp.ge.f32.partialorder %v3558_v14, 0.0  ;;  %v4070_v32 = vmul.f32 0.2, %v3558_v14  ;;  %v3556_v25 = vld [vmem:[#allocation2 + $0x4a8] sm:$0xff]  ;;  %v6381_v27 = vpack.c.bf16 %v4325_v26, %v4325_v26  ;;  %v4195_v28 = vsel %vm3683_vm3, %v3427_v12, %v3939_v24 }
 0x137   :  { %3183 = vst.msk [vmem:[#allocation2 + $0x118] sm:$0xff] %vm16_vm1, %v2926_v6  ;;  %3311 = vst.msk [vmem:[#allocation2 + $0x518] sm:$0xff] %vm16_vm1, %v3054_v58  ;;  %v4323_v37 = vsel %vm3811_vm5, %v3555_v59, %v4067_v20  ;;  %vm3684_vm8 = vcmp.ge.f32.partialorder %v3428_v23, 0.0  ;;  %v3433_v42 = vld [vmem:[#allocation2 + $0xd0] sm:$0xff]  ;;  %v6251_v30 = vpack.c.bf16 %v4195_v28, %v4195_v28  ;;  %v4198_v34 = vsel %vm3686_vm6, %v3430_v19, %v3942_v31  ;;  %v3431_v61 = vld [vmem:[#allocation2 + $0xc0] sm:$0xff]  ;;  %v8449_v62 = vpop.f32.mrb[37].mxu0 }
 0x138   :  { %3181 = vst.msk [vmem:[#allocation2 + $0x108] sm:$0xff] %vm16_vm1, %v2924_v18  ;;  %v3561_v52 = vld [vmem:[#allocation2 + $0x4d0] sm:$0xff]  ;;  %v6379_v33 = vpack.c.bf16 %v4323_v37, %v4323_v37  ;;  %v4326_v60 = vsel %vm3814_vm7, %v3558_v14, %v4070_v32  ;;  %v6254_v35 = vpack.c.bf16 %v4198_v34, %v4198_v34  ;;  %v3940_v10 = vmul.f32 0.2, %v3428_v23  ;;  %v3559_v38 = vld [vmem:[#allocation2 + $0x4c0] sm:$0xff]  ;;  %v3434_v45 = vld [vmem:[#allocation2 + $0xd8] sm:$0xff] }
 0x139   :  { %5473 = vst.msk [vmem:[%s10189_s2 + $0x44] sm:$0xf] %vm5455_vm4, %v6248_v16  ;;  %5601 = vst.msk [vmem:[%s10189_s2 + $0x244] sm:$0xf] %vm5455_vm4, %v6376_v5  ;;  %v6382_v36 = vpack.c.bf16 %v4326_v60, %v4326_v60  ;;  %vm3812_vm9 = vcmp.ge.f32.partialorder %v3556_v25, 0.0  ;;  %vm3689_vm10 = vcmp.ge.f32.partialorder %v3433_v42, 0.0 }
 0x13a   :  { %5478 = vst.msk [vmem:[%s10189_s2 + $0x58] sm:$0xf] %vm5455_vm4, %v6253_v22  ;;  %5606 = vst.msk [vmem:[%s10189_s2 + $0x258] sm:$0xf] %vm5455_vm4, %v6381_v27  ;;  %v4068_v11 = vmul.f32 0.2, %v3556_v25  ;;  %v4196_v40 = vsel %vm3684_vm8, %v3428_v23, %v3940_v10 }
 0x13b   :  { %5476 = vst.msk [vmem:[%s10189_s2 + $0x50] sm:$0xf] %vm5455_vm4, %v6251_v30  ;;  %5604 = vst.msk [vmem:[%s10189_s2 + $0x250] sm:$0xf] %vm5455_vm4, %v6379_v33  ;;  %v3945_v39 = vmul.f32 0.2, %v3433_v42  ;;  %v6252_v46 = vpack.c.bf16 %v4196_v40, %v4196_v40 }
 0x13c   :  { %vm3817_vm11 = vcmp.ge.f32.partialorder %v3561_v52, 0.0  ;;  %5479 = vst.msk [vmem:[%s10189_s2 + $0x5c] sm:$0xf] %vm5455_vm4, %v6254_v35  ;;  %5607 = vst.msk [vmem:[%s10189_s2 + $0x25c] sm:$0xf] %vm5455_vm4, %v6382_v36  ;;  %vm3687_vm0 = vcmp.ge.f32.partialorder %v3431_v61, 0.0  ;;  %v4324_v47 = vsel %vm3812_vm9, %v3556_v25, %v4068_v11 }
 0x13d   :  { %v4073_v41 = vmul.f32 0.2, %v3561_v52  ;;  %v3943_v43 = vmul.f32 0.2, %v3431_v61  ;;  %v4201_v48 = vsel %vm3689_vm10, %v3433_v42, %v3945_v39  ;;  %vm3815_vm12 = vcmp.ge.f32.partialorder %v3559_v38, 0.0  ;;  %v3562_v49 = vld [vmem:[#allocation2 + $0x4d8] sm:$0xff] }
 0x13e   :  { %v3432_v50 = vld [vmem:[#allocation2 + $0xc8] sm:$0xff]  ;;  %v8475_v51 = vpop.f32.mrb[38].mxu0  ;;  %v8477_v54 = vpop.f32.mrb[38].mxu1  ;;  %v6380_v55 = vpack.c.bf16 %v4324_v47, %v4324_v47  ;;  %v6257_v56 = vpack.c.bf16 %v4201_v48, %v4201_v48  ;;  %5477 = vst.msk [vmem:[%s10189_s2 + $0x54] sm:$0xf] %vm5455_vm4, %v6252_v46  ;;  %vm3690_vm13 = vcmp.ge.f32.partialorder %v3434_v45, 0.0 }
 0x13f   :  { %v4329_v57 = vsel %vm3817_vm11, %v3561_v52, %v4073_v41  ;;  %v4199_v0 = vsel %vm3687_vm0, %v3431_v61, %v3943_v43  ;;  %v3560_v1 = vld [vmem:[#allocation2 + $0x4c8] sm:$0xff]  ;;  %v8480_v2 = vpop.f32.mrb[39].mxu0  ;;  %v8482_v44 = vpop.f32.mrb[39].mxu1  ;;  %v4071_v7 = vmul.f32 0.2, %v3559_v38  ;;  %v3437_v8 = vld [vmem:[#allocation2 + $0xf0] sm:$0xff] }
 0x140   :  { %v6385_v6 = vpack.c.bf16 %v4329_v57, %v4329_v57  ;;  %v6255_v58 = vpack.c.bf16 %v4199_v0, %v4199_v0  ;;  %5605 = vst.msk [vmem:[%s10189_s2 + $0x254] sm:$0xf] %vm5455_vm4, %v6380_v55  ;;  %5482 = vst.msk [vmem:[%s10189_s2 + $0x68] sm:$0xf] %vm5455_vm4, %v6257_v56  ;;  %v3946_v9 = vmul.f32 0.2, %v3434_v45 }
 0x141   :  { %vm3818_vm14 = vcmp.ge.f32.partialorder %v3562_v49, 0.0  ;;  %v4074_v63 = vmul.f32 0.2, %v3562_v49  ;;  %vm3688_vm15 = vcmp.ge.f32.partialorder %v3432_v50, 0.0  ;;  %v4327_v4 = vsel %vm3815_vm12, %v3559_v38, %v4071_v7  ;;  %v3565_v18 = vld [vmem:[#allocation2 + $0x4f0] sm:$0xff]  ;;  %v3435_v19 = vld [vmem:[#allocation2 + $0xe0] sm:$0xff] }
 0x142   :  { %5610 = vst.msk [vmem:[%s10189_s2 + $0x268] sm:$0xf] %vm5455_vm4, %v6385_v6  ;;  %5480 = vst.msk [vmem:[%s10189_s2 + $0x60] sm:$0xf] %vm5455_vm4, %v6255_v58  ;;  %v3944_v12 = vmul.f32 0.2, %v3432_v50  ;;  %v6383_v16 = vpack.c.bf16 %v4327_v4, %v4327_v4  ;;  %v4202_v17 = vsel %vm3690_vm13, %v3434_v45, %v3946_v9 }
 0x143   :  { %vm3816_vm2 = vcmp.ge.f32.partialorder %v3560_v1, 0.0  ;;  %v4072_v59 = vmul.f32 0.2, %v3560_v1  ;;  %v4330_v13 = vsel %vm3818_vm14, %v3562_v49, %v4074_v63  ;;  %vm3693_vm3 = vcmp.ge.f32.partialorder %v3437_v8, 0.0  ;;  %v3563_v14 = vld [vmem:[#allocation2 + $0x4e0] sm:$0xff]  ;;  %v8506_v5 = vpop.f32.mrb[40].mxu0 }
 0x144   :  { %v8508_v22 = vpop.f32.mrb[40].mxu1  ;;  %v6258_v21 = vpack.c.bf16 %v4202_v17, %v4202_v17  ;;  %v6386_v23 = vpack.c.bf16 %v4330_v13, %v4330_v13  ;;  %v4200_v24 = vsel %vm3688_vm15, %v3432_v50, %v3944_v12  ;;  %v3438_v26 = vld [vmem:[#allocation2 + $0xf8] sm:$0xff]  ;;  %v8511_v32 = vpop.f32.mrb[41].mxu0  ;;  %5608 = vst.msk [vmem:[%s10189_s2 + $0x260] sm:$0xf] %vm5455_vm4, %v6383_v16  ;;  %vm3821_vm5 = vcmp.ge.f32.partialorder %v3565_v18, 0.0 }
 0x145   :  { %v4328_v20 = vsel %vm3816_vm2, %v3560_v1, %v4072_v59  ;;  %v3566_v31 = vld [vmem:[#allocation2 + $0x4f8] sm:$0xff]  ;;  %v8513_v25 = vpop.f32.mrb[41].mxu1  ;;  %v6256_v27 = vpack.c.bf16 %v4200_v24, %v4200_v24  ;;  %v3949_v37 = vmul.f32 0.2, %v3437_v8  ;;  %v3436_v42 = vld [vmem:[#allocation2 + $0xe8] sm:$0xff]  ;;  %v8519_v52 = vpop.f32.mrb[42].mxu0 }
 0x146   :  { %v6384_v28 = vpack.c.bf16 %v4328_v20, %v4328_v20  ;;  %v8521_v30 = vpop.f32.mrb[42].mxu1  ;;  %5483 = vst.msk [vmem:[%s10189_s2 + $0x6c] sm:$0xf] %vm5455_vm4, %v6258_v21  ;;  %5611 = vst.msk [vmem:[%s10189_s2 + $0x26c] sm:$0xf] %vm5455_vm4, %v6386_v23  ;;  %vm3691_vm6 = vcmp.ge.f32.partialorder %v3435_v19, 0.0 }
 0x147   :  { %v4077_v33 = vmul.f32 0.2, %v3565_v18  ;;  %v3947_v34 = vmul.f32 0.2, %v3435_v19  ;;  %vm3819_vm7 = vcmp.ge.f32.partialorder %v3563_v14, 0.0  ;;  %v4205_v60 = vsel %vm3693_vm3, %v3437_v8, %v3949_v37  ;;  %v8540_v36 = vpop.f32.mrb[43].mxu0 }
 0x148   :  { %5481 = vst.msk [vmem:[%s10189_s2 + $0x64] sm:$0xf] %vm5455_vm4, %v6256_v27  ;;  %5609 = vst.msk [vmem:[%s10189_s2 + $0x264] sm:$0xf] %vm5455_vm4, %v6384_v28  ;;  %v4075_v61 = vmul.f32 0.2, %v3563_v14  ;;  %v6261_v10 = vpack.c.bf16 %v4205_v60, %v4205_v60 }
 0x149   :  { %vm3694_vm8 = vcmp.ge.f32.partialorder %v3438_v26, 0.0  ;;  %v3950_v35 = vmul.f32 0.2, %v3438_v26  ;;  %v4333_v38 = vsel %vm3821_vm5, %v3565_v18, %v4077_v33  ;;  %v4203_v11 = vsel %vm3691_vm6, %v3435_v19, %v3947_v34  ;;  %v3564_v39 = vld [vmem:[#allocation2 + $0x4e8] sm:$0xff]  ;;  %v3441_v40 = vld [vmem:[#allocation2 + $0x110] sm:$0xff]  ;;  %v8543_v41 = vpop.f32.mrb[43].mxu1 }
 0x14a   :  { %vm3822_vm9 = vcmp.ge.f32.partialorder %v3566_v31, 0.0  ;;  %v8545_v43 = vpop.f32.mrb[44].mxu0  ;;  %v6389_v45 = vpack.c.bf16 %v4333_v38, %v4333_v38  ;;  %v6259_v46 = vpack.c.bf16 %v4203_v11, %v4203_v11  ;;  %v4331_v47 = vsel %vm3819_vm7, %v3563_v14, %v4075_v61  ;;  %v3569_v49 = vld [vmem:[#allocation2 + $0x510] sm:$0xff]  ;;  %v3439_v50 = vld [vmem:[#allocation2 + $0x100] sm:$0xff]  ;;  %v8548_v55 = vpop.f32.mrb[44].mxu1  ;;  %v3442_v13 = vld [vmem:[#allocation2 + $0x118] sm:$0xff] }
 0x14b   :  { %v4206_v48 = vsel %vm3694_vm8, %v3438_v26, %v3950_v35  ;;  %v8550_v56 = vpop.f32.mrb[45].mxu0  ;;  %5486 = vst.msk [vmem:[%s10189_s2 + $0x78] sm:$0xf] %vm5455_vm4, %v6261_v10  ;;  %v6387_v57 = vpack.c.bf16 %v4331_v47, %v4331_v47  ;;  %v4078_v1 = vmul.f32 0.2, %v3566_v31  ;;  %vm3692_vm10 = vcmp.ge.f32.partialorder %v3436_v42, 0.0 }
 0x14c   :  { %v6262_v0 = vpack.c.bf16 %v4206_v48, %v4206_v48  ;;  %v3567_v6 = vld [vmem:[#allocation2 + $0x500] sm:$0xff]  ;;  %v8556_v58 = vpop.f32.mrb[45].mxu1  ;;  %v8558_v7 = vpop.f32.mrb[46].mxu0  ;;  %5614 = vst.msk [vmem:[%s10189_s2 + $0x278] sm:$0xf] %vm5455_vm4, %v6389_v45  ;;  %vm3820_vm11 = vcmp.ge.f32.partialorder %v3564_v39, 0.0 }
 0x14d   :  { %5484 = vst.msk [vmem:[%s10189_s2 + $0x70] sm:$0xf] %vm5455_vm4, %v6259_v46  ;;  %v3948_v8 = vmul.f32 0.2, %v3436_v42  ;;  %v4076_v9 = vmul.f32 0.2, %v3564_v39  ;;  %v4334_v63 = vsel %vm3822_vm9, %v3566_v31, %v4078_v1 }
 0x14e   :  { %vm3697_vm0 = vcmp.ge.f32.partialorder %v3441_v40, 0.0  ;;  %5612 = vst.msk [vmem:[%s10189_s2 + $0x270] sm:$0xf] %vm5455_vm4, %v6387_v57  ;;  %5487 = vst.msk [vmem:[%s10189_s2 + $0x7c] sm:$0xf] %vm5455_vm4, %v6262_v0  ;;  %vm3825_vm12 = vcmp.ge.f32.partialorder %v3569_v49, 0.0  ;;  %v6390_v18 = vpack.c.bf16 %v4334_v63, %v4334_v63 }
 0x14f   :  { %v3953_v4 = vmul.f32 0.2, %v3441_v40  ;;  %v4081_v12 = vmul.f32 0.2, %v3569_v49  ;;  %v8577_v59 = vpop.f32.mrb[46].mxu1  ;;  %v4204_v16 = vsel %vm3692_vm10, %v3436_v42, %v3948_v8  ;;  %v4332_v17 = vsel %vm3820_vm11, %v3564_v39, %v4076_v9  ;;  %v3570_v19 = vld [vmem:[#allocation2 + $0x518] sm:$0xff] }
 0x150   :  { %vm3695_vm13 = vcmp.ge.f32.partialorder %v3439_v50, 0.0  ;;  %v8580_v14 = vpop.f32.mrb[47].mxu0  ;;  %v8582_v21 = vpop.f32.mrb[47].mxu1  ;;  %v6260_v23 = vpack.c.bf16 %v4204_v16, %v4204_v16  ;;  %v6388_v24 = vpack.c.bf16 %v4332_v17, %v4332_v17  ;;  %v3440_v31 = vld [vmem:[#allocation2 + $0x108] sm:$0xff]  ;;  %5615 = vst.msk [vmem:[%s10189_s2 + $0x27c] sm:$0xf] %vm5455_vm4, %v6390_v18 }
 0x151   :  { %v4209_v20 = vsel %vm3697_vm0, %v3441_v40, %v3953_v4  ;;  %v4337_v26 = vsel %vm3825_vm12, %v3569_v49, %v4081_v12  ;;  %v434_v27 = vld [vmem:[#allocation2 + $0x508] sm:$0xff]  ;;  %v3951_v42 = vmul.f32 0.2, %v3439_v50  ;;  %vm3823_vm14 = vcmp.ge.f32.partialorder %v3567_v6, 0.0  ;;  %v311_v33 = vld [vmem:[#allocation2 + $0x130] sm:$0xff]  ;;  %v8589_v60 = vpop.f32.mrb[48].mxu0 }
 0x152   :  { %v6265_v28 = vpack.c.bf16 %v4209_v20, %v4209_v20  ;;  %v6393_v37 = vpack.c.bf16 %v4337_v26, %v4337_v26  ;;  %v439_v34 = vld [vmem:[#allocation2 + $0x530] sm:$0xff]  ;;  %v8591_v61 = vpop.f32.mrb[48].mxu1  ;;  %5485 = vst.msk [vmem:[%s10189_s2 + $0x74] sm:$0xf] %vm5455_vm4, %v6260_v23  ;;  %5613 = vst.msk [vmem:[%s10189_s2 + $0x274] sm:$0xf] %vm5455_vm4, %v6388_v24  ;;  %v3052_v63 = vadd.f32 %v8427_v15, %v434_v27 }
 0x153   :  { %v4079_v35 = vmul.f32 0.2, %v3567_v6  ;;  %vm3698_vm15 = vcmp.ge.f32.partialorder %v3442_v13, 0.0  ;;  %v3954_v10 = vmul.f32 0.2, %v3442_v13  ;;  %vm3826_vm2 = vcmp.ge.f32.partialorder %v3570_v19, 0.0 }
 0x154   :  { %v309_v38 = vld [vmem:[#allocation2 + $0x120] sm:$0xff]  ;;  %v312_v39 = vld [vmem:[#allocation2 + $0x138] sm:$0xff]  ;;  %5490 = vst.msk [vmem:[%s10189_s2 + $0x88] sm:$0xf] %vm5455_vm4, %v6265_v28  ;;  %5618 = vst.msk [vmem:[%s10189_s2 + $0x288] sm:$0xf] %vm5455_vm4, %v6393_v37  ;;  %v4207_v45 = vsel %vm3695_vm13, %v3439_v50, %v3951_v42 }
 0x155   :  { %v437_v11 = vld [vmem:[#allocation2 + $0x520] sm:$0xff]  ;;  %v440_v40 = vld [vmem:[#allocation2 + $0x538] sm:$0xff]  ;;  %v4082_v46 = vmul.f32 0.2, %v3570_v19  ;;  %vm3696_vm3 = vcmp.ge.f32.partialorder %v3440_v31, 0.0  ;;  %v310_v48 = vld [vmem:[#allocation2 + $0x128] sm:$0xff]  ;;  %v6263_v1 = vpack.c.bf16 %v4207_v45, %v4207_v45  ;;  %v4335_v8 = vsel %vm3823_vm14, %v3567_v6, %v4079_v35 }
 0x156   :  { %v3952_v47 = vmul.f32 0.2, %v3440_v31  ;;  %v438_v49 = vld [vmem:[#allocation2 + $0x528] sm:$0xff]  ;;  %v315_v57 = vld [vmem:[#allocation2 + $0x150] sm:$0xff]  ;;  %v8610_v0 = vpop.f32.mrb[49].mxu0  ;;  %v4210_v9 = vsel %vm3698_vm15, %v3442_v13, %v3954_v10  ;;  %v313_v12 = vld [vmem:[#allocation2 + $0x140] sm:$0xff]  ;;  %v6391_v17 = vpack.c.bf16 %v4335_v8, %v4335_v8 }
 0x157   :  { %v443_v4 = vld [vmem:[#allocation2 + $0x550] sm:$0xff]  ;;  %v441_v18 = vld [vmem:[#allocation2 + $0x540] sm:$0xff]  ;;  %v8615_v16 = vpop.f32.mrb[49].mxu1  ;;  %v8617_v50 = vpop.f32.mrb[50].mxu0  ;;  %v6266_v23 = vpack.c.bf16 %v4210_v9, %v4210_v9  ;;  %v4338_v24 = vsel %vm3826_vm2, %v3570_v19, %v4082_v46  ;;  %v316_v26 = vld [vmem:[#allocation2 + $0x158] sm:$0xff]  ;;  %3309 = vst.msk [vmem:[#allocation2 + $0x508] sm:$0xff] %vm16_vm1, %v3052_v63  ;;  %v2929_v19 = vadd.f32 %v8444_v53, %v311_v33  ;;  %v2927_v46 = vadd.f32 %v8449_v62, %v309_v38 }
 0x158   :  { %v4208_v20 = vsel %vm3696_vm3, %v3440_v31, %v3952_v47  ;;  %v444_v28 = vld [vmem:[#allocation2 + $0x558] sm:$0xff]  ;;  %v314_v6 = vld [vmem:[#allocation2 + $0x148] sm:$0xff]  ;;  %v8621_v37 = vpop.f32.mrb[50].mxu1  ;;  %v8623_v13 = vpop.f32.mrb[51].mxu0  ;;  %5488 = vst.msk [vmem:[%s10189_s2 + $0x80] sm:$0xf] %vm5455_vm4, %v6263_v1  ;;  %v6394_v15 = vpack.c.bf16 %v4338_v24, %v4338_v24  ;;  %v3057_v31 = vadd.f32 %v8446_v29, %v439_v34  ;;  %v3055_v53 = vadd.f32 %v8451_v3, %v437_v11 }
 0x159   :  { %v6264_v27 = vpack.c.bf16 %v4208_v20, %v4208_v20  ;;  %v442_v42 = vld [vmem:[#allocation2 + $0x548] sm:$0xff]  ;;  %v319_v35 = vld [vmem:[#allocation2 + $0x170] sm:$0xff]  ;;  %v8632_v45 = vpop.f32.mrb[51].mxu1  ;;  %5616 = vst.msk [vmem:[%s10189_s2 + $0x280] sm:$0xf] %vm5455_vm4, %v6391_v17  ;;  %v2930_v29 = vadd.f32 %v8475_v51, %v312_v39  ;;  %v3058_v33 = vadd.f32 %v8477_v54, %v440_v40  ;;  %v317_v34 = vld [vmem:[#allocation2 + $0x160] sm:$0xff]  ;;  %v2928_v62 = vadd.f32 %v8480_v2, %v310_v48 }
 0x15a   :  { %v447_v10 = vld [vmem:[#allocation2 + $0x570] sm:$0xff]  ;;  %5491 = vst.msk [vmem:[%s10189_s2 + $0x8c] sm:$0xf] %vm5455_vm4, %v6266_v23  ;;  %v445_v47 = vld [vmem:[#allocation2 + $0x560] sm:$0xff]  ;;  %v320_v1 = vld [vmem:[#allocation2 + $0x178] sm:$0xff]  ;;  %v3056_v3 = vadd.f32 %v8482_v44, %v438_v49  ;;  %v2933_v51 = vadd.f32 %v8506_v5, %v315_v57  ;;  %v3061_v54 = vadd.f32 %v8508_v22, %v443_v4  ;;  %v2931_v40 = vadd.f32 %v8511_v32, %v313_v12  ;;  %v8668_v57 = vpop.f32.mrb[52].mxu0 }
 0x15b   :  { %5619 = vst.msk [vmem:[%s10189_s2 + $0x28c] sm:$0xf] %vm5455_vm4, %v6394_v15  ;;  %5489 = vst.msk [vmem:[%s10189_s2 + $0x84] sm:$0xf] %vm5455_vm4, %v6264_v27  ;;  %v448_v38 = vld [vmem:[#allocation2 + $0x578] sm:$0xff]  ;;  %v318_v11 = vld [vmem:[#allocation2 + $0x168] sm:$0xff]  ;;  %v3059_v2 = vadd.f32 %v8513_v25, %v441_v18  ;;  %v2934_v44 = vadd.f32 %v8519_v52, %v316_v26  ;;  %v3062_v5 = vadd.f32 %v8521_v30, %v444_v28 }
 0x15c   :  { %3186 = vst.msk [vmem:[#allocation2 + $0x130] sm:$0xff] %vm16_vm1, %v2929_v19  ;;  %3314 = vst.msk [vmem:[#allocation2 + $0x530] sm:$0xff] %vm16_vm1, %v3057_v31  ;;  %v446_v39 = vld [vmem:[#allocation2 + $0x568] sm:$0xff]  ;;  %v323_v22 = vld [vmem:[#allocation2 + $0x190] sm:$0xff]  ;;  %v8670_v8 = vpop.f32.mrb[52].mxu1  ;;  %v2932_v32 = vadd.f32 %v8540_v36, %v314_v6  ;;  %v3060_v25 = vadd.f32 %v8543_v41, %v442_v42  ;;  %v2937_v52 = vadd.f32 %v8545_v43, %v319_v35  ;;  %v2076_v12 = vpop.f32.mrb[53].mxu0 }
 0x15d   :  { %3184 = vst.msk [vmem:[#allocation2 + $0x120] sm:$0xff] %vm16_vm1, %v2927_v46  ;;  %3312 = vst.msk [vmem:[#allocation2 + $0x520] sm:$0xff] %vm16_vm1, %v3055_v53  ;;  %v451_v48 = vld [vmem:[#allocation2 + $0x590] sm:$0xff]  ;;  %v321_v49 = vld [vmem:[#allocation2 + $0x180] sm:$0xff]  ;;  %v3065_v30 = vadd.f32 %v8548_v55, %v447_v10  ;;  %v2588_v18 = vpop.f32.mrb[53].mxu1  ;;  %v2935_v36 = vadd.f32 %v8550_v56, %v317_v34  ;;  %v3063_v41 = vadd.f32 %v8556_v58, %v445_v47  ;;  %v8688_v20 = vpop.f32.mrb[54].mxu0 }
 0x15e   :  { %3187 = vst.msk [vmem:[#allocation2 + $0x138] sm:$0xff] %vm16_vm1, %v2930_v29  ;;  %3315 = vst.msk [vmem:[#allocation2 + $0x538] sm:$0xff] %vm16_vm1, %v3058_v33  ;;  %v449_v9 = vld [vmem:[#allocation2 + $0x580] sm:$0xff]  ;;  %v324_v63 = vld [vmem:[#allocation2 + $0x198] sm:$0xff]  ;;  %v2938_v43 = vadd.f32 %v8558_v7, %v320_v1  ;;  %v3066_v55 = vadd.f32 %v8577_v59, %v448_v38  ;;  %v8690_v26 = vpop.f32.mrb[54].mxu1  ;;  %v2936_v56 = vadd.f32 %v8580_v14, %v318_v11  ;;  %v8700_v27 = vpop.f32.mrb[55].mxu0 }
 0x15f   :  { %3185 = vst.msk [vmem:[#allocation2 + $0x128] sm:$0xff] %vm16_vm1, %v2928_v62  ;;  %3313 = vst.msk [vmem:[#allocation2 + $0x528] sm:$0xff] %vm16_vm1, %v3056_v3  ;;  %v452_v4 = vld [vmem:[#allocation2 + $0x598] sm:$0xff]  ;;  %v322_v17 = vld [vmem:[#allocation2 + $0x188] sm:$0xff]  ;;  %v3064_v58 = vadd.f32 %v8582_v21, %v446_v39  ;;  %v2941_v7 = vadd.f32 %v8589_v60, %v323_v22  ;;  %v3069_v59 = vadd.f32 %v8591_v61, %v451_v48  ;;  %v8702_v19 = vpop.f32.mrb[55].mxu1 }
 0x160   :  { %3190 = vst.msk [vmem:[#allocation2 + $0x150] sm:$0xff] %vm16_vm1, %v2933_v51  ;;  %3318 = vst.msk [vmem:[#allocation2 + $0x550] sm:$0xff] %vm16_vm1, %v3061_v54  ;;  %v450_v23 = vld [vmem:[#allocation2 + $0x588] sm:$0xff]  ;;  %v327_v24 = vld [vmem:[#allocation2 + $0x1b0] sm:$0xff]  ;;  %v2939_v14 = vadd.f32 %v8610_v0, %v321_v49  ;;  %v3067_v21 = vadd.f32 %v8615_v16, %v449_v9  ;;  %v2942_v60 = vadd.f32 %v8617_v50, %v324_v63 }
 0x161   :  { %3188 = vst.msk [vmem:[#allocation2 + $0x140] sm:$0xff] %vm16_vm1, %v2931_v40  ;;  %3316 = vst.msk [vmem:[#allocation2 + $0x540] sm:$0xff] %vm16_vm1, %v3059_v2  ;;  %v455_v28 = vld [vmem:[#allocation2 + $0x5b0] sm:$0xff]  ;;  %v325_v6 = vld [vmem:[#allocation2 + $0x1a0] sm:$0xff]  ;;  %v3070_v61 = vadd.f32 %v8621_v37, %v452_v4  ;;  %v2940_v35 = vadd.f32 %v8623_v13, %v322_v17  ;;  %v3068_v0 = vadd.f32 %v8632_v45, %v450_v23 }
 0x162   :  { %3191 = vst.msk [vmem:[#allocation2 + $0x158] sm:$0xff] %vm16_vm1, %v2934_v44  ;;  %3319 = vst.msk [vmem:[#allocation2 + $0x558] sm:$0xff] %vm16_vm1, %v3062_v5  ;;  %v453_v15 = vld [vmem:[#allocation2 + $0x5a0] sm:$0xff]  ;;  %v3568_v31 = vld [vmem:[#allocation2 + $0x508] sm:$0xff]  ;;  %v2945_v50 = vadd.f32 %v8668_v57, %v327_v24  ;;  %v3073_v37 = vadd.f32 %v8670_v8, %v455_v28  ;;  %v2943_v46 = vadd.f32 %v2076_v12, %v325_v6  ;;  %v8738_v5 = vpop.f32.mrb[56].mxu0 }
 0x163   :  { %3189 = vst.msk [vmem:[#allocation2 + $0x148] sm:$0xff] %vm16_vm1, %v2932_v32  ;;  %3317 = vst.msk [vmem:[#allocation2 + $0x548] sm:$0xff] %vm16_vm1, %v3060_v25  ;;  %vm3824_vm5 = vcmp.ge.f32.partialorder %v3568_v31, 0.0  ;;  %v4080_v42 = vmul.f32 0.2, %v3568_v31  ;;  %v3445_v10 = vld [vmem:[#allocation2 + $0x130] sm:$0xff]  ;;  %v3071_v53 = vadd.f32 %v2588_v18, %v453_v15 }
 0x164   :  { %3194 = vst.msk [vmem:[#allocation2 + $0x170] sm:$0xff] %vm16_vm1, %v2937_v52  ;;  %3322 = vst.msk [vmem:[#allocation2 + $0x570] sm:$0xff] %vm16_vm1, %v3065_v30  ;;  %v3573_v16 = vld [vmem:[#allocation2 + $0x530] sm:$0xff]  ;;  %vm3701_vm6 = vcmp.ge.f32.partialorder %v3445_v10, 0.0  ;;  %v3957_v45 = vmul.f32 0.2, %v3445_v10 }
 0x165   :  { %3192 = vst.msk [vmem:[#allocation2 + $0x160] sm:$0xff] %vm16_vm1, %v2935_v36  ;;  %3320 = vst.msk [vmem:[#allocation2 + $0x560] sm:$0xff] %vm16_vm1, %v3063_v41  ;;  %v4336_v13 = vsel %vm3824_vm5, %v3568_v31, %v4080_v42  ;;  %vm3829_vm7 = vcmp.ge.f32.partialorder %v3573_v16, 0.0  ;;  %v3443_v29 = vld [vmem:[#allocation2 + $0x120] sm:$0xff]  ;;  %v4085_v47 = vmul.f32 0.2, %v3573_v16 }
 0x166   :  { %3195 = vst.msk [vmem:[#allocation2 + $0x178] sm:$0xff] %vm16_vm1, %v2938_v43  ;;  %3323 = vst.msk [vmem:[#allocation2 + $0x578] sm:$0xff] %vm16_vm1, %v3066_v55  ;;  %v3571_v33 = vld [vmem:[#allocation2 + $0x520] sm:$0xff]  ;;  %v6392_v34 = vpack.c.bf16 %v4336_v13, %v4336_v13  ;;  %vm3699_vm8 = vcmp.ge.f32.partialorder %v3443_v29, 0.0  ;;  %v3955_v1 = vmul.f32 0.2, %v3443_v29  ;;  %v4213_v3 = vsel %vm3701_vm6, %v3445_v10, %v3957_v45 }
 0x167   :  { %3193 = vst.msk [vmem:[#allocation2 + $0x168] sm:$0xff] %vm16_vm1, %v2936_v56  ;;  %3321 = vst.msk [vmem:[#allocation2 + $0x568] sm:$0xff] %vm16_vm1, %v3064_v58  ;;  %v3446_v62 = vld [vmem:[#allocation2 + $0x138] sm:$0xff]  ;;  %vm3827_vm9 = vcmp.ge.f32.partialorder %v3571_v33, 0.0  ;;  %v4083_v51 = vmul.f32 0.2, %v3571_v33  ;;  %v6269_v11 = vpack.c.bf16 %v4213_v3, %v4213_v3  ;;  %v4341_v39 = vsel %vm3829_vm7, %v3573_v16, %v4085_v47 }
 0x168   :  { %3198 = vst.msk [vmem:[#allocation2 + $0x190] sm:$0xff] %vm16_vm1, %v2941_v7  ;;  %3326 = vst.msk [vmem:[#allocation2 + $0x590] sm:$0xff] %vm16_vm1, %v3069_v59  ;;  %vm3702_vm10 = vcmp.ge.f32.partialorder %v3446_v62, 0.0  ;;  %v3574_v54 = vld [vmem:[#allocation2 + $0x538] sm:$0xff]  ;;  %v3444_v38 = vld [vmem:[#allocation2 + $0x128] sm:$0xff]  ;;  %v4211_v40 = vsel %vm3699_vm8, %v3443_v29, %v3955_v1  ;;  %v6397_v22 = vpack.c.bf16 %v4341_v39, %v4341_v39  ;;  %v8740_v32 = vpop.f32.mrb[56].mxu1 }
 0x169   :  { %3196 = vst.msk [vmem:[#allocation2 + $0x180] sm:$0xff] %vm16_vm1, %v2939_v14  ;;  %3324 = vst.msk [vmem:[#allocation2 + $0x580] sm:$0xff] %vm16_vm1, %v3067_v21  ;;  %v3958_v2 = vmul.f32 0.2, %v3446_v62  ;;  %v3572_v44 = vld [vmem:[#allocation2 + $0x528] sm:$0xff]  ;;  %v6267_v48 = vpack.c.bf16 %v4211_v40, %v4211_v40  ;;  %v4339_v49 = vsel %vm3827_vm9, %v3571_v33, %v4083_v51  ;;  %vm3830_vm11 = vcmp.ge.f32.partialorder %v3574_v54, 0.0 }
 0x16a   :  { %3199 = vst.msk [vmem:[#allocation2 + $0x198] sm:$0xff] %vm16_vm1, %v2942_v60  ;;  %3327 = vst.msk [vmem:[#allocation2 + $0x598] sm:$0xff] %vm16_vm1, %v3070_v61  ;;  %v3449_v57 = vld [vmem:[#allocation2 + $0x150] sm:$0xff]  ;;  %v8742_v25 = vpop.f32.mrb[57].mxu0  ;;  %v6395_v52 = vpack.c.bf16 %v4339_v49, %v4339_v49  ;;  %v4086_v9 = vmul.f32 0.2, %v3574_v54 }
 0x16b   :  { %3197 = vst.msk [vmem:[#allocation2 + $0x188] sm:$0xff] %vm16_vm1, %v2940_v35  ;;  %3325 = vst.msk [vmem:[#allocation2 + $0x588] sm:$0xff] %vm16_vm1, %v3068_v0  ;;  %v3577_v8 = vld [vmem:[#allocation2 + $0x550] sm:$0xff]  ;;  %v4214_v30 = vsel %vm3702_vm10, %v3446_v62, %v3958_v2  ;;  %vm3700_vm0 = vcmp.ge.f32.partialorder %v3444_v38, 0.0  ;;  %v3956_v4 = vmul.f32 0.2, %v3444_v38 }
 0x16c   :  { %3202 = vst.msk [vmem:[#allocation2 + $0x1b0] sm:$0xff] %vm16_vm1, %v2945_v50  ;;  %3330 = vst.msk [vmem:[#allocation2 + $0x5b0] sm:$0xff] %vm16_vm1, %v3073_v37  ;;  %v6270_v63 = vpack.c.bf16 %v4214_v30, %v4214_v30  ;;  %vm3828_vm12 = vcmp.ge.f32.partialorder %v3572_v44, 0.0  ;;  %v4084_v12 = vmul.f32 0.2, %v3572_v44  ;;  %v3447_v18 = vld [vmem:[#allocation2 + $0x140] sm:$0xff]  ;;  %v4342_v36 = vsel %vm3830_vm11, %v3574_v54, %v4086_v9 }
 0x16d   :  { %3200 = vst.msk [vmem:[#allocation2 + $0x1a0] sm:$0xff] %vm16_vm1, %v2943_v46  ;;  %3328 = vst.msk [vmem:[#allocation2 + $0x5a0] sm:$0xff] %vm16_vm1, %v3071_v53  ;;  %vm3705_vm13 = vcmp.ge.f32.partialorder %v3449_v57, 0.0  ;;  %v3961_v41 = vmul.f32 0.2, %v3449_v57  ;;  %vm3833_vm14 = vcmp.ge.f32.partialorder %v3577_v8, 0.0  ;;  %v6398_v55 = vpack.c.bf16 %v4342_v36, %v4342_v36 }
 0x16e   :  { %5617 = vst.msk [vmem:[%s10189_s2 + $0x284] sm:$0xf] %vm5455_vm4, %v6392_v34  ;;  %5494 = vst.msk [vmem:[%s10189_s2 + $0x98] sm:$0xf] %vm5455_vm4, %v6269_v11  ;;  %v3575_v43 = vld [vmem:[#allocation2 + $0x540] sm:$0xff]  ;;  %v4212_v17 = vsel %vm3700_vm0, %v3444_v38, %v3956_v4  ;;  %v4340_v23 = vsel %vm3828_vm12, %v3572_v44, %v4084_v12  ;;  %v3450_v56 = vld [vmem:[#allocation2 + $0x158] sm:$0xff] }
 0x16f   :  { %5622 = vst.msk [vmem:[%s10189_s2 + $0x298] sm:$0xf] %vm5455_vm4, %v6397_v22  ;;  %5492 = vst.msk [vmem:[%s10189_s2 + $0x90] sm:$0xf] %vm5455_vm4, %v6267_v48  ;;  %v4089_v24 = vmul.f32 0.2, %v3577_v8  ;;  %v6268_v7 = vpack.c.bf16 %v4212_v17, %v4212_v17  ;;  %v6396_v59 = vpack.c.bf16 %v4340_v23, %v4340_v23  ;;  %v4217_v28 = vsel %vm3705_vm13, %v3449_v57, %v3961_v41 }
 0x170   :  { %5620 = vst.msk [vmem:[%s10189_s2 + $0x290] sm:$0xf] %vm5455_vm4, %v6395_v52  ;;  %5495 = vst.msk [vmem:[%s10189_s2 + $0x9c] sm:$0xf] %vm5455_vm4, %v6270_v63  ;;  %v8767_v58 = vpop.f32.mrb[57].mxu1  ;;  %vm3703_vm15 = vcmp.ge.f32.partialorder %v3447_v18, 0.0  ;;  %v6273_v21 = vpack.c.bf16 %v4217_v28, %v4217_v28 }
 0x171   :  { %v3578_v6 = vld [vmem:[#allocation2 + $0x558] sm:$0xff]  ;;  %v3448_v15 = vld [vmem:[#allocation2 + $0x148] sm:$0xff]  ;;  %v8769_v31 = vpop.f32.mrb[58].mxu0  ;;  %v8771_v14 = vpop.f32.mrb[58].mxu1  ;;  %5623 = vst.msk [vmem:[%s10189_s2 + $0x29c] sm:$0xf] %vm5455_vm4, %v6398_v55  ;;  %v4345_v60 = vsel %vm3833_vm14, %v3577_v8, %v4089_v24 }
 0x172   :  { %v3959_v61 = vmul.f32 0.2, %v3447_v18  ;;  %vm3831_vm2 = vcmp.ge.f32.partialorder %v3575_v43, 0.0  ;;  %5493 = vst.msk [vmem:[%s10189_s2 + $0x94] sm:$0xf] %vm5455_vm4, %v6268_v7  ;;  %v6401_v42 = vpack.c.bf16 %v4345_v60, %v4345_v60  ;;  %vm3706_vm3 = vcmp.ge.f32.partialorder %v3450_v56, 0.0 }
 0x173   :  { %5621 = vst.msk [vmem:[%s10189_s2 + $0x294] sm:$0xf] %vm5455_vm4, %v6396_v59  ;;  %v4087_v35 = vmul.f32 0.2, %v3575_v43  ;;  %v3962_v0 = vmul.f32 0.2, %v3450_v56 }
 0x174   :  { %v3576_v10 = vld [vmem:[#allocation2 + $0x548] sm:$0xff]  ;;  %5498 = vst.msk [vmem:[%s10189_s2 + $0xa8] sm:$0xf] %vm5455_vm4, %v6273_v21  ;;  %v4215_v16 = vsel %vm3703_vm15, %v3447_v18, %v3959_v61  ;;  %vm3834_vm5 = vcmp.ge.f32.partialorder %v3578_v6, 0.0  ;;  %v4090_v50 = vmul.f32 0.2, %v3578_v6 }
 0x175   :  { %vm3704_vm6 = vcmp.ge.f32.partialorder %v3448_v15, 0.0  ;;  %v3453_v37 = vld [vmem:[#allocation2 + $0x170] sm:$0xff]  ;;  %5626 = vst.msk [vmem:[%s10189_s2 + $0x2a8] sm:$0xf] %vm5455_vm4, %v6401_v42  ;;  %v6271_v46 = vpack.c.bf16 %v4215_v16, %v4215_v16  ;;  %v4343_v53 = vsel %vm3831_vm2, %v3575_v43, %v4087_v35  ;;  %v4218_v13 = vsel %vm3706_vm3, %v3450_v56, %v3962_v0  ;;  %v8796_v33 = vpop.f32.mrb[59].mxu0  ;;  %v3451_v62 = vld [vmem:[#allocation2 + $0x160] sm:$0xff] }
 0x176   :  { %v3960_v45 = vmul.f32 0.2, %v3448_v15  ;;  %v3581_v29 = vld [vmem:[#allocation2 + $0x570] sm:$0xff]  ;;  %v6399_v34 = vpack.c.bf16 %v4343_v53, %v4343_v53  ;;  %v6274_v47 = vpack.c.bf16 %v4218_v13, %v4218_v13  ;;  %v4346_v1 = vsel %vm3834_vm5, %v3578_v6, %v4090_v50  ;;  %v3579_v3 = vld [vmem:[#allocation2 + $0x560] sm:$0xff]  ;;  %v3454_v51 = vld [vmem:[#allocation2 + $0x178] sm:$0xff]  ;;  %v8798_v54 = vpop.f32.mrb[59].mxu1 }
 0x177   :  { %vm3832_vm7 = vcmp.ge.f32.partialorder %v3576_v10, 0.0  ;;  %v8800_v38 = vpop.f32.mrb[60].mxu0  ;;  %5496 = vst.msk [vmem:[%s10189_s2 + $0xa0] sm:$0xf] %vm5455_vm4, %v6271_v46  ;;  %v6402_v11 = vpack.c.bf16 %v4346_v1, %v4346_v1  ;;  %v4088_v40 = vmul.f32 0.2, %v3576_v10 }
 0x178   :  { %v4216_v39 = vsel %vm3704_vm6, %v3448_v15, %v3960_v45  ;;  %vm3709_vm8 = vcmp.ge.f32.partialorder %v3453_v37, 0.0  ;;  %v3582_v2 = vld [vmem:[#allocation2 + $0x578] sm:$0xff]  ;;  %v8807_v44 = vpop.f32.mrb[60].mxu1  ;;  %v8809_v22 = vpop.f32.mrb[61].mxu0  ;;  %5624 = vst.msk [vmem:[%s10189_s2 + $0x2a0] sm:$0xf] %vm5455_vm4, %v6399_v34 }
 0x179   :  { %5499 = vst.msk [vmem:[%s10189_s2 + $0xac] sm:$0xf] %vm5455_vm4, %v6274_v47  ;;  %v6272_v48 = vpack.c.bf16 %v4216_v39, %v4216_v39  ;;  %v3965_v49 = vmul.f32 0.2, %v3453_v37  ;;  %vm3837_vm9 = vcmp.ge.f32.partialorder %v3581_v29, 0.0  ;;  %v8819_v8 = vpop.f32.mrb[61].mxu1  ;;  %v4344_v52 = vsel %vm3832_vm7, %v3576_v10, %v4088_v40 }
 0x17a   :  { %v4093_v57 = vmul.f32 0.2, %v3581_v29  ;;  %5627 = vst.msk [vmem:[%s10189_s2 + $0x2ac] sm:$0xf] %vm5455_vm4, %v6402_v11  ;;  %vm3707_vm10 = vcmp.ge.f32.partialorder %v3451_v62, 0.0  ;;  %vm3835_vm11 = vcmp.ge.f32.partialorder %v3579_v3, 0.0  ;;  %v6400_v4 = vpack.c.bf16 %v4344_v52, %v4344_v52 }
 0x17b   :  { %v3963_v30 = vmul.f32 0.2, %v3451_v62  ;;  %v8826_v9 = vpop.f32.mrb[62].mxu0  ;;  %v8828_v63 = vpop.f32.mrb[62].mxu1  ;;  %5497 = vst.msk [vmem:[%s10189_s2 + $0xa4] sm:$0xf] %vm5455_vm4, %v6272_v48  ;;  %v4221_v12 = vsel %vm3709_vm8, %v3453_v37, %v3965_v49 }
 0x17c   :  { %v4349_v18 = vsel %vm3837_vm9, %v3581_v29, %v4093_v57  ;;  %v4091_v36 = vmul.f32 0.2, %v3579_v3  ;;  %v3452_v41 = vld [vmem:[#allocation2 + $0x168] sm:$0xff]  ;;  %v8835_v43 = vpop.f32.mrb[63].mxu0  ;;  %v8837_v55 = vpop.f32.mrb[63].mxu1  ;;  %v6277_v17 = vpack.c.bf16 %v4221_v12, %v4221_v12  ;;  %vm3710_vm0 = vcmp.ge.f32.partialorder %v3454_v51, 0.0 }
 0x17d   :  { %v6405_v23 = vpack.c.bf16 %v4349_v18, %v4349_v18  ;;  %v4219_v24 = vsel %vm3707_vm10, %v3451_v62, %v3963_v30  ;;  %v3580_v56 = vld [vmem:[#allocation2 + $0x568] sm:$0xff]  ;;  %v3457_v7 = vld [vmem:[#allocation2 + $0x190] sm:$0xff]  ;;  %v8839_v28 = vpop.f32.mrb[64].mxu0  ;;  %v8841_v6 = vpop.f32.mrb[64].mxu1  ;;  %5625 = vst.msk [vmem:[%s10189_s2 + $0x2a4] sm:$0xf] %vm5455_vm4, %v6400_v4 }
 0x17e   :  { %v3585_v59 = vld [vmem:[#allocation2 + $0x590] sm:$0xff]  ;;  %v6275_v15 = vpack.c.bf16 %v4219_v24, %v4219_v24  ;;  %v4347_v21 = vsel %vm3835_vm11, %v3579_v3, %v4091_v36  ;;  %v3966_v60 = vmul.f32 0.2, %v3454_v51  ;;  %vm3838_vm12 = vcmp.ge.f32.partialorder %v3582_v2, 0.0  ;;  %v3455_v61 = vld [vmem:[#allocation2 + $0x180] sm:$0xff]  ;;  %v8848_v42 = vpop.f32.mrb[65].mxu0 }
 0x17f   :  { %v8850_v35 = vpop.f32.mrb[65].mxu1  ;;  %5502 = vst.msk [vmem:[%s10189_s2 + $0xb8] sm:$0xf] %vm5455_vm4, %v6277_v17  ;;  %5630 = vst.msk [vmem:[%s10189_s2 + $0x2b8] sm:$0xf] %vm5455_vm4, %v6405_v23  ;;  %v6403_v0 = vpack.c.bf16 %v4347_v21, %v4347_v21  ;;  %vm3708_vm13 = vcmp.ge.f32.partialorder %v3452_v41, 0.0 }
 0x180   :  { %v4094_v10 = vmul.f32 0.2, %v3582_v2  ;;  %v3964_v16 = vmul.f32 0.2, %v3452_v41  ;;  %v8860_v50 = vpop.f32.mrb[66].mxu0  ;;  %v4222_v37 = vsel %vm3710_vm0, %v3454_v51, %v3966_v60  ;;  %vm3836_vm14 = vcmp.ge.f32.partialorder %v3580_v56, 0.0 }
 0x181   :  { %5500 = vst.msk [vmem:[%s10189_s2 + $0xb0] sm:$0xf] %vm5455_vm4, %v6275_v15  ;;  %v4092_v46 = vmul.f32 0.2, %v3580_v56  ;;  %vm3713_vm15 = vcmp.ge.f32.partialorder %v3457_v7, 0.0  ;;  %v8867_v53 = vpop.f32.mrb[66].mxu1  ;;  %v6278_v45 = vpack.c.bf16 %v4222_v37, %v4222_v37 }
 0x182   :  { %v8869_v13 = vpop.f32.mrb[67].mxu0  ;;  %5628 = vst.msk [vmem:[%s10189_s2 + $0x2b0] sm:$0xf] %vm5455_vm4, %v6403_v0  ;;  %v4350_v29 = vsel %vm3838_vm12, %v3582_v2, %v4094_v10  ;;  %v4220_v34 = vsel %vm3708_vm13, %v3452_v41, %v3964_v16  ;;  %v3969_v47 = vmul.f32 0.2, %v3457_v7  ;;  %v3583_v1 = vld [vmem:[#allocation2 + $0x580] sm:$0xff] }
 0x183   :  { %v8876_v62 = vpop.f32.mrb[67].mxu1  ;;  %v6406_v3 = vpack.c.bf16 %v4350_v29, %v4350_v29  ;;  %v6276_v51 = vpack.c.bf16 %v4220_v34, %v4220_v34  ;;  %v4348_v11 = vsel %vm3836_vm14, %v3580_v56, %v4092_v46  ;;  %vm3841_vm2 = vcmp.ge.f32.partialorder %v3585_v59, 0.0  ;;  %v3458_v39 = vld [vmem:[#allocation2 + $0x198] sm:$0xff]  ;;  %v3456_v48 = vld [vmem:[#allocation2 + $0x188] sm:$0xff]  ;;  %5503 = vst.msk [vmem:[%s10189_s2 + $0xbc] sm:$0xf] %vm5455_vm4, %v6278_v45 }
 0x184   :  { %v3586_v40 = vld [vmem:[#allocation2 + $0x598] sm:$0xff]  ;;  %v6404_v49 = vpack.c.bf16 %v4348_v11, %v4348_v11  ;;  %v4225_v2 = vsel %vm3713_vm15, %v3457_v7, %v3969_v47  ;;  %v4097_v57 = vmul.f32 0.2, %v3585_v59  ;;  %vm3711_vm3 = vcmp.ge.f32.partialorder %v3455_v61, 0.0  ;;  %v3584_v52 = vld [vmem:[#allocation2 + $0x588] sm:$0xff]  ;;  %v8883_v30 = vpop.f32.mrb[68].mxu0 }
 0x185   :  { %v8885_v4 = vpop.f32.mrb[68].mxu1  ;;  %5631 = vst.msk [vmem:[%s10189_s2 + $0x2bc] sm:$0xf] %vm5455_vm4, %v6406_v3  ;;  %5501 = vst.msk [vmem:[%s10189_s2 + $0xb4] sm:$0xf] %vm5455_vm4, %v6276_v51  ;;  %v6281_v12 = vpack.c.bf16 %v4225_v2, %v4225_v2  ;;  %vm3839_vm5 = vcmp.ge.f32.partialorder %v3583_v1, 0.0 }
 0x186   :  { %v3967_v18 = vmul.f32 0.2, %v3455_v61  ;;  %v4095_v36 = vmul.f32 0.2, %v3583_v1  ;;  %v8895_v41 = vpop.f32.mrb[69].mxu0  ;;  %v4353_v17 = vsel %vm3841_vm2, %v3585_v59, %v4097_v57  ;;  %vm3714_vm6 = vcmp.ge.f32.partialorder %v3458_v39, 0.0 }
 0x187   :  { %5629 = vst.msk [vmem:[%s10189_s2 + $0x2b4] sm:$0xf] %vm5455_vm4, %v6404_v49  ;;  %v3970_v23 = vmul.f32 0.2, %v3458_v39  ;;  %vm3842_vm7 = vcmp.ge.f32.partialorder %v3586_v40, 0.0  ;;  %v8902_v24 = vpop.f32.mrb[69].mxu1  ;;  %v6409_v7 = vpack.c.bf16 %v4353_v17, %v4353_v17 }
 0x188   :  { %v8904_v56 = vpop.f32.mrb[70].mxu0  ;;  %5506 = vst.msk [vmem:[%s10189_s2 + $0xc8] sm:$0xf] %vm5455_vm4, %v6281_v12  ;;  %v4223_v15 = vsel %vm3711_vm3, %v3455_v61, %v3967_v18  ;;  %v4351_v21 = vsel %vm3839_vm5, %v3583_v1, %v4095_v36  ;;  %v4098_v60 = vmul.f32 0.2, %v3586_v40  ;;  %v3461_v0 = vld [vmem:[#allocation2 + $0x1b0] sm:$0xff] }
 0x189   :  { %v8911_v10 = vpop.f32.mrb[70].mxu1  ;;  %v8913_v59 = vpop.f32.mrb[71].mxu0  ;;  %v6279_v16 = vpack.c.bf16 %v4223_v15, %v4223_v15  ;;  %v6407_v37 = vpack.c.bf16 %v4351_v21, %v4351_v21  ;;  %v4226_v46 = vsel %vm3714_vm6, %v3458_v39, %v3970_v23  ;;  %vm3712_vm8 = vcmp.ge.f32.partialorder %v3456_v48, 0.0  ;;  %v3589_v45 = vld [vmem:[#allocation2 + $0x5b0] sm:$0xff]  ;;  %v3459_v29 = vld [vmem:[#allocation2 + $0x1a0] sm:$0xff]  ;;  %v328_v3 = vld [vmem:[#allocation2 + $0x1b8] sm:$0xff] }
 0x18a   :  { %10190 = vst [vmem:[#allocation3_spill] sm:$0xff] %v8911_v10  ;;  %10191 = vst [vmem:[#allocation4_spill] sm:$0xff] %v8913_v59  ;;  %v8915_v34 = vpop.f32.mrb[71].mxu1  ;;  %v6282_v61 = vpack.c.bf16 %v4226_v46, %v4226_v46  ;;  %v4354_v47 = vsel %vm3842_vm7, %v3586_v40, %v4098_v60  ;;  %v3968_v1 = vmul.f32 0.2, %v3456_v48  ;;  %vm3840_vm9 = vcmp.ge.f32.partialorder %v3584_v52, 0.0 }
 0x18b   :  { %10192 = vst [vmem:[#allocation5_spill] sm:$0xff] %v8915_v34  ;;  %5634 = vst.msk [vmem:[%s10189_s2 + $0x2c8] sm:$0xf] %vm5455_vm4, %v6409_v7  ;;  %v6410_v51 = vpack.c.bf16 %v4354_v47, %v4354_v47  ;;  %v4096_v11 = vmul.f32 0.2, %v3584_v52  ;;  %vm3717_vm10 = vcmp.ge.f32.partialorder %v3461_v0, 0.0 }
 0x18c   :  { %5504 = vst.msk [vmem:[%s10189_s2 + $0xc0] sm:$0xf] %vm5455_vm4, %v6279_v16  ;;  %5632 = vst.msk [vmem:[%s10189_s2 + $0x2c0] sm:$0xf] %vm5455_vm4, %v6407_v37  ;;  %v3973_v39 = vmul.f32 0.2, %v3461_v0  ;;  %v4224_v12 = vsel %vm3712_vm8, %v3456_v48, %v3968_v1 }
 0x18d   :  { %v3587_v49 = vld [vmem:[#allocation2 + $0x5a0] sm:$0xff]  ;;  %v456_v2 = vld [vmem:[#allocation2 + $0x5b8] sm:$0xff]  ;;  %v326_v40 = vld [vmem:[#allocation2 + $0x1a8] sm:$0xff]  ;;  %5507 = vst.msk [vmem:[%s10189_s2 + $0xcc] sm:$0xf] %vm5455_vm4, %v6282_v61  ;;  %vm3845_vm11 = vcmp.ge.f32.partialorder %v3589_v45, 0.0  ;;  %v6280_v7 = vpack.c.bf16 %v4224_v12, %v4224_v12  ;;  %v4352_v15 = vsel %vm3840_vm9, %v3584_v52, %v4096_v11 }
 0x18e   :  { %v454_v57 = vld [vmem:[#allocation2 + $0x5a8] sm:$0xff]  ;;  %v4101_v18 = vmul.f32 0.2, %v3589_v45  ;;  %vm3715_vm0 = vcmp.ge.f32.partialorder %v3459_v29, 0.0  ;;  %v331_v36 = vld [vmem:[#allocation2 + $0x1d0] sm:$0xff]  ;;  %v329_v23 = vld [vmem:[#allocation2 + $0x1c0] sm:$0xff]  ;;  %v4229_v21 = vsel %vm3717_vm10, %v3461_v0, %v3973_v39  ;;  %v6408_v47 = vpack.c.bf16 %v4352_v15, %v4352_v15 }
 0x18f   :  { %v459_v17 = vld [vmem:[#allocation2 + $0x5d0] sm:$0xff]  ;;  %5635 = vst.msk [vmem:[%s10189_s2 + $0x2cc] sm:$0xf] %vm5455_vm4, %v6410_v51  ;;  %v3971_v60 = vmul.f32 0.2, %v3459_v29  ;;  %v457_v16 = vld [vmem:[#allocation2 + $0x5c0] sm:$0xff]  ;;  %v6285_v1 = vpack.c.bf16 %v4229_v21, %v4229_v21 }
 0x190   :  { %v332_v37 = vld [vmem:[#allocation2 + $0x1d8] sm:$0xff]  ;;  %v8941_v46 = vpop.f32.mrb[72].mxu0  ;;  %v8943_v61 = vpop.f32.mrb[72].mxu1  ;;  %v4357_v34 = vsel %vm3845_vm11, %v3589_v45, %v4101_v18  ;;  %vm3843_vm12 = vcmp.ge.f32.partialorder %v3587_v49, 0.0  ;;  %v330_v59 = vld [vmem:[#allocation2 + $0x1c8] sm:$0xff]  ;;  %v335_v12 = vld [vmem:[#allocation2 + $0x1f0] sm:$0xff]  ;;  %v2946_v45 = vadd.f32 %v8688_v20, %v328_v3  ;;  %v2944_v20 = vadd.f32 %v8700_v27, %v326_v40 }
 0x191   :  { %v460_v48 = vld [vmem:[#allocation2 + $0x5d8] sm:$0xff]  ;;  %10193 = vst [vmem:[#allocation6_spill] sm:$0xff] %v8941_v46  ;;  %10194 = vst [vmem:[#allocation7_spill] sm:$0xff] %v8943_v61  ;;  %v458_v51 = vld [vmem:[#allocation2 + $0x5c8] sm:$0xff]  ;;  %v8946_v52 = vpop.f32.mrb[73].mxu0  ;;  %v8948_v0 = vpop.f32.mrb[73].mxu1  ;;  %v6413_v11 = vpack.c.bf16 %v4357_v34, %v4357_v34  ;;  %v4227_v39 = vsel %vm3715_vm0, %v3459_v29, %v3971_v60  ;;  %v3074_v34 = vadd.f32 %v8690_v26, %v456_v2 }
 0x192   :  { %v463_v10 = vld [vmem:[#allocation2 + $0x5f0] sm:$0xff]  ;;  %10195 = vst [vmem:[#allocation8_spill] sm:$0xff] %v8948_v0  ;;  %5505 = vst.msk [vmem:[%s10189_s2 + $0xc4] sm:$0xf] %vm5455_vm4, %v6280_v7  ;;  %v4099_v15 = vmul.f32 0.2, %v3587_v49  ;;  %v6283_v29 = vpack.c.bf16 %v4227_v39, %v4227_v39  ;;  %v3072_v3 = vadd.f32 %v8702_v19, %v454_v57  ;;  %v2949_v26 = vadd.f32 %v8738_v5, %v331_v36 }
 0x193   :  { %v333_v18 = vld [vmem:[#allocation2 + $0x1e0] sm:$0xff]  ;;  %v8956_v61 = vpop.f32.mrb[74].mxu0  ;;  %v8958_v46 = vpop.f32.mrb[74].mxu1  ;;  %5633 = vst.msk [vmem:[%s10189_s2 + $0x2c4] sm:$0xf] %vm5455_vm4, %v6408_v47  ;;  %v336_v7 = vld [vmem:[#allocation2 + $0x1f8] sm:$0xff]  ;;  %v3077_v27 = vadd.f32 %v8740_v32, %v459_v17  ;;  %v2947_v19 = vadd.f32 %v8742_v25, %v329_v23  ;;  %v3075_v5 = vadd.f32 %v8767_v58, %v457_v16  ;;  %v2950_v32 = vadd.f32 %v8769_v31, %v332_v37 }
 0x194   :  { %v461_v21 = vld [vmem:[#allocation2 + $0x5e0] sm:$0xff]  ;;  %10196 = vst [vmem:[#allocation9_spill] sm:$0xff] %v8956_v61  ;;  %10197 = vst [vmem:[#allocation10_spill] sm:$0xff] %v8958_v46  ;;  %v464_v60 = vld [vmem:[#allocation2 + $0x5f8] sm:$0xff]  ;;  %v8971_v61 = vpop.f32.mrb[75].mxu0  ;;  %v8973_v0 = vpop.f32.mrb[75].mxu1  ;;  %v4355_v47 = vsel %vm3843_vm12, %v3587_v49, %v4099_v15  ;;  %v3078_v25 = vadd.f32 %v8771_v14, %v460_v48  ;;  %v2948_v23 = vadd.f32 %v8796_v33, %v330_v59 }
 0x195   :  { %5510 = vst.msk [vmem:[%s10189_s2 + $0xd8] sm:$0xf] %vm5455_vm4, %v6285_v1  ;;  %v334_v46 = vld [vmem:[#allocation2 + $0x1e8] sm:$0xff]  ;;  %5638 = vst.msk [vmem:[%s10189_s2 + $0x2d8] sm:$0xf] %vm5455_vm4, %v6413_v11  ;;  %v339_v40 = vld [vmem:[#allocation2 + $0x210] sm:$0xff]  ;;  %v6411_v1 = vpack.c.bf16 %v4355_v47, %v4355_v47  ;;  %v3076_v11 = vadd.f32 %v8798_v54, %v458_v51  ;;  %v2953_v39 = vadd.f32 %v8800_v38, %v335_v12 }
 0x196   :  { %3203 = vst.msk [vmem:[#allocation2 + $0x1b8] sm:$0xff] %vm16_vm1, %v2946_v45  ;;  %v462_v2 = vld [vmem:[#allocation2 + $0x5e8] sm:$0xff]  ;;  %v467_v57 = vld [vmem:[#allocation2 + $0x610] sm:$0xff]  ;;  %3331 = vst.msk [vmem:[#allocation2 + $0x5b8] sm:$0xff] %vm16_vm1, %v3074_v34  ;;  %v3081_v58 = vadd.f32 %v8807_v44, %v463_v10  ;;  %v2951_v33 = vadd.f32 %v8809_v22, %v333_v18  ;;  %v3079_v54 = vadd.f32 %v8819_v8, %v461_v21  ;;  %v9020_v15 = vpop.f32.mrb[76].mxu0  ;;  %v9022_v45 = vpop.f32.mrb[76].mxu1 }
 0x197   :  { %5508 = vst.msk [vmem:[%s10189_s2 + $0xd0] sm:$0xf] %vm5455_vm4, %v6283_v29  ;;  %v337_v49 = vld [vmem:[#allocation2 + $0x200] sm:$0xff]  ;;  %v340_v17 = vld [vmem:[#allocation2 + $0x218] sm:$0xff]  ;;  %v338_v16 = vld [vmem:[#allocation2 + $0x208] sm:$0xff]  ;;  %v2954_v38 = vadd.f32 %v8826_v9, %v336_v7  ;;  %v3082_v44 = vadd.f32 %v8828_v63, %v464_v60  ;;  %v2952_v48 = vadd.f32 %v8835_v43, %v334_v46  ;;  %v3080_v22 = vadd.f32 %v8837_v55, %v462_v2  ;;  %v9032_v21 = vpop.f32.mrb[77].mxu0 }
 0x198   :  { %3201 = vst.msk [vmem:[#allocation2 + $0x1a8] sm:$0xff] %vm16_vm1, %v2944_v20  ;;  %3329 = vst.msk [vmem:[#allocation2 + $0x5a8] sm:$0xff] %vm16_vm1, %v3072_v3  ;;  %v465_v36 = vld [vmem:[#allocation2 + $0x600] sm:$0xff]  ;;  %v468_v31 = vld [vmem:[#allocation2 + $0x618] sm:$0xff]  ;;  %v2957_v8 = vadd.f32 %v8839_v28, %v339_v40  ;;  %v3085_v9 = vadd.f32 %v8841_v6, %v467_v57  ;;  %v2955_v43 = vadd.f32 %v8848_v42, %v337_v49  ;;  %v9034_v29 = vpop.f32.mrb[77].mxu1  ;;  %v9044_v34 = vpop.f32.mrb[78].mxu0 }
 0x199   :  { %3206 = vst.msk [vmem:[#allocation2 + $0x1d0] sm:$0xff] %vm16_vm1, %v2949_v26  ;;  %3334 = vst.msk [vmem:[#allocation2 + $0x5d0] sm:$0xff] %vm16_vm1, %v3077_v27  ;;  %v466_v14 = vld [vmem:[#allocation2 + $0x608] sm:$0xff]  ;;  %v343_v10 = vld [vmem:[#allocation2 + $0x230] sm:$0xff]  ;;  %v3083_v55 = vadd.f32 %v8850_v35, %v465_v36  ;;  %v2958_v28 = vadd.f32 %v8860_v50, %v340_v17  ;;  %v3086_v6 = vadd.f32 %v8867_v53, %v468_v31  ;;  %v9046_v20 = vpop.f32.mrb[78].mxu1  ;;  %v9056_v47 = vpop.f32.mrb[79].mxu0 }
 0x19a   :  { %3204 = vst.msk [vmem:[#allocation2 + $0x1c0] sm:$0xff] %vm16_vm1, %v2947_v19  ;;  %3332 = vst.msk [vmem:[#allocation2 + $0x5c0] sm:$0xff] %vm16_vm1, %v3075_v5  ;;  %v471_v59 = vld [vmem:[#allocation2 + $0x630] sm:$0xff]  ;;  %v341_v37 = vld [vmem:[#allocation2 + $0x220] sm:$0xff]  ;;  %v2956_v42 = vadd.f32 %v8869_v13, %v338_v16  ;;  %v3084_v35 = vadd.f32 %v8876_v62, %v466_v14  ;;  %v2961_v50 = vadd.f32 %v8883_v30, %v343_v10  ;;  %v9058_v26 = vpop.f32.mrb[79].mxu1  ;;  %v9077_v10 = vpop.f32.mrb[80].mxu0 }
 0x19b   :  { %5636 = vst.msk [vmem:[%s10189_s2 + $0x2d0] sm:$0xf] %vm5455_vm4, %v6411_v1  ;;  %v469_v63 = vld [vmem:[#allocation2 + $0x620] sm:$0xff]  ;;  %v344_v51 = vld [vmem:[#allocation2 + $0x238] sm:$0xff]  ;;  %v342_v46 = vld [vmem:[#allocation2 + $0x228] sm:$0xff]  ;;  %v3089_v53 = vadd.f32 %v8885_v4, %v471_v59  ;;  %v2959_v13 = vadd.f32 %v8895_v41, %v341_v37 }
 0x19c   :  { %3207 = vst.msk [vmem:[#allocation2 + $0x1d8] sm:$0xff] %vm16_vm1, %v2950_v32  ;;  %3335 = vst.msk [vmem:[#allocation2 + $0x5d8] sm:$0xff] %vm16_vm1, %v3078_v25  ;;  %v472_v12 = vld [vmem:[#allocation2 + $0x638] sm:$0xff]  ;;  %v470_v18 = vld [vmem:[#allocation2 + $0x628] sm:$0xff]  ;;  %v3087_v62 = vadd.f32 %v8902_v24, %v469_v63  ;;  %v2962_v30 = vadd.f32 %v8904_v56, %v344_v51 }
 0x19d   :  { %3205 = vst.msk [vmem:[#allocation2 + $0x1c8] sm:$0xff] %vm16_vm1, %v2948_v23  ;;  %3333 = vst.msk [vmem:[#allocation2 + $0x5c8] sm:$0xff] %vm16_vm1, %v3076_v11  ;;  %v3462_v3 = vld [vmem:[#allocation2 + $0x1b8] sm:$0xff]  ;;  %v10198_v4 = vld [vmem:[#allocation3_spill] sm:$0xff] }
 0x19e   :  { %3210 = vst.msk [vmem:[#allocation2 + $0x1f0] sm:$0xff] %vm16_vm1, %v2953_v39  ;;  %3338 = vst.msk [vmem:[#allocation2 + $0x5f0] sm:$0xff] %vm16_vm1, %v3081_v58  ;;  %v3090_v7 = vadd.f32 %v10198_v4, %v472_v12  ;;  %v347_v60 = vld [vmem:[#allocation2 + $0x250] sm:$0xff]  ;;  %vm3718_vm13 = vcmp.ge.f32.partialorder %v3462_v3, 0.0  ;;  %v3974_v27 = vmul.f32 0.2, %v3462_v3 }
 0x19f   :  { %3208 = vst.msk [vmem:[#allocation2 + $0x1e0] sm:$0xff] %vm16_vm1, %v2951_v33  ;;  %3336 = vst.msk [vmem:[#allocation2 + $0x5e0] sm:$0xff] %vm16_vm1, %v3079_v54  ;;  %v3590_v19 = vld [vmem:[#allocation2 + $0x5b8] sm:$0xff]  ;;  %v3460_v2 = vld [vmem:[#allocation2 + $0x1a8] sm:$0xff] }
 0x1a0   :  { %3211 = vst.msk [vmem:[#allocation2 + $0x1f8] sm:$0xff] %vm16_vm1, %v2954_v38  ;;  %3339 = vst.msk [vmem:[#allocation2 + $0x5f8] sm:$0xff] %vm16_vm1, %v3082_v44  ;;  %v3588_v40 = vld [vmem:[#allocation2 + $0x5a8] sm:$0xff]  ;;  %v10200_v56 = vld [vmem:[#allocation5_spill] sm:$0xff]  ;;  %vm3846_vm14 = vcmp.ge.f32.partialorder %v3590_v19, 0.0  ;;  %vm3716_vm15 = vcmp.ge.f32.partialorder %v3460_v2, 0.0  ;;  %v4230_v32 = vsel %vm3718_vm13, %v3462_v3, %v3974_v27 }
 0x1a1   :  { %3209 = vst.msk [vmem:[#allocation2 + $0x1e8] sm:$0xff] %vm16_vm1, %v2952_v48  ;;  %3337 = vst.msk [vmem:[#allocation2 + $0x5e8] sm:$0xff] %vm16_vm1, %v3080_v22  ;;  %v10199_v41 = vld [vmem:[#allocation4_spill] sm:$0xff]  ;;  %v3088_v57 = vadd.f32 %v10200_v56, %v470_v18  ;;  %v4102_v1 = vmul.f32 0.2, %v3590_v19  ;;  %vm3844_vm2 = vcmp.ge.f32.partialorder %v3588_v40, 0.0  ;;  %v6286_v39 = vpack.c.bf16 %v4230_v32, %v4230_v32 }
 0x1a2   :  { %3214 = vst.msk [vmem:[#allocation2 + $0x210] sm:$0xff] %vm16_vm1, %v2957_v8  ;;  %3342 = vst.msk [vmem:[#allocation2 + $0x610] sm:$0xff] %vm16_vm1, %v3085_v9  ;;  %v2960_v24 = vadd.f32 %v10199_v41, %v342_v46  ;;  %v3972_v5 = vmul.f32 0.2, %v3460_v2  ;;  %v4100_v25 = vmul.f32 0.2, %v3588_v40 }
 0x1a3   :  { %3212 = vst.msk [vmem:[#allocation2 + $0x200] sm:$0xff] %vm16_vm1, %v2955_v43  ;;  %3340 = vst.msk [vmem:[#allocation2 + $0x600] sm:$0xff] %vm16_vm1, %v3083_v55  ;;  %v3465_v49 = vld [vmem:[#allocation2 + $0x1d0] sm:$0xff]  ;;  %v3463_v17 = vld [vmem:[#allocation2 + $0x1c0] sm:$0xff]  ;;  %v4358_v58 = vsel %vm3846_vm14, %v3590_v19, %v4102_v1 }
 0x1a4   :  { %3215 = vst.msk [vmem:[#allocation2 + $0x218] sm:$0xff] %vm16_vm1, %v2958_v28  ;;  %3343 = vst.msk [vmem:[#allocation2 + $0x618] sm:$0xff] %vm16_vm1, %v3086_v6  ;;  %v3593_v36 = vld [vmem:[#allocation2 + $0x5d0] sm:$0xff]  ;;  %v10201_v23 = vld [vmem:[#allocation6_spill] sm:$0xff]  ;;  %v4228_v31 = vsel %vm3716_vm15, %v3460_v2, %v3972_v5  ;;  %vm3721_vm3 = vcmp.ge.f32.partialorder %v3465_v49, 0.0  ;;  %v6414_v14 = vpack.c.bf16 %v4358_v58, %v4358_v58  ;;  %v4356_v54 = vsel %vm3844_vm2, %v3588_v40, %v4100_v25 }
 0x1a5   :  { %3213 = vst.msk [vmem:[#allocation2 + $0x208] sm:$0xff] %vm16_vm1, %v2956_v42  ;;  %3341 = vst.msk [vmem:[#allocation2 + $0x608] sm:$0xff] %vm16_vm1, %v3084_v35  ;;  %v2965_v11 = vadd.f32 %v10201_v23, %v347_v60  ;;  %v3591_v16 = vld [vmem:[#allocation2 + $0x5c0] sm:$0xff]  ;;  %v6284_v33 = vpack.c.bf16 %v4228_v31, %v4228_v31  ;;  %v3977_v38 = vmul.f32 0.2, %v3465_v49  ;;  %v3466_v44 = vld [vmem:[#allocation2 + $0x1d8] sm:$0xff]  ;;  %v6412_v59 = vpack.c.bf16 %v4356_v54, %v4356_v54 }
 0x1a6   :  { %3218 = vst.msk [vmem:[#allocation2 + $0x230] sm:$0xff] %vm16_vm1, %v2961_v50  ;;  %3346 = vst.msk [vmem:[#allocation2 + $0x630] sm:$0xff] %vm16_vm1, %v3089_v53  ;;  %vm3849_vm5 = vcmp.ge.f32.partialorder %v3593_v36, 0.0  ;;  %v4105_v37 = vmul.f32 0.2, %v3593_v36  ;;  %vm3719_vm6 = vcmp.ge.f32.partialorder %v3463_v17, 0.0 }
 0x1a7   :  { %3216 = vst.msk [vmem:[#allocation2 + $0x220] sm:$0xff] %vm16_vm1, %v2959_v13  ;;  %3344 = vst.msk [vmem:[#allocation2 + $0x620] sm:$0xff] %vm16_vm1, %v3087_v62  ;;  %v3594_v48 = vld [vmem:[#allocation2 + $0x5d8] sm:$0xff]  ;;  %v4233_v22 = vsel %vm3721_vm3, %v3465_v49, %v3977_v38  ;;  %v3975_v8 = vmul.f32 0.2, %v3463_v17  ;;  %vm3847_vm7 = vcmp.ge.f32.partialorder %v3591_v16, 0.0 }
 0x1a8   :  { %3219 = vst.msk [vmem:[#allocation2 + $0x238] sm:$0xff] %vm16_vm1, %v2962_v30  ;;  %3347 = vst.msk [vmem:[#allocation2 + $0x638] sm:$0xff] %vm16_vm1, %v3090_v7  ;;  %v4103_v9 = vmul.f32 0.2, %v3591_v16  ;;  %v6289_v63 = vpack.c.bf16 %v4233_v22, %v4233_v22  ;;  %v4361_v51 = vsel %vm3849_vm5, %v3593_v36, %v4105_v37  ;;  %vm3722_vm8 = vcmp.ge.f32.partialorder %v3466_v44, 0.0  ;;  %v3464_v43 = vld [vmem:[#allocation2 + $0x1c8] sm:$0xff] }
 0x1a9   :  { %3217 = vst.msk [vmem:[#allocation2 + $0x228] sm:$0xff] %vm16_vm1, %v2960_v24  ;;  %3345 = vst.msk [vmem:[#allocation2 + $0x628] sm:$0xff] %vm16_vm1, %v3088_v57  ;;  %v3978_v12 = vmul.f32 0.2, %v3466_v44  ;;  %v3592_v55 = vld [vmem:[#allocation2 + $0x5c8] sm:$0xff]  ;;  %v6417_v28 = vpack.c.bf16 %v4361_v51, %v4361_v51  ;;  %v4231_v6 = vsel %vm3719_vm6, %v3463_v17, %v3975_v8  ;;  %vm3850_vm9 = vcmp.ge.f32.partialorder %v3594_v48, 0.0 }
 0x1aa   :  { %3222 = vst.msk [vmem:[#allocation2 + $0x250] sm:$0xff] %vm16_vm1, %v2965_v11  ;;  %v4359_v46 = vsel %vm3847_vm7, %v3591_v16, %v4103_v9  ;;  %v3469_v18 = vld [vmem:[#allocation2 + $0x1f0] sm:$0xff]  ;;  %v9097_v42 = vpop.f32.mrb[80].mxu1  ;;  %v9099_v35 = vpop.f32.mrb[81].mxu0  ;;  %v6287_v50 = vpack.c.bf16 %v4231_v6, %v4231_v6  ;;  %v4106_v13 = vmul.f32 0.2, %v3594_v48 }
 0x1ab   :  { %5511 = vst.msk [vmem:[%s10189_s2 + $0xdc] sm:$0xf] %vm5455_vm4, %v6286_v39  ;;  %5639 = vst.msk [vmem:[%s10189_s2 + $0x2dc] sm:$0xf] %vm5455_vm4, %v6414_v14  ;;  %v6415_v53 = vpack.c.bf16 %v4359_v46, %v4359_v46  ;;  %v4234_v3 = vsel %vm3722_vm8, %v3466_v44, %v3978_v12  ;;  %v3597_v62 = vld [vmem:[#allocation2 + $0x5f0] sm:$0xff]  ;;  %v9105_v30 = vpop.f32.mrb[81].mxu1 }
 0x1ac   :  { %5509 = vst.msk [vmem:[%s10189_s2 + $0xd4] sm:$0xf] %vm5455_vm4, %v6284_v33  ;;  %5637 = vst.msk [vmem:[%s10189_s2 + $0x2d4] sm:$0xf] %vm5455_vm4, %v6412_v59  ;;  %v6290_v4 = vpack.c.bf16 %v4234_v3, %v4234_v3  ;;  %vm3720_vm10 = vcmp.ge.f32.partialorder %v3464_v43, 0.0  ;;  %vm3848_vm11 = vcmp.ge.f32.partialorder %v3592_v55, 0.0  ;;  %v4362_v27 = vsel %vm3850_vm9, %v3594_v48, %v4106_v13 }
 0x1ad   :  { %5514 = vst.msk [vmem:[%s10189_s2 + $0xe8] sm:$0xf] %vm5455_vm4, %v6289_v63  ;;  %5642 = vst.msk [vmem:[%s10189_s2 + $0x2e8] sm:$0xf] %vm5455_vm4, %v6417_v28  ;;  %v3976_v7 = vmul.f32 0.2, %v3464_v43  ;;  %v6418_v40 = vpack.c.bf16 %v4362_v27, %v4362_v27 }
 0x1ae   :  { %v3467_v60 = vld [vmem:[#allocation2 + $0x1e0] sm:$0xff]  ;;  %5512 = vst.msk [vmem:[%s10189_s2 + $0xe0] sm:$0xf] %vm5455_vm4, %v6287_v50  ;;  %5640 = vst.msk [vmem:[%s10189_s2 + $0x2e0] sm:$0xf] %vm5455_vm4, %v6415_v53  ;;  %vm3725_vm0 = vcmp.ge.f32.partialorder %v3469_v18, 0.0 }
 0x1af   :  { %v4104_v19 = vmul.f32 0.2, %v3592_v55  ;;  %v3981_v2 = vmul.f32 0.2, %v3469_v18  ;;  %5515 = vst.msk [vmem:[%s10189_s2 + $0xec] sm:$0xf] %vm5455_vm4, %v6290_v4  ;;  %v4232_v41 = vsel %vm3720_vm10, %v3464_v43, %v3976_v7 }
 0x1b0   :  { %vm3853_vm12 = vcmp.ge.f32.partialorder %v3597_v62, 0.0  ;;  %v4109_v24 = vmul.f32 0.2, %v3597_v62  ;;  %v3595_v56 = vld [vmem:[#allocation2 + $0x5e0] sm:$0xff]  ;;  %v3470_v57 = vld [vmem:[#allocation2 + $0x1f8] sm:$0xff]  ;;  %v6288_v1 = vpack.c.bf16 %v4232_v41, %v4232_v41  ;;  %vm3723_vm13 = vcmp.ge.f32.partialorder %v3467_v60, 0.0 }
 0x1b1   :  { %v4360_v5 = vsel %vm3848_vm11, %v3592_v55, %v4104_v19  ;;  %v4237_v32 = vsel %vm3725_vm0, %v3469_v18, %v3981_v2  ;;  %v3598_v25 = vld [vmem:[#allocation2 + $0x5f8] sm:$0xff]  ;;  %v9125_v49 = vpop.f32.mrb[82].mxu0  ;;  %v9127_v36 = vpop.f32.mrb[82].mxu1  ;;  %5643 = vst.msk [vmem:[%s10189_s2 + $0x2ec] sm:$0xf] %vm5455_vm4, %v6418_v40  ;;  %v3468_v58 = vld [vmem:[#allocation2 + $0x1e8] sm:$0xff] }
 0x1b2   :  { %v6416_v17 = vpack.c.bf16 %v4360_v5, %v4360_v5  ;;  %v6293_v23 = vpack.c.bf16 %v4237_v32, %v4237_v32  ;;  %v4365_v11 = vsel %vm3853_vm12, %v3597_v62, %v4109_v24  ;;  %v3979_v39 = vmul.f32 0.2, %v3467_v60  ;;  %v3596_v31 = vld [vmem:[#allocation2 + $0x5e8] sm:$0xff]  ;;  %v9133_v16 = vpop.f32.mrb[83].mxu0  ;;  %5513 = vst.msk [vmem:[%s10189_s2 + $0xe4] sm:$0xf] %vm5455_vm4, %v6288_v1 }
 0x1b3   :  { %v6421_v14 = vpack.c.bf16 %v4365_v11, %v4365_v11  ;;  %vm3851_vm14 = vcmp.ge.f32.partialorder %v3595_v56, 0.0  ;;  %v4107_v33 = vmul.f32 0.2, %v3595_v56  ;;  %vm3726_vm15 = vcmp.ge.f32.partialorder %v3470_v57, 0.0  ;;  %v3473_v54 = vld [vmem:[#allocation2 + $0x210] sm:$0xff]  ;;  %v9139_v38 = vpop.f32.mrb[83].mxu1 }
 0x1b4   :  { %v9141_v44 = vpop.f32.mrb[84].mxu0  ;;  %5641 = vst.msk [vmem:[%s10189_s2 + $0x2e4] sm:$0xf] %vm5455_vm4, %v6416_v17  ;;  %5518 = vst.msk [vmem:[%s10189_s2 + $0xf8] sm:$0xf] %vm5455_vm4, %v6293_v23  ;;  %v4235_v59 = vsel %vm3723_vm13, %v3467_v60, %v3979_v39  ;;  %vm3854_vm2 = vcmp.ge.f32.partialorder %v3598_v25, 0.0 }
 0x1b5   :  { %v3982_v37 = vmul.f32 0.2, %v3470_v57  ;;  %v4110_v48 = vmul.f32 0.2, %v3598_v25  ;;  %v9152_v22 = vpop.f32.mrb[84].mxu1  ;;  %v6291_v8 = vpack.c.bf16 %v4235_v59, %v4235_v59  ;;  %v4363_v9 = vsel %vm3851_vm14, %v3595_v56, %v4107_v33  ;;  %v3601_v51 = vld [vmem:[#allocation2 + $0x610] sm:$0xff] }
 0x1b6   :  { %5646 = vst.msk [vmem:[%s10189_s2 + $0x2f8] sm:$0xf] %vm5455_vm4, %v6421_v14  ;;  %vm3724_vm3 = vcmp.ge.f32.partialorder %v3468_v58, 0.0  ;;  %v3980_v63 = vmul.f32 0.2, %v3468_v58  ;;  %v9158_v12 = vpop.f32.mrb[85].mxu0  ;;  %v6419_v55 = vpack.c.bf16 %v4363_v9, %v4363_v9 }
 0x1b7   :  { %v9160_v43 = vpop.f32.mrb[85].mxu1  ;;  %v4238_v28 = vsel %vm3726_vm15, %v3470_v57, %v3982_v37  ;;  %v4366_v6 = vsel %vm3854_vm2, %v3598_v25, %v4110_v48  ;;  %vm3852_vm5 = vcmp.ge.f32.partialorder %v3596_v31, 0.0  ;;  %v3471_v46 = vld [vmem:[#allocation2 + $0x200] sm:$0xff]  ;;  %v9163_v18 = vpop.f32.mrb[86].mxu0  ;;  %5516 = vst.msk [vmem:[%s10189_s2 + $0xf0] sm:$0xf] %vm5455_vm4, %v6291_v8 }
 0x1b8   :  { %v9165_v50 = vpop.f32.mrb[86].mxu1  ;;  %v6294_v53 = vpack.c.bf16 %v4238_v28, %v4238_v28  ;;  %v6422_v3 = vpack.c.bf16 %v4366_v6, %v4366_v6  ;;  %v4236_v13 = vsel %vm3724_vm3, %v3468_v58, %v3980_v63  ;;  %v4108_v62 = vmul.f32 0.2, %v3596_v31  ;;  %v3599_v4 = vld [vmem:[#allocation2 + $0x600] sm:$0xff]  ;;  %v3474_v7 = vld [vmem:[#allocation2 + $0x218] sm:$0xff]  ;;  %v9171_v60 = vpop.f32.mrb[87].mxu0 }
 0x1b9   :  { %v9173_v27 = vpop.f32.mrb[87].mxu1  ;;  %5644 = vst.msk [vmem:[%s10189_s2 + $0x2f0] sm:$0xf] %vm5455_vm4, %v6419_v55  ;;  %v6292_v19 = vpack.c.bf16 %v4236_v13, %v4236_v13  ;;  %vm3729_vm6 = vcmp.ge.f32.partialorder %v3473_v54, 0.0  ;;  %v3985_v2 = vmul.f32 0.2, %v3473_v54 }
 0x1ba   :  { %vm3857_vm7 = vcmp.ge.f32.partialorder %v3601_v51, 0.0  ;;  %v3602_v40 = vld [vmem:[#allocation2 + $0x618] sm:$0xff]  ;;  %v9179_v41 = vpop.f32.mrb[88].mxu0  ;;  %v9181_v24 = vpop.f32.mrb[88].mxu1  ;;  %5519 = vst.msk [vmem:[%s10189_s2 + $0xfc] sm:$0xf] %vm5455_vm4, %v6294_v53  ;;  %v4364_v56 = vsel %vm3852_vm5, %v3596_v31, %v4108_v62 }
 0x1bb   :  { %5647 = vst.msk [vmem:[%s10189_s2 + $0x2fc] sm:$0xf] %vm5455_vm4, %v6422_v3  ;;  %v4113_v57 = vmul.f32 0.2, %v3601_v51  ;;  %vm3727_vm8 = vcmp.ge.f32.partialorder %v3471_v46, 0.0  ;;  %v9192_v5 = vpop.f32.mrb[89].mxu0  ;;  %v6420_v32 = vpack.c.bf16 %v4364_v56, %v4364_v56  ;;  %v4241_v25 = vsel %vm3729_vm6, %v3473_v54, %v3985_v2 }
 0x1bc   :  { %v3983_v1 = vmul.f32 0.2, %v3471_v46  ;;  %5517 = vst.msk [vmem:[%s10189_s2 + $0xf4] sm:$0xf] %vm5455_vm4, %v6292_v19  ;;  %vm3855_vm9 = vcmp.ge.f32.partialorder %v3599_v4, 0.0  ;;  %v3472_v23 = vld [vmem:[#allocation2 + $0x208] sm:$0xff]  ;;  %v6297_v58 = vpack.c.bf16 %v4241_v25, %v4241_v25 }
 0x1bd   :  { %v4111_v17 = vmul.f32 0.2, %v3599_v4  ;;  %v9198_v11 = vpop.f32.mrb[89].mxu1  ;;  %v9200_v39 = vpop.f32.mrb[90].mxu0  ;;  %v4369_v31 = vsel %vm3857_vm7, %v3601_v51, %v4113_v57  ;;  %vm3730_vm10 = vcmp.ge.f32.partialorder %v3474_v7, 0.0  ;;  %v3600_v33 = vld [vmem:[#allocation2 + $0x608] sm:$0xff] }
 0x1be   :  { %10202 = vst [vmem:[#allocation3_spill] sm:$0xff] %v9200_v39  ;;  %v4239_v14 = vsel %vm3727_vm8, %v3471_v46, %v3983_v1  ;;  %v9203_v59 = vpop.f32.mrb[90].mxu1  ;;  %v9205_v37 = vpop.f32.mrb[91].mxu0  ;;  %5645 = vst.msk [vmem:[%s10189_s2 + $0x2f4] sm:$0xf] %vm5455_vm4, %v6420_v32  ;;  %v6425_v54 = vpack.c.bf16 %v4369_v31, %v4369_v31  ;;  %v3477_v63 = vld [vmem:[#allocation2 + $0x230] sm:$0xff] }
 0x1bf   :  { %10203 = vst [vmem:[#allocation4_spill] sm:$0xff] %v9203_v59  ;;  %10204 = vst [vmem:[#allocation5_spill] sm:$0xff] %v9205_v37  ;;  %v6295_v48 = vpack.c.bf16 %v4239_v14, %v4239_v14  ;;  %v4367_v8 = vsel %vm3855_vm9, %v3599_v4, %v4111_v17  ;;  %v3986_v9 = vmul.f32 0.2, %v3474_v7  ;;  %v9211_v55 = vpop.f32.mrb[91].mxu1  ;;  %vm3858_vm11 = vcmp.ge.f32.partialorder %v3602_v40, 0.0 }
 0x1c0   :  { %10205 = vst [vmem:[#allocation6_spill] sm:$0xff] %v9211_v55  ;;  %5522 = vst.msk [vmem:[%s10189_s2 + $0x108] sm:$0xf] %vm5455_vm4, %v6297_v58  ;;  %v6423_v51 = vpack.c.bf16 %v4367_v8, %v4367_v8  ;;  %v4114_v28 = vmul.f32 0.2, %v3602_v40  ;;  %vm3728_vm0 = vcmp.ge.f32.partialorder %v3472_v23, 0.0 }
 0x1c1   :  { %v3605_v6 = vld [vmem:[#allocation2 + $0x630] sm:$0xff]  ;;  %5650 = vst.msk [vmem:[%s10189_s2 + $0x308] sm:$0xf] %vm5455_vm4, %v6425_v54  ;;  %5520 = vst.msk [vmem:[%s10189_s2 + $0x100] sm:$0xf] %vm5455_vm4, %v6295_v48  ;;  %v4242_v46 = vsel %vm3730_vm10, %v3474_v7, %v3986_v9  ;;  %vm3856_vm12 = vcmp.ge.f32.partialorder %v3600_v33, 0.0 }
 0x1c2   :  { %v3984_v53 = vmul.f32 0.2, %v3472_v23  ;;  %v4112_v3 = vmul.f32 0.2, %v3600_v33  ;;  %5648 = vst.msk [vmem:[%s10189_s2 + $0x300] sm:$0xf] %vm5455_vm4, %v6423_v51  ;;  %v6298_v13 = vpack.c.bf16 %v4242_v46, %v4242_v46  ;;  %v4370_v62 = vsel %vm3858_vm11, %v3602_v40, %v4114_v28 }
 0x1c3   :  { %vm3733_vm13 = vcmp.ge.f32.partialorder %v3477_v63, 0.0  ;;  %v3989_v4 = vmul.f32 0.2, %v3477_v63  ;;  %v3475_v19 = vld [vmem:[#allocation2 + $0x220] sm:$0xff]  ;;  %v6426_v56 = vpack.c.bf16 %v4370_v62, %v4370_v62  ;;  %vm3861_vm14 = vcmp.ge.f32.partialorder %v3605_v6, 0.0  ;;  %v3478_v7 = vld [vmem:[#allocation2 + $0x238] sm:$0xff] }
 0x1c4   :  { %v3603_v2 = vld [vmem:[#allocation2 + $0x620] sm:$0xff]  ;;  %v4240_v57 = vsel %vm3728_vm0, %v3472_v23, %v3984_v53  ;;  %v4368_v1 = vsel %vm3856_vm12, %v3600_v33, %v4112_v3  ;;  %v9231_v32 = vpop.f32.mrb[92].mxu0  ;;  %v9233_v25 = vpop.f32.mrb[92].mxu1  ;;  %5523 = vst.msk [vmem:[%s10189_s2 + $0x10c] sm:$0xf] %vm5455_vm4, %v6298_v13  ;;  %v3606_v14 = vld [vmem:[#allocation2 + $0x638] sm:$0xff] }
 0x1c5   :  { %10206 = vst [vmem:[#allocation11_spill] sm:$0xff] %v9231_v32  ;;  %10207 = vst [vmem:[#allocation12_spill] sm:$0xff] %v9233_v25  ;;  %v6296_v40 = vpack.c.bf16 %v4240_v57, %v4240_v57  ;;  %v6424_v17 = vpack.c.bf16 %v4368_v1, %v4368_v1  ;;  %v4245_v58 = vsel %vm3733_vm13, %v3477_v63, %v3989_v4  ;;  %v4117_v31 = vmul.f32 0.2, %v3605_v6  ;;  %v3476_v54 = vld [vmem:[#allocation2 + $0x228] sm:$0xff]  ;;  %v9239_v48 = vpop.f32.mrb[93].mxu0 }
 0x1c6   :  { %10208 = vst [vmem:[#allocation13_spill] sm:$0xff] %v9239_v48  ;;  %v9241_v23 = vpop.f32.mrb[93].mxu1  ;;  %5651 = vst.msk [vmem:[%s10189_s2 + $0x30c] sm:$0xf] %vm5455_vm4, %v6426_v56  ;;  %v6301_v33 = vpack.c.bf16 %v4245_v58, %v4245_v58  ;;  %vm3731_vm15 = vcmp.ge.f32.partialorder %v3475_v19, 0.0  ;;  %vm3859_vm2 = vcmp.ge.f32.partialorder %v3603_v2, 0.0 }
 0x1c7   :  { %10209 = vst [vmem:[#allocation14_spill] sm:$0xff] %v9241_v23  ;;  %v3987_v8 = vmul.f32 0.2, %v3475_v19  ;;  %v9247_v9 = vpop.f32.mrb[94].mxu0  ;;  %v9249_v51 = vpop.f32.mrb[94].mxu1  ;;  %v4373_v63 = vsel %vm3861_vm14, %v3605_v6, %v4117_v31  ;;  %vm3734_vm3 = vcmp.ge.f32.partialorder %v3478_v7, 0.0 }
 0x1c8   :  { %10210 = vst [vmem:[#allocation15_spill] sm:$0xff] %v9247_v9  ;;  %10211 = vst [vmem:[#allocation16_spill] sm:$0xff] %v9249_v51  ;;  %v4115_v28 = vmul.f32 0.2, %v3603_v2  ;;  %v3990_v46 = vmul.f32 0.2, %v3478_v7  ;;  %v6429_v62 = vpack.c.bf16 %v4373_v63, %v4373_v63 }
 0x1c9   :  { %5521 = vst.msk [vmem:[%s10189_s2 + $0x104] sm:$0xf] %vm5455_vm4, %v6296_v40  ;;  %5649 = vst.msk [vmem:[%s10189_s2 + $0x304] sm:$0xf] %vm5455_vm4, %v6424_v17  ;;  %v475_v53 = vld [vmem:[#allocation2 + $0x650] sm:$0xff]  ;;  %v345_v3 = vld [vmem:[#allocation2 + $0x240] sm:$0xff]  ;;  %v4243_v4 = vsel %vm3731_vm15, %v3475_v19, %v3987_v8 }
 0x1ca   :  { %v9260_v13 = vpop.f32.mrb[95].mxu0  ;;  %5526 = vst.msk [vmem:[%s10189_s2 + $0x118] sm:$0xf] %vm5455_vm4, %v6301_v33  ;;  %vm3862_vm5 = vcmp.ge.f32.partialorder %v3606_v14, 0.0  ;;  %v4118_v56 = vmul.f32 0.2, %v3606_v14  ;;  %v6299_v17 = vpack.c.bf16 %v4243_v4, %v4243_v4  ;;  %v4371_v58 = vsel %vm3859_vm2, %v3603_v2, %v4115_v28 }
 0x1cb   :  { %10212 = vst [vmem:[#allocation17_spill] sm:$0xff] %v9260_v13  ;;  %v3604_v57 = vld [vmem:[#allocation2 + $0x628] sm:$0xff]  ;;  %v3481_v1 = vld [vmem:[#allocation2 + $0x250] sm:$0xff]  ;;  %v473_v6 = vld [vmem:[#allocation2 + $0x640] sm:$0xff]  ;;  %v9267_v40 = vpop.f32.mrb[95].mxu1  ;;  %v4246_v31 = vsel %vm3734_vm3, %v3478_v7, %v3990_v46  ;;  %vm3732_vm6 = vcmp.ge.f32.partialorder %v3476_v54, 0.0  ;;  %v6427_v19 = vpack.c.bf16 %v4371_v58, %v4371_v58 }
 0x1cc   :  { %10213 = vst [vmem:[#allocation18_spill] sm:$0xff] %v9267_v40  ;;  %v348_v13 = vld [vmem:[#allocation2 + $0x258] sm:$0xff]  ;;  %v346_v9 = vld [vmem:[#allocation2 + $0x248] sm:$0xff]  ;;  %5654 = vst.msk [vmem:[%s10189_s2 + $0x318] sm:$0xf] %vm5455_vm4, %v6429_v62  ;;  %v6302_v33 = vpack.c.bf16 %v4246_v31, %v4246_v31  ;;  %v4374_v8 = vsel %vm3862_vm5, %v3606_v14, %v4118_v56  ;;  %vm3860_vm7 = vcmp.ge.f32.partialorder %v3604_v57, 0.0 }
 0x1cd   :  { %v476_v51 = vld [vmem:[#allocation2 + $0x658] sm:$0xff]  ;;  %v3988_v63 = vmul.f32 0.2, %v3476_v54  ;;  %v474_v40 = vld [vmem:[#allocation2 + $0x648] sm:$0xff]  ;;  %v351_v4 = vld [vmem:[#allocation2 + $0x270] sm:$0xff]  ;;  %v6430_v2 = vpack.c.bf16 %v4374_v8, %v4374_v8  ;;  %vm3737_vm8 = vcmp.ge.f32.partialorder %v3481_v1, 0.0  ;;  %v2963_v8 = vadd.f32 %v8946_v52, %v345_v3 }
 0x1ce   :  { %v479_v23 = vld [vmem:[#allocation2 + $0x670] sm:$0xff]  ;;  %5524 = vst.msk [vmem:[%s10189_s2 + $0x110] sm:$0xf] %vm5455_vm4, %v6299_v17  ;;  %v4116_v7 = vmul.f32 0.2, %v3604_v57  ;;  %v349_v28 = vld [vmem:[#allocation2 + $0x260] sm:$0xff] }
 0x1cf   :  { %v477_v46 = vld [vmem:[#allocation2 + $0x660] sm:$0xff]  ;;  %v352_v62 = vld [vmem:[#allocation2 + $0x278] sm:$0xff]  ;;  %5652 = vst.msk [vmem:[%s10189_s2 + $0x310] sm:$0xf] %vm5455_vm4, %v6427_v19  ;;  %5527 = vst.msk [vmem:[%s10189_s2 + $0x11c] sm:$0xf] %vm5455_vm4, %v6302_v33  ;;  %v4244_v14 = vsel %vm3732_vm6, %v3476_v54, %v3988_v63 }
 0x1d0   :  { %v480_v58 = vld [vmem:[#allocation2 + $0x678] sm:$0xff]  ;;  %v3993_v56 = vmul.f32 0.2, %v3481_v1  ;;  %v10214_v17 = vld [vmem:[#allocation7_spill] sm:$0xff]  ;;  %v350_v48 = vld [vmem:[#allocation2 + $0x268] sm:$0xff]  ;;  %v9291_v32 = vpop.f32.mrb[96].mxu0  ;;  %v6300_v19 = vpack.c.bf16 %v4244_v14, %v4244_v14  ;;  %v4372_v33 = vsel %vm3860_vm7, %v3604_v57, %v4116_v7 }
 0x1d1   :  { %v3093_v31 = vadd.f32 %v10214_v17, %v475_v53  ;;  %v478_v25 = vld [vmem:[#allocation2 + $0x668] sm:$0xff]  ;;  %10215 = vst [vmem:[#allocation7_spill] sm:$0xff] %v9291_v32  ;;  %v9293_v55 = vpop.f32.mrb[96].mxu1  ;;  %5655 = vst.msk [vmem:[%s10189_s2 + $0x31c] sm:$0xf] %vm5455_vm4, %v6430_v2  ;;  %v10218_v37 = vld [vmem:[#allocation9_spill] sm:$0xff] }
 0x1d2   :  { %10216 = vst [vmem:[#allocation19_spill] sm:$0xff] %v9293_v55  ;;  %v10217_v54 = vld [vmem:[#allocation8_spill] sm:$0xff]  ;;  %v2966_v53 = vadd.f32 %v10218_v37, %v348_v13  ;;  %v355_v17 = vld [vmem:[#allocation2 + $0x290] sm:$0xff]  ;;  %v353_v3 = vld [vmem:[#allocation2 + $0x280] sm:$0xff]  ;;  %v9302_v59 = vpop.f32.mrb[97].mxu0  ;;  %v9304_v32 = vpop.f32.mrb[97].mxu1  ;;  %v6428_v55 = vpack.c.bf16 %v4372_v33, %v4372_v33  ;;  %v4249_v39 = vsel %vm3737_vm8, %v3481_v1, %v3993_v56 }
 0x1d3   :  { %v3091_v63 = vadd.f32 %v10217_v54, %v473_v6  ;;  %v483_v52 = vld [vmem:[#allocation2 + $0x690] sm:$0xff]  ;;  %3350 = vst.msk [vmem:[#allocation2 + $0x650] sm:$0xff] %vm16_vm1, %v3093_v31  ;;  %3220 = vst.msk [vmem:[#allocation2 + $0x240] sm:$0xff] %vm16_vm1, %v2963_v8  ;;  %v10219_v2 = vld [vmem:[#allocation10_spill] sm:$0xff]  ;;  %v2964_v6 = vadd.f32 %v8971_v61, %v346_v9  ;;  %v9311_v14 = vpop.f32.mrb[98].mxu0  ;;  %v9313_v54 = vpop.f32.mrb[98].mxu1  ;;  %v6305_v1 = vpack.c.bf16 %v4249_v39, %v4249_v39 }
 0x1d4   :  { %v3094_v57 = vadd.f32 %v10219_v2, %v476_v51  ;;  %v481_v7 = vld [vmem:[#allocation2 + $0x680] sm:$0xff]  ;;  %v356_v37 = vld [vmem:[#allocation2 + $0x298] sm:$0xff]  ;;  %5525 = vst.msk [vmem:[%s10189_s2 + $0x114] sm:$0xf] %vm5455_vm4, %v6300_v19  ;;  %v3092_v51 = vadd.f32 %v8973_v0, %v474_v40  ;;  %v2969_v61 = vadd.f32 %v9020_v15, %v351_v4  ;;  %v3097_v9 = vadd.f32 %v9022_v45, %v479_v23  ;;  %v354_v56 = vld [vmem:[#allocation2 + $0x288] sm:$0xff]  ;;  %v9324_v33 = vpop.f32.mrb[99].mxu0 }
 0x1d5   :  { %v484_v13 = vld [vmem:[#allocation2 + $0x698] sm:$0xff]  ;;  %3348 = vst.msk [vmem:[#allocation2 + $0x640] sm:$0xff] %vm16_vm1, %v3091_v63  ;;  %3223 = vst.msk [vmem:[#allocation2 + $0x258] sm:$0xff] %vm16_vm1, %v2966_v53  ;;  %v482_v31 = vld [vmem:[#allocation2 + $0x688] sm:$0xff]  ;;  %v9326_v2 = vpop.f32.mrb[99].mxu1  ;;  %v2967_v0 = vadd.f32 %v9032_v21, %v349_v28  ;;  %v3095_v15 = vadd.f32 %v9034_v29, %v477_v46  ;;  %v2970_v45 = vadd.f32 %v9044_v34, %v352_v62 }
 0x1d6   :  { %v359_v8 = vld [vmem:[#allocation2 + $0x2b0] sm:$0xff]  ;;  %5653 = vst.msk [vmem:[%s10189_s2 + $0x314] sm:$0xf] %vm5455_vm4, %v6428_v55  ;;  %v3098_v39 = vadd.f32 %v9046_v20, %v480_v58  ;;  %v357_v40 = vld [vmem:[#allocation2 + $0x2a0] sm:$0xff]  ;;  %5530 = vst.msk [vmem:[%s10189_s2 + $0x128] sm:$0xf] %vm5455_vm4, %v6305_v1  ;;  %v2968_v21 = vadd.f32 %v9056_v47, %v350_v48  ;;  %v3096_v29 = vadd.f32 %v9058_v26, %v478_v25 }
 0x1d7   :  { %3351 = vst.msk [vmem:[#allocation2 + $0x658] sm:$0xff] %vm16_vm1, %v3094_v57  ;;  %3221 = vst.msk [vmem:[#allocation2 + $0x248] sm:$0xff] %vm16_vm1, %v2964_v6  ;;  %v487_v23 = vld [vmem:[#allocation2 + $0x6b0] sm:$0xff]  ;;  %v485_v4 = vld [vmem:[#allocation2 + $0x6a0] sm:$0xff]  ;;  %v2973_v34 = vadd.f32 %v9077_v10, %v355_v17  ;;  %v3101_v20 = vadd.f32 %v9097_v42, %v483_v52  ;;  %v2971_v62 = vadd.f32 %v9099_v35, %v353_v3  ;;  %v9373_v17 = vpop.f32.mrb[100].mxu0  ;;  %v9375_v52 = vpop.f32.mrb[100].mxu1 }
 0x1d8   :  { %3349 = vst.msk [vmem:[#allocation2 + $0x648] sm:$0xff] %vm16_vm1, %v3092_v51  ;;  %3226 = vst.msk [vmem:[#allocation2 + $0x270] sm:$0xff] %vm16_vm1, %v2969_v61  ;;  %v360_v55 = vld [vmem:[#allocation2 + $0x2b8] sm:$0xff]  ;;  %v358_v46 = vld [vmem:[#allocation2 + $0x2a8] sm:$0xff]  ;;  %v3099_v47 = vadd.f32 %v9105_v30, %v481_v7  ;;  %v2974_v26 = vadd.f32 %v9125_v49, %v356_v37  ;;  %v3102_v10 = vadd.f32 %v9127_v36, %v484_v13  ;;  %v9385_v6 = vpop.f32.mrb[101].mxu0  ;;  %v9387_v7 = vpop.f32.mrb[101].mxu1 }
 0x1d9   :  { %3354 = vst.msk [vmem:[#allocation2 + $0x670] sm:$0xff] %vm16_vm1, %v3097_v9  ;;  %v488_v28 = vld [vmem:[#allocation2 + $0x6b8] sm:$0xff]  ;;  %3224 = vst.msk [vmem:[#allocation2 + $0x260] sm:$0xff] %vm16_vm1, %v2967_v0  ;;  %v486_v42 = vld [vmem:[#allocation2 + $0x6a8] sm:$0xff]  ;;  %v2972_v58 = vadd.f32 %v9133_v16, %v354_v56  ;;  %v3100_v35 = vadd.f32 %v9139_v38, %v482_v31  ;;  %v2977_v30 = vadd.f32 %v9141_v44, %v359_v8  ;;  %v9401_v31 = vpop.f32.mrb[102].mxu0  ;;  %v9403_v8 = vpop.f32.mrb[102].mxu1 }
 0x1da   :  { %3352 = vst.msk [vmem:[#allocation2 + $0x660] sm:$0xff] %vm16_vm1, %v3095_v15  ;;  %3227 = vst.msk [vmem:[#allocation2 + $0x278] sm:$0xff] %vm16_vm1, %v2970_v45  ;;  %v363_v25 = vld [vmem:[#allocation2 + $0x2d0] sm:$0xff]  ;;  %v3105_v49 = vadd.f32 %v9152_v22, %v487_v23  ;;  %v361_v36 = vld [vmem:[#allocation2 + $0x2c0] sm:$0xff]  ;;  %v2975_v19 = vadd.f32 %v9158_v12, %v357_v40  ;;  %v3103_v63 = vadd.f32 %v9160_v43, %v485_v4 }
 0x1db   :  { %3355 = vst.msk [vmem:[#allocation2 + $0x678] sm:$0xff] %vm16_vm1, %v3098_v39  ;;  %v491_v48 = vld [vmem:[#allocation2 + $0x6d0] sm:$0xff]  ;;  %3225 = vst.msk [vmem:[#allocation2 + $0x268] sm:$0xff] %vm16_vm1, %v2968_v21  ;;  %v2978_v16 = vadd.f32 %v9163_v18, %v360_v55  ;;  %v3106_v38 = vadd.f32 %v9165_v50, %v488_v28  ;;  %v489_v44 = vld [vmem:[#allocation2 + $0x6c0] sm:$0xff]  ;;  %v2976_v12 = vadd.f32 %v9171_v60, %v358_v46 }
 0x1dc   :  { %3353 = vst.msk [vmem:[#allocation2 + $0x668] sm:$0xff] %vm16_vm1, %v3096_v29  ;;  %3230 = vst.msk [vmem:[#allocation2 + $0x290] sm:$0xff] %vm16_vm1, %v2973_v34  ;;  %v364_v53 = vld [vmem:[#allocation2 + $0x2d8] sm:$0xff]  ;;  %v3609_v3 = vld [vmem:[#allocation2 + $0x650] sm:$0xff]  ;;  %v3104_v43 = vadd.f32 %v9173_v27, %v486_v42  ;;  %v2981_v18 = vadd.f32 %v9179_v41, %v363_v25  ;;  %v3109_v50 = vadd.f32 %v9181_v24, %v491_v48 }
 0x1dd   :  { %3358 = vst.msk [vmem:[#allocation2 + $0x690] sm:$0xff] %vm16_vm1, %v3101_v20  ;;  %3228 = vst.msk [vmem:[#allocation2 + $0x280] sm:$0xff] %vm16_vm1, %v2971_v62  ;;  %v492_v22 = vld [vmem:[#allocation2 + $0x6d8] sm:$0xff]  ;;  %v3479_v57 = vld [vmem:[#allocation2 + $0x240] sm:$0xff]  ;;  %vm3865_vm9 = vcmp.ge.f32.partialorder %v3609_v3, 0.0  ;;  %v2979_v24 = vadd.f32 %v9192_v5, %v361_v36  ;;  %v3107_v1 = vadd.f32 %v9198_v11, %v489_v44 }
 0x1de   :  { %3356 = vst.msk [vmem:[#allocation2 + $0x680] sm:$0xff] %vm16_vm1, %v3099_v47  ;;  %3231 = vst.msk [vmem:[#allocation2 + $0x298] sm:$0xff] %vm16_vm1, %v2974_v26  ;;  %v4121_v37 = vmul.f32 0.2, %v3609_v3  ;;  %vm3735_vm10 = vcmp.ge.f32.partialorder %v3479_v57, 0.0  ;;  %v3607_v60 = vld [vmem:[#allocation2 + $0x640] sm:$0xff] }
 0x1df   :  { %3359 = vst.msk [vmem:[#allocation2 + $0x698] sm:$0xff] %vm16_vm1, %v3102_v10  ;;  %3229 = vst.msk [vmem:[#allocation2 + $0x288] sm:$0xff] %vm16_vm1, %v2972_v58  ;;  %v3991_v13 = vmul.f32 0.2, %v3479_v57  ;;  %v3482_v27 = vld [vmem:[#allocation2 + $0x258] sm:$0xff]  ;;  %v10220_v51 = vld [vmem:[#allocation3_spill] sm:$0xff] }
 0x1e0   :  { %3357 = vst.msk [vmem:[#allocation2 + $0x688] sm:$0xff] %vm16_vm1, %v3100_v35  ;;  %3234 = vst.msk [vmem:[#allocation2 + $0x2b0] sm:$0xff] %vm16_vm1, %v2977_v30  ;;  %v3610_v41 = vld [vmem:[#allocation2 + $0x658] sm:$0xff]  ;;  %v2982_v61 = vadd.f32 %v10220_v51, %v364_v53  ;;  %v10221_v9 = vld [vmem:[#allocation4_spill] sm:$0xff]  ;;  %v4377_v0 = vsel %vm3865_vm9, %v3609_v3, %v4121_v37  ;;  %vm3863_vm11 = vcmp.ge.f32.partialorder %v3607_v60, 0.0  ;;  %vm3738_vm0 = vcmp.ge.f32.partialorder %v3482_v27, 0.0 }
 0x1e1   :  { %3362 = vst.msk [vmem:[#allocation2 + $0x6b0] sm:$0xff] %vm16_vm1, %v3105_v49  ;;  %3232 = vst.msk [vmem:[#allocation2 + $0x2a0] sm:$0xff] %vm16_vm1, %v2975_v19  ;;  %v3110_v56 = vadd.f32 %v10221_v9, %v492_v22  ;;  %v4247_v15 = vsel %vm3735_vm10, %v3479_v57, %v3991_v13  ;;  %v4119_v45 = vmul.f32 0.2, %v3607_v60  ;;  %v3480_v39 = vld [vmem:[#allocation2 + $0x248] sm:$0xff]  ;;  %v6433_v40 = vpack.c.bf16 %v4377_v0, %v4377_v0  ;;  %v3485_v4 = vld [vmem:[#allocation2 + $0x270] sm:$0xff] }
 0x1e2   :  { %3360 = vst.msk [vmem:[#allocation2 + $0x6a0] sm:$0xff] %vm16_vm1, %v3103_v63  ;;  %3235 = vst.msk [vmem:[#allocation2 + $0x2b8] sm:$0xff] %vm16_vm1, %v2978_v16  ;;  %v3608_v23 = vld [vmem:[#allocation2 + $0x648] sm:$0xff]  ;;  %v6303_v5 = vpack.c.bf16 %v4247_v15, %v4247_v15  ;;  %v3994_v11 = vmul.f32 0.2, %v3482_v27  ;;  %vm3866_vm12 = vcmp.ge.f32.partialorder %v3610_v41, 0.0 }
 0x1e3   :  { %3363 = vst.msk [vmem:[#allocation2 + $0x6b8] sm:$0xff] %vm16_vm1, %v3106_v38  ;;  %3233 = vst.msk [vmem:[#allocation2 + $0x2a8] sm:$0xff] %vm16_vm1, %v2976_v12  ;;  %v4375_v21 = vsel %vm3863_vm11, %v3607_v60, %v4119_v45  ;;  %v4122_v29 = vmul.f32 0.2, %v3610_v41  ;;  %vm3736_vm13 = vcmp.ge.f32.partialorder %v3480_v39, 0.0  ;;  %v3613_v34 = vld [vmem:[#allocation2 + $0x670] sm:$0xff] }
 0x1e4   :  { %3361 = vst.msk [vmem:[#allocation2 + $0x6a8] sm:$0xff] %vm16_vm1, %v3104_v43  ;;  %3238 = vst.msk [vmem:[#allocation2 + $0x2d0] sm:$0xff] %vm16_vm1, %v2981_v18  ;;  %v6431_v20 = vpack.c.bf16 %v4375_v21, %v4375_v21  ;;  %v4250_v55 = vsel %vm3738_vm0, %v3482_v27, %v3994_v11  ;;  %v3992_v28 = vmul.f32 0.2, %v3480_v39  ;;  %vm3864_vm14 = vcmp.ge.f32.partialorder %v3608_v23, 0.0  ;;  %v3483_v46 = vld [vmem:[#allocation2 + $0x260] sm:$0xff] }
 0x1e5   :  { %3366 = vst.msk [vmem:[#allocation2 + $0x6d0] sm:$0xff] %vm16_vm1, %v3109_v50  ;;  %3236 = vst.msk [vmem:[#allocation2 + $0x2c0] sm:$0xff] %vm16_vm1, %v2979_v24  ;;  %v6306_v62 = vpack.c.bf16 %v4250_v55, %v4250_v55  ;;  %v4378_v47 = vsel %vm3866_vm12, %v3610_v41, %v4122_v29  ;;  %v4120_v26 = vmul.f32 0.2, %v3608_v23  ;;  %vm3741_vm15 = vcmp.ge.f32.partialorder %v3485_v4, 0.0  ;;  %v3611_v10 = vld [vmem:[#allocation2 + $0x660] sm:$0xff] }
 0x1e6   :  { %3364 = vst.msk [vmem:[#allocation2 + $0x6c0] sm:$0xff] %vm16_vm1, %v3107_v1  ;;  %3239 = vst.msk [vmem:[#allocation2 + $0x2d8] sm:$0xff] %vm16_vm1, %v2982_v61  ;;  %v6434_v42 = vpack.c.bf16 %v4378_v47, %v4378_v47  ;;  %v4248_v25 = vsel %vm3736_vm13, %v3480_v39, %v3992_v28  ;;  %v3997_v48 = vmul.f32 0.2, %v3485_v4  ;;  %vm3869_vm2 = vcmp.ge.f32.partialorder %v3613_v34, 0.0  ;;  %v3486_v58 = vld [vmem:[#allocation2 + $0x278] sm:$0xff] }
 0x1e7   :  { %3367 = vst.msk [vmem:[#allocation2 + $0x6d8] sm:$0xff] %vm16_vm1, %v3110_v56  ;;  %v6304_v35 = vpack.c.bf16 %v4248_v25, %v4248_v25  ;;  %v4376_v30 = vsel %vm3864_vm14, %v3608_v23, %v4120_v26  ;;  %v4125_v49 = vmul.f32 0.2, %v3613_v34  ;;  %vm3739_vm3 = vcmp.ge.f32.partialorder %v3483_v46, 0.0  ;;  %v3614_v36 = vld [vmem:[#allocation2 + $0x678] sm:$0xff]  ;;  %v3484_v38 = vld [vmem:[#allocation2 + $0x268] sm:$0xff] }
 0x1e8   :  { %5658 = vst.msk [vmem:[%s10189_s2 + $0x328] sm:$0xf] %vm5455_vm4, %v6433_v40  ;;  %5528 = vst.msk [vmem:[%s10189_s2 + $0x120] sm:$0xf] %vm5455_vm4, %v6303_v5  ;;  %v6432_v19 = vpack.c.bf16 %v4376_v30, %v4376_v30  ;;  %v4253_v63 = vsel %vm3741_vm15, %v3485_v4, %v3997_v48  ;;  %v3995_v16 = vmul.f32 0.2, %v3483_v46 }
 0x1e9   :  { %5656 = vst.msk [vmem:[%s10189_s2 + $0x320] sm:$0xf] %vm5455_vm4, %v6431_v20  ;;  %5531 = vst.msk [vmem:[%s10189_s2 + $0x12c] sm:$0xf] %vm5455_vm4, %v6306_v62  ;;  %vm3867_vm5 = vcmp.ge.f32.partialorder %v3611_v10, 0.0  ;;  %v6309_v44 = vpack.c.bf16 %v4253_v63, %v4253_v63  ;;  %v4381_v53 = vsel %vm3869_vm2, %v3613_v34, %v4125_v49  ;;  %vm3742_vm6 = vcmp.ge.f32.partialorder %v3486_v58, 0.0 }
 0x1ea   :  { %5659 = vst.msk [vmem:[%s10189_s2 + $0x32c] sm:$0xf] %vm5455_vm4, %v6434_v42  ;;  %5529 = vst.msk [vmem:[%s10189_s2 + $0x124] sm:$0xf] %vm5455_vm4, %v6304_v35  ;;  %v4123_v22 = vmul.f32 0.2, %v3611_v10  ;;  %v6437_v57 = vpack.c.bf16 %v4381_v53, %v4381_v53  ;;  %v4251_v12 = vsel %vm3739_vm3, %v3483_v46, %v3995_v16 }
 0x1eb   :  { %v3612_v3 = vld [vmem:[#allocation2 + $0x668] sm:$0xff]  ;;  %5657 = vst.msk [vmem:[%s10189_s2 + $0x324] sm:$0xf] %vm5455_vm4, %v6432_v19  ;;  %v3998_v43 = vmul.f32 0.2, %v3486_v58  ;;  %vm3870_vm7 = vcmp.ge.f32.partialorder %v3614_v36, 0.0  ;;  %v6307_v50 = vpack.c.bf16 %v4251_v12, %v4251_v12 }
 0x1ec   :  { %v3489_v18 = vld [vmem:[#allocation2 + $0x290] sm:$0xff]  ;;  %5534 = vst.msk [vmem:[%s10189_s2 + $0x138] sm:$0xf] %vm5455_vm4, %v6309_v44  ;;  %v4379_v37 = vsel %vm3867_vm5, %v3611_v10, %v4123_v22  ;;  %v4126_v13 = vmul.f32 0.2, %v3614_v36  ;;  %vm3740_vm8 = vcmp.ge.f32.partialorder %v3484_v38, 0.0 }
 0x1ed   :  { %v3617_v60 = vld [vmem:[#allocation2 + $0x690] sm:$0xff]  ;;  %5662 = vst.msk [vmem:[%s10189_s2 + $0x338] sm:$0xf] %vm5455_vm4, %v6437_v57  ;;  %v6435_v27 = vpack.c.bf16 %v4379_v37, %v4379_v37  ;;  %v4254_v41 = vsel %vm3742_vm6, %v3486_v58, %v3998_v43  ;;  %v3996_v24 = vmul.f32 0.2, %v3484_v38  ;;  %vm3868_vm9 = vcmp.ge.f32.partialorder %v3612_v3, 0.0 }
 0x1ee   :  { %v3487_v1 = vld [vmem:[#allocation2 + $0x280] sm:$0xff]  ;;  %v9453_v51 = vpop.f32.mrb[103].mxu0  ;;  %v9455_v61 = vpop.f32.mrb[103].mxu1  ;;  %5532 = vst.msk [vmem:[%s10189_s2 + $0x130] sm:$0xf] %vm5455_vm4, %v6307_v50  ;;  %v6310_v9 = vpack.c.bf16 %v4254_v41, %v4254_v41  ;;  %v4382_v56 = vsel %vm3870_vm7, %v3614_v36, %v4126_v13  ;;  %vm3745_vm10 = vcmp.ge.f32.partialorder %v3489_v18, 0.0 }
 0x1ef   :  { %v4124_v0 = vmul.f32 0.2, %v3612_v3  ;;  %v3615_v15 = vld [vmem:[#allocation2 + $0x680] sm:$0xff]  ;;  %v9462_v45 = vpop.f32.mrb[104].mxu0  ;;  %v9464_v39 = vpop.f32.mrb[104].mxu1  ;;  %v6438_v23 = vpack.c.bf16 %v4382_v56, %v4382_v56  ;;  %v4252_v40 = vsel %vm3740_vm8, %v3484_v38, %v3996_v24  ;;  %vm3873_vm11 = vcmp.ge.f32.partialorder %v3617_v60, 0.0 }
 0x1f0   :  { %5660 = vst.msk [vmem:[%s10189_s2 + $0x330] sm:$0xf] %vm5455_vm4, %v6435_v27  ;;  %v4001_v5 = vmul.f32 0.2, %v3489_v18  ;;  %v3490_v11 = vld [vmem:[#allocation2 + $0x298] sm:$0xff]  ;;  %v9471_v4 = vpop.f32.mrb[105].mxu0  ;;  %v6308_v29 = vpack.c.bf16 %v4252_v40, %v4252_v40 }
 0x1f1   :  { %v9473_v21 = vpop.f32.mrb[105].mxu1  ;;  %5535 = vst.msk [vmem:[%s10189_s2 + $0x13c] sm:$0xf] %vm5455_vm4, %v6310_v9  ;;  %v4380_v34 = vsel %vm3868_vm9, %v3612_v3, %v4124_v0  ;;  %v4129_v20 = vmul.f32 0.2, %v3617_v60  ;;  %vm3743_vm0 = vcmp.ge.f32.partialorder %v3487_v1, 0.0 }
 0x1f2   :  { %v3618_v55 = vld [vmem:[#allocation2 + $0x698] sm:$0xff]  ;;  %v9480_v28 = vpop.f32.mrb[106].mxu0  ;;  %v9482_v46 = vpop.f32.mrb[106].mxu1  ;;  %5663 = vst.msk [vmem:[%s10189_s2 + $0x33c] sm:$0xf] %vm5455_vm4, %v6438_v23  ;;  %v6436_v62 = vpack.c.bf16 %v4380_v34, %v4380_v34  ;;  %v4257_v47 = vsel %vm3745_vm10, %v3489_v18, %v4001_v5  ;;  %vm3871_vm12 = vcmp.ge.f32.partialorder %v3615_v15, 0.0 }
 0x1f3   :  { %v3999_v26 = vmul.f32 0.2, %v3487_v1  ;;  %v3488_v10 = vld [vmem:[#allocation2 + $0x288] sm:$0xff]  ;;  %v9489_v42 = vpop.f32.mrb[107].mxu0  ;;  %v9491_v25 = vpop.f32.mrb[107].mxu1  ;;  %v6313_v48 = vpack.c.bf16 %v4257_v47, %v4257_v47  ;;  %v4385_v58 = vsel %vm3873_vm11, %v3617_v60, %v4129_v20  ;;  %vm3746_vm13 = vcmp.ge.f32.partialorder %v3490_v11, 0.0 }
 0x1f4   :  { %5533 = vst.msk [vmem:[%s10189_s2 + $0x134] sm:$0xf] %vm5455_vm4, %v6308_v29  ;;  %v4127_v35 = vmul.f32 0.2, %v3615_v15  ;;  %v3616_v30 = vld [vmem:[#allocation2 + $0x688] sm:$0xff]  ;;  %v9498_v49 = vpop.f32.mrb[108].mxu0  ;;  %v6441_v19 = vpack.c.bf16 %v4385_v58, %v4385_v58 }
 0x1f5   :  { %v9500_v36 = vpop.f32.mrb[108].mxu1  ;;  %5661 = vst.msk [vmem:[%s10189_s2 + $0x334] sm:$0xf] %vm5455_vm4, %v6436_v62  ;;  %v4255_v63 = vsel %vm3743_vm0, %v3487_v1, %v3999_v26  ;;  %v4002_v16 = vmul.f32 0.2, %v3490_v11  ;;  %vm3874_vm14 = vcmp.ge.f32.partialorder %v3618_v55, 0.0 }
 0x1f6   :  { %v3493_v38 = vld [vmem:[#allocation2 + $0x2b0] sm:$0xff]  ;;  %v9507_v44 = vpop.f32.mrb[109].mxu0  ;;  %v9509_v53 = vpop.f32.mrb[109].mxu1  ;;  %5538 = vst.msk [vmem:[%s10189_s2 + $0x148] sm:$0xf] %vm5455_vm4, %v6313_v48  ;;  %v6311_v22 = vpack.c.bf16 %v4255_v63, %v4255_v63  ;;  %v4383_v3 = vsel %vm3871_vm12, %v3615_v15, %v4127_v35  ;;  %vm3744_vm15 = vcmp.ge.f32.partialorder %v3488_v10, 0.0 }
 0x1f7   :  { %v4130_v57 = vmul.f32 0.2, %v3618_v55  ;;  %v3621_v12 = vld [vmem:[#allocation2 + $0x6b0] sm:$0xff]  ;;  %v9516_v43 = vpop.f32.mrb[110].mxu0  ;;  %v9518_v18 = vpop.f32.mrb[110].mxu1  ;;  %v6439_v50 = vpack.c.bf16 %v4383_v3, %v4383_v3  ;;  %v4258_v37 = vsel %vm3746_vm13, %v3490_v11, %v4002_v16  ;;  %vm3872_vm2 = vcmp.ge.f32.partialorder %v3616_v30, 0.0 }
 0x1f8   :  { %5666 = vst.msk [vmem:[%s10189_s2 + $0x348] sm:$0xf] %vm5455_vm4, %v6441_v19  ;;  %v4000_v13 = vmul.f32 0.2, %v3488_v10  ;;  %v3491_v60 = vld [vmem:[#allocation2 + $0x2a0] sm:$0xff]  ;;  %v9525_v27 = vpop.f32.mrb[111].mxu0  ;;  %v6314_v24 = vpack.c.bf16 %v4258_v37, %v4258_v37 }
 0x1f9   :  { %v9527_v41 = vpop.f32.mrb[111].mxu1  ;;  %5536 = vst.msk [vmem:[%s10189_s2 + $0x140] sm:$0xf] %vm5455_vm4, %v6311_v22  ;;  %v4386_v1 = vsel %vm3874_vm14, %v3618_v55, %v4130_v57  ;;  %v4128_v9 = vmul.f32 0.2, %v3616_v30  ;;  %vm3749_vm3 = vcmp.ge.f32.partialorder %v3493_v38, 0.0 }
 0x1fa   :  { %10222 = vst [vmem:[#allocation8_spill] sm:$0xff] %v9527_v41  ;;  %v3619_v56 = vld [vmem:[#allocation2 + $0x6a0] sm:$0xff]  ;;  %v9534_v0 = vpop.f32.mrb[112].mxu0  ;;  %v9536_v15 = vpop.f32.mrb[112].mxu1  ;;  %5664 = vst.msk [vmem:[%s10189_s2 + $0x340] sm:$0xf] %vm5455_vm4, %v6439_v50  ;;  %v6442_v23 = vpack.c.bf16 %v4386_v1, %v4386_v1  ;;  %v4256_v40 = vsel %vm3744_vm15, %v3488_v10, %v4000_v13 }
 0x1fb   :  { %10223 = vst [vmem:[#allocation9_spill] sm:$0xff] %v9534_v0  ;;  %10224 = vst [vmem:[#allocation10_spill] sm:$0xff] %v9536_v15  ;;  %v4005_v5 = vmul.f32 0.2, %v3493_v38  ;;  %vm3877_vm5 = vcmp.ge.f32.partialorder %v3621_v12, 0.0  ;;  %v3494_v11 = vld [vmem:[#allocation2 + $0x2b8] sm:$0xff]  ;;  %v6312_v20 = vpack.c.bf16 %v4256_v40, %v4256_v40  ;;  %v4384_v55 = vsel %vm3872_vm2, %v3616_v30, %v4128_v9 }
 0x1fc   :  { %v9543_v29 = vpop.f32.mrb[113].mxu0  ;;  %v9545_v34 = vpop.f32.mrb[113].mxu1  ;;  %5539 = vst.msk [vmem:[%s10189_s2 + $0x14c] sm:$0xf] %vm5455_vm4, %v6314_v24  ;;  %v4133_v62 = vmul.f32 0.2, %v3621_v12  ;;  %v6440_v48 = vpack.c.bf16 %v4384_v55, %v4384_v55 }
 0x1fd   :  { %10225 = vst [vmem:[#allocation3_spill] sm:$0xff] %v9543_v29  ;;  %10226 = vst [vmem:[#allocation4_spill] sm:$0xff] %v9545_v34  ;;  %vm3747_vm6 = vcmp.ge.f32.partialorder %v3491_v60, 0.0  ;;  %v3622_v47 = vld [vmem:[#allocation2 + $0x6b8] sm:$0xff]  ;;  %v9552_v26 = vpop.f32.mrb[114].mxu0  ;;  %v9554_v10 = vpop.f32.mrb[114].mxu1  ;;  %v4261_v58 = vsel %vm3749_vm3, %v3493_v38, %v4005_v5 }
 0x1fe   :  { %10227 = vst [vmem:[#allocation20_spill] sm:$0xff] %v9552_v26  ;;  %10228 = vst [vmem:[#allocation21_spill] sm:$0xff] %v9554_v10  ;;  %v4003_v35 = vmul.f32 0.2, %v3491_v60  ;;  %vm3875_vm7 = vcmp.ge.f32.partialorder %v3619_v56, 0.0  ;;  %v3492_v19 = vld [vmem:[#allocation2 + $0x2a8] sm:$0xff]  ;;  %v6317_v16 = vpack.c.bf16 %v4261_v58, %v4261_v58  ;;  %v4389_v22 = vsel %vm3877_vm5, %v3621_v12, %v4133_v62 }
 0x1ff   :  { %5667 = vst.msk [vmem:[%s10189_s2 + $0x34c] sm:$0xf] %vm5455_vm4, %v6442_v23  ;;  %v9561_v63 = vpop.f32.mrb[115].mxu0  ;;  %v9563_v30 = vpop.f32.mrb[115].mxu1  ;;  %5537 = vst.msk [vmem:[%s10189_s2 + $0x144] sm:$0xf] %vm5455_vm4, %v6312_v20  ;;  %v6445_v38 = vpack.c.bf16 %v4389_v22, %v4389_v22 }
 0x200   :  { %10229 = vst [vmem:[#allocation22_spill] sm:$0xff] %v9561_v63  ;;  %10230 = vst [vmem:[#allocation23_spill] sm:$0xff] %v9563_v30  ;;  %v4131_v3 = vmul.f32 0.2, %v3619_v56  ;;  %vm3750_vm8 = vcmp.ge.f32.partialorder %v3494_v11, 0.0  ;;  %v3620_v57 = vld [vmem:[#allocation2 + $0x6a8] sm:$0xff]  ;;  %v4259_v50 = vsel %vm3747_vm6, %v3491_v60, %v4003_v35 }
 0x201   :  { %5665 = vst.msk [vmem:[%s10189_s2 + $0x344] sm:$0xf] %vm5455_vm4, %v6440_v48  ;;  %v4006_v37 = vmul.f32 0.2, %v3494_v11  ;;  %vm3878_vm9 = vcmp.ge.f32.partialorder %v3622_v47, 0.0  ;;  %v3497_v13 = vld [vmem:[#allocation2 + $0x2d0] sm:$0xff]  ;;  %v6315_v12 = vpack.c.bf16 %v4259_v50, %v4259_v50 }
 0x202   :  { %5542 = vst.msk [vmem:[%s10189_s2 + $0x158] sm:$0xf] %vm5455_vm4, %v6317_v16  ;;  %v4387_v24 = vsel %vm3875_vm7, %v3619_v56, %v4131_v3  ;;  %v4134_v1 = vmul.f32 0.2, %v3622_v47  ;;  %vm3748_vm10 = vcmp.ge.f32.partialorder %v3492_v19, 0.0  ;;  %v3625_v9 = vld [vmem:[#allocation2 + $0x6d0] sm:$0xff] }
 0x203   :  { %5670 = vst.msk [vmem:[%s10189_s2 + $0x358] sm:$0xf] %vm5455_vm4, %v6445_v38  ;;  %v6443_v60 = vpack.c.bf16 %v4387_v24, %v4387_v24  ;;  %v4262_v23 = vsel %vm3750_vm8, %v3494_v11, %v4006_v37  ;;  %v4004_v40 = vmul.f32 0.2, %v3492_v19  ;;  %vm3876_vm11 = vcmp.ge.f32.partialorder %v3620_v57, 0.0  ;;  %v3495_v5 = vld [vmem:[#allocation2 + $0x2c0] sm:$0xff] }
 0x204   :  { %5540 = vst.msk [vmem:[%s10189_s2 + $0x150] sm:$0xf] %vm5455_vm4, %v6315_v12  ;;  %v6318_v56 = vpack.c.bf16 %v4262_v23, %v4262_v23  ;;  %v4390_v20 = vsel %vm3878_vm9, %v3622_v47, %v4134_v1  ;;  %v4132_v55 = vmul.f32 0.2, %v3620_v57  ;;  %vm3753_vm0 = vcmp.ge.f32.partialorder %v3497_v13, 0.0  ;;  %v3623_v62 = vld [vmem:[#allocation2 + $0x6c0] sm:$0xff] }
 0x205   :  { %v9590_v48 = vpop.f32.mrb[116].mxu0  ;;  %v9592_v58 = vpop.f32.mrb[116].mxu1  ;;  %5668 = vst.msk [vmem:[%s10189_s2 + $0x350] sm:$0xf] %vm5455_vm4, %v6443_v60  ;;  %v6446_v11 = vpack.c.bf16 %v4390_v20, %v4390_v20  ;;  %v4260_v35 = vsel %vm3748_vm10, %v3492_v19, %v4004_v40  ;;  %v4009_v16 = vmul.f32 0.2, %v3497_v13 }
 0x206   :  { %10231 = vst [vmem:[#allocation24_spill] sm:$0xff] %v9590_v48  ;;  %10232 = vst [vmem:[#allocation25_spill] sm:$0xff] %v9592_v58  ;;  %vm3881_vm12 = vcmp.ge.f32.partialorder %v3625_v9, 0.0  ;;  %v3498_v22 = vld [vmem:[#allocation2 + $0x2d8] sm:$0xff]  ;;  %v362_v3 = vld [vmem:[#allocation2 + $0x2c8] sm:$0xff]  ;;  %v9599_v47 = vpop.f32.mrb[117].mxu0  ;;  %v6316_v50 = vpack.c.bf16 %v4260_v35, %v4260_v35  ;;  %v4388_v37 = vsel %vm3876_vm11, %v3620_v57, %v4132_v55 }
 0x207   :  { %10233 = vst [vmem:[#allocation26_spill] sm:$0xff] %v9599_v47  ;;  %v9601_v38 = vpop.f32.mrb[117].mxu1  ;;  %5543 = vst.msk [vmem:[%s10189_s2 + $0x15c] sm:$0xf] %vm5455_vm4, %v6318_v56  ;;  %v4137_v12 = vmul.f32 0.2, %v3625_v9  ;;  %v6444_v40 = vpack.c.bf16 %v4388_v37, %v4388_v37  ;;  %v4265_v56 = vsel %vm3753_vm0, %v3497_v13, %v4009_v16 }
 0x208   :  { %10234 = vst [vmem:[#allocation27_spill] sm:$0xff] %v9601_v38  ;;  %vm3751_vm13 = vcmp.ge.f32.partialorder %v3495_v5, 0.0  ;;  %v3626_v24 = vld [vmem:[#allocation2 + $0x6d8] sm:$0xff]  ;;  %v490_v19 = vld [vmem:[#allocation2 + $0x6c8] sm:$0xff]  ;;  %v367_v1 = vld [vmem:[#allocation2 + $0x2f0] sm:$0xff]  ;;  %v9608_v60 = vpop.f32.mrb[118].mxu0 }
 0x209   :  { %10235 = vst [vmem:[#allocation28_spill] sm:$0xff] %v9608_v60  ;;  %v9610_v23 = vpop.f32.mrb[118].mxu1  ;;  %5671 = vst.msk [vmem:[%s10189_s2 + $0x35c] sm:$0xf] %vm5455_vm4, %v6446_v11  ;;  %v4007_v20 = vmul.f32 0.2, %v3495_v5  ;;  %v4393_v60 = vsel %vm3881_vm12, %v3625_v9, %v4137_v12 }
 0x20a   :  { %10236 = vst [vmem:[#allocation29_spill] sm:$0xff] %v9610_v23  ;;  %vm3879_vm14 = vcmp.ge.f32.partialorder %v3623_v62, 0.0  ;;  %v495_v57 = vld [vmem:[#allocation2 + $0x6f0] sm:$0xff]  ;;  %v365_v55 = vld [vmem:[#allocation2 + $0x2e0] sm:$0xff]  ;;  %v9617_v35 = vpop.f32.mrb[119].mxu0  ;;  %v9619_v38 = vpop.f32.mrb[119].mxu1  ;;  %v6321_v23 = vpack.c.bf16 %v4265_v56, %v4265_v56 }
 0x20b   :  { %10237 = vst [vmem:[#allocation30_spill] sm:$0xff] %v9617_v35  ;;  %10238 = vst [vmem:[#allocation31_spill] sm:$0xff] %v9619_v38  ;;  %v4135_v11 = vmul.f32 0.2, %v3623_v62  ;;  %vm3754_vm15 = vcmp.ge.f32.partialorder %v3498_v22, 0.0  ;;  %v493_v37 = vld [vmem:[#allocation2 + $0x6e0] sm:$0xff]  ;;  %v6449_v35 = vpack.c.bf16 %v4393_v60, %v4393_v60  ;;  %v4263_v38 = vsel %vm3751_vm13, %v3495_v5, %v4007_v20 }
 0x20c   :  { %5541 = vst.msk [vmem:[%s10189_s2 + $0x154] sm:$0xf] %vm5455_vm4, %v6316_v50  ;;  %v368_v13 = vld [vmem:[#allocation2 + $0x2f8] sm:$0xff]  ;;  %5669 = vst.msk [vmem:[%s10189_s2 + $0x354] sm:$0xf] %vm5455_vm4, %v6444_v40  ;;  %vm3882_vm2 = vcmp.ge.f32.partialorder %v3626_v24, 0.0  ;;  %v6319_v9 = vpack.c.bf16 %v4263_v38, %v4263_v38 }
 0x20d   :  { %v496_v16 = vld [vmem:[#allocation2 + $0x6f8] sm:$0xff]  ;;  %v4010_v47 = vmul.f32 0.2, %v3498_v22  ;;  %v366_v58 = vld [vmem:[#allocation2 + $0x2e8] sm:$0xff]  ;;  %v371_v56 = vld [vmem:[#allocation2 + $0x310] sm:$0xff]  ;;  %v4391_v12 = vsel %vm3879_vm14, %v3623_v62, %v4135_v11 }
 0x20e   :  { %v494_v50 = vld [vmem:[#allocation2 + $0x6e8] sm:$0xff]  ;;  %5546 = vst.msk [vmem:[%s10189_s2 + $0x168] sm:$0xf] %vm5455_vm4, %v6321_v23  ;;  %v4138_v48 = vmul.f32 0.2, %v3626_v24  ;;  %v10239_v30 = vld [vmem:[#allocation5_spill] sm:$0xff]  ;;  %v6447_v5 = vpack.c.bf16 %v4391_v12, %v4391_v12 }
 0x20f   :  { %v2980_v63 = vadd.f32 %v10239_v30, %v362_v3  ;;  %v499_v40 = vld [vmem:[#allocation2 + $0x710] sm:$0xff]  ;;  %v369_v60 = vld [vmem:[#allocation2 + $0x300] sm:$0xff]  ;;  %5674 = vst.msk [vmem:[%s10189_s2 + $0x368] sm:$0xf] %vm5455_vm4, %v6449_v35  ;;  %v4266_v20 = vsel %vm3754_vm15, %v3498_v22, %v4010_v47  ;;  %v10240_v26 = vld [vmem:[#allocation6_spill] sm:$0xff] }
 0x210   :  { %v497_v10 = vld [vmem:[#allocation2 + $0x700] sm:$0xff]  ;;  %v3108_v34 = vadd.f32 %v10240_v26, %v490_v19  ;;  %v372_v29 = vld [vmem:[#allocation2 + $0x318] sm:$0xff]  ;;  %v370_v11 = vld [vmem:[#allocation2 + $0x308] sm:$0xff]  ;;  %5544 = vst.msk [vmem:[%s10189_s2 + $0x160] sm:$0xf] %vm5455_vm4, %v6319_v9  ;;  %v6322_v30 = vpack.c.bf16 %v4266_v20, %v4266_v20  ;;  %v4394_v3 = vsel %vm3882_vm2, %v3626_v24, %v4138_v48 }
 0x211   :  { %v10241_v23 = vld [vmem:[#allocation11_spill] sm:$0xff]  ;;  %v500_v62 = vld [vmem:[#allocation2 + $0x718] sm:$0xff]  ;;  %3237 = vst.msk [vmem:[#allocation2 + $0x2c8] sm:$0xff] %vm16_vm1, %v2980_v63  ;;  %v10242_v35 = vld [vmem:[#allocation12_spill] sm:$0xff]  ;;  %v6450_v9 = vpack.c.bf16 %v4394_v3, %v4394_v3 }
 0x212   :  { %v2985_v38 = vadd.f32 %v10241_v23, %v367_v1  ;;  %v3113_v12 = vadd.f32 %v10242_v35, %v495_v57  ;;  %v10243_v22 = vld [vmem:[#allocation13_spill] sm:$0xff]  ;;  %v498_v26 = vld [vmem:[#allocation2 + $0x708] sm:$0xff]  ;;  %v9652_v23 = vpop.f32.mrb[120].mxu0  ;;  %5672 = vst.msk [vmem:[%s10189_s2 + $0x360] sm:$0xf] %vm5455_vm4, %v6447_v5  ;;  %v10245_v63 = vld [vmem:[#allocation14_spill] sm:$0xff] }
 0x213   :  { %v2983_v47 = vadd.f32 %v10243_v22, %v365_v55  ;;  %v375_v19 = vld [vmem:[#allocation2 + $0x330] sm:$0xff]  ;;  %10244 = vst [vmem:[#allocation5_spill] sm:$0xff] %v9652_v23  ;;  %3365 = vst.msk [vmem:[#allocation2 + $0x6c8] sm:$0xff] %vm16_vm1, %v3108_v34  ;;  %v3111_v48 = vadd.f32 %v10245_v63, %v493_v37  ;;  %v10246_v24 = vld [vmem:[#allocation15_spill] sm:$0xff]  ;;  %v9663_v23 = vpop.f32.mrb[120].mxu1  ;;  %v9665_v0 = vpop.f32.mrb[121].mxu0 }
 0x214   :  { %v503_v1 = vld [vmem:[#allocation2 + $0x730] sm:$0xff]  ;;  %3242 = vst.msk [vmem:[#allocation2 + $0x2f0] sm:$0xff] %vm16_vm1, %v2985_v38  ;;  %v2986_v57 = vadd.f32 %v10246_v24, %v368_v13  ;;  %v10247_v55 = vld [vmem:[#allocation16_spill] sm:$0xff]  ;;  %v373_v35 = vld [vmem:[#allocation2 + $0x320] sm:$0xff]  ;;  %v9679_v41 = vpop.f32.mrb[122].mxu0 }
 0x215   :  { %v3114_v20 = vadd.f32 %v10247_v55, %v496_v16  ;;  %v501_v22 = vld [vmem:[#allocation2 + $0x720] sm:$0xff]  ;;  %v376_v15 = vld [vmem:[#allocation2 + $0x338] sm:$0xff]  ;;  %10248 = vst [vmem:[#allocation6_spill] sm:$0xff] %v9663_v23  ;;  %10249 = vst [vmem:[#allocation11_spill] sm:$0xff] %v9665_v0  ;;  %v9677_v23 = vpop.f32.mrb[121].mxu1 }
 0x216   :  { %5547 = vst.msk [vmem:[%s10189_s2 + $0x16c] sm:$0xf] %vm5455_vm4, %v6322_v30  ;;  %v10250_v34 = vld [vmem:[#allocation17_spill] sm:$0xff]  ;;  %v10251_v13 = vld [vmem:[#allocation18_spill] sm:$0xff]  ;;  %v10252_v5 = vld [vmem:[#allocation7_spill] sm:$0xff] }
 0x217   :  { %3370 = vst.msk [vmem:[#allocation2 + $0x6f0] sm:$0xff] %vm16_vm1, %v3113_v12  ;;  %3240 = vst.msk [vmem:[#allocation2 + $0x2e0] sm:$0xff] %vm16_vm1, %v2983_v47  ;;  %v2984_v37 = vadd.f32 %v10250_v34, %v366_v58  ;;  %v3112_v16 = vadd.f32 %v10251_v13, %v494_v50  ;;  %v2989_v38 = vadd.f32 %v10252_v5, %v371_v56  ;;  %v10253_v3 = vld [vmem:[#allocation19_spill] sm:$0xff]  ;;  %v504_v24 = vld [vmem:[#allocation2 + $0x738] sm:$0xff]  ;;  %v9692_v34 = vpop.f32.mrb[122].mxu1 }
 0x218   :  { %v3117_v63 = vadd.f32 %v10253_v3, %v499_v40  ;;  %v374_v55 = vld [vmem:[#allocation2 + $0x328] sm:$0xff]  ;;  %5675 = vst.msk [vmem:[%s10189_s2 + $0x36c] sm:$0xf] %vm5455_vm4, %v6450_v9  ;;  %v2987_v58 = vadd.f32 %v9302_v59, %v369_v60  ;;  %v3115_v50 = vadd.f32 %v9304_v32, %v497_v10  ;;  %v2990_v56 = vadd.f32 %v9311_v14, %v372_v29  ;;  %v379_v30 = vld [vmem:[#allocation2 + $0x350] sm:$0xff]  ;;  %v377_v47 = vld [vmem:[#allocation2 + $0x340] sm:$0xff]  ;;  %v9694_v9 = vpop.f32.mrb[123].mxu0 }
 0x219   :  { %v502_v0 = vld [vmem:[#allocation2 + $0x728] sm:$0xff]  ;;  %3368 = vst.msk [vmem:[#allocation2 + $0x6e0] sm:$0xff] %vm16_vm1, %v3111_v48  ;;  %3243 = vst.msk [vmem:[#allocation2 + $0x2f8] sm:$0xff] %vm16_vm1, %v2986_v57  ;;  %v3118_v40 = vadd.f32 %v9313_v54, %v500_v62  ;;  %v507_v12 = vld [vmem:[#allocation2 + $0x750] sm:$0xff]  ;;  %v2988_v59 = vadd.f32 %v9324_v33, %v370_v11  ;;  %v3116_v32 = vadd.f32 %v9326_v2, %v498_v26  ;;  %v9704_v62 = vpop.f32.mrb[123].mxu1 }
 0x21a   :  { %3371 = vst.msk [vmem:[#allocation2 + $0x6f8] sm:$0xff] %vm16_vm1, %v3114_v20  ;;  %3241 = vst.msk [vmem:[#allocation2 + $0x2e8] sm:$0xff] %vm16_vm1, %v2984_v37  ;;  %v2993_v14 = vadd.f32 %v9373_v17, %v375_v19  ;;  %v3121_v54 = vadd.f32 %v9375_v52, %v503_v1  ;;  %v505_v29 = vld [vmem:[#allocation2 + $0x740] sm:$0xff]  ;;  %v380_v10 = vld [vmem:[#allocation2 + $0x358] sm:$0xff]  ;;  %v2991_v33 = vadd.f32 %v9385_v6, %v373_v35 }
 0x21b   :  { %3369 = vst.msk [vmem:[#allocation2 + $0x6e8] sm:$0xff] %vm16_vm1, %v3112_v16  ;;  %3246 = vst.msk [vmem:[#allocation2 + $0x310] sm:$0xff] %vm16_vm1, %v2989_v38  ;;  %v508_v60 = vld [vmem:[#allocation2 + $0x758] sm:$0xff]  ;;  %v3119_v2 = vadd.f32 %v9387_v7, %v501_v22  ;;  %v2994_v17 = vadd.f32 %v9401_v31, %v376_v15  ;;  %v3122_v52 = vadd.f32 %v9403_v8, %v504_v24  ;;  %v378_v11 = vld [vmem:[#allocation2 + $0x348] sm:$0xff]  ;;  %v9748_v38 = vpop.f32.mrb[124].mxu1 }
 0x21c   :  { %3374 = vst.msk [vmem:[#allocation2 + $0x710] sm:$0xff] %vm16_vm1, %v3117_v63  ;;  %3244 = vst.msk [vmem:[#allocation2 + $0x300] sm:$0xff] %vm16_vm1, %v2987_v58  ;;  %v506_v26 = vld [vmem:[#allocation2 + $0x748] sm:$0xff]  ;;  %v2992_v19 = vadd.f32 %v9453_v51, %v374_v55  ;;  %v3120_v6 = vadd.f32 %v9455_v61, %v502_v0  ;;  %v2997_v7 = vadd.f32 %v9462_v45, %v379_v30  ;;  %v383_v15 = vld [vmem:[#allocation2 + $0x370] sm:$0xff] }
 0x21d   :  { %3372 = vst.msk [vmem:[#allocation2 + $0x700] sm:$0xff] %vm16_vm1, %v3115_v50  ;;  %3247 = vst.msk [vmem:[#allocation2 + $0x318] sm:$0xff] %vm16_vm1, %v2990_v56  ;;  %v3125_v31 = vadd.f32 %v9464_v39, %v507_v12  ;;  %v3496_v8 = vld [vmem:[#allocation2 + $0x2c8] sm:$0xff]  ;;  %v2995_v1 = vadd.f32 %v9471_v4, %v377_v47  ;;  %v3123_v51 = vadd.f32 %v9473_v21, %v505_v29  ;;  %v511_v0 = vld [vmem:[#allocation2 + $0x770] sm:$0xff]  ;;  %v9754_v56 = vpop.f32.mrb[125].mxu1 }
 0x21e   :  { %3375 = vst.msk [vmem:[#allocation2 + $0x718] sm:$0xff] %vm16_vm1, %v3118_v40  ;;  %3245 = vst.msk [vmem:[#allocation2 + $0x308] sm:$0xff] %vm16_vm1, %v2988_v59  ;;  %v2998_v61 = vadd.f32 %v9480_v28, %v380_v10  ;;  %v3126_v45 = vadd.f32 %v9482_v46, %v508_v60  ;;  %v381_v39 = vld [vmem:[#allocation2 + $0x360] sm:$0xff]  ;;  %vm3752_vm3 = vcmp.ge.f32.partialorder %v3496_v8, 0.0  ;;  %v4008_v48 = vmul.f32 0.2, %v3496_v8 }
 0x21f   :  { %3373 = vst.msk [vmem:[#allocation2 + $0x708] sm:$0xff] %vm16_vm1, %v3116_v32  ;;  %3250 = vst.msk [vmem:[#allocation2 + $0x330] sm:$0xff] %vm16_vm1, %v2993_v14  ;;  %v3624_v57 = vld [vmem:[#allocation2 + $0x6c8] sm:$0xff]  ;;  %v3501_v20 = vld [vmem:[#allocation2 + $0x2f0] sm:$0xff]  ;;  %v2996_v4 = vadd.f32 %v9489_v42, %v378_v11  ;;  %v3124_v21 = vadd.f32 %v9491_v25, %v506_v26  ;;  %v9736_v28 = vpop.f32.mrb[124].mxu0  ;;  %v3001_v25 = vadd.f32 %v9498_v49, %v383_v15 }
 0x220   :  { %3378 = vst.msk [vmem:[#allocation2 + $0x730] sm:$0xff] %vm16_vm1, %v3121_v54  ;;  %3248 = vst.msk [vmem:[#allocation2 + $0x320] sm:$0xff] %vm16_vm1, %v2991_v33  ;;  %vm3880_vm5 = vcmp.ge.f32.partialorder %v3624_v57, 0.0  ;;  %v4136_v46 = vmul.f32 0.2, %v3624_v57  ;;  %vm3757_vm6 = vcmp.ge.f32.partialorder %v3501_v20, 0.0  ;;  %v4264_v22 = vsel %vm3752_vm3, %v3496_v8, %v4008_v48 }
 0x221   :  { %3376 = vst.msk [vmem:[#allocation2 + $0x720] sm:$0xff] %vm16_vm1, %v3119_v2  ;;  %3251 = vst.msk [vmem:[#allocation2 + $0x338] sm:$0xff] %vm16_vm1, %v2994_v17  ;;  %v4013_v35 = vmul.f32 0.2, %v3501_v20  ;;  %v3629_v37 = vld [vmem:[#allocation2 + $0x6f0] sm:$0xff]  ;;  %v3499_v42 = vld [vmem:[#allocation2 + $0x2e0] sm:$0xff]  ;;  %v3129_v16 = vadd.f32 %v9500_v36, %v511_v0  ;;  %v2999_v5 = vadd.f32 %v9507_v44, %v381_v39  ;;  %v6320_v63 = vpack.c.bf16 %v4264_v22, %v4264_v22 }
 0x222   :  { %3379 = vst.msk [vmem:[#allocation2 + $0x738] sm:$0xff] %vm16_vm1, %v3122_v52  ;;  %3249 = vst.msk [vmem:[#allocation2 + $0x328] sm:$0xff] %vm16_vm1, %v2992_v19  ;;  %v3627_v13 = vld [vmem:[#allocation2 + $0x6e0] sm:$0xff]  ;;  %v9750_v3 = vpop.f32.mrb[125].mxu0  ;;  %v4392_v24 = vsel %vm3880_vm5, %v3624_v57, %v4136_v46  ;;  %vm3885_vm7 = vcmp.ge.f32.partialorder %v3629_v37, 0.0  ;;  %v3502_v58 = vld [vmem:[#allocation2 + $0x2f8] sm:$0xff] }
 0x223   :  { %3377 = vst.msk [vmem:[#allocation2 + $0x728] sm:$0xff] %vm16_vm1, %v3120_v6  ;;  %3254 = vst.msk [vmem:[#allocation2 + $0x350] sm:$0xff] %vm16_vm1, %v2997_v7  ;;  %v4269_v55 = vsel %vm3757_vm6, %v3501_v20, %v4013_v35  ;;  %v3630_v50 = vld [vmem:[#allocation2 + $0x6f8] sm:$0xff]  ;;  %v9756_v40 = vpop.f32.mrb[126].mxu0  ;;  %v6448_v49 = vpack.c.bf16 %v4392_v24, %v4392_v24  ;;  %v4141_v30 = vmul.f32 0.2, %v3629_v37 }
 0x224   :  { %3382 = vst.msk [vmem:[#allocation2 + $0x750] sm:$0xff] %vm16_vm1, %v3125_v31  ;;  %3252 = vst.msk [vmem:[#allocation2 + $0x340] sm:$0xff] %vm16_vm1, %v2995_v1  ;;  %v6325_v36 = vpack.c.bf16 %v4269_v55, %v4269_v55  ;;  %vm3755_vm8 = vcmp.ge.f32.partialorder %v3499_v42, 0.0  ;;  %v3500_v44 = vld [vmem:[#allocation2 + $0x2e8] sm:$0xff]  ;;  %v4011_v12 = vmul.f32 0.2, %v3499_v42 }
 0x225   :  { %3380 = vst.msk [vmem:[#allocation2 + $0x740] sm:$0xff] %vm16_vm1, %v3123_v51  ;;  %3255 = vst.msk [vmem:[#allocation2 + $0x358] sm:$0xff] %vm16_vm1, %v2998_v61  ;;  %vm3883_vm9 = vcmp.ge.f32.partialorder %v3627_v13, 0.0  ;;  %v4139_v47 = vmul.f32 0.2, %v3627_v13  ;;  %vm3758_vm10 = vcmp.ge.f32.partialorder %v3502_v58, 0.0  ;;  %v4397_v59 = vsel %vm3885_vm7, %v3629_v37, %v4141_v30 }
 0x226   :  { %3383 = vst.msk [vmem:[#allocation2 + $0x758] sm:$0xff] %vm16_vm1, %v3126_v45  ;;  %3253 = vst.msk [vmem:[#allocation2 + $0x348] sm:$0xff] %vm16_vm1, %v2996_v4  ;;  %v4014_v32 = vmul.f32 0.2, %v3502_v58  ;;  %vm3886_vm11 = vcmp.ge.f32.partialorder %v3630_v50, 0.0  ;;  %v3628_v54 = vld [vmem:[#allocation2 + $0x6e8] sm:$0xff]  ;;  %v6453_v29 = vpack.c.bf16 %v4397_v59, %v4397_v59  ;;  %v4267_v10 = vsel %vm3755_vm8, %v3499_v42, %v4011_v12 }
 0x227   :  { %3381 = vst.msk [vmem:[#allocation2 + $0x748] sm:$0xff] %vm16_vm1, %v3124_v21  ;;  %3258 = vst.msk [vmem:[#allocation2 + $0x370] sm:$0xff] %vm16_vm1, %v3001_v25  ;;  %v4142_v14 = vmul.f32 0.2, %v3630_v50  ;;  %v4395_v60 = vsel %vm3883_vm9, %v3627_v13, %v4139_v47  ;;  %vm3756_vm0 = vcmp.ge.f32.partialorder %v3500_v44, 0.0  ;;  %v3505_v33 = vld [vmem:[#allocation2 + $0x310] sm:$0xff]  ;;  %v6323_v11 = vpack.c.bf16 %v4267_v10, %v4267_v10 }
 0x228   :  { %3386 = vst.msk [vmem:[#allocation2 + $0x770] sm:$0xff] %vm16_vm1, %v3129_v16  ;;  %3256 = vst.msk [vmem:[#allocation2 + $0x360] sm:$0xff] %vm16_vm1, %v2999_v5  ;;  %v3633_v2 = vld [vmem:[#allocation2 + $0x710] sm:$0xff]  ;;  %v9775_v17 = vpop.f32.mrb[126].mxu1  ;;  %v9777_v52 = vpop.f32.mrb[127].mxu0  ;;  %v6451_v26 = vpack.c.bf16 %v4395_v60, %v4395_v60  ;;  %v4270_v19 = vsel %vm3758_vm10, %v3502_v58, %v4014_v32  ;;  %v3503_v7 = vld [vmem:[#allocation2 + $0x300] sm:$0xff] }
 0x229   :  { %5545 = vst.msk [vmem:[%s10189_s2 + $0x164] sm:$0xf] %vm5455_vm4, %v6320_v63  ;;  %5673 = vst.msk [vmem:[%s10189_s2 + $0x364] sm:$0xf] %vm5455_vm4, %v6448_v49  ;;  %v4398_v6 = vsel %vm3886_vm11, %v3630_v50, %v4142_v14  ;;  %v9780_v31 = vpop.f32.mrb[127].mxu1  ;;  %v6326_v15 = vpack.c.bf16 %v4270_v19, %v4270_v19  ;;  %vm3884_vm12 = vcmp.ge.f32.partialorder %v3628_v54, 0.0 }
 0x22a   :  { %5550 = vst.msk [vmem:[%s10189_s2 + $0x178] sm:$0xf] %vm5455_vm4, %v6325_v36  ;;  %5678 = vst.msk [vmem:[%s10189_s2 + $0x378] sm:$0xf] %vm5455_vm4, %v6453_v29  ;;  %v6454_v8 = vpack.c.bf16 %v4398_v6, %v4398_v6  ;;  %v4012_v1 = vmul.f32 0.2, %v3500_v44 }
 0x22b   :  { %v3631_v51 = vld [vmem:[#allocation2 + $0x700] sm:$0xff]  ;;  %5548 = vst.msk [vmem:[%s10189_s2 + $0x170] sm:$0xf] %vm5455_vm4, %v6323_v11  ;;  %5676 = vst.msk [vmem:[%s10189_s2 + $0x370] sm:$0xf] %vm5455_vm4, %v6451_v26  ;;  %vm3761_vm13 = vcmp.ge.f32.partialorder %v3505_v33, 0.0 }
 0x22c   :  { %v4140_v61 = vmul.f32 0.2, %v3628_v54  ;;  %v4017_v45 = vmul.f32 0.2, %v3505_v33  ;;  %vm3889_vm14 = vcmp.ge.f32.partialorder %v3633_v2, 0.0  ;;  %v4268_v0 = vsel %vm3756_vm0, %v3500_v44, %v4012_v1  ;;  %v3506_v57 = vld [vmem:[#allocation2 + $0x318] sm:$0xff] }
 0x22d   :  { %5551 = vst.msk [vmem:[%s10189_s2 + $0x17c] sm:$0xf] %vm5455_vm4, %v6326_v15  ;;  %5679 = vst.msk [vmem:[%s10189_s2 + $0x37c] sm:$0xf] %vm5455_vm4, %v6454_v8  ;;  %v4145_v39 = vmul.f32 0.2, %v3633_v2  ;;  %v6324_v20 = vpack.c.bf16 %v4268_v0, %v4268_v0 }
 0x22e   :  { %vm3759_vm15 = vcmp.ge.f32.partialorder %v3503_v7, 0.0  ;;  %v4015_v48 = vmul.f32 0.2, %v3503_v7  ;;  %v4396_v4 = vsel %vm3884_vm12, %v3628_v54, %v4140_v61  ;;  %v4273_v21 = vsel %vm3761_vm13, %v3505_v33, %v4017_v45  ;;  %v3634_v46 = vld [vmem:[#allocation2 + $0x718] sm:$0xff]  ;;  %v3504_v35 = vld [vmem:[#allocation2 + $0x308] sm:$0xff]  ;;  %v3509_v24 = vld [vmem:[#allocation2 + $0x330] sm:$0xff] }
 0x22f   :  { %vm3887_vm2 = vcmp.ge.f32.partialorder %v3631_v51, 0.0  ;;  %v6452_v22 = vpack.c.bf16 %v4396_v4, %v4396_v4  ;;  %v6329_v37 = vpack.c.bf16 %v4273_v21, %v4273_v21  ;;  %v4401_v42 = vsel %vm3889_vm14, %v3633_v2, %v4145_v39  ;;  %v3632_v25 = vld [vmem:[#allocation2 + $0x708] sm:$0xff]  ;;  %5549 = vst.msk [vmem:[%s10189_s2 + $0x174] sm:$0xf] %vm5455_vm4, %v6324_v20  ;;  %v3637_v30 = vld [vmem:[#allocation2 + $0x730] sm:$0xff]  ;;  %v3507_v59 = vld [vmem:[#allocation2 + $0x320] sm:$0xff] }
 0x230   :  { %v4271_v13 = vsel %vm3759_vm15, %v3503_v7, %v4015_v48  ;;  %v6457_v16 = vpack.c.bf16 %v4401_v42, %v4401_v42  ;;  %v4143_v63 = vmul.f32 0.2, %v3631_v51  ;;  %vm3762_vm3 = vcmp.ge.f32.partialorder %v3506_v57, 0.0  ;;  %v3635_v32 = vld [vmem:[#allocation2 + $0x720] sm:$0xff]  ;;  %v3510_v60 = vld [vmem:[#allocation2 + $0x338] sm:$0xff]  ;;  %v3508_v1 = vld [vmem:[#allocation2 + $0x328] sm:$0xff] }
 0x231   :  { %v6327_v5 = vpack.c.bf16 %v4271_v13, %v4271_v13  ;;  %5677 = vst.msk [vmem:[%s10189_s2 + $0x374] sm:$0xf] %vm5455_vm4, %v6452_v22  ;;  %5554 = vst.msk [vmem:[%s10189_s2 + $0x188] sm:$0xf] %vm5455_vm4, %v6329_v37  ;;  %v4018_v55 = vmul.f32 0.2, %v3506_v57 }
 0x232   :  { %vm3890_vm5 = vcmp.ge.f32.partialorder %v3634_v46, 0.0  ;;  %v4146_v58 = vmul.f32 0.2, %v3634_v46  ;;  %vm3760_vm6 = vcmp.ge.f32.partialorder %v3504_v35, 0.0  ;;  %5682 = vst.msk [vmem:[%s10189_s2 + $0x388] sm:$0xf] %vm5455_vm4, %v6457_v16  ;;  %v4399_v50 = vsel %vm3887_vm2, %v3631_v51, %v4143_v63 }
 0x233   :  { %5552 = vst.msk [vmem:[%s10189_s2 + $0x180] sm:$0xf] %vm5455_vm4, %v6327_v5  ;;  %v4016_v49 = vmul.f32 0.2, %v3504_v35  ;;  %vm3888_vm7 = vcmp.ge.f32.partialorder %v3632_v25, 0.0  ;;  %v6455_v44 = vpack.c.bf16 %v4399_v50, %v4399_v50  ;;  %v4274_v12 = vsel %vm3762_vm3, %v3506_v57, %v4018_v55  ;;  %v3638_v26 = vld [vmem:[#allocation2 + $0x738] sm:$0xff] }
 0x234   :  { %v4144_v36 = vmul.f32 0.2, %v3632_v25  ;;  %v4402_v47 = vsel %vm3890_vm5, %v3634_v46, %v4146_v58  ;;  %vm3765_vm8 = vcmp.ge.f32.partialorder %v3509_v24, 0.0  ;;  %v6330_v14 = vpack.c.bf16 %v4274_v12, %v4274_v12  ;;  %v3636_v0 = vld [vmem:[#allocation2 + $0x728] sm:$0xff]  ;;  %v3513_v39 = vld [vmem:[#allocation2 + $0x350] sm:$0xff]  ;;  %v3511_v37 = vld [vmem:[#allocation2 + $0x340] sm:$0xff] }
 0x235   :  { %v6458_v54 = vpack.c.bf16 %v4402_v47, %v4402_v47  ;;  %v4272_v29 = vsel %vm3760_vm6, %v3504_v35, %v4016_v49  ;;  %5680 = vst.msk [vmem:[%s10189_s2 + $0x380] sm:$0xf] %vm5455_vm4, %v6455_v44  ;;  %v4021_v11 = vmul.f32 0.2, %v3509_v24  ;;  %vm3893_vm9 = vcmp.ge.f32.partialorder %v3637_v30, 0.0  ;;  %v3641_v21 = vld [vmem:[#allocation2 + $0x750] sm:$0xff] }
 0x236   :  { %v4400_v10 = vsel %vm3888_vm7, %v3632_v25, %v4144_v36  ;;  %v6328_v33 = vpack.c.bf16 %v4272_v29, %v4272_v29  ;;  %5555 = vst.msk [vmem:[%s10189_s2 + $0x18c] sm:$0xf] %vm5455_vm4, %v6330_v14  ;;  %v4149_v19 = vmul.f32 0.2, %v3637_v30  ;;  %vm3763_vm10 = vcmp.ge.f32.partialorder %v3507_v59, 0.0  ;;  %v3639_v63 = vld [vmem:[#allocation2 + $0x740] sm:$0xff] }
 0x237   :  { %v6456_v2 = vpack.c.bf16 %v4400_v10, %v4400_v10  ;;  %5683 = vst.msk [vmem:[%s10189_s2 + $0x38c] sm:$0xf] %vm5455_vm4, %v6458_v54  ;;  %v4019_v6 = vmul.f32 0.2, %v3507_v59  ;;  %vm3891_vm11 = vcmp.ge.f32.partialorder %v3635_v32, 0.0  ;;  %v4277_v7 = vsel %vm3765_vm8, %v3509_v24, %v4021_v11  ;;  %v3514_v50 = vld [vmem:[#allocation2 + $0x358] sm:$0xff] }
 0x238   :  { %5553 = vst.msk [vmem:[%s10189_s2 + $0x184] sm:$0xf] %vm5455_vm4, %v6328_v33  ;;  %v4147_v15 = vmul.f32 0.2, %v3635_v32  ;;  %vm3766_vm0 = vcmp.ge.f32.partialorder %v3510_v60, 0.0  ;;  %v6333_v51 = vpack.c.bf16 %v4277_v7, %v4277_v7  ;;  %v4405_v61 = vsel %vm3893_vm9, %v3637_v30, %v4149_v19  ;;  %v3642_v49 = vld [vmem:[#allocation2 + $0x758] sm:$0xff] }
 0x239   :  { %5681 = vst.msk [vmem:[%s10189_s2 + $0x384] sm:$0xf] %vm5455_vm4, %v6456_v2  ;;  %v4022_v8 = vmul.f32 0.2, %v3510_v60  ;;  %v4275_v45 = vsel %vm3763_vm10, %v3507_v59, %v4019_v6  ;;  %vm3894_vm12 = vcmp.ge.f32.partialorder %v3638_v26, 0.0  ;;  %v6461_v48 = vpack.c.bf16 %v4405_v61, %v4405_v61  ;;  %v3512_v47 = vld [vmem:[#allocation2 + $0x348] sm:$0xff] }
 0x23a   :  { %v6331_v57 = vpack.c.bf16 %v4275_v45, %v4275_v45  ;;  %v4403_v20 = vsel %vm3891_vm11, %v3635_v32, %v4147_v15  ;;  %5558 = vst.msk [vmem:[%s10189_s2 + $0x198] sm:$0xf] %vm5455_vm4, %v6333_v51  ;;  %v4150_v22 = vmul.f32 0.2, %v3638_v26  ;;  %vm3764_vm13 = vcmp.ge.f32.partialorder %v3508_v1, 0.0  ;;  %v3640_v54 = vld [vmem:[#allocation2 + $0x748] sm:$0xff] }
 0x23b   :  { %v4278_v4 = vsel %vm3766_vm0, %v3510_v60, %v4022_v8  ;;  %v6459_v46 = vpack.c.bf16 %v4403_v20, %v4403_v20  ;;  %5686 = vst.msk [vmem:[%s10189_s2 + $0x398] sm:$0xf] %vm5455_vm4, %v6461_v48  ;;  %v4020_v42 = vmul.f32 0.2, %v3508_v1  ;;  %vm3892_vm14 = vcmp.ge.f32.partialorder %v3636_v0, 0.0  ;;  %v3517_v11 = vld [vmem:[#allocation2 + $0x370] sm:$0xff] }
 0x23c   :  { %v6334_v35 = vpack.c.bf16 %v4278_v4, %v4278_v4  ;;  %5556 = vst.msk [vmem:[%s10189_s2 + $0x190] sm:$0xf] %vm5455_vm4, %v6331_v57  ;;  %v4148_v13 = vmul.f32 0.2, %v3636_v0  ;;  %vm3769_vm15 = vcmp.ge.f32.partialorder %v3513_v39, 0.0  ;;  %v4406_v25 = vsel %vm3894_vm12, %v3638_v26, %v4150_v22  ;;  %v3645_v7 = vld [vmem:[#allocation2 + $0x770] sm:$0xff] }
 0x23d   :  { %5684 = vst.msk [vmem:[%s10189_s2 + $0x390] sm:$0xf] %vm5455_vm4, %v6459_v46  ;;  %v4025_v16 = vmul.f32 0.2, %v3513_v39  ;;  %vm3897_vm2 = vcmp.ge.f32.partialorder %v3641_v21, 0.0  ;;  %v6462_v24 = vpack.c.bf16 %v4406_v25, %v4406_v25  ;;  %v4276_v55 = vsel %vm3764_vm13, %v3508_v1, %v4020_v42  ;;  %v3515_v15 = vld [vmem:[#allocation2 + $0x360] sm:$0xff] }
 0x23e   :  { %5559 = vst.msk [vmem:[%s10189_s2 + $0x19c] sm:$0xf] %vm5455_vm4, %v6334_v35  ;;  %v4153_v5 = vmul.f32 0.2, %v3641_v21  ;;  %v4404_v58 = vsel %vm3892_vm14, %v3636_v0, %v4148_v13  ;;  %vm3767_vm3 = vcmp.ge.f32.partialorder %v3511_v37, 0.0  ;;  %v6332_v36 = vpack.c.bf16 %v4276_v55, %v4276_v55  ;;  %v509_v8 = vld [vmem:[#allocation2 + $0x760] sm:$0xff] }
 0x23f   :  { %v6460_v30 = vpack.c.bf16 %v4404_v58, %v4404_v58  ;;  %v4281_v44 = vsel %vm3769_vm15, %v3513_v39, %v4025_v16  ;;  %5687 = vst.msk [vmem:[%s10189_s2 + $0x39c] sm:$0xf] %vm5455_vm4, %v6462_v24  ;;  %v4023_v14 = vmul.f32 0.2, %v3511_v37  ;;  %vm3895_vm5 = vcmp.ge.f32.partialorder %v3639_v63, 0.0  ;;  %v384_v0 = vld [vmem:[#allocation2 + $0x378] sm:$0xff] }
 0x240   :  { %v4409_v12 = vsel %vm3897_vm2, %v3641_v21, %v4153_v5  ;;  %v6337_v59 = vpack.c.bf16 %v4281_v44, %v4281_v44  ;;  %5557 = vst.msk [vmem:[%s10189_s2 + $0x194] sm:$0xf] %vm5455_vm4, %v6332_v36  ;;  %v4151_v29 = vmul.f32 0.2, %v3639_v63  ;;  %vm3770_vm6 = vcmp.ge.f32.partialorder %v3514_v50, 0.0  ;;  %v512_v39 = vld [vmem:[#allocation2 + $0x778] sm:$0xff] }
 0x241   :  { %v6465_v32 = vpack.c.bf16 %v4409_v12, %v4409_v12  ;;  %5685 = vst.msk [vmem:[%s10189_s2 + $0x394] sm:$0xf] %vm5455_vm4, %v6460_v30  ;;  %v4026_v10 = vmul.f32 0.2, %v3514_v50  ;;  %vm3898_vm7 = vcmp.ge.f32.partialorder %v3642_v49, 0.0  ;;  %v4279_v60 = vsel %vm3767_vm3, %v3511_v37, %v4023_v14  ;;  %v382_v48 = vld [vmem:[#allocation2 + $0x368] sm:$0xff] }
 0x242   :  { %5562 = vst.msk [vmem:[%s10189_s2 + $0x1a8] sm:$0xf] %vm5455_vm4, %v6337_v59  ;;  %v4154_v33 = vmul.f32 0.2, %v3642_v49  ;;  %vm3768_vm8 = vcmp.ge.f32.partialorder %v3512_v47, 0.0  ;;  %v6335_v26 = vpack.c.bf16 %v4279_v60, %v4279_v60  ;;  %v4407_v19 = vsel %vm3895_vm5, %v3639_v63, %v4151_v29  ;;  %v510_v21 = vld [vmem:[#allocation2 + $0x768] sm:$0xff] }
 0x243   :  { %5690 = vst.msk [vmem:[%s10189_s2 + $0x3a8] sm:$0xf] %vm5455_vm4, %v6465_v32  ;;  %v4024_v2 = vmul.f32 0.2, %v3512_v47  ;;  %v4282_v6 = vsel %vm3770_vm6, %v3514_v50, %v4026_v10  ;;  %vm3896_vm9 = vcmp.ge.f32.partialorder %v3640_v54, 0.0  ;;  %v6463_v1 = vpack.c.bf16 %v4407_v19, %v4407_v19  ;;  %v387_v46 = vld [vmem:[#allocation2 + $0x390] sm:$0xff] }
 0x244   :  { %v6338_v51 = vpack.c.bf16 %v4282_v6, %v4282_v6  ;;  %v4410_v61 = vsel %vm3898_vm7, %v3642_v49, %v4154_v33  ;;  %5560 = vst.msk [vmem:[%s10189_s2 + $0x1a0] sm:$0xf] %vm5455_vm4, %v6335_v26  ;;  %v4152_v4 = vmul.f32 0.2, %v3640_v54  ;;  %vm3773_vm10 = vcmp.ge.f32.partialorder %v3517_v11, 0.0  ;;  %v515_v35 = vld [vmem:[#allocation2 + $0x790] sm:$0xff] }
 0x245   :  { %v4280_v45 = vsel %vm3768_vm8, %v3512_v47, %v4024_v2  ;;  %v6466_v57 = vpack.c.bf16 %v4410_v61, %v4410_v61  ;;  %5688 = vst.msk [vmem:[%s10189_s2 + $0x3a0] sm:$0xf] %vm5455_vm4, %v6463_v1  ;;  %v4029_v22 = vmul.f32 0.2, %v3517_v11  ;;  %vm3901_vm11 = vcmp.ge.f32.partialorder %v3645_v7, 0.0  ;;  %v385_v42 = vld [vmem:[#allocation2 + $0x380] sm:$0xff] }
 0x246   :  { %v6336_v20 = vpack.c.bf16 %v4280_v45, %v4280_v45  ;;  %5563 = vst.msk [vmem:[%s10189_s2 + $0x1ac] sm:$0xf] %vm5455_vm4, %v6338_v51  ;;  %v4157_v37 = vmul.f32 0.2, %v3645_v7  ;;  %vm3771_vm0 = vcmp.ge.f32.partialorder %v3515_v15, 0.0  ;;  %v513_v13 = vld [vmem:[#allocation2 + $0x780] sm:$0xff]  ;;  %v4408_v16 = vsel %vm3896_vm9, %v3640_v54, %v4152_v4 }
 0x247   :  { %v388_v25 = vld [vmem:[#allocation2 + $0x398] sm:$0xff]  ;;  %5691 = vst.msk [vmem:[%s10189_s2 + $0x3ac] sm:$0xf] %vm5455_vm4, %v6466_v57  ;;  %v4027_v5 = vmul.f32 0.2, %v3515_v15  ;;  %v3127_v63 = vadd.f32 %v9509_v53, %v509_v8  ;;  %v3002_v24 = vadd.f32 %v9516_v43, %v384_v0  ;;  %v386_v58 = vld [vmem:[#allocation2 + $0x388] sm:$0xff]  ;;  %v6464_v49 = vpack.c.bf16 %v4408_v16, %v4408_v16 }
 0x248   :  { %5561 = vst.msk [vmem:[%s10189_s2 + $0x1a4] sm:$0xf] %vm5455_vm4, %v6336_v20  ;;  %v516_v55 = vld [vmem:[#allocation2 + $0x798] sm:$0xff]  ;;  %v514_v50 = vld [vmem:[#allocation2 + $0x788] sm:$0xff]  ;;  %v4285_v36 = vsel %vm3773_vm10, %v3517_v11, %v4029_v22  ;;  %v4413_v30 = vsel %vm3901_vm11, %v3645_v7, %v4157_v37  ;;  %v3130_v44 = vadd.f32 %v9518_v18, %v512_v39  ;;  %v391_v12 = vld [vmem:[#allocation2 + $0x3b0] sm:$0xff]  ;;  %v3000_v53 = vadd.f32 %v9525_v27, %v382_v48 }
 0x249   :  { %v519_v47 = vld [vmem:[#allocation2 + $0x7b0] sm:$0xff]  ;;  %v389_v59 = vld [vmem:[#allocation2 + $0x3a0] sm:$0xff]  ;;  %v6341_v32 = vpack.c.bf16 %v4285_v36, %v4285_v36  ;;  %v6469_v14 = vpack.c.bf16 %v4413_v30, %v4413_v30  ;;  %v4283_v54 = vsel %vm3771_vm0, %v3515_v15, %v4027_v5  ;;  %3384 = vst.msk [vmem:[#allocation2 + $0x760] sm:$0xff] %vm16_vm1, %v3127_v63  ;;  %3259 = vst.msk [vmem:[#allocation2 + $0x378] sm:$0xff] %vm16_vm1, %v3002_v24 }
 0x24a   :  { %v517_v43 = vld [vmem:[#allocation2 + $0x7a0] sm:$0xff]  ;;  %v392_v29 = vld [vmem:[#allocation2 + $0x3b8] sm:$0xff]  ;;  %5689 = vst.msk [vmem:[%s10189_s2 + $0x3a4] sm:$0xf] %vm5455_vm4, %v6464_v49  ;;  %v6339_v18 = vpack.c.bf16 %v4283_v54, %v4283_v54  ;;  %v10254_v60 = vld [vmem:[#allocation8_spill] sm:$0xff] }
 0x24b   :  { %v520_v10 = vld [vmem:[#allocation2 + $0x7b8] sm:$0xff]  ;;  %3387 = vst.msk [vmem:[#allocation2 + $0x778] sm:$0xff] %vm16_vm1, %v3130_v44  ;;  %v3128_v33 = vadd.f32 %v10254_v60, %v510_v21  ;;  %v10255_v2 = vld [vmem:[#allocation9_spill] sm:$0xff]  ;;  %v390_v6 = vld [vmem:[#allocation2 + $0x3a8] sm:$0xff] }
 0x24c   :  { %v3005_v11 = vadd.f32 %v10255_v2, %v387_v46  ;;  %v10256_v26 = vld [vmem:[#allocation10_spill] sm:$0xff]  ;;  %v518_v7 = vld [vmem:[#allocation2 + $0x7a8] sm:$0xff]  ;;  %v395_v27 = vld [vmem:[#allocation2 + $0x3d0] sm:$0xff]  ;;  %5566 = vst.msk [vmem:[%s10189_s2 + $0x1b8] sm:$0xf] %vm5455_vm4, %v6341_v32 }
 0x24d   :  { %v3133_v19 = vadd.f32 %v10256_v26, %v515_v35  ;;  %5694 = vst.msk [vmem:[%s10189_s2 + $0x3b8] sm:$0xf] %vm5455_vm4, %v6469_v14  ;;  %v10257_v15 = vld [vmem:[#allocation3_spill] sm:$0xff]  ;;  %v10258_v1 = vld [vmem:[#allocation4_spill] sm:$0xff]  ;;  %v10260_v0 = vld [vmem:[#allocation21_spill] sm:$0xff] }
 0x24e   :  { %3257 = vst.msk [vmem:[#allocation2 + $0x368] sm:$0xff] %vm16_vm1, %v3000_v53  ;;  %v3003_v8 = vadd.f32 %v10257_v15, %v385_v42  ;;  %v3131_v51 = vadd.f32 %v10258_v1, %v513_v13  ;;  %v10259_v61 = vld [vmem:[#allocation20_spill] sm:$0xff]  ;;  %v3134_v39 = vadd.f32 %v10260_v0, %v516_v55  ;;  %v523_v48 = vld [vmem:[#allocation2 + $0x7d0] sm:$0xff]  ;;  %v393_v57 = vld [vmem:[#allocation2 + $0x3c0] sm:$0xff] }
 0x24f   :  { %v3006_v45 = vadd.f32 %v10259_v61, %v388_v25  ;;  %v521_v20 = vld [vmem:[#allocation2 + $0x7c0] sm:$0xff]  ;;  %5564 = vst.msk [vmem:[%s10189_s2 + $0x1b0] sm:$0xf] %vm5455_vm4, %v6339_v18  ;;  %v10261_v4 = vld [vmem:[#allocation22_spill] sm:$0xff]  ;;  %v10263_v22 = vld [vmem:[#allocation24_spill] sm:$0xff] }
 0x250   :  { %3385 = vst.msk [vmem:[#allocation2 + $0x768] sm:$0xff] %vm16_vm1, %v3128_v33  ;;  %3262 = vst.msk [vmem:[#allocation2 + $0x390] sm:$0xff] %vm16_vm1, %v3005_v11  ;;  %v3004_v21 = vadd.f32 %v10261_v4, %v386_v58  ;;  %v10262_v46 = vld [vmem:[#allocation23_spill] sm:$0xff]  ;;  %v3009_v37 = vadd.f32 %v10263_v22, %v391_v12  ;;  %v10264_v42 = vld [vmem:[#allocation25_spill] sm:$0xff]  ;;  %v3139_v2 = vadd.f32 %v9677_v23, %v521_v20 }
 0x251   :  { %3390 = vst.msk [vmem:[#allocation2 + $0x790] sm:$0xff] %vm16_vm1, %v3133_v19  ;;  %v3132_v35 = vadd.f32 %v10262_v46, %v514_v50  ;;  %v3137_v13 = vadd.f32 %v10264_v42, %v519_v47  ;;  %v396_v25 = vld [vmem:[#allocation2 + $0x3d8] sm:$0xff]  ;;  %v394_v5 = vld [vmem:[#allocation2 + $0x3c8] sm:$0xff]  ;;  %3260 = vst.msk [vmem:[#allocation2 + $0x380] sm:$0xff] %vm16_vm1, %v3003_v8 }
 0x252   :  { %v524_v16 = vld [vmem:[#allocation2 + $0x7d8] sm:$0xff]  ;;  %3388 = vst.msk [vmem:[#allocation2 + $0x780] sm:$0xff] %vm16_vm1, %v3131_v51  ;;  %3263 = vst.msk [vmem:[#allocation2 + $0x398] sm:$0xff] %vm16_vm1, %v3006_v45  ;;  %v10266_v55 = vld [vmem:[#allocation27_spill] sm:$0xff]  ;;  %v3014_v11 = vadd.f32 %v9679_v41, %v396_v25  ;;  %v3012_v8 = vadd.f32 %v9694_v9, %v394_v5 }
 0x253   :  { %3391 = vst.msk [vmem:[#allocation2 + $0x798] sm:$0xff] %vm16_vm1, %v3134_v39  ;;  %v10265_v63 = vld [vmem:[#allocation26_spill] sm:$0xff]  ;;  %v3135_v58 = vadd.f32 %v10266_v55, %v517_v43  ;;  %v10267_v50 = vld [vmem:[#allocation28_spill] sm:$0xff]  ;;  %v10268_v36 = vld [vmem:[#allocation29_spill] sm:$0xff]  ;;  %v3142_v26 = vadd.f32 %v9692_v34, %v524_v16 }
 0x254   :  { %v3007_v24 = vadd.f32 %v10265_v63, %v389_v59  ;;  %v3010_v49 = vadd.f32 %v10267_v50, %v392_v29  ;;  %v3138_v30 = vadd.f32 %v10268_v36, %v520_v10  ;;  %v522_v44 = vld [vmem:[#allocation2 + $0x7c8] sm:$0xff]  ;;  %v399_v12 = vld [vmem:[#allocation2 + $0x3f0] sm:$0xff]  ;;  %3261 = vst.msk [vmem:[#allocation2 + $0x388] sm:$0xff] %vm16_vm1, %v3004_v21  ;;  %3389 = vst.msk [vmem:[#allocation2 + $0x788] sm:$0xff] %vm16_vm1, %v3132_v35 }
 0x255   :  { %v527_v47 = vld [vmem:[#allocation2 + $0x7f0] sm:$0xff]  ;;  %3266 = vst.msk [vmem:[#allocation2 + $0x3b0] sm:$0xff] %vm16_vm1, %v3009_v37  ;;  %3394 = vst.msk [vmem:[#allocation2 + $0x7b0] sm:$0xff] %vm16_vm1, %v3137_v13  ;;  %v10269_v32 = vld [vmem:[#allocation30_spill] sm:$0xff]  ;;  %v3140_v23 = vadd.f32 %v9704_v62, %v522_v44  ;;  %v3017_v41 = vadd.f32 %v9736_v28, %v399_v12 }
 0x256   :  { %v3008_v14 = vadd.f32 %v10269_v32, %v390_v6  ;;  %v10270_v59 = vld [vmem:[#allocation31_spill] sm:$0xff]  ;;  %v10271_v53 = vld [vmem:[#allocation5_spill] sm:$0xff]  ;;  %v10272_v29 = vld [vmem:[#allocation6_spill] sm:$0xff]  ;;  %3264 = vst.msk [vmem:[#allocation2 + $0x3a0] sm:$0xff] %vm16_vm1, %v3007_v24  ;;  %v3145_v34 = vadd.f32 %v9748_v38, %v527_v47 }
 0x257   :  { %v3136_v54 = vadd.f32 %v10270_v59, %v518_v7  ;;  %v3013_v43 = vadd.f32 %v10271_v53, %v395_v27  ;;  %v3141_v18 = vadd.f32 %v10272_v29, %v523_v48  ;;  %v397_v10 = vld [vmem:[#allocation2 + $0x3e0] sm:$0xff]  ;;  %3392 = vst.msk [vmem:[#allocation2 + $0x7a0] sm:$0xff] %vm16_vm1, %v3135_v58  ;;  %3267 = vst.msk [vmem:[#allocation2 + $0x3b8] sm:$0xff] %vm16_vm1, %v3010_v49  ;;  %v400_v6 = vld [vmem:[#allocation2 + $0x3f8] sm:$0xff] }
 0x258   :  { %3395 = vst.msk [vmem:[#allocation2 + $0x7b8] sm:$0xff] %vm16_vm1, %v3138_v30  ;;  %v10273_v60 = vld [vmem:[#allocation11_spill] sm:$0xff]  ;;  %v528_v7 = vld [vmem:[#allocation2 + $0x7f8] sm:$0xff]  ;;  %3265 = vst.msk [vmem:[#allocation2 + $0x3a8] sm:$0xff] %vm16_vm1, %v3008_v14  ;;  %v3015_v62 = vadd.f32 %v9750_v3, %v397_v10  ;;  %v3018_v38 = vadd.f32 %v9756_v40, %v400_v6 }
 0x259   :  { %v3011_v33 = vadd.f32 %v10273_v60, %v393_v57  ;;  %v525_v19 = vld [vmem:[#allocation2 + $0x7e0] sm:$0xff]  ;;  %v3518_v15 = vld [vmem:[#allocation2 + $0x378] sm:$0xff]  ;;  %3393 = vst.msk [vmem:[#allocation2 + $0x7a8] sm:$0xff] %vm16_vm1, %v3136_v54  ;;  %3270 = vst.msk [vmem:[#allocation2 + $0x3d0] sm:$0xff] %vm16_vm1, %v3013_v43  ;;  %v3146_v45 = vadd.f32 %v9775_v17, %v528_v7 }
 0x25a   :  { %v3643_v27 = vld [vmem:[#allocation2 + $0x760] sm:$0xff]  ;;  %3398 = vst.msk [vmem:[#allocation2 + $0x7d0] sm:$0xff] %vm16_vm1, %v3141_v18  ;;  %vm3774_vm13 = vcmp.ge.f32.partialorder %v3518_v15, 0.0  ;;  %v4030_v51 = vmul.f32 0.2, %v3518_v15  ;;  %3396 = vst.msk [vmem:[#allocation2 + $0x7c0] sm:$0xff] %vm16_vm1, %v3139_v2  ;;  %v3143_v28 = vadd.f32 %v9754_v56, %v525_v19 }
 0x25b   :  { %vm3899_vm12 = vcmp.ge.f32.partialorder %v3643_v27, 0.0  ;;  %v4155_v1 = vmul.f32 0.2, %v3643_v27  ;;  %3268 = vst.msk [vmem:[#allocation2 + $0x3c0] sm:$0xff] %vm16_vm1, %v3011_v33  ;;  %3271 = vst.msk [vmem:[#allocation2 + $0x3d8] sm:$0xff] %vm16_vm1, %v3014_v11  ;;  %v3646_v61 = vld [vmem:[#allocation2 + $0x778] sm:$0xff] }
 0x25c   :  { %3399 = vst.msk [vmem:[#allocation2 + $0x7d8] sm:$0xff] %vm16_vm1, %v3142_v26  ;;  %v3516_v9 = vld [vmem:[#allocation2 + $0x368] sm:$0xff]  ;;  %3269 = vst.msk [vmem:[#allocation2 + $0x3c8] sm:$0xff] %vm16_vm1, %v3012_v8  ;;  %v4286_v39 = vsel %vm3774_vm13, %v3518_v15, %v4030_v51  ;;  %vm3902_vm14 = vcmp.ge.f32.partialorder %v3646_v61, 0.0  ;;  %v4158_v48 = vmul.f32 0.2, %v3646_v61 }
 0x25d   :  { %3397 = vst.msk [vmem:[#allocation2 + $0x7c8] sm:$0xff] %vm16_vm1, %v3140_v23  ;;  %3274 = vst.msk [vmem:[#allocation2 + $0x3f0] sm:$0xff] %vm16_vm1, %v3017_v41  ;;  %v4411_v0 = vsel %vm3899_vm12, %v3643_v27, %v4155_v1  ;;  %v3644_v57 = vld [vmem:[#allocation2 + $0x768] sm:$0xff]  ;;  %v3521_v20 = vld [vmem:[#allocation2 + $0x390] sm:$0xff]  ;;  %v6342_v46 = vpack.c.bf16 %v4286_v39, %v4286_v39  ;;  %vm3772_vm15 = vcmp.ge.f32.partialorder %v3516_v9, 0.0 }
 0x25e   :  { %3402 = vst.msk [vmem:[#allocation2 + $0x7f0] sm:$0xff] %vm16_vm1, %v3145_v34  ;;  %v3649_v4 = vld [vmem:[#allocation2 + $0x790] sm:$0xff]  ;;  %v6467_v21 = vpack.c.bf16 %v4411_v0, %v4411_v0  ;;  %v4028_v35 = vmul.f32 0.2, %v3516_v9  ;;  %v3519_v3 = vld [vmem:[#allocation2 + $0x380] sm:$0xff]  ;;  %3272 = vst.msk [vmem:[#allocation2 + $0x3e0] sm:$0xff] %vm16_vm1, %v3015_v62  ;;  %v4414_v56 = vsel %vm3902_vm14, %v3646_v61, %v4158_v48 }
 0x25f   :  { %3400 = vst.msk [vmem:[#allocation2 + $0x7e0] sm:$0xff] %vm16_vm1, %v3143_v28  ;;  %3275 = vst.msk [vmem:[#allocation2 + $0x3f8] sm:$0xff] %vm16_vm1, %v3018_v38  ;;  %vm3900_vm2 = vcmp.ge.f32.partialorder %v3644_v57, 0.0  ;;  %v4156_v40 = vmul.f32 0.2, %v3644_v57  ;;  %vm3777_vm3 = vcmp.ge.f32.partialorder %v3521_v20, 0.0  ;;  %v6470_v22 = vpack.c.bf16 %v4414_v56, %v4414_v56 }
 0x260   :  { %3403 = vst.msk [vmem:[#allocation2 + $0x7f8] sm:$0xff] %vm16_vm1, %v3146_v45  ;;  %v3647_v17 = vld [vmem:[#allocation2 + $0x780] sm:$0xff]  ;;  %v4284_v37 = vsel %vm3772_vm15, %v3516_v9, %v4028_v35  ;;  %v4033_v42 = vmul.f32 0.2, %v3521_v20  ;;  %vm3905_vm5 = vcmp.ge.f32.partialorder %v3649_v4, 0.0  ;;  %v3522_v13 = vld [vmem:[#allocation2 + $0x398] sm:$0xff] }
 0x261   :  { %5692 = vst.msk [vmem:[%s10189_s2 + $0x3b0] sm:$0xf] %vm5455_vm4, %v6467_v21  ;;  %5567 = vst.msk [vmem:[%s10189_s2 + $0x1bc] sm:$0xf] %vm5455_vm4, %v6342_v46  ;;  %v6340_v25 = vpack.c.bf16 %v4284_v37, %v4284_v37  ;;  %v4412_v16 = vsel %vm3900_vm2, %v3644_v57, %v4156_v40  ;;  %v4161_v5 = vmul.f32 0.2, %v3649_v4 }
 0x262   :  { %vm3775_vm6 = vcmp.ge.f32.partialorder %v3519_v3, 0.0  ;;  %v3650_v63 = vld [vmem:[#allocation2 + $0x798] sm:$0xff]  ;;  %5695 = vst.msk [vmem:[%s10189_s2 + $0x3bc] sm:$0xf] %vm5455_vm4, %v6470_v22  ;;  %v6468_v24 = vpack.c.bf16 %v4412_v16, %v4412_v16  ;;  %v4289_v55 = vsel %vm3777_vm3, %v3521_v20, %v4033_v42  ;;  %v4031_v58 = vmul.f32 0.2, %v3519_v3 }
 0x263   :  { %vm3903_vm7 = vcmp.ge.f32.partialorder %v3647_v17, 0.0  ;;  %v3520_v50 = vld [vmem:[#allocation2 + $0x388] sm:$0xff]  ;;  %5565 = vst.msk [vmem:[%s10189_s2 + $0x1b4] sm:$0xf] %vm5455_vm4, %v6340_v25  ;;  %v6345_v49 = vpack.c.bf16 %v4289_v55, %v4289_v55  ;;  %v4417_v36 = vsel %vm3905_vm5, %v3649_v4, %v4161_v5  ;;  %v4159_v30 = vmul.f32 0.2, %v3647_v17 }
 0x264   :  { %vm3778_vm8 = vcmp.ge.f32.partialorder %v3522_v13, 0.0  ;;  %v3648_v44 = vld [vmem:[#allocation2 + $0x788] sm:$0xff]  ;;  %5693 = vst.msk [vmem:[%s10189_s2 + $0x3b4] sm:$0xf] %vm5455_vm4, %v6468_v24  ;;  %v6473_v12 = vpack.c.bf16 %v4417_v36, %v4417_v36  ;;  %v4287_v47 = vsel %vm3775_vm6, %v3519_v3, %v4031_v58  ;;  %v4034_v32 = vmul.f32 0.2, %v3522_v13 }
 0x265   :  { %vm3906_vm9 = vcmp.ge.f32.partialorder %v3650_v63, 0.0  ;;  %v3525_v14 = vld [vmem:[#allocation2 + $0x3b0] sm:$0xff]  ;;  %5570 = vst.msk [vmem:[%s10189_s2 + $0x1c8] sm:$0xf] %vm5455_vm4, %v6345_v49  ;;  %v6343_v59 = vpack.c.bf16 %v4287_v47, %v4287_v47  ;;  %v4415_v54 = vsel %vm3903_vm7, %v3647_v17, %v4159_v30  ;;  %v4162_v53 = vmul.f32 0.2, %v3650_v63 }
 0x266   :  { %vm3776_vm10 = vcmp.ge.f32.partialorder %v3520_v50, 0.0  ;;  %v3653_v43 = vld [vmem:[#allocation2 + $0x7b0] sm:$0xff]  ;;  %5698 = vst.msk [vmem:[%s10189_s2 + $0x3c8] sm:$0xf] %vm5455_vm4, %v6473_v12  ;;  %v6471_v29 = vpack.c.bf16 %v4415_v54, %v4415_v54  ;;  %v4290_v18 = vsel %vm3778_vm8, %v3522_v13, %v4034_v32  ;;  %v4032_v10 = vmul.f32 0.2, %v3520_v50 }
 0x267   :  { %vm3904_vm11 = vcmp.ge.f32.partialorder %v3648_v44, 0.0  ;;  %v3523_v60 = vld [vmem:[#allocation2 + $0x3a0] sm:$0xff]  ;;  %5568 = vst.msk [vmem:[%s10189_s2 + $0x1c0] sm:$0xf] %vm5455_vm4, %v6343_v59  ;;  %v6346_v33 = vpack.c.bf16 %v4290_v18, %v4290_v18  ;;  %v4418_v2 = vsel %vm3906_vm9, %v3650_v63, %v4162_v53  ;;  %v4160_v11 = vmul.f32 0.2, %v3648_v44 }
 0x268   :  { %vm3781_vm0 = vcmp.ge.f32.partialorder %v3525_v14, 0.0  ;;  %v3651_v26 = vld [vmem:[#allocation2 + $0x7a0] sm:$0xff]  ;;  %5696 = vst.msk [vmem:[%s10189_s2 + $0x3c0] sm:$0xf] %vm5455_vm4, %v6471_v29  ;;  %v6474_v19 = vpack.c.bf16 %v4418_v2, %v4418_v2  ;;  %v4288_v6 = vsel %vm3776_vm10, %v3520_v50, %v4032_v10  ;;  %v4037_v7 = vmul.f32 0.2, %v3525_v14 }
 0x269   :  { %vm3909_vm12 = vcmp.ge.f32.partialorder %v3653_v43, 0.0  ;;  %v3526_v27 = vld [vmem:[#allocation2 + $0x3b8] sm:$0xff]  ;;  %5571 = vst.msk [vmem:[%s10189_s2 + $0x1cc] sm:$0xf] %vm5455_vm4, %v6346_v33  ;;  %v6344_v15 = vpack.c.bf16 %v4288_v6, %v4288_v6  ;;  %v4416_v8 = vsel %vm3904_vm11, %v3648_v44, %v4160_v11  ;;  %v4165_v23 = vmul.f32 0.2, %v3653_v43 }
 0x26a   :  { %vm3779_vm13 = vcmp.ge.f32.partialorder %v3523_v60, 0.0  ;;  %v3654_v41 = vld [vmem:[#allocation2 + $0x7b8] sm:$0xff]  ;;  %5699 = vst.msk [vmem:[%s10189_s2 + $0x3cc] sm:$0xf] %vm5455_vm4, %v6474_v19  ;;  %v6472_v34 = vpack.c.bf16 %v4416_v8, %v4416_v8  ;;  %v4293_v1 = vsel %vm3781_vm0, %v3525_v14, %v4037_v7  ;;  %v4035_v51 = vmul.f32 0.2, %v3523_v60 }
 0x26b   :  { %vm3907_vm14 = vcmp.ge.f32.partialorder %v3651_v26, 0.0  ;;  %v3524_v61 = vld [vmem:[#allocation2 + $0x3a8] sm:$0xff]  ;;  %5569 = vst.msk [vmem:[%s10189_s2 + $0x1c4] sm:$0xf] %vm5455_vm4, %v6344_v15  ;;  %v6349_v9 = vpack.c.bf16 %v4293_v1, %v4293_v1  ;;  %v4421_v62 = vsel %vm3909_vm12, %v3653_v43, %v4165_v23  ;;  %v4163_v28 = vmul.f32 0.2, %v3651_v26 }
 0x26c   :  { %vm3782_vm15 = vcmp.ge.f32.partialorder %v3526_v27, 0.0  ;;  %v3652_v38 = vld [vmem:[#allocation2 + $0x7a8] sm:$0xff]  ;;  %5697 = vst.msk [vmem:[%s10189_s2 + $0x3c4] sm:$0xf] %vm5455_vm4, %v6472_v34  ;;  %v6477_v45 = vpack.c.bf16 %v4421_v62, %v4421_v62  ;;  %v4291_v0 = vsel %vm3779_vm13, %v3523_v60, %v4035_v51  ;;  %v4038_v39 = vmul.f32 0.2, %v3526_v27 }
 0x26d   :  { %vm3910_vm2 = vcmp.ge.f32.partialorder %v3654_v41, 0.0  ;;  %v3529_v48 = vld [vmem:[#allocation2 + $0x3d0] sm:$0xff]  ;;  %5574 = vst.msk [vmem:[%s10189_s2 + $0x1d8] sm:$0xf] %vm5455_vm4, %v6349_v9  ;;  %v6347_v57 = vpack.c.bf16 %v4291_v0, %v4291_v0  ;;  %v4419_v20 = vsel %vm3907_vm14, %v3651_v26, %v4163_v28  ;;  %v4166_v4 = vmul.f32 0.2, %v3654_v41 }
 0x26e   :  { %vm3780_vm3 = vcmp.ge.f32.partialorder %v3524_v61, 0.0  ;;  %v3657_v21 = vld [vmem:[#allocation2 + $0x7d0] sm:$0xff]  ;;  %5702 = vst.msk [vmem:[%s10189_s2 + $0x3d8] sm:$0xf] %vm5455_vm4, %v6477_v45  ;;  %v6475_v46 = vpack.c.bf16 %v4419_v20, %v4419_v20  ;;  %v4294_v35 = vsel %vm3782_vm15, %v3526_v27, %v4038_v39  ;;  %v4036_v3 = vmul.f32 0.2, %v3524_v61 }
 0x26f   :  { %vm3908_vm5 = vcmp.ge.f32.partialorder %v3652_v38, 0.0  ;;  %v3527_v56 = vld [vmem:[#allocation2 + $0x3c0] sm:$0xff]  ;;  %5572 = vst.msk [vmem:[%s10189_s2 + $0x1d0] sm:$0xf] %vm5455_vm4, %v6347_v57  ;;  %v6350_v40 = vpack.c.bf16 %v4294_v35, %v4294_v35  ;;  %v4422_v17 = vsel %vm3910_vm2, %v3654_v41, %v4166_v4  ;;  %v4164_v22 = vmul.f32 0.2, %v3652_v38 }
 0x270   :  { %vm3785_vm6 = vcmp.ge.f32.partialorder %v3529_v48, 0.0  ;;  %v3655_v37 = vld [vmem:[#allocation2 + $0x7c0] sm:$0xff]  ;;  %5700 = vst.msk [vmem:[%s10189_s2 + $0x3d0] sm:$0xf] %vm5455_vm4, %v6475_v46  ;;  %v6478_v42 = vpack.c.bf16 %v4422_v17, %v4422_v17  ;;  %v4292_v13 = vsel %vm3780_vm3, %v3524_v61, %v4036_v3  ;;  %v4041_v25 = vmul.f32 0.2, %v3529_v48 }
 0x271   :  { %vm3913_vm7 = vcmp.ge.f32.partialorder %v3657_v21, 0.0  ;;  %v3530_v16 = vld [vmem:[#allocation2 + $0x3d8] sm:$0xff]  ;;  %5575 = vst.msk [vmem:[%s10189_s2 + $0x1dc] sm:$0xf] %vm5455_vm4, %v6350_v40  ;;  %v6348_v5 = vpack.c.bf16 %v4292_v13, %v4292_v13  ;;  %v4420_v63 = vsel %vm3908_vm5, %v3652_v38, %v4164_v22  ;;  %v4169_v24 = vmul.f32 0.2, %v3657_v21 }
 0x272   :  { %vm3783_vm8 = vcmp.ge.f32.partialorder %v3527_v56, 0.0  ;;  %v3658_v55 = vld [vmem:[#allocation2 + $0x7d8] sm:$0xff]  ;;  %5703 = vst.msk [vmem:[%s10189_s2 + $0x3dc] sm:$0xf] %vm5455_vm4, %v6478_v42  ;;  %v6476_v58 = vpack.c.bf16 %v4420_v63, %v4420_v63  ;;  %v4297_v50 = vsel %vm3785_vm6, %v3529_v48, %v4041_v25  ;;  %v4039_v49 = vmul.f32 0.2, %v3527_v56 }
 0x273   :  { %vm3911_vm9 = vcmp.ge.f32.partialorder %v3655_v37, 0.0  ;;  %v3528_v36 = vld [vmem:[#allocation2 + $0x3c8] sm:$0xff]  ;;  %5573 = vst.msk [vmem:[%s10189_s2 + $0x1d4] sm:$0xf] %vm5455_vm4, %v6348_v5  ;;  %v6353_v30 = vpack.c.bf16 %v4297_v50, %v4297_v50  ;;  %v4425_v44 = vsel %vm3913_vm7, %v3657_v21, %v4169_v24  ;;  %v4167_v12 = vmul.f32 0.2, %v3655_v37 }
 0x274   :  { %vm3786_vm10 = vcmp.ge.f32.partialorder %v3530_v16, 0.0  ;;  %v3656_v47 = vld [vmem:[#allocation2 + $0x7c8] sm:$0xff]  ;;  %5701 = vst.msk [vmem:[%s10189_s2 + $0x3d4] sm:$0xf] %vm5455_vm4, %v6476_v58  ;;  %v6481_v32 = vpack.c.bf16 %v4425_v44, %v4425_v44  ;;  %v4295_v14 = vsel %vm3783_vm8, %v3527_v56, %v4039_v49  ;;  %v4042_v59 = vmul.f32 0.2, %v3530_v16 }
 0x275   :  { %vm3914_vm11 = vcmp.ge.f32.partialorder %v3658_v55, 0.0  ;;  %v3533_v54 = vld [vmem:[#allocation2 + $0x3f0] sm:$0xff]  ;;  %5578 = vst.msk [vmem:[%s10189_s2 + $0x1e8] sm:$0xf] %vm5455_vm4, %v6353_v30  ;;  %v6351_v53 = vpack.c.bf16 %v4295_v14, %v4295_v14  ;;  %v4423_v43 = vsel %vm3911_vm9, %v3655_v37, %v4167_v12  ;;  %v4170_v29 = vmul.f32 0.2, %v3658_v55 }
 0x276   :  { %vm3784_vm0 = vcmp.ge.f32.partialorder %v3528_v36, 0.0  ;;  %v3661_v18 = vld [vmem:[#allocation2 + $0x7f0] sm:$0xff]  ;;  %5706 = vst.msk [vmem:[%s10189_s2 + $0x3e8] sm:$0xf] %vm5455_vm4, %v6481_v32  ;;  %v6479_v10 = vpack.c.bf16 %v4423_v43, %v4423_v43  ;;  %v4298_v60 = vsel %vm3786_vm10, %v3530_v16, %v4042_v59  ;;  %v4040_v33 = vmul.f32 0.2, %v3528_v36 }
 0x277   :  { %vm3912_vm12 = vcmp.ge.f32.partialorder %v3656_v47, 0.0  ;;  %v3531_v2 = vld [vmem:[#allocation2 + $0x3e0] sm:$0xff]  ;;  %5576 = vst.msk [vmem:[%s10189_s2 + $0x1e0] sm:$0xf] %vm5455_vm4, %v6351_v53  ;;  %v6354_v11 = vpack.c.bf16 %v4298_v60, %v4298_v60  ;;  %v4426_v26 = vsel %vm3914_vm11, %v3658_v55, %v4170_v29  ;;  %v4168_v19 = vmul.f32 0.2, %v3656_v47 }
 0x278   :  { %vm3789_vm13 = vcmp.ge.f32.partialorder %v3533_v54, 0.0  ;;  %v3659_v6 = vld [vmem:[#allocation2 + $0x7e0] sm:$0xff]  ;;  %5704 = vst.msk [vmem:[%s10189_s2 + $0x3e0] sm:$0xf] %vm5455_vm4, %v6479_v10  ;;  %v6482_v7 = vpack.c.bf16 %v4426_v26, %v4426_v26  ;;  %v4296_v27 = vsel %vm3784_vm0, %v3528_v36, %v4040_v33  ;;  %v4045_v15 = vmul.f32 0.2, %v3533_v54 }
 0x279   :  { %vm3917_vm14 = vcmp.ge.f32.partialorder %v3661_v18, 0.0  ;;  %v3534_v8 = vld [vmem:[#allocation2 + $0x3f8] sm:$0xff]  ;;  %5579 = vst.msk [vmem:[%s10189_s2 + $0x1ec] sm:$0xf] %vm5455_vm4, %v6354_v11  ;;  %v6352_v23 = vpack.c.bf16 %v4296_v27, %v4296_v27  ;;  %v4424_v41 = vsel %vm3912_vm12, %v3656_v47, %v4168_v19  ;;  %v4173_v34 = vmul.f32 0.2, %v3661_v18 }
 0x27a   :  { %vm3787_vm15 = vcmp.ge.f32.partialorder %v3531_v2, 0.0  ;;  %v3662_v1 = vld [vmem:[#allocation2 + $0x7f8] sm:$0xff]  ;;  %5707 = vst.msk [vmem:[%s10189_s2 + $0x3ec] sm:$0xf] %vm5455_vm4, %v6482_v7  ;;  %v6480_v51 = vpack.c.bf16 %v4424_v41, %v4424_v41  ;;  %v4301_v61 = vsel %vm3789_vm13, %v3533_v54, %v4045_v15  ;;  %v4043_v9 = vmul.f32 0.2, %v3531_v2 }
 0x27b   :  { %vm3915_vm2 = vcmp.ge.f32.partialorder %v3659_v6, 0.0  ;;  %v398_v62 = vld [vmem:[#allocation2 + $0x3e8] sm:$0xff]  ;;  %5577 = vst.msk [vmem:[%s10189_s2 + $0x1e4] sm:$0xf] %vm5455_vm4, %v6352_v23  ;;  %v6357_v28 = vpack.c.bf16 %v4301_v61, %v4301_v61  ;;  %v4429_v38 = vsel %vm3917_vm14, %v3661_v18, %v4173_v34  ;;  %v4171_v45 = vmul.f32 0.2, %v3659_v6 }
 0x27c   :  { %vm3790_vm3 = vcmp.ge.f32.partialorder %v3534_v8, 0.0  ;;  %v526_v0 = vld [vmem:[#allocation2 + $0x7e8] sm:$0xff]  ;;  %5705 = vst.msk [vmem:[%s10189_s2 + $0x3e4] sm:$0xf] %vm5455_vm4, %v6480_v51  ;;  %v6485_v39 = vpack.c.bf16 %v4429_v38, %v4429_v38  ;;  %v4299_v48 = vsel %vm3787_vm15, %v3531_v2, %v4043_v9  ;;  %v4046_v57 = vmul.f32 0.2, %v3534_v8 }
 0x27d   :  { %vm3918_vm5 = vcmp.ge.f32.partialorder %v3662_v1, 0.0  ;;  %5582 = vst.msk [vmem:[%s10189_s2 + $0x1f8] sm:$0xf] %vm5455_vm4, %v6357_v28  ;;  %v6355_v20 = vpack.c.bf16 %v4299_v48, %v4299_v48  ;;  %v4427_v4 = vsel %vm3915_vm2, %v3659_v6, %v4171_v45  ;;  %v4174_v21 = vmul.f32 0.2, %v3662_v1 }
 0x27e   :  { %v3016_v46 = vadd.f32 %v9777_v52, %v398_v62  ;;  %5710 = vst.msk [vmem:[%s10189_s2 + $0x3f8] sm:$0xf] %vm5455_vm4, %v6485_v39  ;;  %v6483_v35 = vpack.c.bf16 %v4427_v4, %v4427_v4  ;;  %v4302_v3 = vsel %vm3790_vm3, %v3534_v8, %v4046_v57  ;;  %v3144_v56 = vadd.f32 %v9780_v31, %v526_v0 }
 0x27f   :  { %5580 = vst.msk [vmem:[%s10189_s2 + $0x1f0] sm:$0xf] %vm5455_vm4, %v6355_v20  ;;  %v6358_v40 = vpack.c.bf16 %v4302_v3, %v4302_v3  ;;  %v4430_v17 = vsel %vm3918_vm5, %v3662_v1, %v4174_v21 }
 0x280   :  { %3273 = vst.msk [vmem:[#allocation2 + $0x3e8] sm:$0xff] %vm16_vm1, %v3016_v46  ;;  %v6486_v52 = vpack.c.bf16 %v4430_v17, %v4430_v17  ;;  %3401 = vst.msk [vmem:[#allocation2 + $0x7e8] sm:$0xff] %vm16_vm1, %v3144_v56 }
 0x281   :  { %5708 = vst.msk [vmem:[%s10189_s2 + $0x3f0] sm:$0xf] %vm5455_vm4, %v6483_v35  ;;  %5583 = vst.msk [vmem:[%s10189_s2 + $0x1fc] sm:$0xf] %vm5455_vm4, %v6358_v40 }
 0x282   :  { %5711 = vst.msk [vmem:[%s10189_s2 + $0x3fc] sm:$0xf] %vm5455_vm4, %v6486_v52 }
 0x287   :  { %v3532_v31 = vld [vmem:[#allocation2 + $0x3e8] sm:$0xff] }
 0x288   :  { %vm3788_vm6 = vcmp.ge.f32.partialorder %v3532_v31, 0.0  ;;  %v4044_v22 = vmul.f32 0.2, %v3532_v31  ;;  %v3660_v37 = vld [vmem:[#allocation2 + $0x7e8] sm:$0xff] }
 0x289   :  { %vm3916_vm7 = vcmp.ge.f32.partialorder %v3660_v37, 0.0  ;;  %v4172_v42 = vmul.f32 0.2, %v3660_v37 }
 0x28a   :  { %v4300_v13 = vsel %vm3788_vm6, %v3532_v31, %v4044_v22 }
 0x28b   :  { %v6356_v25 = vpack.c.bf16 %v4300_v13, %v4300_v13  ;;  %v4428_v16 = vsel %vm3916_vm7, %v3660_v37, %v4172_v42 }
 0x28c   :  { %v6484_v5 = vpack.c.bf16 %v4428_v16, %v4428_v16 }
 0x28d   :  { %5581 = vst.msk [vmem:[%s10189_s2 + $0x1f4] sm:$0xf] %vm5455_vm4, %v6356_v25 }
 0x28e   :  { %5709 = vst.msk [vmem:[%s10189_s2 + $0x3f4] sm:$0xf] %vm5455_vm4, %v6484_v5 }

// kernel: _lambda_.10
= control target key start
LH: loop header
LB: loop body
LE: loop exit
PB: predicated region body
PF: predicated region fallthrough
CT: control target
= control target key end

     0   :  { %vm732_vm0 = vcmask 125952   ;;  %s1608_s0 = inlined_call_operand.vmem [shape: bf16[512,16], index: 0, kind: input, shape index: {}]   ;;  %s1609_s1 = inlined_call_operand.vmem [shape: f32[1,16], index: 1, kind: input, shape index: {}]   ;;  %s1610_s2 = inlined_call_operand.vmem [shape: f32[1,16], index: 2, kind: input, shape index: {}]   ;;  %s1611_s3 = inlined_call_operand.vmem [shape: bf16[512,16], index: 3, kind: output, shape index: {}]  }
   0x1   :  { %v932_v0 = vld [vmem:[%s1608_s0] sm:$0xff]   ;;  %v1059_v4 = vld [vmem:[%s1608_s0 + $0x8] sm:$0xff]   ;;  %v1060_v5 = vld [vmem:[%s1608_s0 + $0x10] sm:$0xff]  }
   0x2   :  { %v1118_v1 = vld [vmem:[%s1609_s1] ss:$0 sm:$0xff]  ;;  %v933_v2 = vunpack.c.l.bf16 %v932_v0  ;;  %v934_v3 = vunpack.c.h.bf16 %v932_v0  ;;  %v1061_v6 = vld [vmem:[%s1608_s0 + $0x18] sm:$0xff]   ;;  %v937_v8 = vunpack.c.l.bf16 %v1059_v4  ;;  %v938_v9 = vunpack.c.h.bf16 %v1059_v4  ;;  %v1063_v40 = vld [vmem:[%s1608_s0 + $0x28] sm:$0xff]  }
   0x3   :  { %v1132_v7 = vld [vmem:[%s1610_s2] ss:$0 sm:$0xff]  ;;  %v941_v10 = vunpack.c.l.bf16 %v1060_v5  ;;  %v942_v11 = vunpack.c.h.bf16 %v1060_v5  ;;  %v945_v14 = vunpack.c.l.bf16 %v1061_v6  ;;  %v946_v15 = vunpack.c.h.bf16 %v1061_v6  ;;  %v1064_v52 = vld [vmem:[%s1608_s0 + $0x30] sm:$0xff]  }
   0x4   :  { %v149_v12 = vmul.f32 %v933_v2, %v1118_v1  ;;  %v150_v13 = vmul.f32 %v934_v3, %v1118_v1  ;;  %v151_v16 = vmul.f32 %v937_v8, %v1118_v1  ;;  %v152_v17 = vmul.f32 %v938_v9, %v1118_v1  ;;  %v1062_v39 = vld [vmem:[%s1608_s0 + $0x20] sm:$0xff]  }
   0x5   :  { %v153_v18 = vmul.f32 %v941_v10, %v1118_v1  ;;  %v154_v19 = vmul.f32 %v942_v11, %v1118_v1  ;;  %v155_v22 = vmul.f32 %v945_v14, %v1118_v1  ;;  %v156_v23 = vmul.f32 %v946_v15, %v1118_v1 }
   0x6   :  { %v220_v20 = vadd.f32 %v1132_v7, %v149_v12  ;;  %v221_v21 = vadd.f32 %v1132_v7, %v150_v13  ;;  %v222_v24 = vadd.f32 %v1132_v7, %v151_v16  ;;  %v223_v25 = vadd.f32 %v1132_v7, %v152_v17  ;;  %v1065_v17 = vld [vmem:[%s1608_s0 + $0x38] sm:$0xff]  }
   0x7   :  { %v224_v26 = vadd.f32 %v1132_v7, %v153_v18  ;;  %v225_v27 = vadd.f32 %v1132_v7, %v154_v19  ;;  %v226_v46 = vadd.f32 %v1132_v7, %v155_v22  ;;  %v227_v47 = vadd.f32 %v1132_v7, %v156_v23  ;;  %v1066_v18 = vld [vmem:[%s1608_s0 + $0x40] sm:$0xff]   ;;  %v1067_v23 = vld [vmem:[%s1608_s0 + $0x48] sm:$0xff]  }
   0x8   :  { %vm284_vm1 = vcmp.ge.f32.partialorder %v220_v20, 0.0  ;;  %v348_v28 = vmul.f32 0.2, %v220_v20  ;;  %vm285_vm2 = vcmp.ge.f32.partialorder %v221_v21, 0.0  ;;  %v349_v29 = vmul.f32 0.2, %v221_v21 }
   0x9   :  { %vm286_vm3 = vcmp.ge.f32.partialorder %v222_v24, 0.0  ;;  %v350_v30 = vmul.f32 0.2, %v222_v24  ;;  %vm287_vm4 = vcmp.ge.f32.partialorder %v223_v25, 0.0  ;;  %v351_v31 = vmul.f32 0.2, %v223_v25 }
   0xa   :  { %v412_v32 = vsel %vm284_vm1, %v220_v20, %v348_v28  ;;  %v413_v33 = vsel %vm285_vm2, %v221_v21, %v349_v29  ;;  %vm288_vm5 = vcmp.ge.f32.partialorder %v224_v26, 0.0  ;;  %v352_v34 = vmul.f32 0.2, %v224_v26 }
   0xb   :  { %v867_v35 = vpack.c.bf16 %v412_v32, %v412_v32  ;;  %v868_v36 = vpack.c.bf16 %v413_v33, %v413_v33  ;;  %v414_v37 = vsel %vm286_vm3, %v222_v24, %v350_v30  ;;  %v415_v38 = vsel %vm287_vm4, %v223_v25, %v351_v31 }
   0xc   :  { %v869_v41 = vpack.c.bf16 %v414_v37, %v414_v37  ;;  %v870_v42 = vpack.c.bf16 %v415_v38, %v415_v38  ;;  %v416_v43 = vsel %vm288_vm5, %v224_v26, %v352_v34  ;;  %vm289_vm6 = vcmp.ge.f32.partialorder %v225_v27, 0.0 }
   0xd   :  { %733 = vst.msk [vmem:[%s1611_s3] sm:$0xf] %vm732_vm0, %v867_v35  ;;  %734 = vst.msk [vmem:[%s1611_s3 + $0x4] sm:$0xf] %vm732_vm0, %v868_v36  ;;  %v871_v44 = vpack.c.bf16 %v416_v43, %v416_v43  ;;  %v353_v45 = vmul.f32 0.2, %v225_v27  ;;  %v949_v48 = vunpack.c.l.bf16 %v1062_v39  ;;  %v950_v49 = vunpack.c.h.bf16 %v1062_v39 }
   0xe   :  { %735 = vst.msk [vmem:[%s1611_s3 + $0x8] sm:$0xf] %vm732_vm0, %v869_v41  ;;  %736 = vst.msk [vmem:[%s1611_s3 + $0xc] sm:$0xf] %vm732_vm0, %v870_v42  ;;  %v953_v50 = vunpack.c.l.bf16 %v1063_v40  ;;  %v954_v51 = vunpack.c.h.bf16 %v1063_v40  ;;  %vm290_vm7 = vcmp.ge.f32.partialorder %v226_v46, 0.0  ;;  %vm291_vm8 = vcmp.ge.f32.partialorder %v227_v47, 0.0 }
   0xf   :  { %737 = vst.msk [vmem:[%s1611_s3 + $0x10] sm:$0xf] %vm732_vm0, %v871_v44  ;;  %v417_v53 = vsel %vm289_vm6, %v225_v27, %v353_v45  ;;  %v354_v54 = vmul.f32 0.2, %v226_v46  ;;  %v355_v56 = vmul.f32 0.2, %v227_v47  ;;  %v157_v57 = vmul.f32 %v949_v48, %v1118_v1 }
  0x10   :  { %v872_v55 = vpack.c.bf16 %v417_v53, %v417_v53  ;;  %v158_v58 = vmul.f32 %v950_v49, %v1118_v1  ;;  %v159_v60 = vmul.f32 %v953_v50, %v1118_v1  ;;  %v160_v61 = vmul.f32 %v954_v51, %v1118_v1 }
  0x11   :  { %v418_v59 = vsel %vm290_vm7, %v226_v46, %v354_v54  ;;  %v957_v62 = vunpack.c.l.bf16 %v1064_v52  ;;  %v419_v0 = vsel %vm291_vm8, %v227_v47, %v355_v56  ;;  %v228_v2 = vadd.f32 %v1132_v7, %v157_v57  ;;  %v1068_v57 = vld [vmem:[%s1608_s0 + $0x50] sm:$0xff]  }
  0x12   :  { %738 = vst.msk [vmem:[%s1611_s3 + $0x14] sm:$0xf] %vm732_vm0, %v872_v55  ;;  %v873_v63 = vpack.c.bf16 %v418_v59, %v418_v59  ;;  %v229_v3 = vadd.f32 %v1132_v7, %v158_v58  ;;  %v874_v4 = vpack.c.bf16 %v419_v0, %v419_v0  ;;  %v230_v5 = vadd.f32 %v1132_v7, %v159_v60 }
  0x13   :  { %v231_v6 = vadd.f32 %v1132_v7, %v160_v61  ;;  %v161_v8 = vmul.f32 %v957_v62, %v1118_v1  ;;  %vm292_vm9 = vcmp.ge.f32.partialorder %v228_v2, 0.0  ;;  %v356_v9 = vmul.f32 0.2, %v228_v2  ;;  %v1069_v62 = vld [vmem:[%s1608_s0 + $0x58] sm:$0xff]  }
  0x14   :  { %739 = vst.msk [vmem:[%s1611_s3 + $0x18] sm:$0xf] %vm732_vm0, %v873_v63  ;;  %vm293_vm10 = vcmp.ge.f32.partialorder %v229_v3, 0.0  ;;  %v357_v10 = vmul.f32 0.2, %v229_v3  ;;  %vm294_vm11 = vcmp.ge.f32.partialorder %v230_v5, 0.0  ;;  %v958_v16 = vunpack.c.h.bf16 %v1064_v52 }
  0x15   :  { %740 = vst.msk [vmem:[%s1611_s3 + $0x1c] sm:$0xf] %vm732_vm0, %v874_v4  ;;  %v358_v11 = vmul.f32 0.2, %v230_v5  ;;  %vm295_vm12 = vcmp.ge.f32.partialorder %v231_v6, 0.0  ;;  %v420_v13 = vsel %vm292_vm9, %v228_v2, %v356_v9  ;;  %v232_v15 = vadd.f32 %v1132_v7, %v161_v8 }
  0x16   :  { %v359_v12 = vmul.f32 0.2, %v231_v6  ;;  %v421_v14 = vsel %vm293_vm10, %v229_v3, %v357_v10  ;;  %v875_v19 = vpack.c.bf16 %v420_v13, %v420_v13  ;;  %v162_v27 = vmul.f32 %v958_v16, %v1118_v1  ;;  %v1070_v3 = vld [vmem:[%s1608_s0 + $0x60] sm:$0xff]   ;;  %v1071_v13 = vld [vmem:[%s1608_s0 + $0x68] sm:$0xff]  }
  0x17   :  { %v876_v20 = vpack.c.bf16 %v421_v14, %v421_v14  ;;  %v422_v21 = vsel %vm294_vm11, %v230_v5, %v358_v11  ;;  %vm296_vm13 = vcmp.ge.f32.partialorder %v232_v15, 0.0  ;;  %v360_v26 = vmul.f32 0.2, %v232_v15 }
  0x18   :  { %v423_v22 = vsel %vm295_vm12, %v231_v6, %v359_v12  ;;  %v877_v24 = vpack.c.bf16 %v422_v21, %v422_v21  ;;  %741 = vst.msk [vmem:[%s1611_s3 + $0x20] sm:$0xf] %vm732_vm0, %v875_v19  ;;  %v961_v28 = vunpack.c.l.bf16 %v1065_v17  ;;  %v962_v29 = vunpack.c.h.bf16 %v1065_v17 }
  0x19   :  { %v878_v25 = vpack.c.bf16 %v423_v22, %v423_v22  ;;  %742 = vst.msk [vmem:[%s1611_s3 + $0x24] sm:$0xf] %vm732_vm0, %v876_v20  ;;  %v965_v30 = vunpack.c.l.bf16 %v1066_v18  ;;  %v424_v31 = vsel %vm296_vm13, %v232_v15, %v360_v26  ;;  %v966_v32 = vunpack.c.h.bf16 %v1066_v18 }
  0x1a   :  { %743 = vst.msk [vmem:[%s1611_s3 + $0x28] sm:$0xf] %vm732_vm0, %v877_v24  ;;  %v969_v33 = vunpack.c.l.bf16 %v1067_v23  ;;  %v970_v34 = vunpack.c.h.bf16 %v1067_v23  ;;  %v879_v35 = vpack.c.bf16 %v424_v31, %v424_v31  ;;  %v233_v36 = vadd.f32 %v1132_v7, %v162_v27 }
  0x1b   :  { %744 = vst.msk [vmem:[%s1611_s3 + $0x2c] sm:$0xf] %vm732_vm0, %v878_v25  ;;  %v163_v37 = vmul.f32 %v961_v28, %v1118_v1  ;;  %v164_v38 = vmul.f32 %v962_v29, %v1118_v1  ;;  %v165_v39 = vmul.f32 %v965_v30, %v1118_v1  ;;  %v166_v40 = vmul.f32 %v966_v32, %v1118_v1 }
  0x1c   :  { %v167_v41 = vmul.f32 %v969_v33, %v1118_v1  ;;  %v168_v42 = vmul.f32 %v970_v34, %v1118_v1  ;;  %745 = vst.msk [vmem:[%s1611_s3 + $0x30] sm:$0xf] %vm732_vm0, %v879_v35  ;;  %vm297_vm14 = vcmp.ge.f32.partialorder %v233_v36, 0.0  ;;  %v361_v43 = vmul.f32 0.2, %v233_v36 }
  0x1d   :  { %v234_v44 = vadd.f32 %v1132_v7, %v163_v37  ;;  %v235_v45 = vadd.f32 %v1132_v7, %v164_v38  ;;  %v236_v46 = vadd.f32 %v1132_v7, %v165_v39  ;;  %v237_v47 = vadd.f32 %v1132_v7, %v166_v40 }
  0x1e   :  { %v238_v48 = vadd.f32 %v1132_v7, %v167_v41  ;;  %v239_v49 = vadd.f32 %v1132_v7, %v168_v42  ;;  %v425_v50 = vsel %vm297_vm14, %v233_v36, %v361_v43  ;;  %v973_v8 = vunpack.c.l.bf16 %v1068_v57  ;;  %v1072_v41 = vld [vmem:[%s1608_s0 + $0x70] sm:$0xff]  }
  0x1f   :  { %vm298_vm15 = vcmp.ge.f32.partialorder %v234_v44, 0.0  ;;  %v362_v51 = vmul.f32 0.2, %v234_v44  ;;  %vm299_vm1 = vcmp.ge.f32.partialorder %v235_v45, 0.0  ;;  %v880_v52 = vpack.c.bf16 %v425_v50, %v425_v50 }
  0x20   :  { %v363_v53 = vmul.f32 0.2, %v235_v45  ;;  %vm300_vm2 = vcmp.ge.f32.partialorder %v236_v46, 0.0  ;;  %v364_v54 = vmul.f32 0.2, %v236_v46  ;;  %vm301_vm3 = vcmp.ge.f32.partialorder %v237_v47, 0.0 }
  0x21   :  { %v426_v55 = vsel %vm298_vm15, %v234_v44, %v362_v51  ;;  %v365_v56 = vmul.f32 0.2, %v237_v47  ;;  %vm302_vm4 = vcmp.ge.f32.partialorder %v238_v48, 0.0  ;;  %746 = vst.msk [vmem:[%s1611_s3 + $0x34] sm:$0xf] %vm732_vm0, %v880_v52  ;;  %vm303_vm5 = vcmp.ge.f32.partialorder %v239_v49, 0.0 }
  0x22   :  { %v881_v58 = vpack.c.bf16 %v426_v55, %v426_v55  ;;  %v427_v59 = vsel %vm299_vm1, %v235_v45, %v363_v53  ;;  %v428_v60 = vsel %vm300_vm2, %v236_v46, %v364_v54  ;;  %v366_v61 = vmul.f32 0.2, %v238_v48  ;;  %v1073_v45 = vld [vmem:[%s1608_s0 + $0x78] sm:$0xff]  }
  0x23   :  { %v882_v63 = vpack.c.bf16 %v427_v59, %v427_v59  ;;  %v883_v0 = vpack.c.bf16 %v428_v60, %v428_v60  ;;  %v429_v2 = vsel %vm301_vm3, %v237_v47, %v365_v56  ;;  %v367_v6 = vmul.f32 0.2, %v239_v49 }
  0x24   :  { %747 = vst.msk [vmem:[%s1611_s3 + $0x38] sm:$0xf] %vm732_vm0, %v881_v58  ;;  %v884_v4 = vpack.c.bf16 %v429_v2, %v429_v2  ;;  %v430_v5 = vsel %vm302_vm4, %v238_v48, %v366_v61  ;;  %v974_v10 = vunpack.c.h.bf16 %v1068_v57  ;;  %v977_v11 = vunpack.c.l.bf16 %v1069_v62 }
  0x25   :  { %748 = vst.msk [vmem:[%s1611_s3 + $0x3c] sm:$0xf] %vm732_vm0, %v882_v63  ;;  %749 = vst.msk [vmem:[%s1611_s3 + $0x40] sm:$0xf] %vm732_vm0, %v883_v0  ;;  %v885_v9 = vpack.c.bf16 %v430_v5, %v430_v5  ;;  %v978_v12 = vunpack.c.h.bf16 %v1069_v62  ;;  %v431_v14 = vsel %vm303_vm5, %v239_v49, %v367_v6  ;;  %v169_v15 = vmul.f32 %v973_v8, %v1118_v1  ;;  %v1074_v62 = vld [vmem:[%s1608_s0 + $0x80] sm:$0xff]  }
  0x26   :  { %750 = vst.msk [vmem:[%s1611_s3 + $0x44] sm:$0xf] %vm732_vm0, %v884_v4  ;;  %v981_v16 = vunpack.c.l.bf16 %v1070_v3  ;;  %v982_v17 = vunpack.c.h.bf16 %v1070_v3  ;;  %v886_v18 = vpack.c.bf16 %v431_v14, %v431_v14  ;;  %v170_v19 = vmul.f32 %v974_v10, %v1118_v1 }
  0x27   :  { %751 = vst.msk [vmem:[%s1611_s3 + $0x48] sm:$0xf] %vm732_vm0, %v885_v9  ;;  %v171_v20 = vmul.f32 %v977_v11, %v1118_v1  ;;  %v172_v21 = vmul.f32 %v978_v12, %v1118_v1  ;;  %v240_v22 = vadd.f32 %v1132_v7, %v169_v15  ;;  %v985_v25 = vunpack.c.l.bf16 %v1071_v13 }
  0x28   :  { %v173_v23 = vmul.f32 %v981_v16, %v1118_v1  ;;  %v174_v24 = vmul.f32 %v982_v17, %v1118_v1  ;;  %752 = vst.msk [vmem:[%s1611_s3 + $0x4c] sm:$0xf] %vm732_vm0, %v886_v18  ;;  %v241_v26 = vadd.f32 %v1132_v7, %v170_v19  ;;  %v986_v29 = vunpack.c.h.bf16 %v1071_v13  ;;  %v1075_v16 = vld [vmem:[%s1608_s0 + $0x88] sm:$0xff]  }
  0x29   :  { %v242_v27 = vadd.f32 %v1132_v7, %v171_v20  ;;  %v243_v28 = vadd.f32 %v1132_v7, %v172_v21  ;;  %vm304_vm6 = vcmp.ge.f32.partialorder %v240_v22, 0.0  ;;  %v368_v30 = vmul.f32 0.2, %v240_v22 }
  0x2a   :  { %v244_v31 = vadd.f32 %v1132_v7, %v173_v23  ;;  %v245_v32 = vadd.f32 %v1132_v7, %v174_v24  ;;  %vm305_vm7 = vcmp.ge.f32.partialorder %v241_v26, 0.0  ;;  %v369_v33 = vmul.f32 0.2, %v241_v26  ;;  %v1076_v24 = vld [vmem:[%s1608_s0 + $0x90] sm:$0xff]  }
  0x2b   :  { %vm306_vm8 = vcmp.ge.f32.partialorder %v242_v27, 0.0  ;;  %v370_v34 = vmul.f32 0.2, %v242_v27  ;;  %v432_v35 = vsel %vm304_vm6, %v240_v22, %v368_v30  ;;  %vm307_vm9 = vcmp.ge.f32.partialorder %v243_v28, 0.0 }
  0x2c   :  { %v371_v36 = vmul.f32 0.2, %v243_v28  ;;  %vm308_vm10 = vcmp.ge.f32.partialorder %v244_v31, 0.0  ;;  %v887_v37 = vpack.c.bf16 %v432_v35, %v432_v35  ;;  %v433_v38 = vsel %vm305_vm7, %v241_v26, %v369_v33 }
  0x2d   :  { %v434_v39 = vsel %vm306_vm8, %v242_v27, %v370_v34  ;;  %v372_v40 = vmul.f32 0.2, %v244_v31  ;;  %v888_v42 = vpack.c.bf16 %v433_v38, %v433_v38  ;;  %vm309_vm11 = vcmp.ge.f32.partialorder %v245_v32, 0.0 }
  0x2e   :  { %v889_v43 = vpack.c.bf16 %v434_v39, %v434_v39  ;;  %v435_v44 = vsel %vm307_vm9, %v243_v28, %v371_v36  ;;  %753 = vst.msk [vmem:[%s1611_s3 + $0x50] sm:$0xf] %vm732_vm0, %v887_v37  ;;  %v373_v48 = vmul.f32 0.2, %v245_v32  ;;  %v175_v49 = vmul.f32 %v985_v25, %v1118_v1 }
  0x2f   :  { %v890_v46 = vpack.c.bf16 %v435_v44, %v435_v44  ;;  %v436_v47 = vsel %vm308_vm10, %v244_v31, %v372_v40  ;;  %754 = vst.msk [vmem:[%s1611_s3 + $0x54] sm:$0xf] %vm732_vm0, %v888_v42  ;;  %v176_v51 = vmul.f32 %v986_v29, %v1118_v1  ;;  %v989_v52 = vunpack.c.l.bf16 %v1072_v41  ;;  %v1359_v29 = vld [vmem:[%s1608_s0 + $0x98] sm:$0xff]  }
  0x30   :  { %755 = vst.msk [vmem:[%s1611_s3 + $0x58] sm:$0xf] %vm732_vm0, %v889_v43  ;;  %v891_v50 = vpack.c.bf16 %v436_v47, %v436_v47  ;;  %v990_v53 = vunpack.c.h.bf16 %v1072_v41  ;;  %v437_v54 = vsel %vm309_vm11, %v245_v32, %v373_v48  ;;  %v246_v55 = vadd.f32 %v1132_v7, %v175_v49 }
  0x31   :  { %756 = vst.msk [vmem:[%s1611_s3 + $0x5c] sm:$0xf] %vm732_vm0, %v890_v46  ;;  %v993_v56 = vunpack.c.l.bf16 %v1073_v45  ;;  %v994_v57 = vunpack.c.h.bf16 %v1073_v45  ;;  %v892_v58 = vpack.c.bf16 %v437_v54, %v437_v54  ;;  %v247_v59 = vadd.f32 %v1132_v7, %v176_v51 }
  0x32   :  { %757 = vst.msk [vmem:[%s1611_s3 + $0x60] sm:$0xf] %vm732_vm0, %v891_v50  ;;  %v177_v60 = vmul.f32 %v989_v52, %v1118_v1  ;;  %v178_v61 = vmul.f32 %v990_v53, %v1118_v1  ;;  %vm310_vm12 = vcmp.ge.f32.partialorder %v246_v55, 0.0  ;;  %v374_v63 = vmul.f32 0.2, %v246_v55 }
  0x33   :  { %v179_v0 = vmul.f32 %v993_v56, %v1118_v1  ;;  %v180_v2 = vmul.f32 %v994_v57, %v1118_v1  ;;  %758 = vst.msk [vmem:[%s1611_s3 + $0x64] sm:$0xf] %vm732_vm0, %v892_v58  ;;  %vm311_vm13 = vcmp.ge.f32.partialorder %v247_v59, 0.0  ;;  %v375_v3 = vmul.f32 0.2, %v247_v59  ;;  %v1078_v58 = vld [vmem:[%s1608_s0 + $0xa0] sm:$0xff]  }
  0x34   :  { %v248_v4 = vadd.f32 %v1132_v7, %v177_v60  ;;  %v249_v5 = vadd.f32 %v1132_v7, %v178_v61  ;;  %v438_v6 = vsel %vm310_vm12, %v246_v55, %v374_v63  ;;  %v997_v10 = vunpack.c.l.bf16 %v1074_v62 }
  0x35   :  { %v250_v8 = vadd.f32 %v1132_v7, %v179_v0  ;;  %v251_v9 = vadd.f32 %v1132_v7, %v180_v2  ;;  %v893_v11 = vpack.c.bf16 %v438_v6, %v438_v6  ;;  %v439_v12 = vsel %vm311_vm13, %v247_v59, %v375_v3  ;;  %v1080_v6 = vld [vmem:[%s1608_s0 + $0xb0] sm:$0xff]  }
  0x36   :  { %vm312_vm14 = vcmp.ge.f32.partialorder %v248_v4, 0.0  ;;  %v376_v13 = vmul.f32 0.2, %v248_v4  ;;  %v894_v14 = vpack.c.bf16 %v439_v12, %v439_v12  ;;  %vm313_vm15 = vcmp.ge.f32.partialorder %v249_v5, 0.0  ;;  %v1081_v12 = vld [vmem:[%s1608_s0 + $0xb8] sm:$0xff]  }
  0x37   :  { %v377_v15 = vmul.f32 0.2, %v249_v5  ;;  %vm314_vm1 = vcmp.ge.f32.partialorder %v250_v8, 0.0  ;;  %759 = vst.msk [vmem:[%s1611_s3 + $0x68] sm:$0xf] %vm732_vm0, %v893_v11  ;;  %vm315_vm2 = vcmp.ge.f32.partialorder %v251_v9, 0.0  ;;  %v181_v22 = vmul.f32 %v997_v10, %v1118_v1 }
  0x38   :  { %v440_v17 = vsel %vm312_vm14, %v248_v4, %v376_v13  ;;  %v378_v18 = vmul.f32 0.2, %v250_v8  ;;  %v379_v19 = vmul.f32 0.2, %v251_v9  ;;  %760 = vst.msk [vmem:[%s1611_s3 + $0x6c] sm:$0xf] %vm732_vm0, %v894_v14  ;;  %v998_v23 = vunpack.c.h.bf16 %v1074_v62 }
  0x39   :  { %v895_v20 = vpack.c.bf16 %v440_v17, %v440_v17  ;;  %v441_v21 = vsel %vm313_vm15, %v249_v5, %v377_v15  ;;  %v1001_v28 = vunpack.c.l.bf16 %v1075_v16  ;;  %v252_v32 = vadd.f32 %v1132_v7, %v181_v22  ;;  %v1079_v5 = vld [vmem:[%s1608_s0 + $0xa8] sm:$0xff]  }
  0x3a   :  { %v896_v25 = vpack.c.bf16 %v441_v21, %v441_v21  ;;  %v442_v26 = vsel %vm314_vm1, %v250_v8, %v378_v18  ;;  %v443_v27 = vsel %vm315_vm2, %v251_v9, %v379_v19  ;;  %v182_v33 = vmul.f32 %v998_v23, %v1118_v1 }
  0x3b   :  { %761 = vst.msk [vmem:[%s1611_s3 + $0x70] sm:$0xf] %vm732_vm0, %v895_v20  ;;  %v897_v30 = vpack.c.bf16 %v442_v26, %v442_v26  ;;  %v898_v31 = vpack.c.bf16 %v443_v27, %v443_v27  ;;  %v183_v34 = vmul.f32 %v1001_v28, %v1118_v1  ;;  %v1002_v35 = vunpack.c.h.bf16 %v1075_v16 }
  0x3c   :  { %762 = vst.msk [vmem:[%s1611_s3 + $0x74] sm:$0xf] %vm732_vm0, %v896_v25  ;;  %v1005_v36 = vunpack.c.l.bf16 %v1076_v24  ;;  %v1006_v37 = vunpack.c.h.bf16 %v1076_v24  ;;  %vm316_vm3 = vcmp.ge.f32.partialorder %v252_v32, 0.0  ;;  %v380_v38 = vmul.f32 0.2, %v252_v32 }
  0x3d   :  { %763 = vst.msk [vmem:[%s1611_s3 + $0x78] sm:$0xf] %vm732_vm0, %v897_v30  ;;  %764 = vst.msk [vmem:[%s1611_s3 + $0x7c] sm:$0xf] %vm732_vm0, %v898_v31  ;;  %v253_v39 = vadd.f32 %v1132_v7, %v182_v33  ;;  %v1009_v40 = vunpack.c.l.bf16 %v1359_v29  ;;  %v254_v41 = vadd.f32 %v1132_v7, %v183_v34  ;;  %v184_v42 = vmul.f32 %v1002_v35, %v1118_v1 }
  0x3e   :  { %v185_v43 = vmul.f32 %v1005_v36, %v1118_v1  ;;  %v186_v44 = vmul.f32 %v1006_v37, %v1118_v1  ;;  %v444_v45 = vsel %vm316_vm3, %v252_v32, %v380_v38  ;;  %v1010_v3 = vunpack.c.h.bf16 %v1359_v29 }
  0x3f   :  { %vm317_vm4 = vcmp.ge.f32.partialorder %v253_v39, 0.0  ;;  %v381_v46 = vmul.f32 0.2, %v253_v39  ;;  %v187_v47 = vmul.f32 %v1009_v40, %v1118_v1  ;;  %v899_v48 = vpack.c.bf16 %v444_v45, %v444_v45 }
  0x40   :  { %vm318_vm5 = vcmp.ge.f32.partialorder %v254_v41, 0.0  ;;  %v382_v49 = vmul.f32 0.2, %v254_v41  ;;  %v255_v50 = vadd.f32 %v1132_v7, %v184_v42  ;;  %v256_v52 = vadd.f32 %v1132_v7, %v185_v43 }
  0x41   :  { %v445_v51 = vsel %vm317_vm4, %v253_v39, %v381_v46  ;;  %v257_v53 = vadd.f32 %v1132_v7, %v186_v44  ;;  %v258_v54 = vadd.f32 %v1132_v7, %v187_v47  ;;  %765 = vst.msk [vmem:[%s1611_s3 + $0x80] sm:$0xf] %vm732_vm0, %v899_v48  ;;  %v1013_v4 = vunpack.c.l.bf16 %v1078_v58 }
  0x42   :  { %v900_v55 = vpack.c.bf16 %v445_v51, %v445_v51  ;;  %v446_v56 = vsel %vm318_vm5, %v254_v41, %v382_v49  ;;  %vm319_vm6 = vcmp.ge.f32.partialorder %v255_v50, 0.0  ;;  %v383_v57 = vmul.f32 0.2, %v255_v50  ;;  %v1082_v41 = vld [vmem:[%s1608_s0 + $0xc0] sm:$0xff]  }
  0x43   :  { %v901_v59 = vpack.c.bf16 %v446_v56, %v446_v56  ;;  %vm320_vm7 = vcmp.ge.f32.partialorder %v256_v52, 0.0  ;;  %v384_v60 = vmul.f32 0.2, %v256_v52  ;;  %vm321_vm8 = vcmp.ge.f32.partialorder %v257_v53, 0.0 }
  0x44   :  { %766 = vst.msk [vmem:[%s1611_s3 + $0x84] sm:$0xf] %vm732_vm0, %v900_v55  ;;  %v447_v61 = vsel %vm319_vm6, %v255_v50, %v383_v57  ;;  %v385_v62 = vmul.f32 0.2, %v257_v53  ;;  %vm322_vm9 = vcmp.ge.f32.partialorder %v258_v54, 0.0  ;;  %v1014_v11 = vunpack.c.h.bf16 %v1078_v58 }
  0x45   :  { %v386_v63 = vmul.f32 0.2, %v258_v54  ;;  %767 = vst.msk [vmem:[%s1611_s3 + $0x88] sm:$0xf] %vm732_vm0, %v901_v59  ;;  %v902_v0 = vpack.c.bf16 %v447_v61, %v447_v61  ;;  %v448_v2 = vsel %vm320_vm7, %v256_v52, %v384_v60  ;;  %v188_v15 = vmul.f32 %v1010_v3, %v1118_v1  ;;  %v1083_v52 = vld [vmem:[%s1608_s0 + $0xc8] sm:$0xff]  }
  0x46   :  { %v903_v8 = vpack.c.bf16 %v448_v2, %v448_v2  ;;  %v449_v9 = vsel %vm321_vm8, %v257_v53, %v385_v62  ;;  %v189_v16 = vmul.f32 %v1013_v4, %v1118_v1  ;;  %v190_v17 = vmul.f32 %v1014_v11, %v1118_v1 }
  0x47   :  { %v450_v10 = vsel %vm322_vm9, %v258_v54, %v386_v63  ;;  %768 = vst.msk [vmem:[%s1611_s3 + $0x8c] sm:$0xf] %vm732_vm0, %v902_v0  ;;  %v904_v13 = vpack.c.bf16 %v449_v9, %v449_v9  ;;  %v1017_v18 = vunpack.c.l.bf16 %v1079_v5  ;;  %v1018_v19 = vunpack.c.h.bf16 %v1079_v5  ;;  %v1084_v9 = vld [vmem:[%s1608_s0 + $0xd0] sm:$0xff]  }
  0x48   :  { %v905_v14 = vpack.c.bf16 %v450_v10, %v450_v10  ;;  %769 = vst.msk [vmem:[%s1611_s3 + $0x90] sm:$0xf] %vm732_vm0, %v903_v8  ;;  %v1021_v20 = vunpack.c.l.bf16 %v1080_v6  ;;  %v259_v21 = vadd.f32 %v1132_v7, %v188_v15  ;;  %v260_v22 = vadd.f32 %v1132_v7, %v189_v16 }
  0x49   :  { %770 = vst.msk [vmem:[%s1611_s3 + $0x94] sm:$0xf] %vm732_vm0, %v904_v13  ;;  %v1022_v23 = vunpack.c.h.bf16 %v1080_v6  ;;  %v1025_v24 = vunpack.c.l.bf16 %v1081_v12  ;;  %v261_v25 = vadd.f32 %v1132_v7, %v190_v17  ;;  %v191_v26 = vmul.f32 %v1017_v18, %v1118_v1 }
  0x4a   :  { %771 = vst.msk [vmem:[%s1611_s3 + $0x98] sm:$0xf] %vm732_vm0, %v905_v14  ;;  %v192_v27 = vmul.f32 %v1018_v19, %v1118_v1  ;;  %v193_v28 = vmul.f32 %v1021_v20, %v1118_v1  ;;  %vm323_vm10 = vcmp.ge.f32.partialorder %v259_v21, 0.0  ;;  %v387_v29 = vmul.f32 0.2, %v259_v21 }
  0x4b   :  { %vm324_vm11 = vcmp.ge.f32.partialorder %v260_v22, 0.0  ;;  %v388_v30 = vmul.f32 0.2, %v260_v22  ;;  %vm325_vm12 = vcmp.ge.f32.partialorder %v261_v25, 0.0  ;;  %v389_v31 = vmul.f32 0.2, %v261_v25 }
  0x4c   :  { %v262_v32 = vadd.f32 %v1132_v7, %v191_v26  ;;  %v263_v33 = vadd.f32 %v1132_v7, %v192_v27  ;;  %v451_v34 = vsel %vm323_vm10, %v259_v21, %v387_v29  ;;  %v264_v36 = vadd.f32 %v1132_v7, %v193_v28 }
  0x4d   :  { %v452_v35 = vsel %vm324_vm11, %v260_v22, %v388_v30  ;;  %v194_v37 = vmul.f32 %v1022_v23, %v1118_v1  ;;  %v906_v38 = vpack.c.bf16 %v451_v34, %v451_v34  ;;  %v453_v40 = vsel %vm325_vm12, %v261_v25, %v389_v31  ;;  %v1085_v23 = vld [vmem:[%s1608_s0 + $0xd8] sm:$0xff]   ;;  %v1086_v30 = vld [vmem:[%s1608_s0 + $0xe0] sm:$0xff]  }
  0x4e   :  { %v907_v39 = vpack.c.bf16 %v452_v35, %v452_v35  ;;  %vm326_vm13 = vcmp.ge.f32.partialorder %v262_v32, 0.0  ;;  %v908_v42 = vpack.c.bf16 %v453_v40, %v453_v40  ;;  %v390_v43 = vmul.f32 0.2, %v262_v32 }
  0x4f   :  { %vm327_vm14 = vcmp.ge.f32.partialorder %v263_v33, 0.0  ;;  %v391_v44 = vmul.f32 0.2, %v263_v33  ;;  %772 = vst.msk [vmem:[%s1611_s3 + $0x9c] sm:$0xf] %vm732_vm0, %v906_v38  ;;  %vm328_vm15 = vcmp.ge.f32.partialorder %v264_v36, 0.0  ;;  %v265_v46 = vadd.f32 %v1132_v7, %v194_v37 }
  0x50   :  { %773 = vst.msk [vmem:[%s1611_s3 + $0xa0] sm:$0xf] %vm732_vm0, %v907_v39  ;;  %v392_v45 = vmul.f32 0.2, %v264_v36  ;;  %v195_v47 = vmul.f32 %v1025_v24, %v1118_v1  ;;  %774 = vst.msk [vmem:[%s1611_s3 + $0xa4] sm:$0xf] %vm732_vm0, %v908_v42  ;;  %v454_v48 = vsel %vm326_vm13, %v262_v32, %v390_v43  ;;  %v1026_v50 = vunpack.c.h.bf16 %v1081_v12 }
  0x51   :  { %v455_v49 = vsel %vm327_vm14, %v263_v33, %v391_v44  ;;  %v1029_v51 = vunpack.c.l.bf16 %v1082_v41  ;;  %v909_v53 = vpack.c.bf16 %v454_v48, %v454_v48  ;;  %vm329_vm1 = vcmp.ge.f32.partialorder %v265_v46, 0.0  ;;  %v1087_v39 = vld [vmem:[%s1608_s0 + $0xe8] sm:$0xff]  }
  0x52   :  { %v910_v54 = vpack.c.bf16 %v455_v49, %v455_v49  ;;  %v456_v55 = vsel %vm328_vm15, %v264_v36, %v392_v45  ;;  %v393_v57 = vmul.f32 0.2, %v265_v46  ;;  %v266_v58 = vadd.f32 %v1132_v7, %v195_v47 }
  0x53   :  { %v911_v56 = vpack.c.bf16 %v456_v55, %v456_v55  ;;  %v196_v59 = vmul.f32 %v1026_v50, %v1118_v1  ;;  %775 = vst.msk [vmem:[%s1611_s3 + $0xa8] sm:$0xf] %vm732_vm0, %v909_v53  ;;  %v197_v60 = vmul.f32 %v1029_v51, %v1118_v1  ;;  %v1030_v61 = vunpack.c.h.bf16 %v1082_v41 }
  0x54   :  { %776 = vst.msk [vmem:[%s1611_s3 + $0xac] sm:$0xf] %vm732_vm0, %v910_v54  ;;  %v1033_v62 = vunpack.c.l.bf16 %v1083_v52  ;;  %v1034_v63 = vunpack.c.h.bf16 %v1083_v52  ;;  %v457_v0 = vsel %vm329_vm1, %v265_v46, %v393_v57  ;;  %vm330_vm2 = vcmp.ge.f32.partialorder %v266_v58, 0.0 }
  0x55   :  { %777 = vst.msk [vmem:[%s1611_s3 + $0xb0] sm:$0xf] %vm732_vm0, %v911_v56  ;;  %v394_v2 = vmul.f32 0.2, %v266_v58  ;;  %v267_v3 = vadd.f32 %v1132_v7, %v196_v59  ;;  %v912_v4 = vpack.c.bf16 %v457_v0, %v457_v0  ;;  %v268_v5 = vadd.f32 %v1132_v7, %v197_v60  ;;  %v1088_v0 = vld [vmem:[%s1608_s0 + $0xf0] sm:$0xff]  }
  0x56   :  { %v198_v6 = vmul.f32 %v1030_v61, %v1118_v1  ;;  %v199_v8 = vmul.f32 %v1033_v62, %v1118_v1  ;;  %v200_v12 = vmul.f32 %v1034_v63, %v1118_v1  ;;  %v1037_v19 = vunpack.c.l.bf16 %v1084_v9 }
  0x57   :  { %v458_v10 = vsel %vm330_vm2, %v266_v58, %v394_v2  ;;  %vm331_vm3 = vcmp.ge.f32.partialorder %v267_v3, 0.0  ;;  %v395_v11 = vmul.f32 0.2, %v267_v3  ;;  %778 = vst.msk [vmem:[%s1611_s3 + $0xb4] sm:$0xf] %vm732_vm0, %v912_v4  ;;  %vm332_vm4 = vcmp.ge.f32.partialorder %v268_v5, 0.0 }
  0x58   :  { %v913_v13 = vpack.c.bf16 %v458_v10, %v458_v10  ;;  %v396_v14 = vmul.f32 0.2, %v268_v5  ;;  %v269_v15 = vadd.f32 %v1132_v7, %v198_v6  ;;  %v270_v17 = vadd.f32 %v1132_v7, %v199_v8 }
  0x59   :  { %v459_v16 = vsel %vm331_vm3, %v267_v3, %v395_v11  ;;  %v271_v18 = vadd.f32 %v1132_v7, %v200_v12  ;;  %v201_v28 = vmul.f32 %v1037_v19, %v1118_v1  ;;  %v1038_v29 = vunpack.c.h.bf16 %v1084_v9 }
  0x5a   :  { %779 = vst.msk [vmem:[%s1611_s3 + $0xb8] sm:$0xf] %vm732_vm0, %v913_v13  ;;  %v914_v20 = vpack.c.bf16 %v459_v16, %v459_v16  ;;  %v460_v21 = vsel %vm332_vm4, %v268_v5, %v396_v14  ;;  %vm333_vm5 = vcmp.ge.f32.partialorder %v269_v15, 0.0  ;;  %v397_v22 = vmul.f32 0.2, %v269_v15  ;;  %v1089_v13 = vld [vmem:[%s1608_s0 + $0xf8] sm:$0xff]  }
  0x5b   :  { %v915_v24 = vpack.c.bf16 %v460_v21, %v460_v21  ;;  %vm334_vm6 = vcmp.ge.f32.partialorder %v270_v17, 0.0  ;;  %v398_v25 = vmul.f32 0.2, %v270_v17  ;;  %vm335_vm7 = vcmp.ge.f32.partialorder %v271_v18, 0.0 }
  0x5c   :  { %780 = vst.msk [vmem:[%s1611_s3 + $0xbc] sm:$0xf] %vm732_vm0, %v914_v20  ;;  %v461_v26 = vsel %vm333_vm5, %v269_v15, %v397_v22  ;;  %v399_v27 = vmul.f32 0.2, %v271_v18  ;;  %v1041_v33 = vunpack.c.l.bf16 %v1085_v23  ;;  %v1042_v34 = vunpack.c.h.bf16 %v1085_v23 }
  0x5d   :  { %781 = vst.msk [vmem:[%s1611_s3 + $0xc0] sm:$0xf] %vm732_vm0, %v915_v24  ;;  %v916_v31 = vpack.c.bf16 %v461_v26, %v461_v26  ;;  %v462_v32 = vsel %vm334_vm6, %v270_v17, %v398_v25  ;;  %v272_v37 = vadd.f32 %v1132_v7, %v201_v28  ;;  %v202_v38 = vmul.f32 %v1038_v29, %v1118_v1 }
  0x5e   :  { %v917_v35 = vpack.c.bf16 %v462_v32, %v462_v32  ;;  %v463_v36 = vsel %vm335_vm7, %v271_v18, %v399_v27  ;;  %v203_v41 = vmul.f32 %v1041_v33, %v1118_v1  ;;  %v204_v42 = vmul.f32 %v1042_v34, %v1118_v1  ;;  %v1090_v27 = vld [vmem:[%s1609_s1] ss:$0 sm:$0xff] }
  0x5f   :  { %782 = vst.msk [vmem:[%s1611_s3 + $0xc4] sm:$0xf] %vm732_vm0, %v916_v31  ;;  %v918_v40 = vpack.c.bf16 %v463_v36, %v463_v36  ;;  %v1045_v43 = vunpack.c.l.bf16 %v1086_v30  ;;  %vm336_vm8 = vcmp.ge.f32.partialorder %v272_v37, 0.0  ;;  %v400_v44 = vmul.f32 0.2, %v272_v37 }
  0x60   :  { %783 = vst.msk [vmem:[%s1611_s3 + $0xc8] sm:$0xf] %vm732_vm0, %v917_v35  ;;  %v273_v45 = vadd.f32 %v1132_v7, %v202_v38  ;;  %v1046_v46 = vunpack.c.h.bf16 %v1086_v30  ;;  %v274_v47 = vadd.f32 %v1132_v7, %v203_v41  ;;  %v275_v48 = vadd.f32 %v1132_v7, %v204_v42 }
  0x61   :  { %784 = vst.msk [vmem:[%s1611_s3 + $0xcc] sm:$0xf] %vm732_vm0, %v918_v40  ;;  %v205_v49 = vmul.f32 %v1045_v43, %v1118_v1  ;;  %v1049_v50 = vunpack.c.l.bf16 %v1087_v39  ;;  %v464_v51 = vsel %vm336_vm8, %v272_v37, %v400_v44  ;;  %v1050_v63 = vunpack.c.h.bf16 %v1087_v39 }
  0x62   :  { %vm337_vm9 = vcmp.ge.f32.partialorder %v273_v45, 0.0  ;;  %v401_v52 = vmul.f32 0.2, %v273_v45  ;;  %v206_v53 = vmul.f32 %v1046_v46, %v1118_v1  ;;  %v919_v54 = vpack.c.bf16 %v464_v51, %v464_v51 }
  0x63   :  { %vm338_vm10 = vcmp.ge.f32.partialorder %v274_v47, 0.0  ;;  %v402_v55 = vmul.f32 0.2, %v274_v47  ;;  %vm339_vm11 = vcmp.ge.f32.partialorder %v275_v48, 0.0  ;;  %v403_v57 = vmul.f32 0.2, %v275_v48 }
  0x64   :  { %v465_v56 = vsel %vm337_vm9, %v273_v45, %v401_v52  ;;  %v276_v58 = vadd.f32 %v1132_v7, %v205_v49  ;;  %v277_v59 = vadd.f32 %v1132_v7, %v206_v53  ;;  %785 = vst.msk [vmem:[%s1611_s3 + $0xd0] sm:$0xf] %vm732_vm0, %v919_v54  ;;  %v207_v62 = vmul.f32 %v1049_v50, %v1118_v1 }
  0x65   :  { %v920_v60 = vpack.c.bf16 %v465_v56, %v465_v56  ;;  %v466_v61 = vsel %vm338_vm10, %v274_v47, %v402_v55  ;;  %v467_v3 = vsel %vm339_vm11, %v275_v48, %v403_v57  ;;  %v208_v10 = vmul.f32 %v1050_v63, %v1118_v1 }
  0x66   :  { %v921_v2 = vpack.c.bf16 %v466_v61, %v466_v61  ;;  %vm340_vm12 = vcmp.ge.f32.partialorder %v276_v58, 0.0  ;;  %v404_v4 = vmul.f32 0.2, %v276_v58  ;;  %v922_v5 = vpack.c.bf16 %v467_v3, %v467_v3 }
  0x67   :  { %786 = vst.msk [vmem:[%s1611_s3 + $0xd4] sm:$0xf] %vm732_vm0, %v920_v60  ;;  %vm341_vm13 = vcmp.ge.f32.partialorder %v277_v59, 0.0  ;;  %v405_v6 = vmul.f32 0.2, %v277_v59  ;;  %v278_v8 = vadd.f32 %v1132_v7, %v207_v62  ;;  %v1053_v11 = vunpack.c.l.bf16 %v1088_v0 }
  0x68   :  { %787 = vst.msk [vmem:[%s1611_s3 + $0xd8] sm:$0xf] %vm732_vm0, %v921_v2  ;;  %v468_v9 = vsel %vm340_vm12, %v276_v58, %v404_v4  ;;  %v1054_v12 = vunpack.c.h.bf16 %v1088_v0  ;;  %788 = vst.msk [vmem:[%s1611_s3 + $0xdc] sm:$0xf] %vm732_vm0, %v922_v5  ;;  %v279_v18 = vadd.f32 %v1132_v7, %v208_v10  ;;  %v1057_v22 = vunpack.c.l.bf16 %v1089_v13 }
  0x69   :  { %v923_v14 = vpack.c.bf16 %v468_v9, %v468_v9  ;;  %v469_v15 = vsel %vm341_vm13, %v277_v59, %v405_v6  ;;  %vm342_vm14 = vcmp.ge.f32.partialorder %v278_v8, 0.0  ;;  %v406_v16 = vmul.f32 0.2, %v278_v8 }
  0x6a   :  { %v924_v17 = vpack.c.bf16 %v469_v15, %v469_v15  ;;  %v209_v19 = vmul.f32 %v1053_v11, %v1118_v1  ;;  %v210_v20 = vmul.f32 %v1054_v12, %v1118_v1  ;;  %v1058_v23 = vunpack.c.h.bf16 %v1089_v13 }
  0x6b   :  { %789 = vst.msk [vmem:[%s1611_s3 + $0xe0] sm:$0xf] %vm732_vm0, %v923_v14  ;;  %v470_v21 = vsel %vm342_vm14, %v278_v8, %v406_v16  ;;  %vm343_vm15 = vcmp.ge.f32.partialorder %v279_v18, 0.0  ;;  %v407_v25 = vmul.f32 0.2, %v279_v18  ;;  %v211_v28 = vmul.f32 %v1090_v27, %v1057_v22 }
  0x6c   :  { %790 = vst.msk [vmem:[%s1611_s3 + $0xe4] sm:$0xf] %vm732_vm0, %v924_v17  ;;  %v925_v24 = vpack.c.bf16 %v470_v21, %v470_v21  ;;  %v280_v26 = vadd.f32 %v1132_v7, %v209_v19  ;;  %v281_v1 = vadd.f32 %v1132_v7, %v210_v20  ;;  %v212_v29 = vmul.f32 %v1090_v27, %v1058_v23  ;;  %v1091_v7 = vld [vmem:[%s1610_s2] ss:$0 sm:$0xff] }
  0x6d   :  { %v471_v30 = vsel %vm343_vm15, %v279_v18, %v407_v25  ;;  %v282_v34 = vadd.f32 %v1091_v7, %v211_v28 }
  0x6e   :  { %791 = vst.msk [vmem:[%s1611_s3 + $0xe8] sm:$0xf] %vm732_vm0, %v925_v24  ;;  %vm344_vm1 = vcmp.ge.f32.partialorder %v280_v26, 0.0  ;;  %v408_v31 = vmul.f32 0.2, %v280_v26  ;;  %v926_v32 = vpack.c.bf16 %v471_v30, %v471_v30  ;;  %vm345_vm2 = vcmp.ge.f32.partialorder %v281_v1, 0.0 }
  0x6f   :  { %v409_v33 = vmul.f32 0.2, %v281_v1  ;;  %v283_v36 = vadd.f32 %v1091_v7, %v212_v29  ;;  %vm346_vm3 = vcmp.ge.f32.partialorder %v282_v34, 0.0  ;;  %v410_v39 = vmul.f32 0.2, %v282_v34 }
  0x70   :  { %v472_v35 = vsel %vm344_vm1, %v280_v26, %v408_v31  ;;  %792 = vst.msk [vmem:[%s1611_s3 + $0xec] sm:$0xf] %vm732_vm0, %v926_v32 }
  0x71   :  { %v927_v37 = vpack.c.bf16 %v472_v35, %v472_v35  ;;  %v473_v38 = vsel %vm345_vm2, %v281_v1, %v409_v33  ;;  %vm347_vm4 = vcmp.ge.f32.partialorder %v283_v36, 0.0  ;;  %v411_v41 = vmul.f32 0.2, %v283_v36 }
  0x72   :  { %v928_v40 = vpack.c.bf16 %v473_v38, %v473_v38  ;;  %v474_v42 = vsel %vm346_vm3, %v282_v34, %v410_v39 }
  0x73   :  { %793 = vst.msk [vmem:[%s1611_s3 + $0xf0] sm:$0xf] %vm732_vm0, %v927_v37  ;;  %v929_v43 = vpack.c.bf16 %v474_v42, %v474_v42  ;;  %v475_v44 = vsel %vm347_vm4, %v283_v36, %v411_v41 }
  0x74   :  { %794 = vst.msk [vmem:[%s1611_s3 + $0xf4] sm:$0xf] %vm732_vm0, %v928_v40  ;;  %v930_v45 = vpack.c.bf16 %v475_v44, %v475_v44 }
  0x75   :  { %795 = vst.msk [vmem:[%s1611_s3 + $0xf8] sm:$0xf] %vm732_vm0, %v929_v43 }
  0x76   :  { %796 = vst.msk [vmem:[%s1611_s3 + $0xfc] sm:$0xf] %vm732_vm0, %v930_v45 }

// kernel: _lambda_.11
= control target key start
LH: loop header
LB: loop body
LE: loop exit
PB: predicated region body
PF: predicated region fallthrough
CT: control target
= control target key end

     0   :  { %vm19_vm0 = vcmask 261120   ;;  %v796_v32 = vmov 0.0   ;;  %vm489_vm1 = vcmask 257024   ;;  %vm543_vm2 = vcmask 253952   ;;  %s1087_s1 = inlined_call_operand.vmem [shape: bf16[256,32], index: 1, kind: input, shape index: {}]   ;;  %s1088_s0 = inlined_call_operand.vmem [shape: bf16[128,256], index: 0, kind: input, shape index: {}]   ;;  %s1089_s2 = inlined_call_operand.vmem [shape: bf16[128,32], index: 2, kind: output, shape index: {0}]   ;;  %s1090_s3 = inlined_call_operand.vmem [shape: f32[1,1,32], index: 3, kind: output, shape index: {1}]   ;;  %s1091_s4 = inlined_call_operand.vmem [shape: f32[1,1,32], index: 4, kind: output, shape index: {2}]  }
   0x1   :  { %v756_v0 = vld [vmem:[%s1087_s1 + $0x40] sm:$0xff]   ;;  %v758_v2 = vld [vmem:[%s1087_s1 + $0x48] sm:$0xff]   ;;  %v760_v4 = vld [vmem:[%s1087_s1 + $0x50] sm:$0xff]   ;;  %20 = vst.msk [vmem:[#allocation2] sm:$0xff] %vm19_vm0, %v796_v32 }
   0x2   :  { %v757_v1 = vld [vmem:[%s1087_s1] sm:$0xff]   ;;  %675 = vmatprep.subr.bf16.mxu0 %v756_v0  ;;  %739 = vmatprep.subr.bf16.mxu1 %v756_v0  ;;  %v759_v3 = vld [vmem:[%s1087_s1 + $0x8] sm:$0xff]   ;;  %v761_v5 = vld [vmem:[%s1087_s1 + $0x10] sm:$0xff]   ;;  %21 = vst.msk [vmem:[#allocation2 + $0x8] sm:$0xff] %vm19_vm0, %v796_v32 }
   0x3   :  { %676 = vmatpush3.bf16.msra.mxu0 %v757_v1  ;;  %747 = vmatpush3.bf16.msra.mxu1 %v757_v1  ;;  %v762_v6 = vld [vmem:[%s1087_s1 + $0x58] sm:$0xff]   ;;  %v764_v8 = vld [vmem:[%s1087_s1 + $0x60] sm:$0xff]   ;;  %v766_v10 = vld [vmem:[%s1087_s1 + $0x68] sm:$0xff]   ;;  %22 = vst.msk [vmem:[#allocation2 + $0x10] sm:$0xff] %vm19_vm0, %v796_v32 }
   0x4   :  { %677 = vmatprep.subr.bf16.mxu0 %v758_v2  ;;  %740 = vmatprep.subr.bf16.mxu1 %v758_v2  ;;  %v763_v7 = vld [vmem:[%s1087_s1 + $0x18] sm:$0xff]   ;;  %v765_v9 = vld [vmem:[%s1087_s1 + $0x20] sm:$0xff]   ;;  %v767_v12 = vld [vmem:[%s1087_s1 + $0x28] sm:$0xff]   ;;  %23 = vst.msk [vmem:[#allocation2 + $0x18] sm:$0xff] %vm19_vm0, %v796_v32 }
   0x5   :  { %v774_v11 = vld [vmem:[%s1088_s0 + $0x4] ss:$8 sps:$4 sm:$0xff]   ;;  %v768_v14 = vld [vmem:[%s1087_s1 + $0x70] sm:$0xff]   ;;  %v770_v16 = vld [vmem:[%s1087_s1 + $0x78] sm:$0xff]   ;;  %24 = vst.msk [vmem:[#allocation2 + $0x20] sm:$0xff] %vm19_vm0, %v796_v32 }
   0x6   :  { %v780_v13 = vld [vmem:[%s1088_s0 + $0x44] ss:$8 sps:$4 sm:$0xff]   ;;  %308 = vmatprep.mubr.bf16.mxu0 %v774_v11  ;;  %v769_v15 = vld [vmem:[%s1087_s1 + $0x30] sm:$0xff]   ;;  %v771_v17 = vld [vmem:[%s1087_s1 + $0x38] sm:$0xff]   ;;  %25 = vst.msk [vmem:[#allocation2 + $0x28] sm:$0xff] %vm19_vm0, %v796_v32 }
   0x7   :  { %678 = vmatpush3.bf16.msra.mxu0 %v759_v3  ;;  %748 = vmatpush3.bf16.msra.mxu1 %v759_v3  ;;  %v772_v18 = vld [vmem:[%s1088_s0] ss:$8 sps:$4 sm:$0xff]   ;;  %v775_v20 = vld [vmem:[%s1088_s0 + $0x14] ss:$8 sps:$4 sm:$0xff]   ;;  %v777_v22 = vld [vmem:[%s1088_s0 + $0x10] ss:$8 sps:$4 sm:$0xff]  }
   0x8   :  { %679 = vmatprep.subr.bf16.mxu0 %v760_v4  ;;  %741 = vmatprep.subr.bf16.mxu1 %v760_v4  ;;  %v778_v19 = vld [vmem:[%s1088_s0 + $0x40] ss:$8 sps:$4 sm:$0xff]   ;;  %v784_v21 = vld [vmem:[%s1088_s0 + $0x54] ss:$8 sps:$4 sm:$0xff]   ;;  %v786_v23 = vld [vmem:[%s1088_s0 + $0x50] ss:$8 sps:$4 sm:$0xff]  }
   0x9   :  { %340 = vmatprep.mubr.bf16.mxu1 %v780_v13  ;;  %v781_v24 = vld [vmem:[%s1088_s0 + $0x24] ss:$8 sps:$4 sm:$0xff]   ;;  %v783_v26 = vld [vmem:[%s1088_s0 + $0x20] ss:$8 sps:$4 sm:$0xff]   ;;  %v787_v28 = vld [vmem:[%s1088_s0 + $0x34] ss:$8 sps:$4 sm:$0xff]  }
   0xa   :  { %v790_v25 = vld [vmem:[%s1088_s0 + $0x64] ss:$8 sps:$4 sm:$0xff]   ;;  %v792_v27 = vld [vmem:[%s1088_s0 + $0x60] ss:$8 sps:$4 sm:$0xff]   ;;  %v793_v29 = vld [vmem:[%s1088_s0 + $0x74] ss:$8 sps:$4 sm:$0xff]  }
   0xb   :  { %680 = vmatpush3.bf16.msra.mxu0 %v761_v5  ;;  %749 = vmatpush3.bf16.msra.mxu1 %v761_v5  ;;  %v789_v30 = vld [vmem:[%s1088_s0 + $0x30] ss:$8 sps:$4 sm:$0xff]   ;;  %26 = vst.msk [vmem:[#allocation2 + $0x30] sm:$0xff] %vm19_vm0, %v796_v32  ;;  %27 = vst.msk [vmem:[#allocation2 + $0x38] sm:$0xff] %vm19_vm0, %v796_v32  ;;  %v36_v35 = vld [vmem:[#allocation2] sm:$0xff] }
   0xc   :  { %681 = vmatprep.subr.bf16.mxu0 %v762_v6  ;;  %742 = vmatprep.subr.bf16.mxu1 %v762_v6  ;;  %v795_v31 = vld [vmem:[%s1088_s0 + $0x70] ss:$8 sps:$4 sm:$0xff]   ;;  %28 = vst.msk [vmem:[#allocation2 + $0x40] sm:$0xff] %vm19_vm0, %v796_v32  ;;  %29 = vst.msk [vmem:[#allocation2 + $0x48] sm:$0xff] %vm19_vm0, %v796_v32  ;;  %v37_v43 = vld [vmem:[#allocation2 + $0x8] sm:$0xff] }
   0xd   :  { %30 = vst.msk [vmem:[#allocation2 + $0x50] sm:$0xff] %vm19_vm0, %v796_v32  ;;  %31 = vst.msk [vmem:[#allocation2 + $0x58] sm:$0xff] %vm19_vm0, %v796_v32  ;;  %v38_v55 = vld [vmem:[#allocation2 + $0x10] sm:$0xff]  ;;  %v39_v63 = vld [vmem:[#allocation2 + $0x18] sm:$0xff] }
   0xe   :  { %32 = vst.msk [vmem:[#allocation2 + $0x60] sm:$0xff] %vm19_vm0, %v796_v32  ;;  %33 = vst.msk [vmem:[#allocation2 + $0x68] sm:$0xff] %vm19_vm0, %v796_v32 }
   0xf   :  { %682 = vmatpush3.bf16.msra.mxu0 %v763_v7  ;;  %750 = vmatpush3.bf16.msra.mxu1 %v763_v7  ;;  %34 = vst.msk [vmem:[#allocation2 + $0x70] sm:$0xff] %vm19_vm0, %v796_v32  ;;  %35 = vst.msk [vmem:[#allocation2 + $0x78] sm:$0xff] %vm19_vm0, %v796_v32 }
  0x10   :  { %683 = vmatprep.subr.bf16.mxu0 %v764_v8  ;;  %743 = vmatprep.subr.bf16.mxu1 %v764_v8 }
  0x13   :  { %684 = vmatpush3.bf16.msra.mxu0 %v765_v9  ;;  %751 = vmatpush3.bf16.msra.mxu1 %v765_v9  ;;  %v44_v37 = vld [vmem:[#allocation2 + $0x40] sm:$0xff]  ;;  %v45_v45 = vld [vmem:[#allocation2 + $0x48] sm:$0xff] }
  0x14   :  { %685 = vmatprep.subr.bf16.mxu0 %v766_v10  ;;  %744 = vmatprep.subr.bf16.mxu1 %v766_v10  ;;  %v46_v57 = vld [vmem:[#allocation2 + $0x50] sm:$0xff]  ;;  %v47_v5 = vld [vmem:[#allocation2 + $0x58] sm:$0xff] }
  0x17   :  { %686 = vmatpush3.bf16.msra.mxu0 %v767_v12  ;;  %752 = vmatpush3.bf16.msra.mxu1 %v767_v12 }
  0x18   :  { %687 = vmatprep.subr.bf16.mxu0 %v768_v14  ;;  %745 = vmatprep.subr.bf16.mxu1 %v768_v14 }
  0x1b   :  { %688 = vmatpush3.bf16.msra.mxu0 %v769_v15  ;;  %753 = vmatpush3.bf16.msra.mxu1 %v769_v15 }
  0x1c   :  { %689 = vmatprep.subr.bf16.mxu0 %v770_v16  ;;  %746 = vmatprep.subr.bf16.mxu1 %v770_v16 }
  0x1f   :  { %690 = vmatpush3.bf16.msra.mxu0 %v771_v17  ;;  %754 = vmatpush3.bf16.msra.mxu1 %v771_v17 }
  0x22   :  { %309 = vmatmul.mubr.bf16.vlgmr.msra.gmra.mrb[0].mxu0 %v772_v18  ;;  %341 = vmatmul.mubr.bf16.vlgmr.msra.gmra.mrb[0].mxu1 %v778_v19  ;;  %v40_v19 = vld [vmem:[#allocation2 + $0x20] sm:$0xff] }
  0x23   :  { %316 = vmatprep.mubr.bf16.mxu0 %v775_v20  ;;  %348 = vmatprep.mubr.bf16.mxu1 %v784_v21  ;;  %v48_v21 = vld [vmem:[#allocation2 + $0x60] sm:$0xff] }
  0x2a   :  { %317 = vmatmul.mubr.bf16.gmra.mrb[4].mxu0 %v777_v22  ;;  %349 = vmatmul.mubr.bf16.gmra.mrb[4].mxu1 %v786_v23 }
  0x2b   :  { %324 = vmatprep.mubr.bf16.mxu0 %v781_v24  ;;  %356 = vmatprep.mubr.bf16.mxu1 %v790_v25 }
  0x32   :  { %325 = vmatmul.mubr.bf16.gmra.mrb[8].mxu0 %v783_v26  ;;  %357 = vmatmul.mubr.bf16.gmra.mrb[8].mxu1 %v792_v27  ;;  %v41_v27 = vld [vmem:[#allocation2 + $0x28] sm:$0xff] }
  0x33   :  { %332 = vmatprep.mubr.bf16.mxu0 %v787_v28  ;;  %364 = vmatprep.mubr.bf16.mxu1 %v793_v29 }
  0x3a   :  { %333 = vmatmul.mubr.bf16.gmra.mrb[12].mxu0 %v789_v30  ;;  %365 = vmatmul.mubr.bf16.gmra.mrb[12].mxu1 %v795_v31 }
  0xf5   :  { %v691_v33 = vpop.f32.mrb[0].mxu0  ;;  %v715_v34 = vpop.f32.mrb[0].mxu1 }
  0xf6   :  { %v692_v36 = vpop.f32.mrb[1].mxu0  ;;  %v716_v38 = vpop.f32.mrb[1].mxu1 }
  0xf7   :  { %v693_v39 = vadd.f32 %v692_v36, %v691_v33  ;;  %v694_v40 = vpop.f32.mrb[2].mxu0  ;;  %v717_v41 = vadd.f32 %v716_v38, %v715_v34  ;;  %v718_v42 = vpop.f32.mrb[2].mxu1 }
  0xf8   :  { %v695_v44 = vpop.f32.mrb[3].mxu0  ;;  %v719_v46 = vpop.f32.mrb[3].mxu1 }
  0xf9   :  { %v373_v47 = vadd.f32 %v693_v39, %v36_v35  ;;  %v696_v48 = vadd.f32 %v695_v44, %v694_v40  ;;  %v381_v49 = vadd.f32 %v717_v41, %v44_v37  ;;  %v720_v50 = vadd.f32 %v719_v46, %v718_v42  ;;  %v49_v44 = vld [vmem:[#allocation2 + $0x68] sm:$0xff] }
  0xfb   :  { %390 = vst.msk [vmem:[#allocation2] sm:$0xff] %vm19_vm0, %v373_v47  ;;  %v374_v51 = vadd.f32 %v696_v48, %v37_v43  ;;  %398 = vst.msk [vmem:[#allocation2 + $0x40] sm:$0xff] %vm19_vm0, %v381_v49  ;;  %v382_v52 = vadd.f32 %v720_v50, %v45_v45 }
  0xfd   :  { %391 = vst.msk [vmem:[#allocation2 + $0x8] sm:$0xff] %vm19_vm0, %v374_v51  ;;  %v697_v53 = vpop.f32.mrb[4].mxu0  ;;  %399 = vst.msk [vmem:[#allocation2 + $0x48] sm:$0xff] %vm19_vm0, %v382_v52  ;;  %v721_v54 = vpop.f32.mrb[4].mxu1 }
  0xfe   :  { %v698_v56 = vpop.f32.mrb[5].mxu0  ;;  %v722_v58 = vpop.f32.mrb[5].mxu1 }
  0xff   :  { %v699_v59 = vadd.f32 %v698_v56, %v697_v53  ;;  %v700_v60 = vpop.f32.mrb[6].mxu0  ;;  %v723_v61 = vadd.f32 %v722_v58, %v721_v54  ;;  %v724_v62 = vpop.f32.mrb[6].mxu1 }
 0x100   :  { %v701_v0 = vpop.f32.mrb[7].mxu0  ;;  %v725_v1 = vpop.f32.mrb[7].mxu1 }
 0x101   :  { %v375_v2 = vadd.f32 %v699_v59, %v38_v55  ;;  %v702_v3 = vadd.f32 %v701_v0, %v700_v60  ;;  %v383_v4 = vadd.f32 %v723_v61, %v46_v57  ;;  %v726_v6 = vadd.f32 %v725_v1, %v724_v62  ;;  %v42_v55 = vld [vmem:[#allocation2 + $0x30] sm:$0xff] }
 0x102   :  { %v409_v7 = vld [vmem:[#allocation2] sm:$0xff]  ;;  %v50_v62 = vld [vmem:[#allocation2 + $0x70] sm:$0xff] }
 0x103   :  { %v938_v8 = vld [vmem:[#allocation2 + $0x40] sm:$0xff]  ;;  %v659_v9 = vpack.c.bf16 %v409_v7, %v409_v7  ;;  %392 = vst.msk [vmem:[#allocation2 + $0x10] sm:$0xff] %vm19_vm0, %v375_v2  ;;  %v376_v10 = vadd.f32 %v702_v3, %v39_v63  ;;  %400 = vst.msk [vmem:[#allocation2 + $0x50] sm:$0xff] %vm19_vm0, %v383_v4  ;;  %v384_v14 = vadd.f32 %v726_v6, %v47_v5  ;;  %v506_v45 = vsel %vm19_vm0, %v409_v7, 0.0  ;;  %v43_v2 = vld [vmem:[#allocation2 + $0x38] sm:$0xff] }
 0x104   :  { %v410_v11 = vld [vmem:[#allocation2 + $0x8] sm:$0xff]  ;;  %v667_v12 = vpack.c.bf16 %v938_v8, %v938_v8  ;;  %v545_v34 = vmul.f32 %v409_v7, %v409_v7 }
 0x105   :  { %v944_v13 = vld [vmem:[#allocation2 + $0x48] sm:$0xff]  ;;  %490 = vst.msk [vmem:[%s1089_s2] sm:$0xf] %vm489_vm1, %v659_v9  ;;  %v660_v15 = vpack.c.bf16 %v410_v11, %v410_v11  ;;  %v703_v16 = vpop.f32.mrb[8].mxu0  ;;  %v727_v17 = vpop.f32.mrb[8].mxu1  ;;  %v546_v30 = vmul.f32 %v410_v11, %v410_v11  ;;  %v507_v38 = vsel %vm19_vm0, %v410_v11, 0.0 }
 0x106   :  { %393 = vst.msk [vmem:[#allocation2 + $0x18] sm:$0xff] %vm19_vm0, %v376_v10  ;;  %v668_v18 = vpack.c.bf16 %v944_v13, %v944_v13  ;;  %v704_v20 = vpop.f32.mrb[9].mxu0  ;;  %401 = vst.msk [vmem:[#allocation2 + $0x58] sm:$0xff] %vm19_vm0, %v384_v14  ;;  %v728_v22 = vpop.f32.mrb[9].mxu1  ;;  %v508_v52 = vadd.f32 %v507_v38, %v506_v45  ;;  %v561_v58 = vsel %vm19_vm0, %v545_v34, 0.0 }
 0x107   :  { %498 = vst.msk [vmem:[%s1089_s2 + $0x20] sm:$0xf] %vm489_vm1, %v667_v12  ;;  %491 = vst.msk [vmem:[%s1089_s2 + $0x4] sm:$0xf] %vm489_vm1, %v660_v15  ;;  %v705_v23 = vadd.f32 %v704_v20, %v703_v16  ;;  %v706_v24 = vpop.f32.mrb[10].mxu0  ;;  %v729_v25 = vadd.f32 %v728_v22, %v727_v17  ;;  %v730_v26 = vpop.f32.mrb[10].mxu1 }
 0x108   :  { %499 = vst.msk [vmem:[%s1089_s2 + $0x24] sm:$0xf] %vm489_vm1, %v668_v18  ;;  %v707_v28 = vpop.f32.mrb[11].mxu0  ;;  %v731_v29 = vpop.f32.mrb[11].mxu1  ;;  %v562_v46 = vsel %vm19_vm0, %v546_v30, 0.0  ;;  %v51_v22 = vld [vmem:[#allocation2 + $0x78] sm:$0xff] }
 0x109   :  { %v377_v31 = vadd.f32 %v705_v23, %v40_v19  ;;  %v708_v32 = vadd.f32 %v707_v28, %v706_v24  ;;  %v385_v33 = vadd.f32 %v729_v25, %v48_v21  ;;  %v732_v37 = vadd.f32 %v731_v29, %v730_v26 }
 0x10a   :  { %v411_v35 = vld [vmem:[#allocation2 + $0x10] sm:$0xff]  ;;  %v563_v0 = vadd.f32 %v562_v46, %v561_v58 }
 0x10b   :  { %v966_v36 = vld [vmem:[#allocation2 + $0x50] sm:$0xff]  ;;  %v661_v39 = vpack.c.bf16 %v411_v35, %v411_v35  ;;  %v547_v40 = vmul.f32 %v411_v35, %v411_v35  ;;  %394 = vst.msk [vmem:[#allocation2 + $0x20] sm:$0xff] %vm19_vm0, %v377_v31  ;;  %v378_v41 = vadd.f32 %v708_v32, %v41_v27  ;;  %402 = vst.msk [vmem:[#allocation2 + $0x60] sm:$0xff] %vm19_vm0, %v385_v33  ;;  %v509_v47 = vsel %vm19_vm0, %v411_v35, 0.0 }
 0x10c   :  { %v669_v43 = vpack.c.bf16 %v966_v36, %v966_v36  ;;  %v510_v1 = vadd.f32 %v509_v47, %v508_v52  ;;  %v386_v4 = vadd.f32 %v732_v37, %v49_v44  ;;  %v553_v44 = vmul.f32 %v938_v8, %v938_v8 }
 0x10d   :  { %v412_v42 = vld [vmem:[#allocation2 + $0x18] sm:$0xff]  ;;  %492 = vst.msk [vmem:[%s1089_s2 + $0x8] sm:$0xf] %vm489_vm1, %v661_v39  ;;  %v709_v49 = vpop.f32.mrb[12].mxu0  ;;  %v733_v51 = vpop.f32.mrb[12].mxu1  ;;  %v564_v59 = vsel %vm19_vm0, %v547_v40, 0.0 }
 0x10e   :  { %v662_v48 = vpack.c.bf16 %v412_v42, %v412_v42  ;;  %395 = vst.msk [vmem:[#allocation2 + $0x28] sm:$0xff] %vm19_vm0, %v378_v41  ;;  %v981_v50 = vld [vmem:[#allocation2 + $0x58] sm:$0xff]  ;;  %v548_v53 = vmul.f32 %v412_v42, %v412_v42  ;;  %v710_v56 = vpop.f32.mrb[13].mxu0  ;;  %v734_v57 = vpop.f32.mrb[13].mxu1  ;;  %v511_v7 = vsel %vm19_vm0, %v412_v42, 0.0  ;;  %v565_v12 = vadd.f32 %v564_v59, %v563_v0  ;;  %403 = vst.msk [vmem:[#allocation2 + $0x68] sm:$0xff] %vm19_vm0, %v386_v4 }
 0x10f   :  { %500 = vst.msk [vmem:[%s1089_s2 + $0x28] sm:$0xf] %vm489_vm1, %v669_v43  ;;  %v670_v54 = vpack.c.bf16 %v981_v50, %v981_v50  ;;  %v711_v60 = vadd.f32 %v710_v56, %v709_v49  ;;  %v712_v61 = vpop.f32.mrb[14].mxu0  ;;  %v736_v63 = vpop.f32.mrb[14].mxu1  ;;  %v735_v5 = vadd.f32 %v734_v57, %v733_v51  ;;  %v512_v23 = vadd.f32 %v511_v7, %v510_v1 }
 0x110   :  { %493 = vst.msk [vmem:[%s1089_s2 + $0xc] sm:$0xf] %vm489_vm1, %v662_v48  ;;  %v713_v3 = vpop.f32.mrb[15].mxu0  ;;  %v737_v6 = vpop.f32.mrb[15].mxu1  ;;  %v566_v14 = vsel %vm19_vm0, %v548_v53, 0.0  ;;  %v521_v56 = vsel %vm19_vm0, %v938_v8, 0.0  ;;  %v554_v57 = vmul.f32 %v944_v13, %v944_v13  ;;  %v555_v8 = vmul.f32 %v966_v36, %v966_v36 }
 0x111   :  { %501 = vst.msk [vmem:[%s1089_s2 + $0x2c] sm:$0xf] %vm489_vm1, %v670_v54  ;;  %v379_v9 = vadd.f32 %v711_v60, %v42_v55  ;;  %v714_v10 = vadd.f32 %v713_v3, %v712_v61  ;;  %v738_v11 = vadd.f32 %v737_v6, %v736_v63  ;;  %v387_v17 = vadd.f32 %v735_v5, %v50_v62 }
 0x112   :  { %v413_v15 = vld [vmem:[#allocation2 + $0x20] sm:$0xff]  ;;  %v567_v29 = vadd.f32 %v566_v14, %v565_v12  ;;  %v576_v63 = vsel %vm19_vm0, %v553_v44, 0.0  ;;  %v523_v0 = vsel %vm19_vm0, %v944_v13, 0.0  ;;  %v578_v3 = vsel %vm19_vm0, %v554_v57, 0.0 }
 0x113   :  { %v1001_v16 = vld [vmem:[#allocation2 + $0x60] sm:$0xff]  ;;  %v663_v18 = vpack.c.bf16 %v413_v15, %v413_v15  ;;  %v513_v19 = vsel %vm19_vm0, %v413_v15, 0.0  ;;  %v549_v20 = vmul.f32 %v413_v15, %v413_v15  ;;  %396 = vst.msk [vmem:[#allocation2 + $0x30] sm:$0xff] %vm19_vm0, %v379_v9  ;;  %v380_v21 = vadd.f32 %v714_v10, %v43_v2  ;;  %404 = vst.msk [vmem:[#allocation2 + $0x70] sm:$0xff] %vm19_vm0, %v387_v17 }
 0x114   :  { %v671_v25 = vpack.c.bf16 %v1001_v16, %v1001_v16  ;;  %v514_v30 = vadd.f32 %v513_v19, %v512_v23  ;;  %v388_v31 = vadd.f32 %v738_v11, %v51_v22  ;;  %v525_v4 = vsel %vm19_vm0, %v966_v36, 0.0 }
 0x115   :  { %v414_v24 = vld [vmem:[#allocation2 + $0x28] sm:$0xff]  ;;  %494 = vst.msk [vmem:[%s1089_s2 + $0x10] sm:$0xf] %vm489_vm1, %v663_v18  ;;  %v568_v26 = vsel %vm19_vm0, %v549_v20, 0.0  ;;  %v556_v5 = vmul.f32 %v981_v50, %v981_v50  ;;  %v580_v7 = vsel %vm19_vm0, %v555_v8, 0.0  ;;  %v527_v9 = vsel %vm19_vm0, %v981_v50, 0.0 }
 0x116   :  { %v664_v27 = vpack.c.bf16 %v414_v24, %v414_v24  ;;  %v550_v28 = vmul.f32 %v414_v24, %v414_v24  ;;  %397 = vst.msk [vmem:[#allocation2 + $0x38] sm:$0xff] %vm19_vm0, %v380_v21  ;;  %v515_v32 = vsel %vm19_vm0, %v414_v24, 0.0  ;;  %v569_v33 = vadd.f32 %v568_v26, %v567_v29  ;;  %405 = vst.msk [vmem:[#allocation2 + $0x78] sm:$0xff] %vm19_vm0, %v388_v31  ;;  %v422_v35 = vld [vmem:[#allocation2 + $0x68] sm:$0xff] }
 0x117   :  { %502 = vst.msk [vmem:[%s1089_s2 + $0x30] sm:$0xf] %vm489_vm1, %v671_v25  ;;  %v516_v37 = vadd.f32 %v515_v32, %v514_v30  ;;  %v672_v39 = vpack.c.bf16 %v422_v35, %v422_v35  ;;  %v557_v10 = vmul.f32 %v1001_v16, %v1001_v16  ;;  %v582_v14 = vsel %vm19_vm0, %v556_v5, 0.0 }
 0x118   :  { %495 = vst.msk [vmem:[%s1089_s2 + $0x14] sm:$0xf] %vm489_vm1, %v664_v27  ;;  %v570_v34 = vsel %vm19_vm0, %v550_v28, 0.0  ;;  %v529_v36 = vsel %vm19_vm0, %v1001_v16, 0.0  ;;  %v558_v15 = vmul.f32 %v422_v35, %v422_v35  ;;  %v531_v21 = vsel %vm19_vm0, %v422_v35, 0.0 }
 0x119   :  { %v571_v45 = vadd.f32 %v570_v34, %v569_v33  ;;  %503 = vst.msk [vmem:[%s1089_s2 + $0x34] sm:$0xf] %vm489_vm1, %v672_v39  ;;  %v584_v20 = vsel %vm19_vm0, %v557_v10, 0.0 }
 0x11a   :  { %v415_v38 = vld [vmem:[#allocation2 + $0x30] sm:$0xff]  ;;  %v586_v24 = vsel %vm19_vm0, %v558_v15, 0.0 }
 0x11b   :  { %v665_v40 = vpack.c.bf16 %v415_v38, %v415_v38  ;;  %v517_v41 = vsel %vm19_vm0, %v415_v38, 0.0  ;;  %v551_v42 = vmul.f32 %v415_v38, %v415_v38  ;;  %v423_v43 = vld [vmem:[#allocation2 + $0x70] sm:$0xff] }
 0x11c   :  { %v518_v46 = vadd.f32 %v517_v41, %v516_v37  ;;  %v673_v48 = vpack.c.bf16 %v423_v43, %v423_v43  ;;  %v559_v17 = vmul.f32 %v423_v43, %v423_v43  ;;  %v533_v50 = vsel %vm19_vm0, %v423_v43, 0.0 }
 0x11d   :  { %v416_v47 = vld [vmem:[#allocation2 + $0x38] sm:$0xff]  ;;  %496 = vst.msk [vmem:[%s1089_s2 + $0x18] sm:$0xf] %vm489_vm1, %v665_v40  ;;  %v572_v49 = vsel %vm19_vm0, %v551_v42, 0.0 }
 0x11e   :  { %v666_v51 = vpack.c.bf16 %v416_v47, %v416_v47  ;;  %v519_v52 = vsel %vm19_vm0, %v416_v47, 0.0  ;;  %v552_v53 = vmul.f32 %v416_v47, %v416_v47  ;;  %v573_v54 = vadd.f32 %v572_v49, %v571_v45  ;;  %504 = vst.msk [vmem:[%s1089_s2 + $0x38] sm:$0xf] %vm489_vm1, %v673_v48  ;;  %v424_v59 = vld [vmem:[#allocation2 + $0x78] sm:$0xff] }
 0x11f   :  { %v520_v55 = vadd.f32 %v519_v52, %v518_v46  ;;  %v674_v62 = vpack.c.bf16 %v424_v59, %v424_v59  ;;  %v588_v25 = vsel %vm19_vm0, %v559_v17, 0.0  ;;  %v560_v26 = vmul.f32 %v424_v59, %v424_v59 }
 0x120   :  { %497 = vst.msk [vmem:[%s1089_s2 + $0x1c] sm:$0xf] %vm489_vm1, %v666_v51  ;;  %v574_v58 = vsel %vm19_vm0, %v552_v53, 0.0  ;;  %v535_v16 = vsel %vm19_vm0, %v424_v59, 0.0 }
 0x121   :  { %v522_v60 = vadd.f32 %v521_v56, %v520_v55  ;;  %v575_v61 = vadd.f32 %v574_v58, %v573_v54  ;;  %505 = vst.msk [vmem:[%s1089_s2 + $0x3c] sm:$0xf] %vm489_vm1, %v674_v62  ;;  %v590_v31 = vsel %vm19_vm0, %v560_v26, 0.0 }
 0x123   :  { %v524_v1 = vadd.f32 %v523_v0, %v522_v60  ;;  %v577_v2 = vadd.f32 %v576_v63, %v575_v61 }
 0x125   :  { %v579_v6 = vadd.f32 %v578_v3, %v577_v2  ;;  %v526_v13 = vadd.f32 %v525_v4, %v524_v1 }
 0x127   :  { %v528_v11 = vadd.f32 %v527_v9, %v526_v13  ;;  %v581_v12 = vadd.f32 %v580_v7, %v579_v6 }
 0x129   :  { %v530_v18 = vadd.f32 %v529_v36, %v528_v11  ;;  %v583_v19 = vadd.f32 %v582_v14, %v581_v12 }
 0x12b   :  { %v585_v22 = vadd.f32 %v584_v20, %v583_v19  ;;  %v532_v23 = vadd.f32 %v531_v21, %v530_v18 }
 0x12d   :  { %v587_v27 = vadd.f32 %v586_v24, %v585_v22  ;;  %v534_v28 = vadd.f32 %v533_v50, %v532_v23 }
 0x12f   :  { %v589_v29 = vadd.f32 %v588_v25, %v587_v27  ;;  %v536_v30 = vadd.f32 %v535_v16, %v534_v28 }
 0x131   :  { %v537_v32 = vrot.slane %v536_v30, 4  ;;  %v591_v33 = vadd.f32 %v590_v31, %v589_v29 }
 0x133   :  { %v538_v34 = vadd.f32 %v537_v32, %v536_v30  ;;  %v592_v35 = vrot.slane %v591_v33, 4 }
 0x135   :  { %v539_v37 = vrot.slane %v538_v34, 2  ;;  %v593_v38 = vadd.f32 %v592_v35, %v591_v33 }
 0x137   :  { %v540_v39 = vadd.f32 %v539_v37, %v538_v34  ;;  %v594_v40 = vrot.slane %v593_v38, 2 }
 0x139   :  { %v541_v41 = vrot.slane %v540_v39, 1  ;;  %v595_v42 = vadd.f32 %v594_v40, %v593_v38 }
 0x13b   :  { %v542_v43 = vadd.f32 %v541_v41, %v540_v39  ;;  %v596_v44 = vrot.slane %v595_v42, 1 }
 0x13d   :  { %544 = vst.msk [vmem:[%s1090_s3] sm:$0x1] %vm543_vm2, %v542_v43  ;;  %v597_v45 = vadd.f32 %v596_v44, %v595_v42 }
 0x13f   :  { %598 = vst.msk [vmem:[%s1091_s4] sm:$0x1] %vm543_vm2, %v597_v45 }

// kernel: _lambda_.12
= control target key start
LH: loop header
LB: loop body
LE: loop exit
PB: predicated region body
PF: predicated region fallthrough
CT: control target
= control target key end

     0   :  { %vm204_vm0 = vcmask 257024   ;;  %s448_s0 = inlined_call_operand.vmem [shape: bf16[128,32], index: 0, kind: input, shape index: {}]   ;;  %s449_s1 = inlined_call_operand.vmem [shape: f32[1,32], index: 1, kind: input, shape index: {}]   ;;  %s450_s2 = inlined_call_operand.vmem [shape: f32[1,32], index: 2, kind: input, shape index: {}]   ;;  %s451_s3 = inlined_call_operand.vmem [shape: bf16[128,32], index: 3, kind: output, shape index: {}]  }
   0x1   :  { %v260_v0 = vld [vmem:[%s448_s0] sm:$0xff]   ;;  %v291_v4 = vld [vmem:[%s448_s0 + $0x8] sm:$0xff]   ;;  %v292_v5 = vld [vmem:[%s448_s0 + $0x10] sm:$0xff]  }
   0x2   :  { %v324_v1 = vld [vmem:[%s449_s1] ss:$0 sm:$0xff]  ;;  %v261_v2 = vunpack.c.l.bf16 %v260_v0  ;;  %v262_v3 = vunpack.c.h.bf16 %v260_v0  ;;  %v293_v6 = vld [vmem:[%s448_s0 + $0x18] sm:$0xff]   ;;  %v265_v8 = vunpack.c.l.bf16 %v291_v4  ;;  %v266_v9 = vunpack.c.h.bf16 %v291_v4  ;;  %v295_v40 = vld [vmem:[%s448_s0 + $0x28] sm:$0xff]  }
   0x3   :  { %v338_v7 = vld [vmem:[%s450_s2] ss:$0 sm:$0xff]  ;;  %v269_v10 = vunpack.c.l.bf16 %v292_v5  ;;  %v270_v11 = vunpack.c.h.bf16 %v292_v5  ;;  %v273_v14 = vunpack.c.l.bf16 %v293_v6  ;;  %v274_v15 = vunpack.c.h.bf16 %v293_v6  ;;  %v296_v52 = vld [vmem:[%s448_s0 + $0x30] sm:$0xff]  }
   0x4   :  { %v53_v12 = vmul.f32 %v261_v2, %v324_v1  ;;  %v54_v13 = vmul.f32 %v262_v3, %v324_v1  ;;  %v55_v16 = vmul.f32 %v265_v8, %v324_v1  ;;  %v56_v17 = vmul.f32 %v266_v9, %v324_v1  ;;  %v294_v39 = vld [vmem:[%s448_s0 + $0x20] sm:$0xff]  }
   0x5   :  { %v57_v18 = vmul.f32 %v269_v10, %v324_v1  ;;  %v58_v19 = vmul.f32 %v270_v11, %v324_v1  ;;  %v59_v22 = vmul.f32 %v273_v14, %v324_v1  ;;  %v60_v23 = vmul.f32 %v274_v15, %v324_v1 }
   0x6   :  { %v76_v20 = vadd.f32 %v338_v7, %v53_v12  ;;  %v77_v21 = vadd.f32 %v338_v7, %v54_v13  ;;  %v78_v24 = vadd.f32 %v338_v7, %v55_v16  ;;  %v79_v25 = vadd.f32 %v338_v7, %v56_v17  ;;  %v297_v17 = vld [vmem:[%s448_s0 + $0x38] sm:$0xff]  }
   0x7   :  { %v80_v26 = vadd.f32 %v338_v7, %v57_v18  ;;  %v81_v27 = vadd.f32 %v338_v7, %v58_v19  ;;  %v82_v46 = vadd.f32 %v338_v7, %v59_v22  ;;  %v83_v47 = vadd.f32 %v338_v7, %v60_v23 }
   0x8   :  { %vm92_vm1 = vcmp.ge.f32.partialorder %v76_v20, 0.0  ;;  %v108_v28 = vmul.f32 0.2, %v76_v20  ;;  %vm93_vm2 = vcmp.ge.f32.partialorder %v77_v21, 0.0  ;;  %v109_v29 = vmul.f32 0.2, %v77_v21 }
   0x9   :  { %vm94_vm3 = vcmp.ge.f32.partialorder %v78_v24, 0.0  ;;  %v110_v30 = vmul.f32 0.2, %v78_v24  ;;  %vm95_vm4 = vcmp.ge.f32.partialorder %v79_v25, 0.0  ;;  %v111_v31 = vmul.f32 0.2, %v79_v25 }
   0xa   :  { %v124_v32 = vsel %vm92_vm1, %v76_v20, %v108_v28  ;;  %v125_v33 = vsel %vm93_vm2, %v77_v21, %v109_v29  ;;  %vm96_vm5 = vcmp.ge.f32.partialorder %v80_v26, 0.0  ;;  %v112_v34 = vmul.f32 0.2, %v80_v26 }
   0xb   :  { %v243_v35 = vpack.c.bf16 %v124_v32, %v124_v32  ;;  %v244_v36 = vpack.c.bf16 %v125_v33, %v125_v33  ;;  %v126_v37 = vsel %vm94_vm3, %v78_v24, %v110_v30  ;;  %v127_v38 = vsel %vm95_vm4, %v79_v25, %v111_v31 }
   0xc   :  { %v245_v41 = vpack.c.bf16 %v126_v37, %v126_v37  ;;  %v246_v42 = vpack.c.bf16 %v127_v38, %v127_v38  ;;  %v128_v43 = vsel %vm96_vm5, %v80_v26, %v112_v34  ;;  %vm97_vm6 = vcmp.ge.f32.partialorder %v81_v27, 0.0 }
   0xd   :  { %205 = vst.msk [vmem:[%s451_s3] sm:$0xf] %vm204_vm0, %v243_v35  ;;  %206 = vst.msk [vmem:[%s451_s3 + $0x4] sm:$0xf] %vm204_vm0, %v244_v36  ;;  %v247_v44 = vpack.c.bf16 %v128_v43, %v128_v43  ;;  %v113_v45 = vmul.f32 0.2, %v81_v27  ;;  %v277_v48 = vunpack.c.l.bf16 %v294_v39  ;;  %v278_v49 = vunpack.c.h.bf16 %v294_v39 }
   0xe   :  { %207 = vst.msk [vmem:[%s451_s3 + $0x8] sm:$0xf] %vm204_vm0, %v245_v41  ;;  %208 = vst.msk [vmem:[%s451_s3 + $0xc] sm:$0xf] %vm204_vm0, %v246_v42  ;;  %v281_v50 = vunpack.c.l.bf16 %v295_v40  ;;  %v282_v51 = vunpack.c.h.bf16 %v295_v40  ;;  %vm98_vm7 = vcmp.ge.f32.partialorder %v82_v46, 0.0  ;;  %vm99_vm8 = vcmp.ge.f32.partialorder %v83_v47, 0.0 }
   0xf   :  { %209 = vst.msk [vmem:[%s451_s3 + $0x10] sm:$0xf] %vm204_vm0, %v247_v44  ;;  %v129_v53 = vsel %vm97_vm6, %v81_v27, %v113_v45  ;;  %v114_v54 = vmul.f32 0.2, %v82_v46  ;;  %v115_v56 = vmul.f32 0.2, %v83_v47  ;;  %v61_v57 = vmul.f32 %v277_v48, %v324_v1 }
  0x10   :  { %v248_v55 = vpack.c.bf16 %v129_v53, %v129_v53  ;;  %v62_v58 = vmul.f32 %v278_v49, %v324_v1  ;;  %v63_v60 = vmul.f32 %v281_v50, %v324_v1  ;;  %v64_v61 = vmul.f32 %v282_v51, %v324_v1 }
  0x11   :  { %v130_v59 = vsel %vm98_vm7, %v82_v46, %v114_v54  ;;  %v285_v62 = vunpack.c.l.bf16 %v296_v52  ;;  %v131_v0 = vsel %vm99_vm8, %v83_v47, %v115_v56  ;;  %v84_v2 = vadd.f32 %v338_v7, %v61_v57 }
  0x12   :  { %210 = vst.msk [vmem:[%s451_s3 + $0x14] sm:$0xf] %vm204_vm0, %v248_v55  ;;  %v249_v63 = vpack.c.bf16 %v130_v59, %v130_v59  ;;  %v85_v3 = vadd.f32 %v338_v7, %v62_v58  ;;  %v250_v4 = vpack.c.bf16 %v131_v0, %v131_v0  ;;  %v86_v5 = vadd.f32 %v338_v7, %v63_v60 }
  0x13   :  { %v87_v6 = vadd.f32 %v338_v7, %v64_v61  ;;  %v65_v8 = vmul.f32 %v285_v62, %v324_v1  ;;  %vm100_vm9 = vcmp.ge.f32.partialorder %v84_v2, 0.0  ;;  %v116_v9 = vmul.f32 0.2, %v84_v2 }
  0x14   :  { %211 = vst.msk [vmem:[%s451_s3 + $0x18] sm:$0xf] %vm204_vm0, %v249_v63  ;;  %vm101_vm10 = vcmp.ge.f32.partialorder %v85_v3, 0.0  ;;  %v117_v10 = vmul.f32 0.2, %v85_v3  ;;  %vm102_vm11 = vcmp.ge.f32.partialorder %v86_v5, 0.0  ;;  %v286_v16 = vunpack.c.h.bf16 %v296_v52 }
  0x15   :  { %212 = vst.msk [vmem:[%s451_s3 + $0x1c] sm:$0xf] %vm204_vm0, %v250_v4  ;;  %v118_v11 = vmul.f32 0.2, %v86_v5  ;;  %vm103_vm12 = vcmp.ge.f32.partialorder %v87_v6, 0.0  ;;  %v132_v13 = vsel %vm100_vm9, %v84_v2, %v116_v9  ;;  %v88_v15 = vadd.f32 %v338_v7, %v65_v8 }
  0x16   :  { %v119_v12 = vmul.f32 0.2, %v87_v6  ;;  %v133_v14 = vsel %vm101_vm10, %v85_v3, %v117_v10  ;;  %v251_v18 = vpack.c.bf16 %v132_v13, %v132_v13  ;;  %v66_v25 = vmul.f32 %v286_v16, %v324_v1 }
  0x17   :  { %v252_v19 = vpack.c.bf16 %v133_v14, %v133_v14  ;;  %v134_v20 = vsel %vm102_vm11, %v86_v5, %v118_v11  ;;  %vm104_vm13 = vcmp.ge.f32.partialorder %v88_v15, 0.0  ;;  %v120_v24 = vmul.f32 0.2, %v88_v15 }
  0x18   :  { %v135_v21 = vsel %vm103_vm12, %v87_v6, %v119_v12  ;;  %v253_v22 = vpack.c.bf16 %v134_v20, %v134_v20  ;;  %213 = vst.msk [vmem:[%s451_s3 + $0x20] sm:$0xf] %vm204_vm0, %v251_v18  ;;  %v289_v26 = vunpack.c.l.bf16 %v297_v17  ;;  %v290_v27 = vunpack.c.h.bf16 %v297_v17 }
  0x19   :  { %v254_v23 = vpack.c.bf16 %v135_v21, %v135_v21  ;;  %214 = vst.msk [vmem:[%s451_s3 + $0x24] sm:$0xf] %vm204_vm0, %v252_v19  ;;  %v136_v28 = vsel %vm104_vm13, %v88_v15, %v120_v24  ;;  %v89_v30 = vadd.f32 %v338_v7, %v66_v25 }
  0x1a   :  { %215 = vst.msk [vmem:[%s451_s3 + $0x28] sm:$0xf] %vm204_vm0, %v253_v22  ;;  %v255_v29 = vpack.c.bf16 %v136_v28, %v136_v28  ;;  %v67_v31 = vmul.f32 %v289_v26, %v324_v1  ;;  %v68_v32 = vmul.f32 %v290_v27, %v324_v1 }
  0x1b   :  { %216 = vst.msk [vmem:[%s451_s3 + $0x2c] sm:$0xf] %vm204_vm0, %v254_v23  ;;  %vm105_vm14 = vcmp.ge.f32.partialorder %v89_v30, 0.0  ;;  %v121_v33 = vmul.f32 0.2, %v89_v30 }
  0x1c   :  { %217 = vst.msk [vmem:[%s451_s3 + $0x30] sm:$0xf] %vm204_vm0, %v255_v29  ;;  %v90_v34 = vadd.f32 %v338_v7, %v67_v31  ;;  %v91_v35 = vadd.f32 %v338_v7, %v68_v32 }
  0x1d   :  { %v137_v36 = vsel %vm105_vm14, %v89_v30, %v121_v33 }
  0x1e   :  { %vm106_vm15 = vcmp.ge.f32.partialorder %v90_v34, 0.0  ;;  %v122_v37 = vmul.f32 0.2, %v90_v34  ;;  %vm107_vm1 = vcmp.ge.f32.partialorder %v91_v35, 0.0  ;;  %v256_v38 = vpack.c.bf16 %v137_v36, %v137_v36 }
  0x1f   :  { %v123_v39 = vmul.f32 0.2, %v91_v35 }
  0x20   :  { %v138_v40 = vsel %vm106_vm15, %v90_v34, %v122_v37  ;;  %218 = vst.msk [vmem:[%s451_s3 + $0x34] sm:$0xf] %vm204_vm0, %v256_v38 }
  0x21   :  { %v257_v1 = vpack.c.bf16 %v138_v40, %v138_v40  ;;  %v139_v41 = vsel %vm107_vm1, %v91_v35, %v123_v39 }
  0x22   :  { %v258_v42 = vpack.c.bf16 %v139_v41, %v139_v41 }
  0x23   :  { %219 = vst.msk [vmem:[%s451_s3 + $0x38] sm:$0xf] %vm204_vm0, %v257_v1 }
  0x24   :  { %220 = vst.msk [vmem:[%s451_s3 + $0x3c] sm:$0xf] %vm204_vm0, %v258_v42 }

// kernel: _lambda_.14
= control target key start
LH: loop header
LB: loop body
LE: loop exit
PB: predicated region body
PF: predicated region fallthrough
CT: control target
= control target key end

     0   :  { %vm72_vm4 = vcmask 519168   ;;  %s144_s0 = inlined_call_operand.vmem [shape: bf16[32,64], index: 0, kind: input, shape index: {}]   ;;  %s145_s1 = inlined_call_operand.vmem [shape: f32[1,64], index: 1, kind: input, shape index: {}]   ;;  %s146_s2 = inlined_call_operand.vmem [shape: f32[1,64], index: 2, kind: input, shape index: {}]   ;;  %s147_s3 = inlined_call_operand.vmem [shape: bf16[32,64], index: 3, kind: output, shape index: {}]  }
   0x1   :  { %v92_v0 = vld [vmem:[%s144_s0] sm:$0xff]   ;;  %v99_v4 = vld [vmem:[%s144_s0 + $0x8] sm:$0xff]  }
   0x2   :  { %v81_v1 = vld [vmem:[%s145_s1] ss:$0 sm:$0xff]  ;;  %v93_v2 = vunpack.c.l.bf16 %v92_v0  ;;  %v94_v3 = vunpack.c.h.bf16 %v92_v0  ;;  %v97_v6 = vunpack.c.l.bf16 %v99_v4  ;;  %v98_v7 = vunpack.c.h.bf16 %v99_v4 }
   0x3   :  { %v82_v5 = vld [vmem:[%s146_s2] ss:$0 sm:$0xff] }
   0x4   :  { %v29_v8 = vmul.f32 %v93_v2, %v81_v1  ;;  %v30_v9 = vmul.f32 %v94_v3, %v81_v1  ;;  %v31_v10 = vmul.f32 %v97_v6, %v81_v1  ;;  %v32_v11 = vmul.f32 %v98_v7, %v81_v1 }
   0x6   :  { %v40_v12 = vadd.f32 %v82_v5, %v29_v8  ;;  %v41_v13 = vadd.f32 %v82_v5, %v30_v9  ;;  %v42_v14 = vadd.f32 %v82_v5, %v31_v10  ;;  %v43_v15 = vadd.f32 %v82_v5, %v32_v11 }
   0x8   :  { %vm44_vm0 = vcmp.ge.f32.partialorder %v40_v12, 0.0  ;;  %v48_v16 = vmul.f32 0.2, %v40_v12  ;;  %vm45_vm1 = vcmp.ge.f32.partialorder %v41_v13, 0.0  ;;  %v49_v17 = vmul.f32 0.2, %v41_v13 }
   0x9   :  { %vm46_vm2 = vcmp.ge.f32.partialorder %v42_v14, 0.0  ;;  %v50_v18 = vmul.f32 0.2, %v42_v14  ;;  %vm47_vm3 = vcmp.ge.f32.partialorder %v43_v15, 0.0  ;;  %v51_v19 = vmul.f32 0.2, %v43_v15 }
   0xa   :  { %v52_v20 = vsel %vm44_vm0, %v40_v12, %v48_v16  ;;  %v53_v21 = vsel %vm45_vm1, %v41_v13, %v49_v17 }
   0xb   :  { %v87_v22 = vpack.c.bf16 %v52_v20, %v52_v20  ;;  %v88_v23 = vpack.c.bf16 %v53_v21, %v53_v21  ;;  %v54_v24 = vsel %vm46_vm2, %v42_v14, %v50_v18  ;;  %v55_v25 = vsel %vm47_vm3, %v43_v15, %v51_v19 }
   0xc   :  { %v89_v26 = vpack.c.bf16 %v54_v24, %v54_v24  ;;  %v90_v27 = vpack.c.bf16 %v55_v25, %v55_v25 }
   0xd   :  { %73 = vst.msk [vmem:[%s147_s3] sm:$0xf] %vm72_vm4, %v87_v22  ;;  %74 = vst.msk [vmem:[%s147_s3 + $0x4] sm:$0xf] %vm72_vm4, %v88_v23 }
   0xe   :  { %75 = vst.msk [vmem:[%s147_s3 + $0x8] sm:$0xf] %vm72_vm4, %v89_v26  ;;  %76 = vst.msk [vmem:[%s147_s3 + $0xc] sm:$0xf] %vm72_vm4, %v90_v27 }

// kernel: _lambda_.13
= control target key start
LH: loop header
LB: loop body
LE: loop exit
PB: predicated region body
PF: predicated region fallthrough
CT: control target
= control target key end

     0   :  { %vm19_vm0 = vcmask 523264   ;;  %v661_v40 = vmov 0.0   ;;  %vm462_vm1 = vcmask 519168   ;;  %vm480_vm2 = vcmask 516096   ;;  %s845_s1 = inlined_call_operand.vmem [shape: bf16[512,64], index: 1, kind: input, shape index: {}]   ;;  %s846_s0 = inlined_call_operand.vmem [shape: bf16[32,512], index: 0, kind: input, shape index: {}]   ;;  %s847_s2 = inlined_call_operand.vmem [shape: bf16[32,64], index: 2, kind: output, shape index: {0}]   ;;  %s848_s3 = inlined_call_operand.vmem [shape: f32[1,1,64], index: 3, kind: output, shape index: {1}]   ;;  %s849_s4 = inlined_call_operand.vmem [shape: f32[1,1,64], index: 4, kind: output, shape index: {2}]  }
   0x1   :  { %v617_v0 = vld [vmem:[%s845_s1 + $0x40] sm:$0xff]   ;;  %v621_v4 = vld [vmem:[%s845_s1 + $0x48] sm:$0xff]   ;;  %v625_v8 = vld [vmem:[%s845_s1 + $0x50] sm:$0xff]   ;;  %20 = vst.msk [vmem:[#allocation2] sm:$0xff] %vm19_vm0, %v661_v40 }
   0x2   :  { %v618_v1 = vld [vmem:[%s845_s1 + $0xc0] sm:$0xff]   ;;  %560 = vmatprep.subr.bf16.mxu0 %v617_v0  ;;  %v622_v5 = vld [vmem:[%s845_s1 + $0xc8] sm:$0xff]   ;;  %v626_v9 = vld [vmem:[%s845_s1 + $0xd0] sm:$0xff]   ;;  %21 = vst.msk [vmem:[#allocation2 + $0x8] sm:$0xff] %vm19_vm0, %v661_v40 }
   0x3   :  { %v619_v2 = vld [vmem:[%s845_s1] sm:$0xff]   ;;  %588 = vmatprep.subr.bf16.mxu1 %v618_v1  ;;  %v623_v6 = vld [vmem:[%s845_s1 + $0x8] sm:$0xff]   ;;  %v627_v10 = vld [vmem:[%s845_s1 + $0x10] sm:$0xff]   ;;  %22 = vst.msk [vmem:[#allocation2 + $0x10] sm:$0xff] %vm19_vm0, %v661_v40 }
   0x4   :  { %v620_v3 = vld [vmem:[%s845_s1 + $0x80] sm:$0xff]   ;;  %561 = vmatpush3.bf16.msra.mxu0 %v619_v2  ;;  %v624_v7 = vld [vmem:[%s845_s1 + $0x88] sm:$0xff]   ;;  %v628_v11 = vld [vmem:[%s845_s1 + $0x90] sm:$0xff]   ;;  %23 = vst.msk [vmem:[#allocation2 + $0x18] sm:$0xff] %vm19_vm0, %v661_v40 }
   0x5   :  { %589 = vmatpush3.bf16.msra.mxu1 %v620_v3  ;;  %562 = vmatprep.subr.bf16.mxu0 %v621_v4  ;;  %v629_v12 = vld [vmem:[%s845_s1 + $0x58] sm:$0xff]   ;;  %v633_v16 = vld [vmem:[%s845_s1 + $0x60] sm:$0xff]   ;;  %v637_v20 = vld [vmem:[%s845_s1 + $0x68] sm:$0xff]  }
   0x6   :  { %590 = vmatprep.subr.bf16.mxu1 %v622_v5  ;;  %v630_v13 = vld [vmem:[%s845_s1 + $0xd8] sm:$0xff]   ;;  %v634_v17 = vld [vmem:[%s845_s1 + $0xe0] sm:$0xff]   ;;  %v638_v21 = vld [vmem:[%s845_s1 + $0xe8] sm:$0xff]  }
   0x7   :  { %v631_v14 = vld [vmem:[%s845_s1 + $0x18] sm:$0xff]   ;;  %v635_v18 = vld [vmem:[%s845_s1 + $0x20] sm:$0xff]   ;;  %v639_v22 = vld [vmem:[%s845_s1 + $0x28] sm:$0xff]  }
   0x8   :  { %563 = vmatpush3.bf16.msra.mxu0 %v623_v6  ;;  %v632_v15 = vld [vmem:[%s845_s1 + $0x98] sm:$0xff]   ;;  %v636_v19 = vld [vmem:[%s845_s1 + $0xa0] sm:$0xff]   ;;  %v640_v23 = vld [vmem:[%s845_s1 + $0xa8] sm:$0xff]  }
   0x9   :  { %591 = vmatpush3.bf16.msra.mxu1 %v624_v7  ;;  %564 = vmatprep.subr.bf16.mxu0 %v625_v8  ;;  %v641_v24 = vld [vmem:[%s845_s1 + $0x70] sm:$0xff]   ;;  %v645_v28 = vld [vmem:[%s845_s1 + $0x78] sm:$0xff]   ;;  %v24_v50 = vld [vmem:[#allocation2] sm:$0xff] }
   0xa   :  { %592 = vmatprep.subr.bf16.mxu1 %v626_v9  ;;  %v642_v25 = vld [vmem:[%s845_s1 + $0xf0] sm:$0xff]   ;;  %v646_v29 = vld [vmem:[%s845_s1 + $0xf8] sm:$0xff]   ;;  %v25_v55 = vld [vmem:[#allocation2 + $0x8] sm:$0xff] }
   0xb   :  { %v643_v26 = vld [vmem:[%s845_s1 + $0x30] sm:$0xff]   ;;  %v647_v30 = vld [vmem:[%s845_s1 + $0x38] sm:$0xff]  }
   0xc   :  { %565 = vmatpush3.bf16.msra.mxu0 %v627_v10  ;;  %v644_v27 = vld [vmem:[%s845_s1 + $0xb0] sm:$0xff]   ;;  %v648_v31 = vld [vmem:[%s845_s1 + $0xb8] sm:$0xff]  }
   0xd   :  { %593 = vmatpush3.bf16.msra.mxu1 %v628_v11  ;;  %566 = vmatprep.subr.bf16.mxu0 %v629_v12  ;;  %v649_v32 = vld [vmem:[%s846_s0] ss:$16 sps:$4 sm:$0xff]   ;;  %v651_v33 = vld [vmem:[%s846_s0 + $0x4] ss:$16 sps:$4 sm:$0xff]   ;;  %v652_v34 = vld [vmem:[%s846_s0 + $0x8] ss:$16 sps:$4 sm:$0xff]  }
   0xe   :  { %594 = vmatprep.subr.bf16.mxu1 %v630_v13  ;;  %v654_v35 = vld [vmem:[%s846_s0 + $0xc] ss:$16 sps:$4 sm:$0xff]   ;;  %364 = vmatprep.mubr.bf16.mxu0 %v651_v33  ;;  %v655_v36 = vld [vmem:[%s846_s0 + $0x24] ss:$16 sps:$4 sm:$0xff]   ;;  %v659_v38 = vld [vmem:[%s846_s0 + $0x20] ss:$16 sps:$4 sm:$0xff]  }
   0xf   :  { %413 = vmatprep.mubr.bf16.mxu1 %v654_v35  ;;  %v657_v37 = vld [vmem:[%s846_s0 + $0x2c] ss:$16 sps:$4 sm:$0xff]   ;;  %v660_v39 = vld [vmem:[%s846_s0 + $0x28] ss:$16 sps:$4 sm:$0xff]   ;;  %v26_v4 = vld [vmem:[#allocation2 + $0x10] sm:$0xff] }
  0x10   :  { %567 = vmatpush3.bf16.msra.mxu0 %v631_v14  ;;  %v27_v9 = vld [vmem:[#allocation2 + $0x18] sm:$0xff] }
  0x11   :  { %595 = vmatpush3.bf16.msra.mxu1 %v632_v15  ;;  %568 = vmatprep.subr.bf16.mxu0 %v633_v16 }
  0x12   :  { %596 = vmatprep.subr.bf16.mxu1 %v634_v17 }
  0x14   :  { %569 = vmatpush3.bf16.msra.mxu0 %v635_v18 }
  0x15   :  { %597 = vmatpush3.bf16.msra.mxu1 %v636_v19  ;;  %570 = vmatprep.subr.bf16.mxu0 %v637_v20 }
  0x16   :  { %598 = vmatprep.subr.bf16.mxu1 %v638_v21 }
  0x18   :  { %571 = vmatpush3.bf16.msra.mxu0 %v639_v22 }
  0x19   :  { %599 = vmatpush3.bf16.msra.mxu1 %v640_v23  ;;  %572 = vmatprep.subr.bf16.mxu0 %v641_v24 }
  0x1a   :  { %600 = vmatprep.subr.bf16.mxu1 %v642_v25 }
  0x1c   :  { %573 = vmatpush3.bf16.msra.mxu0 %v643_v26 }
  0x1d   :  { %601 = vmatpush3.bf16.msra.mxu1 %v644_v27  ;;  %574 = vmatprep.subr.bf16.mxu0 %v645_v28 }
  0x1e   :  { %602 = vmatprep.subr.bf16.mxu1 %v646_v29 }
  0x20   :  { %575 = vmatpush3.bf16.msra.mxu0 %v647_v30 }
  0x21   :  { %603 = vmatpush3.bf16.msra.mxu1 %v648_v31 }
  0x23   :  { %365 = vmatmul.mubr.bf16.vlgmr.msra.gmra.mrb[0].mxu0 %v649_v32 }
  0x24   :  { %414 = vmatmul.mubr.bf16.vlgmr.msra.gmra.mrb[0].mxu1 %v652_v34  ;;  %372 = vmatprep.mubr.bf16.mxu0 %v655_v36 }
  0x25   :  { %421 = vmatprep.mubr.bf16.mxu1 %v657_v37 }
  0x2b   :  { %373 = vmatmul.mubr.bf16.gmra.mrb[4].mxu0 %v659_v38 }
  0x2c   :  { %422 = vmatmul.mubr.bf16.gmra.mrb[4].mxu1 %v660_v39 }
  0xf6   :  { %v576_v41 = vpop.f32.mrb[0].mxu0 }
  0xf7   :  { %v604_v42 = vpop.f32.mrb[0].mxu1  ;;  %v577_v43 = vpop.f32.mrb[1].mxu0 }
  0xf8   :  { %v578_v44 = vadd.f32 %v577_v43, %v576_v41  ;;  %v605_v45 = vpop.f32.mrb[1].mxu1  ;;  %v579_v46 = vpop.f32.mrb[2].mxu0 }
  0xf9   :  { %v606_v47 = vadd.f32 %v605_v45, %v604_v42  ;;  %v607_v48 = vpop.f32.mrb[2].mxu1  ;;  %v580_v49 = vpop.f32.mrb[3].mxu0 }
  0xfa   :  { %v581_v51 = vadd.f32 %v580_v49, %v579_v46  ;;  %v608_v52 = vpop.f32.mrb[3].mxu1 }
  0xfb   :  { %v416_v53 = vadd.f32 %v606_v47, %v578_v44  ;;  %v609_v54 = vadd.f32 %v608_v52, %v607_v48 }
  0xfd   :  { %v430_v56 = vadd.f32 %v416_v53, %v24_v50  ;;  %v419_v57 = vadd.f32 %v609_v54, %v581_v51 }
  0xfe   :  { %v582_v58 = vpop.f32.mrb[4].mxu0 }
  0xff   :  { %435 = vst.msk [vmem:[#allocation2] sm:$0xff] %vm19_vm0, %v430_v56  ;;  %v431_v59 = vadd.f32 %v419_v57, %v25_v55  ;;  %v610_v60 = vpop.f32.mrb[4].mxu1  ;;  %v583_v61 = vpop.f32.mrb[5].mxu0 }
 0x100   :  { %v584_v62 = vadd.f32 %v583_v61, %v582_v58  ;;  %v611_v63 = vpop.f32.mrb[5].mxu1  ;;  %v585_v0 = vpop.f32.mrb[6].mxu0 }
 0x101   :  { %436 = vst.msk [vmem:[#allocation2 + $0x8] sm:$0xff] %vm19_vm0, %v431_v59  ;;  %v612_v1 = vadd.f32 %v611_v63, %v610_v60  ;;  %v613_v2 = vpop.f32.mrb[6].mxu1  ;;  %v586_v3 = vpop.f32.mrb[7].mxu0 }
 0x102   :  { %v587_v5 = vadd.f32 %v586_v3, %v585_v0  ;;  %v614_v6 = vpop.f32.mrb[7].mxu1 }
 0x103   :  { %v424_v7 = vadd.f32 %v612_v1, %v584_v62  ;;  %v615_v8 = vadd.f32 %v614_v6, %v613_v2 }
 0x105   :  { %v432_v10 = vadd.f32 %v424_v7, %v26_v4  ;;  %v427_v11 = vadd.f32 %v615_v8, %v587_v5 }
 0x106   :  { %v442_v12 = vld [vmem:[#allocation2] sm:$0xff] }
 0x107   :  { %v556_v13 = vpack.c.bf16 %v442_v12, %v442_v12  ;;  %437 = vst.msk [vmem:[#allocation2 + $0x10] sm:$0xff] %vm19_vm0, %v432_v10  ;;  %v433_v14 = vadd.f32 %v427_v11, %v27_v9  ;;  %v482_v18 = vmul.f32 %v442_v12, %v442_v12  ;;  %v467_v20 = vsel %vm19_vm0, %v442_v12, 0.0 }
 0x108   :  { %v443_v15 = vld [vmem:[#allocation2 + $0x8] sm:$0xff] }
 0x109   :  { %463 = vst.msk [vmem:[%s847_s2] sm:$0xf] %vm462_vm1, %v556_v13  ;;  %v557_v16 = vpack.c.bf16 %v443_v15, %v443_v15  ;;  %v483_v17 = vmul.f32 %v443_v15, %v443_v15  ;;  %v468_v19 = vsel %vm19_vm0, %v443_v15, 0.0  ;;  %v486_v24 = vsel %vm19_vm0, %v482_v18, 0.0 }
 0x10a   :  { %438 = vst.msk [vmem:[#allocation2 + $0x18] sm:$0xff] %vm19_vm0, %v433_v14  ;;  %v469_v22 = vadd.f32 %v468_v19, %v467_v20 }
 0x10b   :  { %464 = vst.msk [vmem:[%s847_s2 + $0x4] sm:$0xf] %vm462_vm1, %v557_v16  ;;  %v487_v21 = vsel %vm19_vm0, %v483_v17, 0.0 }
 0x10c   :  { %v488_v28 = vadd.f32 %v487_v21, %v486_v24 }
 0x10e   :  { %v444_v23 = vld [vmem:[#allocation2 + $0x10] sm:$0xff] }
 0x10f   :  { %v558_v25 = vpack.c.bf16 %v444_v23, %v444_v23  ;;  %v470_v26 = vsel %vm19_vm0, %v444_v23, 0.0  ;;  %v484_v27 = vmul.f32 %v444_v23, %v444_v23 }
 0x110   :  { %v471_v29 = vadd.f32 %v470_v26, %v469_v22 }
 0x111   :  { %v445_v30 = vld [vmem:[#allocation2 + $0x18] sm:$0xff]  ;;  %465 = vst.msk [vmem:[%s847_s2 + $0x8] sm:$0xf] %vm462_vm1, %v558_v25  ;;  %v489_v31 = vsel %vm19_vm0, %v484_v27, 0.0 }
 0x112   :  { %v559_v32 = vpack.c.bf16 %v445_v30, %v445_v30  ;;  %v472_v33 = vsel %vm19_vm0, %v445_v30, 0.0  ;;  %v485_v34 = vmul.f32 %v445_v30, %v445_v30  ;;  %v490_v35 = vadd.f32 %v489_v31, %v488_v28 }
 0x113   :  { %v473_v36 = vadd.f32 %v472_v33, %v471_v29 }
 0x114   :  { %466 = vst.msk [vmem:[%s847_s2 + $0xc] sm:$0xf] %vm462_vm1, %v559_v32  ;;  %v491_v37 = vsel %vm19_vm0, %v485_v34, 0.0 }
 0x115   :  { %v474_v38 = vrot.slane %v473_v36, 4  ;;  %v492_v39 = vadd.f32 %v491_v37, %v490_v35 }
 0x117   :  { %v475_v40 = vadd.f32 %v474_v38, %v473_v36  ;;  %v493_v41 = vrot.slane %v492_v39, 4 }
 0x119   :  { %v476_v42 = vrot.slane %v475_v40, 2  ;;  %v494_v43 = vadd.f32 %v493_v41, %v492_v39 }
 0x11b   :  { %v477_v44 = vadd.f32 %v476_v42, %v475_v40  ;;  %v495_v45 = vrot.slane %v494_v43, 2 }
 0x11d   :  { %v478_v46 = vrot.slane %v477_v44, 1  ;;  %v496_v47 = vadd.f32 %v495_v45, %v494_v43 }
 0x11f   :  { %v479_v48 = vadd.f32 %v478_v46, %v477_v44  ;;  %v497_v49 = vrot.slane %v496_v47, 1 }
 0x121   :  { %481 = vst.msk [vmem:[%s848_s3] sm:$0x1] %vm480_vm2, %v479_v48  ;;  %v498_v50 = vadd.f32 %v497_v49, %v496_v47 }
 0x123   :  { %499 = vst.msk [vmem:[%s849_s4] sm:$0x1] %vm480_vm2, %v498_v50 }

// kernel: _lambda_.15
= control target key start
LH: loop header
LB: loop body
LE: loop exit
PB: predicated region body
PF: predicated region fallthrough
CT: control target
= control target key end

     0   :  { %s1187_s1 = inlined_call_operand.vmem [shape: bf16[1024,128], index: 1, kind: input, shape index: {}]   ;;  %s1188_s0 = inlined_call_operand.vmem [shape: bf16[8,1024], index: 0, kind: input, shape index: {}]   ;;  %s1189_s2 = inlined_call_operand.vmem [shape: f32[8,128], index: 2, kind: output, shape index: {}]  }
   0x1   :  { %v893_v0 = vld [vmem:[%s1187_s1 + $0x40] sm:$0xff]   ;;  %v897_v4 = vld [vmem:[%s1187_s1 + $0x48] sm:$0xff]   ;;  %v901_v8 = vld [vmem:[%s1187_s1 + $0x50] sm:$0xff]  }
   0x2   :  { %v894_v1 = vld [vmem:[%s1187_s1 + $0xc0] sm:$0xff]   ;;  %805 = vmatprep.subr.bf16.mxu0 %v893_v0  ;;  %v898_v5 = vld [vmem:[%s1187_s1 + $0xc8] sm:$0xff]   ;;  %v902_v9 = vld [vmem:[%s1187_s1 + $0xd0] sm:$0xff]  }
   0x3   :  { %v895_v2 = vld [vmem:[%s1187_s1] sm:$0xff]   ;;  %827 = vmatprep.subr.bf16.mxu1 %v894_v1  ;;  %v899_v6 = vld [vmem:[%s1187_s1 + $0x8] sm:$0xff]   ;;  %v903_v10 = vld [vmem:[%s1187_s1 + $0x10] sm:$0xff]  }
   0x4   :  { %v896_v3 = vld [vmem:[%s1187_s1 + $0x80] sm:$0xff]   ;;  %806 = vmatpush3.bf16.msra.mxu0 %v895_v2  ;;  %v900_v7 = vld [vmem:[%s1187_s1 + $0x88] sm:$0xff]   ;;  %v904_v11 = vld [vmem:[%s1187_s1 + $0x90] sm:$0xff]  }
   0x5   :  { %828 = vmatpush3.bf16.msra.mxu1 %v896_v3  ;;  %807 = vmatprep.subr.bf16.mxu0 %v897_v4  ;;  %v905_v12 = vld [vmem:[%s1187_s1 + $0x58] sm:$0xff]   ;;  %v909_v16 = vld [vmem:[%s1187_s1 + $0x60] sm:$0xff]   ;;  %v913_v20 = vld [vmem:[%s1187_s1 + $0x68] sm:$0xff]  }
   0x6   :  { %829 = vmatprep.subr.bf16.mxu1 %v898_v5  ;;  %v906_v13 = vld [vmem:[%s1187_s1 + $0xd8] sm:$0xff]   ;;  %v910_v17 = vld [vmem:[%s1187_s1 + $0xe0] sm:$0xff]   ;;  %v914_v21 = vld [vmem:[%s1187_s1 + $0xe8] sm:$0xff]  }
   0x7   :  { %v907_v14 = vld [vmem:[%s1187_s1 + $0x18] sm:$0xff]   ;;  %v911_v18 = vld [vmem:[%s1187_s1 + $0x20] sm:$0xff]   ;;  %v915_v22 = vld [vmem:[%s1187_s1 + $0x28] sm:$0xff]  }
   0x8   :  { %808 = vmatpush3.bf16.msra.mxu0 %v899_v6  ;;  %v908_v15 = vld [vmem:[%s1187_s1 + $0x98] sm:$0xff]   ;;  %v912_v19 = vld [vmem:[%s1187_s1 + $0xa0] sm:$0xff]   ;;  %v916_v23 = vld [vmem:[%s1187_s1 + $0xa8] sm:$0xff]  }
   0x9   :  { %830 = vmatpush3.bf16.msra.mxu1 %v900_v7  ;;  %809 = vmatprep.subr.bf16.mxu0 %v901_v8  ;;  %v917_v24 = vld [vmem:[%s1187_s1 + $0x70] sm:$0xff]   ;;  %v921_v28 = vld [vmem:[%s1187_s1 + $0x78] sm:$0xff]   ;;  %v18_v32 = vld [vmem:[%s1188_s0] sm:$0xff] }
   0xa   :  { %831 = vmatprep.subr.bf16.mxu1 %v902_v9  ;;  %v918_v25 = vld [vmem:[%s1187_s1 + $0xf0] sm:$0xff]   ;;  %v922_v29 = vld [vmem:[%s1187_s1 + $0xf8] sm:$0xff]   ;;  %v19_v33 = vld [vmem:[%s1188_s0 + $0x8] sm:$0xff]  ;;  %v733_v34 = vcombine.low %v18_v32, %v18_v32  ;;  %v734_v35 = vcombine.high %v18_v32, %v18_v32 }
   0xb   :  { %v919_v26 = vld [vmem:[%s1187_s1 + $0x30] sm:$0xff]   ;;  %v923_v30 = vld [vmem:[%s1187_s1 + $0x38] sm:$0xff]   ;;  %v735_v36 = vcombine.low %v19_v33, %v19_v33  ;;  %v736_v37 = vcombine.high %v19_v33, %v19_v33  ;;  %v929_v38 = vld [vmem:[%s1187_s1 + $0x140] sm:$0xff]  }
   0xc   :  { %810 = vmatpush3.bf16.msra.mxu0 %v903_v10  ;;  %v920_v27 = vld [vmem:[%s1187_s1 + $0xb0] sm:$0xff]   ;;  %v924_v31 = vld [vmem:[%s1187_s1 + $0xb8] sm:$0xff]   ;;  %v930_v39 = vld [vmem:[%s1187_s1 + $0x1c0] sm:$0xff]   ;;  %594 = vmatprep.mubr.bf16.mxu0 %v734_v35 }
   0xd   :  { %832 = vmatpush3.bf16.msra.mxu1 %v904_v11  ;;  %811 = vmatprep.subr.bf16.mxu0 %v905_v12  ;;  %v931_v40 = vld [vmem:[%s1187_s1 + $0x100] sm:$0xff]   ;;  %v933_v42 = vld [vmem:[%s1187_s1 + $0x148] sm:$0xff]   ;;  %v937_v46 = vld [vmem:[%s1187_s1 + $0x150] sm:$0xff]  }
   0xe   :  { %833 = vmatprep.subr.bf16.mxu1 %v906_v13  ;;  %634 = vmatprep.mubr.bf16.mxu1 %v736_v37  ;;  %v932_v41 = vld [vmem:[%s1187_s1 + $0x180] sm:$0xff]   ;;  %v934_v43 = vld [vmem:[%s1187_s1 + $0x1c8] sm:$0xff]   ;;  %v938_v47 = vld [vmem:[%s1187_s1 + $0x1d0] sm:$0xff]  }
   0xf   :  { %v935_v44 = vld [vmem:[%s1187_s1 + $0x108] sm:$0xff]   ;;  %v939_v48 = vld [vmem:[%s1187_s1 + $0x110] sm:$0xff]   ;;  %v941_v50 = vld [vmem:[%s1187_s1 + $0x158] sm:$0xff]  }
  0x10   :  { %812 = vmatpush3.bf16.msra.mxu0 %v907_v14  ;;  %v936_v45 = vld [vmem:[%s1187_s1 + $0x188] sm:$0xff]   ;;  %v940_v49 = vld [vmem:[%s1187_s1 + $0x190] sm:$0xff]   ;;  %v942_v51 = vld [vmem:[%s1187_s1 + $0x1d8] sm:$0xff]  }
  0x11   :  { %834 = vmatpush3.bf16.msra.mxu1 %v908_v15  ;;  %813 = vmatprep.subr.bf16.mxu0 %v909_v16  ;;  %v943_v52 = vld [vmem:[%s1187_s1 + $0x118] sm:$0xff]   ;;  %v945_v54 = vld [vmem:[%s1187_s1 + $0x160] sm:$0xff]   ;;  %v949_v58 = vld [vmem:[%s1187_s1 + $0x168] sm:$0xff]  }
  0x12   :  { %835 = vmatprep.subr.bf16.mxu1 %v910_v17  ;;  %v944_v53 = vld [vmem:[%s1187_s1 + $0x198] sm:$0xff]   ;;  %v946_v55 = vld [vmem:[%s1187_s1 + $0x1e0] sm:$0xff]   ;;  %v950_v59 = vld [vmem:[%s1187_s1 + $0x1e8] sm:$0xff]  }
  0x13   :  { %v947_v56 = vld [vmem:[%s1187_s1 + $0x120] sm:$0xff]   ;;  %v951_v60 = vld [vmem:[%s1187_s1 + $0x128] sm:$0xff]   ;;  %v953_v62 = vld [vmem:[%s1187_s1 + $0x170] sm:$0xff]  }
  0x14   :  { %814 = vmatpush3.bf16.msra.mxu0 %v911_v18  ;;  %v948_v57 = vld [vmem:[%s1187_s1 + $0x1a0] sm:$0xff]   ;;  %v952_v61 = vld [vmem:[%s1187_s1 + $0x1a8] sm:$0xff]   ;;  %v954_v63 = vld [vmem:[%s1187_s1 + $0x1f0] sm:$0xff]  }
  0x15   :  { %836 = vmatpush3.bf16.msra.mxu1 %v912_v19  ;;  %815 = vmatprep.subr.bf16.mxu0 %v913_v20  ;;  %v955_v0 = vld [vmem:[%s1187_s1 + $0x130] sm:$0xff]   ;;  %v957_v2 = vld [vmem:[%s1187_s1 + $0x178] sm:$0xff]  }
  0x16   :  { %837 = vmatprep.subr.bf16.mxu1 %v914_v21  ;;  %v956_v1 = vld [vmem:[%s1187_s1 + $0x1b0] sm:$0xff]   ;;  %v958_v3 = vld [vmem:[%s1187_s1 + $0x1f8] sm:$0xff]  }
  0x17   :  { %v959_v4 = vld [vmem:[%s1187_s1 + $0x138] sm:$0xff]   ;;  %v20_v6 = vld [vmem:[%s1188_s0 + $0x10] sm:$0xff] }
  0x18   :  { %816 = vmatpush3.bf16.msra.mxu0 %v915_v22  ;;  %v960_v5 = vld [vmem:[%s1187_s1 + $0x1b8] sm:$0xff]   ;;  %v737_v7 = vcombine.low %v20_v6, %v20_v6  ;;  %v738_v8 = vcombine.high %v20_v6, %v20_v6 }
  0x19   :  { %838 = vmatpush3.bf16.msra.mxu1 %v916_v23  ;;  %817 = vmatprep.subr.bf16.mxu0 %v917_v24  ;;  %v21_v9 = vld [vmem:[%s1188_s0 + $0x18] sm:$0xff] }
  0x1a   :  { %839 = vmatprep.subr.bf16.mxu1 %v918_v25  ;;  %v739_v10 = vcombine.low %v21_v9, %v21_v9  ;;  %v740_v11 = vcombine.high %v21_v9, %v21_v9 }
  0x1c   :  { %818 = vmatpush3.bf16.msra.mxu0 %v919_v26 }
  0x1d   :  { %840 = vmatpush3.bf16.msra.mxu1 %v920_v27  ;;  %819 = vmatprep.subr.bf16.mxu0 %v921_v28 }
  0x1e   :  { %841 = vmatprep.subr.bf16.mxu1 %v922_v29 }
  0x20   :  { %820 = vmatpush3.bf16.msra.mxu0 %v923_v30 }
  0x21   :  { %842 = vmatpush3.bf16.msra.mxu1 %v924_v31  ;;  %849 = vmatprep.subr.bf16.mxu0 %v929_v38 }
  0x22   :  { %871 = vmatprep.subr.bf16.mxu1 %v930_v39 }
  0x23   :  { %595 = vmatmul.mubr.bf16.vlgmr.msra.gmra.mrb[0].mxu0 %v733_v34 }
  0x24   :  { %635 = vmatmul.mubr.bf16.vlgmr.msra.gmra.mrb[0].mxu1 %v735_v36  ;;  %850 = vmatpush3.bf16.msra.mxu0 %v931_v40 }
  0x25   :  { %872 = vmatpush3.bf16.msra.mxu1 %v932_v41  ;;  %851 = vmatprep.subr.bf16.mxu0 %v933_v42 }
  0x26   :  { %873 = vmatprep.subr.bf16.mxu1 %v934_v43  ;;  %674 = vmatprep.mubr.bf16.mxu0 %v738_v8 }
  0x27   :  { %714 = vmatprep.mubr.bf16.mxu1 %v740_v11 }
  0x28   :  { %852 = vmatpush3.bf16.msra.mxu0 %v935_v44 }
  0x29   :  { %874 = vmatpush3.bf16.msra.mxu1 %v936_v45  ;;  %853 = vmatprep.subr.bf16.mxu0 %v937_v46 }
  0x2a   :  { %875 = vmatprep.subr.bf16.mxu1 %v938_v47 }
  0x2c   :  { %854 = vmatpush3.bf16.msra.mxu0 %v939_v48 }
  0x2d   :  { %876 = vmatpush3.bf16.msra.mxu1 %v940_v49  ;;  %855 = vmatprep.subr.bf16.mxu0 %v941_v50 }
  0x2e   :  { %877 = vmatprep.subr.bf16.mxu1 %v942_v51 }
  0x30   :  { %856 = vmatpush3.bf16.msra.mxu0 %v943_v52 }
  0x31   :  { %878 = vmatpush3.bf16.msra.mxu1 %v944_v53  ;;  %857 = vmatprep.subr.bf16.mxu0 %v945_v54 }
  0x32   :  { %879 = vmatprep.subr.bf16.mxu1 %v946_v55 }
  0x34   :  { %858 = vmatpush3.bf16.msra.mxu0 %v947_v56 }
  0x35   :  { %880 = vmatpush3.bf16.msra.mxu1 %v948_v57  ;;  %859 = vmatprep.subr.bf16.mxu0 %v949_v58 }
  0x36   :  { %881 = vmatprep.subr.bf16.mxu1 %v950_v59 }
  0x38   :  { %860 = vmatpush3.bf16.msra.mxu0 %v951_v60 }
  0x39   :  { %882 = vmatpush3.bf16.msra.mxu1 %v952_v61  ;;  %861 = vmatprep.subr.bf16.mxu0 %v953_v62 }
  0x3a   :  { %883 = vmatprep.subr.bf16.mxu1 %v954_v63 }
  0x3c   :  { %862 = vmatpush3.bf16.msra.mxu0 %v955_v0 }
  0x3d   :  { %884 = vmatpush3.bf16.msra.mxu1 %v956_v1  ;;  %863 = vmatprep.subr.bf16.mxu0 %v957_v2 }
  0x3e   :  { %885 = vmatprep.subr.bf16.mxu1 %v958_v3 }
  0x40   :  { %864 = vmatpush3.bf16.msra.mxu0 %v959_v4 }
  0x41   :  { %886 = vmatpush3.bf16.msra.mxu1 %v960_v5 }
  0x43   :  { %675 = vmatmul.mubr.bf16.vlgmr.msra.gmra.mrb[4].mxu0 %v737_v7 }
  0x44   :  { %715 = vmatmul.mubr.bf16.vlgmr.msra.gmra.mrb[4].mxu1 %v739_v10 }
  0xf6   :  { %v821_v12 = vpop.f32.mrb[0].mxu0 }
  0xf7   :  { %v843_v13 = vpop.f32.mrb[0].mxu1  ;;  %v822_v14 = vpop.f32.mrb[1].mxu0 }
  0xf8   :  { %v844_v15 = vpop.f32.mrb[1].mxu1  ;;  %v823_v16 = vadd.f32 %v822_v14, %v821_v12  ;;  %v824_v18 = vpop.f32.mrb[2].mxu0 }
  0xf9   :  { %v845_v17 = vadd.f32 %v844_v15, %v843_v13  ;;  %v846_v19 = vpop.f32.mrb[2].mxu1  ;;  %v825_v20 = vpop.f32.mrb[3].mxu0 }
  0xfa   :  { %v847_v21 = vpop.f32.mrb[3].mxu1 }
  0xfb   :  { %v637_v22 = vadd.f32 %v845_v17, %v823_v16 }
 0x116   :  { %v865_v23 = vpop.f32.mrb[4].mxu0 }
 0x117   :  { %v887_v24 = vpop.f32.mrb[4].mxu1  ;;  %v866_v25 = vpop.f32.mrb[5].mxu0 }
 0x118   :  { %v888_v26 = vpop.f32.mrb[5].mxu1  ;;  %v867_v27 = vadd.f32 %v866_v25, %v865_v23  ;;  %v868_v29 = vpop.f32.mrb[6].mxu0 }
 0x119   :  { %v889_v28 = vadd.f32 %v888_v26, %v887_v24  ;;  %v890_v30 = vpop.f32.mrb[6].mxu1  ;;  %v869_v31 = vpop.f32.mrb[7].mxu0 }
 0x11a   :  { %v891_v32 = vpop.f32.mrb[7].mxu1  ;;  %v677_v33 = vadd.f32 %v867_v27, %v637_v22 }
 0x11c   :  { %v717_v34 = vadd.f32 %v889_v28, %v677_v33 }
 0x11e   :  { %728 = vst [vmem:[%s1189_s2] sm:$0xff] %v717_v34 }

</bundles_post_ra>
